<compile_context>
chip_gen: v6e
topology: v6e:2x2x1
jax: 0.10.0
libtpu: 0.0.40
codegen_flags: <defaults>
</compile_context>

<pallas_src>
import jax
import jax.numpy as jnp
import numpy as np
from jax import lax
from jax.experimental import pallas as pl
from jax.experimental.pallas import tpu as pltpu

BOARD = 16          # config['game_size']
C_IN = 4            # config['num_history']
C_MID = 5           # fixed by the module
ENC = 32            # config['encoding_dim']
ENC_PAD = 128       # lane-dense padded FC output width (sliced back to ENC)
EPS = 1e-5          # nn.BatchNorm2d default eps
HW = BOARD * BOARD  # 256


# ---------------------------------------------------------------------------
# Pallas kernel: whole encoder = 4 lane-dense bf16 MXU matmuls + bias + ReLU
# ---------------------------------------------------------------------------
def encoder_kernel(x_ref, w1_ref, b1_ref, w2_ref, b2_ref, w3_ref, b3_ref,
                   wfc_ref, bfc_ref, out_ref):

    def dense_relu(h, w_ref, b_ref, out_dtype):
        # bf16 x bf16 -> f32 accumulation (native MXU path, no multipass).
        y = jnp.dot(h, w_ref[...], preferred_element_type=jnp.float32)
        return jnp.maximum(y + b_ref[...], 0.0).astype(out_dtype)

    h = dense_relu(x_ref[...], w1_ref, b1_ref, jnp.bfloat16)   # conv1+bn1+relu
    h = dense_relu(h, w2_ref, b2_ref, jnp.bfloat16)            # conv2+bn2+relu
    h = dense_relu(h, w3_ref, b3_ref, jnp.bfloat16)            # conv3+bn3+relu
    # TODO(synk): Dropout2d(0.1) is identity in eval/inference mode; stochastic
    # training-mode channel dropout is not implemented here.
    out_ref[...] = dense_relu(h, wfc_ref, bfc_ref, out_ref.dtype)  # fc + relu


# ---------------------------------------------------------------------------
# Wrapper
# ---------------------------------------------------------------------------
def _cdiv(a, b):
    return -(-a // b)


def _round_up(n, m):
    return _cdiv(n, m) * m


def _batch_tiling(B, max_batch_tile):
    """Balanced batch tiles: padding <= 15 rows, and >= 2 grid steps whenever
    there is enough batch so v7x's second TensorCore gets work."""
    n_tiles = _cdiv(B, max_batch_tile)
    if B >= 32:
        n_tiles = max(n_tiles, 2)
    tb = _round_up(_cdiv(B, n_tiles), 16)   # bf16-friendly sublane multiple
    n_tiles = _cdiv(B, tb)
    return tb, n_tiles


def simple_conv_encoder(x, folded_params, *, max_batch_tile=512,
                        vmem_limit_bytes=32 * 1024 * 1024):
    """x: (B, C_IN, 16, 16) float32 -> (B, ENC) float32."""
    (w1m, b1v, w2m, b2v, w3m, b3v, wfc_p, bfc_p) = folded_params
    B = x.shape[0]
    # NCHW flatten (ci*256 + h*16 + w) -> lane-dense (B, 1024) bf16 input slab.
    x_flat = x.reshape(B, C_IN * HW).astype(jnp.bfloat16)

    tb, n_tiles = _batch_tiling(B, max_batch_tile)
    b_pad = tb * n_tiles
    if b_pad != B:
        x_flat = jnp.pad(x_flat, ((0, b_pad - B), (0, 0)))

    def const_spec(arr):
        # Constant block index -> stays VMEM-resident across grid steps;
        # single buffer (no pointless double-buffering of the weight slab).
        return pl.BlockSpec(arr.shape, lambda i: (0, 0),
                            pipeline_mode=pl.Buffered(1))

    out = pl.pallas_call(
        encoder_kernel,
        out_shape=jax.ShapeDtypeStruct((b_pad, ENC_PAD), jnp.float32),
        grid_spec=pltpu.PrefetchScalarGridSpec(
            num_scalar_prefetch=0,
            grid=(n_tiles,),
            in_specs=[
                pl.BlockSpec((tb, C_IN * HW), lambda i: (i, 0)),
                const_spec(w1m), const_spec(b1v),
                const_spec(w2m), const_spec(b2v),
                const_spec(w3m), const_spec(b3v),
                const_spec(wfc_p), const_spec(bfc_p),
            ],
            out_specs=pl.BlockSpec((tb, ENC_PAD), lambda i: (i, 0)),
        ),
        compiler_params=pltpu.CompilerParams(
            dimension_semantics=("parallel",),
            vmem_limit_bytes=int(vmem_limit_bytes)),
    )(x_flat, w1m, b1v, w2m, b2v, w3m, b3v, wfc_p, bfc_p)
    return out[:B, :ENC]


# ---------------------------------------------------------------------------
# Parameter folding (host-side, exact in f32, stored bf16):
#   3x3/pad-1 conv + conv bias + eval-mode BN  ->  dense matrix + bias row
# ---------------------------------------------------------------------------
def _shift_basis_np():
    """A[ky, kx, p, q] = 1 iff (h_p, w_p) == (h_q + ky - 1, w_q + kx - 1)."""
    h = np.repeat(np.arange(BOARD), BOARD)   # h of flat index (h*16 + w)
    w = np.tile(np.arange(BOARD), BOARD)     # w of flat index
    A = np.zeros((3, 3, HW, HW), np.float32)
    for ky in range(3):
        for kx in range(3):
            dy, dx = ky - 1, kx - 1
            cond = ((h[:, None] == h[None, :] + dy)
                    & (w[:, None] == w[None, :] + dx))
            A[ky, kx] = cond.astype(np.float32)
    return A


def _fold_conv_bn(conv_w, conv_b, bn, shift_basis):
    """Fold conv + eval-BN into bf16 (cin*HW, cout*HW) matrix + f32 bias row."""
    gamma, beta, mean, var = (np.asarray(t, np.float32) for t in bn)
    w = np.asarray(conv_w, np.float32)
    b = np.asarray(conv_b, np.float32)
    scale = gamma / np.sqrt(var + EPS)                       # (cout,)
    bias = beta + scale * (b - mean)                         # (cout,)
    # m[i, p, o, q] = sum_{ky,kx} w[o,i,ky,kx] * A[ky,kx,p,q] (exact: at most
    # one nonzero term per (p, q)), with the BN scale folded into the columns.
    m = np.einsum('oikl,klpq->ipoq', w, shift_basis)
    m = m * scale[None, None, :, None]
    cout, cin = w.shape[0], w.shape[1]
    mat = np.ascontiguousarray(m.reshape(cin * HW, cout * HW))
    bias_row = np.repeat(bias, HW).reshape(1, cout * HW)
    return (jnp.asarray(mat, dtype=jnp.bfloat16),
            jnp.asarray(bias_row, dtype=jnp.float32))


def init_params(key):
    ks = jax.random.split(key, 16)

    def conv_p(kw, kb, cout, cin):
        w = 0.2 * jax.random.normal(kw, (cout, cin, 3, 3), jnp.float32)
        b = 0.1 * jax.random.normal(kb, (cout,), jnp.float32)
        return w, b

    def bn_p(k, c):
        k1, k2, k3, k4 = jax.random.split(k, 4)
        gamma = 1.0 + 0.1 * jax.random.normal(k1, (c,), jnp.float32)
        beta = 0.1 * jax.random.normal(k2, (c,), jnp.float32)
        mean = 0.1 * jax.random.normal(k3, (c,), jnp.float32)
        var = 1.0 + 0.1 * jax.random.uniform(k4, (c,), jnp.float32)
        return gamma, beta, mean, var

    w1, b1 = conv_p(ks[0], ks[1], C_MID, C_IN)
    w2, b2 = conv_p(ks[2], ks[3], C_MID, C_MID)
    w3, b3 = conv_p(ks[4], ks[5], C_MID, C_MID)
    bn1 = bn_p(ks[6], C_MID)
    bn2 = bn_p(ks[7], C_MID)
    bn3 = bn_p(ks[8], C_MID)
    wfc = 0.03 * jax.random.normal(ks[9], (ENC, C_MID * HW), jnp.float32)
    bfc = 0.1 * jax.random.normal(ks[10], (ENC,), jnp.float32)

    raw = dict(w1=w1, b1=b1, w2=w2, b2=b2, w3=w3, b3=b3,
               bn1=bn1, bn2=bn2, bn3=bn3, wfc=wfc, bfc=bfc)

    A = _shift_basis_np()
    w1m, b1v = _fold_conv_bn(w1, b1, bn1, A)
    w2m, b2v = _fold_conv_bn(w2, b2, bn2, A)
    w3m, b3v = _fold_conv_bn(w3, b3, bn3, A)

    # FC weight transposed + padded to a lane-dense 128-wide output, bf16.
    wfc_p = np.zeros((C_MID * HW, ENC_PAD), np.float32)
    wfc_p[:, :ENC] = np.asarray(wfc, np.float32).T
    bfc_p = np.zeros((1, ENC_PAD), np.float32)
    bfc_p[0, :ENC] = np.asarray(bfc, np.float32)

    folded = (w1m, b1v, w2m, b2v, w3m, b3v,
              jnp.asarray(wfc_p, dtype=jnp.bfloat16),
              jnp.asarray(bfc_p, dtype=jnp.float32))
    return raw, folded


# ---------------------------------------------------------------------------
# Pure-JAX reference (true conv / BN / FC path, f32) for correctness checking
# ---------------------------------------------------------------------------
def reference_forward(x, p):
    hi = lax.Precision.HIGHEST

    def conv(x, w, b):
        y = lax.conv_general_dilated(
            x, w, (1, 1), ((1, 1), (1, 1)),
            dimension_numbers=('NCHW', 'OIHW', 'NCHW'), precision=hi)
        return y + b[None, :, None, None]

    def bn(x, params):
        g, bta, m, v = params
        return (g[None, :, None, None] * (x - m[None, :, None, None])
                / jnp.sqrt(v[None, :, None, None] + EPS)
                + bta[None, :, None, None])

    x = jax.nn.relu(bn(conv(x, p['w1'], p['b1']), p['bn1']))
    x = jax.nn.relu(bn(conv(x, p['w2'], p['b2']), p['bn2']))
    x = jax.nn.relu(bn(conv(x, p['w3'], p['b3']), p['bn3']))
    # dropout: identity (eval mode)
    x = x.reshape(x.shape[0], -1)
    x = jax.nn.relu(jnp.dot(x, p['wfc'].T, precision=hi) + p['bfc'])
    return x


# ---------------------------------------------------------------------------
if __name__ == "__main__":
    key = jax.random.PRNGKey(0)
    kx, kp = jax.random.split(key)
    x = jax.random.normal(kx, (2, C_IN, BOARD, BOARD), jnp.float32)

    raw, folded = init_params(kp)

    out = simple_conv_encoder(x, folded)
    out = jax.block_until_ready(out)
    assert out.shape == (2, ENC) and out.dtype == jnp.float32

    ref = np.asarray(reference_forward(x, raw))
    got = np.asarray(out)
    # bf16 operands (f32 accumulation) vs. f32 reference: expect <~1e-2 abs dev.
    if not np.allclose(got, ref, rtol=3e-2, atol=3e-2):
        raise AssertionError(
            f"Pallas output mismatch, max abs diff = {np.max(np.abs(got - ref))}")

    print("KERNEL_OK")
</pallas_src>

<mosaic_0001>
module attributes {stable_mosaic.version = 11 : i64} {
  func.func @encoder_kernel(%arg0: i32, %arg1: memref<16x1024xbf16, #tpu.memory_space<vmem>>, %arg2: memref<1024x1280xbf16, #tpu.memory_space<vmem>>, %arg3: memref<1x1280xf32, #tpu.memory_space<vmem>>, %arg4: memref<1280x1280xbf16, #tpu.memory_space<vmem>>, %arg5: memref<1x1280xf32, #tpu.memory_space<vmem>>, %arg6: memref<1280x1280xbf16, #tpu.memory_space<vmem>>, %arg7: memref<1x1280xf32, #tpu.memory_space<vmem>>, %arg8: memref<1280x128xbf16, #tpu.memory_space<vmem>>, %arg9: memref<1x128xf32, #tpu.memory_space<vmem>>, %arg10: memref<16x128xf32, #tpu.memory_space<vmem>>) attributes {dimension_semantics = [#tpu.dimension_semantics<parallel>], iteration_bounds = array<i64: 1>, scalar_prefetch = 0 : i64, scratch_operands = 0 : i64, tpu.core_type = #tpu.core_type<tc>, window_params = [{transform_indices = @transform_0, window_bounds = array<i64: 16, 1024>}, {pipeline_mode = #tpu.pipeline_mode<synchronous>, transform_indices = @transform_1, window_bounds = array<i64: 1024, 1280>}, {pipeline_mode = #tpu.pipeline_mode<synchronous>, transform_indices = @transform_2, window_bounds = array<i64: 1, 1280>}, {pipeline_mode = #tpu.pipeline_mode<synchronous>, transform_indices = @transform_3, window_bounds = array<i64: 1280, 1280>}, {pipeline_mode = #tpu.pipeline_mode<synchronous>, transform_indices = @transform_4, window_bounds = array<i64: 1, 1280>}, {pipeline_mode = #tpu.pipeline_mode<synchronous>, transform_indices = @transform_5, window_bounds = array<i64: 1280, 1280>}, {pipeline_mode = #tpu.pipeline_mode<synchronous>, transform_indices = @transform_6, window_bounds = array<i64: 1, 1280>}, {pipeline_mode = #tpu.pipeline_mode<synchronous>, transform_indices = @transform_7, window_bounds = array<i64: 1280, 128>}, {pipeline_mode = #tpu.pipeline_mode<synchronous>, transform_indices = @transform_8, window_bounds = array<i64: 1, 128>}, {transform_indices = @transform_9, window_bounds = array<i64: 16, 128>}]} {
    %c0 = arith.constant 0 : index
    %c0_0 = arith.constant 0 : index
    %0 = vector.load %arg1[%c0, %c0_0] : memref<16x1024xbf16, #tpu.memory_space<vmem>>, vector<16x1024xbf16>
    %c0_1 = arith.constant 0 : index
    %c0_2 = arith.constant 0 : index
    %1 = vector.load %arg2[%c0_1, %c0_2] : memref<1024x1280xbf16, #tpu.memory_space<vmem>>, vector<1024x1280xbf16>
    %cst = arith.constant dense<0.000000e+00> : vector<16x1280xf32>
    %2 = tpu.matmul %0, %1, %cst {dimension_numbers = #tpu.dot_dimension_numbers<[1], [0], [0], [1], [0, 0, 1, 1], [], []>} : vector<16x1024xbf16>, vector<1024x1280xbf16>, vector<16x1280xf32> -> vector<16x1280xf32>
    %c0_3 = arith.constant 0 : index
    %c0_4 = arith.constant 0 : index
    %3 = vector.load %arg3[%c0_3, %c0_4] : memref<1x1280xf32, #tpu.memory_space<vmem>>, vector<1x1280xf32>
    %4 = vector.broadcast %3 : vector<1x1280xf32> to vector<16x1280xf32>
    %5 = arith.addf %2, %4 : vector<16x1280xf32>
    %cst_5 = arith.constant 0.000000e+00 : f32
    %6 = vector.broadcast %cst_5 : f32 to vector<16x1280xf32>
    %7 = arith.maximumf %5, %6 : vector<16x1280xf32>
    %8 = arith.truncf %7 : vector<16x1280xf32> to vector<16x1280xbf16>
    %c0_6 = arith.constant 0 : index
    %c0_7 = arith.constant 0 : index
    %9 = vector.load %arg4[%c0_6, %c0_7] : memref<1280x1280xbf16, #tpu.memory_space<vmem>>, vector<1280x1280xbf16>
    %cst_8 = arith.constant dense<0.000000e+00> : vector<16x1280xf32>
    %10 = tpu.matmul %8, %9, %cst_8 {dimension_numbers = #tpu.dot_dimension_numbers<[1], [0], [0], [1], [0, 0, 1, 1], [], []>} : vector<16x1280xbf16>, vector<1280x1280xbf16>, vector<16x1280xf32> -> vector<16x1280xf32>
    %c0_9 = arith.constant 0 : index
    %c0_10 = arith.constant 0 : index
    %11 = vector.load %arg5[%c0_9, %c0_10] : memref<1x1280xf32, #tpu.memory_space<vmem>>, vector<1x1280xf32>
    %12 = vector.broadcast %11 : vector<1x1280xf32> to vector<16x1280xf32>
    %13 = arith.addf %10, %12 : vector<16x1280xf32>
    %cst_11 = arith.constant 0.000000e+00 : f32
    %14 = vector.broadcast %cst_11 : f32 to vector<16x1280xf32>
    %15 = arith.maximumf %13, %14 : vector<16x1280xf32>
    %16 = arith.truncf %15 : vector<16x1280xf32> to vector<16x1280xbf16>
    %c0_12 = arith.constant 0 : index
    %c0_13 = arith.constant 0 : index
    %17 = vector.load %arg6[%c0_12, %c0_13] : memref<1280x1280xbf16, #tpu.memory_space<vmem>>, vector<1280x1280xbf16>
    %cst_14 = arith.constant dense<0.000000e+00> : vector<16x1280xf32>
    %18 = tpu.matmul %16, %17, %cst_14 {dimension_numbers = #tpu.dot_dimension_numbers<[1], [0], [0], [1], [0, 0, 1, 1], [], []>} : vector<16x1280xbf16>, vector<1280x1280xbf16>, vector<16x1280xf32> -> vector<16x1280xf32>
    %c0_15 = arith.constant 0 : index
    %c0_16 = arith.constant 0 : index
    %19 = vector.load %arg7[%c0_15, %c0_16] : memref<1x1280xf32, #tpu.memory_space<vmem>>, vector<1x1280xf32>
    %20 = vector.broadcast %19 : vector<1x1280xf32> to vector<16x1280xf32>
    %21 = arith.addf %18, %20 : vector<16x1280xf32>
    %cst_17 = arith.constant 0.000000e+00 : f32
    %22 = vector.broadcast %cst_17 : f32 to vector<16x1280xf32>
    %23 = arith.maximumf %21, %22 : vector<16x1280xf32>
    %24 = arith.truncf %23 : vector<16x1280xf32> to vector<16x1280xbf16>
    %c0_18 = arith.constant 0 : index
    %c0_19 = arith.constant 0 : index
    %25 = vector.load %arg8[%c0_18, %c0_19] : memref<1280x128xbf16, #tpu.memory_space<vmem>>, vector<1280x128xbf16>
    %cst_20 = arith.constant dense<0.000000e+00> : vector<16x128xf32>
    %26 = tpu.matmul %24, %25, %cst_20 {dimension_numbers = #tpu.dot_dimension_numbers<[1], [0], [0], [1], [0, 0, 1, 1], [], []>} : vector<16x1280xbf16>, vector<1280x128xbf16>, vector<16x128xf32> -> vector<16x128xf32>
    %c0_21 = arith.constant 0 : index
    %c0_22 = arith.constant 0 : index
    %27 = vector.load %arg9[%c0_21, %c0_22] : memref<1x128xf32, #tpu.memory_space<vmem>>, vector<1x128xf32>
    %28 = vector.broadcast %27 : vector<1x128xf32> to vector<16x128xf32>
    %29 = arith.addf %26, %28 : vector<16x128xf32>
    %cst_23 = arith.constant 0.000000e+00 : f32
    %30 = vector.broadcast %cst_23 : f32 to vector<16x128xf32>
    %31 = arith.maximumf %29, %30 : vector<16x128xf32>
    %c0_24 = arith.constant 0 : index
    %c0_25 = arith.constant 0 : index
    %32 = vector.load %arg10[%c0_24, %c0_25] : memref<16x128xf32, #tpu.memory_space<vmem>>, vector<16x128xf32>
    tpu.vector_store %arg10[%c0_24, %c0_25], %31 {strides = array<i32>} : memref<16x128xf32, #tpu.memory_space<vmem>>, vector<16x128xf32>,
    return
  }
  func.func @transform_0(%arg0: i32) -> (i32, i32) {
    %c0_i32 = arith.constant 0 : i32
    %c0_i32_0 = arith.constant 0 : i32
    return %arg0, %c0_i32 : i32, i32
  }
  func.func @transform_1(%arg0: i32) -> (i32, i32) {
    %c0_i32 = arith.constant 0 : i32
    %c0_i32_0 = arith.constant 0 : i32
    %c0_i32_1 = arith.constant 0 : i32
    return %c0_i32, %c0_i32_0 : i32, i32
  }
  func.func @transform_2(%arg0: i32) -> (i32, i32) {
    %c0_i32 = arith.constant 0 : i32
    %c0_i32_0 = arith.constant 0 : i32
    %c0_i32_1 = arith.constant 0 : i32
    return %c0_i32, %c0_i32_0 : i32, i32
  }
  func.func @transform_3(%arg0: i32) -> (i32, i32) {
    %c0_i32 = arith.constant 0 : i32
    %c0_i32_0 = arith.constant 0 : i32
    %c0_i32_1 = arith.constant 0 : i32
    return %c0_i32, %c0_i32_0 : i32, i32
  }
  func.func @transform_4(%arg0: i32) -> (i32, i32) {
    %c0_i32 = arith.constant 0 : i32
    %c0_i32_0 = arith.constant 0 : i32
    %c0_i32_1 = arith.constant 0 : i32
    return %c0_i32, %c0_i32_0 : i32, i32
  }
  func.func @transform_5(%arg0: i32) -> (i32, i32) {
    %c0_i32 = arith.constant 0 : i32
    %c0_i32_0 = arith.constant 0 : i32
    %c0_i32_1 = arith.constant 0 : i32
    return %c0_i32, %c0_i32_0 : i32, i32
  }
  func.func @transform_6(%arg0: i32) -> (i32, i32) {
    %c0_i32 = arith.constant 0 : i32
    %c0_i32_0 = arith.constant 0 : i32
    %c0_i32_1 = arith.constant 0 : i32
    return %c0_i32, %c0_i32_0 : i32, i32
  }
  func.func @transform_7(%arg0: i32) -> (i32, i32) {
    %c0_i32 = arith.constant 0 : i32
    %c0_i32_0 = arith.constant 0 : i32
    %c0_i32_1 = arith.constant 0 : i32
    return %c0_i32, %c0_i32_0 : i32, i32
  }
  func.func @transform_8(%arg0: i32) -> (i32, i32) {
    %c0_i32 = arith.constant 0 : i32
    %c0_i32_0 = arith.constant 0 : i32
    %c0_i32_1 = arith.constant 0 : i32
    return %c0_i32, %c0_i32_0 : i32, i32
  }
  func.func @transform_9(%arg0: i32) -> (i32, i32) {
    %c0_i32 = arith.constant 0 : i32
    %c0_i32_0 = arith.constant 0 : i32
    return %arg0, %c0_i32 : i32, i32
  }
}

</mosaic_0001>

<bundles_post_ra>
// kernel: tpu_custom_call.1
= control target key start
LH: loop header
LB: loop body
LE: loop exit
PB: predicated region body
PF: predicated region fallthrough
CT: control target
= control target key end

     0   :  { %14 = vsyncpa [#allocation3], 0  ;;  %s24690_s0 = inlined_call_operand.hbm [shape: bf16[16,1024], index: 0, kind: input, shape index: {}]   ;;  %s24691_s1 = inlined_call_operand.hbm [shape: bf16[1024,1280], index: 1, kind: input, shape index: {}]   ;;  %s24692_s2 = inlined_call_operand.hbm [shape: f32[1,1280], index: 2, kind: input, shape index: {}]   ;;  %s24693_s3 = inlined_call_operand.hbm [shape: bf16[1280,1280], index: 3, kind: input, shape index: {}]   ;;  %s24694_s4 = inlined_call_operand.hbm [shape: f32[1,1280], index: 4, kind: input, shape index: {}]   ;;  %s24695_s5 = inlined_call_operand.hbm [shape: bf16[1280,1280], index: 5, kind: input, shape index: {}]   ;;  %s24696_s6 = inlined_call_operand.hbm [shape: f32[1,1280], index: 6, kind: input, shape index: {}]   ;;  %s24697_s7 = inlined_call_operand.hbm [shape: bf16[1280,128], index: 7, kind: input, shape index: {}]   ;;  %s24698_s8 = inlined_call_operand.hbm [shape: f32[1,128], index: 8, kind: input, shape index: {}]   ;;  %s24699_s9 = inlined_call_operand.hbm [shape: f32[16,128], index: 9, kind: output, shape index: {}]  }
   0x1   :  { %15 = vsyncpa [#allocation6], 0 }
   0x2   :  { %16 = vsyncpa [#allocation9], 0 }
   0x3   :  { %17 = vsyncpa [#allocation12], 0 }
   0x4   :  { %18 = vsyncpa [#allocation15], 0 }
   0x5   :  { %19 = vsyncpa [#allocation4], 0  ;;  %s23891_s30 = smov [#allocation5]  }
   0x6   :  { %s37_s10 = sshll.u32 %s23891_s30, 4  ;;  %s38_s10 = int_to_ptr.vmem [resolvable:$true] %s37_s10 }
   0x7   :  { %s23687_s11 = scalar_lea.vmem %s38_s10, 81920  ;;  %p23692_p1 = scmp.lt.s32.totalorder %s38_s10, %s38_s10 }
   0x8   :  { %p23688_p0 = scmp.ne.s32.totalorder %s38_s10, %s23687_s11  ;;  %p23693_p2 = scmp.lt.s32.totalorder %s23687_s11, %s23687_s11 }
   0xa   :  { %p23694_p3 = por %p23693_p2, %p23692_p1 }
   0xc   :  { %p23695_p4 = pnand %p23694_p3, %p23688_p0 }
   0xe   :  { %23698 = shalt.err (!%p23695_p4)
}
   0xf   :  { %s23892_s12 = smov 640   ;;  %s23893_s13 = smov 40  }
  0x10   :  { %43 = dma.hbm_to_vmem [thread:$0]  %s24691_s1, 81920, %s38_s10, [#allocation6], %s23892_s12, %s23892_s12, %s23893_s13  }
  0x11   :  { %s23894_s16 = smov [#allocation8]   ;;  %s23895_s18 = smov [#allocation11]  }
  0x12   :  { %s59_s17 = sshll.u32 %s23894_s16, 4  ;;  %s81_s19 = sshll.u32 %s23895_s18, 4  ;;  %s60_s17 = int_to_ptr.vmem [resolvable:$true] %s59_s17  ;;  %s82_s19 = int_to_ptr.vmem [resolvable:$true] %s81_s19 }
  0x13   :  { %s23707_s20 = scalar_lea.vmem %s60_s17, 102400  ;;  %p23712_p6 = scmp.lt.s32.totalorder %s60_s17, %s60_s17 }
  0x14   :  { %p23708_p5 = scmp.ne.s32.totalorder %s60_s17, %s23707_s20  ;;  %p23713_p7 = scmp.lt.s32.totalorder %s23707_s20, %s23707_s20 }
  0x16   :  { %p23714_p8 = por %p23713_p7, %p23712_p6 }
  0x18   :  { %p23715_p9 = pnand %p23714_p8, %p23708_p5 }
  0x1a   :  { %23718 = shalt.err (!%p23715_p9)
}
  0x1b   :  { %65 = dma.hbm_to_vmem [thread:$0]  %s24693_s3, 102400, %s60_s17, [#allocation9], %s23892_s12, %s23892_s12, %s23893_s13  }
  0x1c   :  { %s23727_s23 = scalar_lea.vmem %s82_s19, 102400  ;;  %p23732_p11 = scmp.lt.s32.totalorder %s82_s19, %s82_s19 }
  0x1d   :  { %p23728_p10 = scmp.ne.s32.totalorder %s82_s19, %s23727_s23  ;;  %p23733_p12 = scmp.lt.s32.totalorder %s23727_s23, %s23727_s23 }
  0x1f   :  { %p23734_p13 = por %p23733_p12, %p23732_p11 }
  0x21   :  { %p23735_p0 = pnand %p23734_p13, %p23728_p10 }
  0x23   :  { %23738 = shalt.err (!%p23735_p0)
}
  0x24   :  { %87 = dma.hbm_to_vmem [thread:$0]  %s24695_s5, 102400, %s82_s19, [#allocation12], %s23892_s12, %s23892_s12, %s23893_s13  }
  0x25   :  { %s23896_s25 = smov [#allocation14]  }
  0x26   :  { %s103_s26 = sshll.u32 %s23896_s25, 4  ;;  %s104_s26 = int_to_ptr.vmem [resolvable:$true] %s103_s26 }
  0x27   :  { %s23747_s27 = scalar_lea.vmem %s104_s26, 10240  ;;  %p23752_p2 = scmp.lt.s32.totalorder %s104_s26, %s104_s26 }
  0x28   :  { %p23748_p1 = scmp.ne.s32.totalorder %s104_s26, %s23747_s27  ;;  %p23753_p3 = scmp.lt.s32.totalorder %s23747_s27, %s23747_s27 }
  0x2a   :  { %p23754_p4 = por %p23753_p3, %p23752_p2 }
  0x2c   :  { %p23755_p5 = pnand %p23754_p4, %p23748_p1 }
  0x2e   :  { %23758 = shalt.err (!%p23755_p5)
}
  0x2f   :  { %s23897_s3 = smov 64   ;;  %s23898_s28 = smov 4  }
  0x30   :  { %109 = dma.hbm_to_vmem [thread:$0]  %s24697_s7, 10240, %s104_s26, [#allocation15], %s23897_s3, %s23897_s3, %s23898_s28  }
  0x31   :  { %s23899_s10 = smov [#allocation2]  }
  0x32   :  { %s25_s11 = sshll.u32 %s23899_s10, 4  ;;  %s26_s11 = int_to_ptr.vmem [resolvable:$true] %s25_s11 }
  0x33   :  { %s23767_s5 = scalar_lea.vmem %s26_s11, 1024  ;;  %p23772_p7 = scmp.lt.s32.totalorder %s26_s11, %s26_s11 }
  0x34   :  { %p23768_p6 = scmp.ne.s32.totalorder %s26_s11, %s23767_s5  ;;  %p23773_p8 = scmp.lt.s32.totalorder %s23767_s5, %s23767_s5 }
  0x36   :  { %p23774_p9 = por %p23773_p8, %p23772_p7 }
  0x38   :  { %p23775_p10 = pnand %p23774_p9, %p23768_p6 }
  0x3a   :  { %23778 = shalt.err (!%p23775_p10)
}
  0x3b   :  { %s23900_s12 = smov 512   ;;  %s23901_s13 = smov 32  }
  0x3c   :  { %31 = dma.hbm_to_vmem [thread:$0]  %s24690_s0, 1024, %s26_s11, [#allocation3], %s23900_s12, %s23900_s12, %s23901_s13  }
  0x3d   :  { %s23902_s16 = smov [#allocation7]   ;;  %s23903_s7 = smov [#allocation10]  }
  0x3e   :  { %s50_s17 = sshll.u32 %s23902_s16, 4  ;;  %s72_s18 = sshll.u32 %s23903_s7, 4  ;;  %s51_s17 = int_to_ptr.vmem [resolvable:$true] %s50_s17  ;;  %s73_s18 = int_to_ptr.vmem [resolvable:$true] %s72_s18 }
  0x3f   :  { %s23787_s19 = scalar_lea.vmem %s51_s17, 160  ;;  %p23792_p12 = scmp.lt.s32.totalorder %s51_s17, %s51_s17 }
  0x40   :  { %p23788_p11 = scmp.ne.s32.totalorder %s51_s17, %s23787_s19  ;;  %p23793_p13 = scmp.lt.s32.totalorder %s23787_s19, %s23787_s19 }
  0x42   :  { %p23794_p0 = por %p23793_p13, %p23792_p12 }
  0x44   :  { %p23795_p1 = pnand %p23794_p0, %p23788_p11 }
  0x46   :  { %23798 = shalt.err (!%p23795_p1)
}
  0x47   :  { %53 = dma.hbm_to_vmem [thread:$0]  %s24692_s2, 160, %s51_s17, [#allocation6]  }
  0x48   :  { %s23807_s22 = scalar_lea.vmem %s73_s18, 160  ;;  %p23812_p3 = scmp.lt.s32.totalorder %s73_s18, %s73_s18 }
  0x49   :  { %p23808_p2 = scmp.ne.s32.totalorder %s73_s18, %s23807_s22  ;;  %p23813_p4 = scmp.lt.s32.totalorder %s23807_s22, %s23807_s22 }
  0x4b   :  { %p23814_p5 = por %p23813_p4, %p23812_p3 }
  0x4d   :  { %p23815_p6 = pnand %p23814_p5, %p23808_p2 }
  0x4f   :  { %23818 = shalt.err (!%p23815_p6)
}
  0x50   :  { %75 = dma.hbm_to_vmem [thread:$0]  %s24694_s4, 160, %s73_s18, [#allocation9]  }
  0x51   :  { %s23904_s1 = smov [#allocation13]   ;;  %s23905_s25 = smov [#allocation16]  }
  0x52   :  { %s94_s24 = sshll.u32 %s23904_s1, 4  ;;  %s116_s26 = sshll.u32 %s23905_s25, 4  ;;  %s95_s24 = int_to_ptr.vmem [resolvable:$true] %s94_s24  ;;  %s117_s26 = int_to_ptr.vmem [resolvable:$true] %s116_s26 }
  0x53   :  { %s23827_s27 = scalar_lea.vmem %s95_s24, 160  ;;  %p23832_p8 = scmp.lt.s32.totalorder %s95_s24, %s95_s24 }
  0x54   :  { %p23828_p7 = scmp.ne.s32.totalorder %s95_s24, %s23827_s27  ;;  %p23833_p9 = scmp.lt.s32.totalorder %s23827_s27, %s23827_s27 }
  0x56   :  { %p23834_p10 = por %p23833_p9, %p23832_p8 }
  0x58   :  { %p23835_p11 = pnand %p23834_p10, %p23828_p7 }
  0x5a   :  { %23838 = shalt.err (!%p23835_p11)
}
  0x5b   :  { %97 = dma.hbm_to_vmem [thread:$0]  %s24696_s6, 160, %s95_s24, [#allocation12]  }
  0x5c   :  { %s23847_s28 = scalar_lea.vmem %s117_s26, 16  ;;  %s23851_s4 = scalar_lea.vmem %s117_s26, 32 }
  0x5d   :  { %p23848_p12 = scmp.ne.s32.totalorder %s117_s26, %s23847_s28  ;;  %p23852_p13 = scmp.lt.s32.totalorder %s117_s26, %s117_s26 }
  0x5e   :  { %p23853_p0 = scmp.lt.s32.totalorder %s23851_s4, %s23847_s28 }
  0x60   :  { %p23854_p1 = por %p23853_p0, %p23852_p13 }
  0x62   :  { %p23855_p2 = pnand %p23854_p1, %p23848_p12 }
  0x64   :  { %23858 = shalt.err (!%p23855_p2)
}
  0x65   :  { %119 = dma.hbm_to_vmem [thread:$0]  %s24698_s8, 16, %s117_s26, [#allocation15]  }
  0x66   :  { %23879 = dma.done.wait [#allocation3], 1024  }
  0x67   :  { %23880 = vsyncadd [#allocation3], 4294966272 }
  0x68   :  { %23881 = dma.done.wait [#allocation6], 82080  }
  0x69   :  { %23882 = vsyncadd [#allocation6], 4294885216 }
  0x6a   :  { %23883 = dma.done.wait [#allocation9], 102560  }
  0x6b   :  { %23884 = vsyncadd [#allocation9], 4294864736 }
  0x6c   :  { %23885 = dma.done.wait [#allocation12], 102560  }
  0x6d   :  { %23886 = vsyncadd [#allocation12], 4294864736 }
  0x6e   :  { %23887 = dma.done.wait [#allocation15], 10256  }
  0x6f   :  { %23888 = vsyncadd [#allocation15], 4294957040  ;;  %v20232_v0 = vld [vmem:[#allocation5 + $0x234] ss:$40 sps:$4 sm:$0xff]   ;;  %v20236_v2 = vld [vmem:[#allocation5 + $0x230] ss:$40 sps:$4 sm:$0xff]  }
  0x70   :  { %v20234_v1 = vld [vmem:[#allocation5 + $0x734] ss:$40 sps:$4 sm:$0xff]   ;;  %4090 = vmatprep.subr.bf16.mxu0 %v20232_v0  ;;  %v20237_v3 = vld [vmem:[#allocation5 + $0x730] ss:$40 sps:$4 sm:$0xff]   ;;  %v20238_v4 = vld [vmem:[#allocation5 + $0x1e4] ss:$40 sps:$4 sm:$0xff]  }
  0x71   :  { %4133 = vmatprep.subr.bf16.mxu1 %v20234_v1  ;;  %4091 = vmatpush1.bf16.msra.mxu0 %v20236_v2  ;;  %v20240_v5 = vld [vmem:[#allocation5 + $0x6e4] ss:$40 sps:$4 sm:$0xff]   ;;  %v20242_v6 = vld [vmem:[#allocation5 + $0x1e0] ss:$40 sps:$4 sm:$0xff]   ;;  %v20244_v8 = vld [vmem:[#allocation5 + $0x194] ss:$40 sps:$4 sm:$0xff]  }
  0x72   :  { %4134 = vmatpush1.bf16.msra.mxu1 %v20237_v3  ;;  %4092 = vmatprep.subr.bf16.mxu0 %v20238_v4  ;;  %v20243_v7 = vld [vmem:[#allocation5 + $0x6e0] ss:$40 sps:$4 sm:$0xff]   ;;  %v20246_v9 = vld [vmem:[#allocation5 + $0x694] ss:$40 sps:$4 sm:$0xff]   ;;  %v20248_v10 = vld [vmem:[#allocation5 + $0x190] ss:$40 sps:$4 sm:$0xff]  }
  0x73   :  { %4135 = vmatprep.subr.bf16.mxu1 %v20240_v5  ;;  %v20249_v11 = vld [vmem:[#allocation5 + $0x690] ss:$40 sps:$4 sm:$0xff]   ;;  %v20250_v12 = vld [vmem:[#allocation5 + $0x144] ss:$40 sps:$4 sm:$0xff]   ;;  %v20254_v14 = vld [vmem:[#allocation5 + $0x140] ss:$40 sps:$4 sm:$0xff]  }
  0x74   :  { %v20252_v13 = vld [vmem:[#allocation5 + $0x644] ss:$40 sps:$4 sm:$0xff]   ;;  %v20255_v15 = vld [vmem:[#allocation5 + $0x640] ss:$40 sps:$4 sm:$0xff]   ;;  %v20256_v16 = vld [vmem:[#allocation5 + $0xf4] ss:$40 sps:$4 sm:$0xff]  }
  0x75   :  { %4093 = vmatpush1.bf16.msra.mxu0 %v20242_v6  ;;  %v20258_v17 = vld [vmem:[#allocation5 + $0x5f4] ss:$40 sps:$4 sm:$0xff]   ;;  %v20260_v18 = vld [vmem:[#allocation5 + $0xf0] ss:$40 sps:$4 sm:$0xff]   ;;  %v20262_v20 = vld [vmem:[#allocation5 + $0xa4] ss:$40 sps:$4 sm:$0xff]  }
  0x76   :  { %4136 = vmatpush1.bf16.msra.mxu1 %v20243_v7  ;;  %4094 = vmatprep.subr.bf16.mxu0 %v20244_v8  ;;  %v20261_v19 = vld [vmem:[#allocation5 + $0x5f0] ss:$40 sps:$4 sm:$0xff]   ;;  %v20264_v21 = vld [vmem:[#allocation5 + $0x5a4] ss:$40 sps:$4 sm:$0xff]   ;;  %v20266_v22 = vld [vmem:[#allocation5 + $0xa0] ss:$40 sps:$4 sm:$0xff]  }
  0x77   :  { %4137 = vmatprep.subr.bf16.mxu1 %v20246_v9  ;;  %v20267_v23 = vld [vmem:[#allocation5 + $0x5a0] ss:$40 sps:$4 sm:$0xff]   ;;  %v20268_v24 = vld [vmem:[#allocation5 + $0x54] ss:$40 sps:$4 sm:$0xff]   ;;  %v20272_v26 = vld [vmem:[#allocation5 + $0x50] ss:$40 sps:$4 sm:$0xff]  }
  0x78   :  { %v20270_v25 = vld [vmem:[#allocation5 + $0x554] ss:$40 sps:$4 sm:$0xff]   ;;  %v20273_v27 = vld [vmem:[#allocation5 + $0x550] ss:$40 sps:$4 sm:$0xff]   ;;  %v20274_v28 = vld [vmem:[#allocation5 + $0x4] ss:$40 sps:$4 sm:$0xff]  }
  0x79   :  { %4095 = vmatpush1.bf16.msra.mxu0 %v20248_v10  ;;  %v20276_v29 = vld [vmem:[#allocation5 + $0x504] ss:$40 sps:$4 sm:$0xff]   ;;  %v20278_v30 = vld [vmem:[#allocation5] ss:$40 sps:$4 sm:$0xff]   ;;  %v20280_v32 = vld [vmem:[#allocation5 + $0x4b4] ss:$40 sps:$4 sm:$0xff]  }
  0x7a   :  { %4138 = vmatpush1.bf16.msra.mxu1 %v20249_v11  ;;  %4096 = vmatprep.subr.bf16.mxu0 %v20250_v12  ;;  %v20279_v31 = vld [vmem:[#allocation5 + $0x500] ss:$40 sps:$4 sm:$0xff]   ;;  %v20282_v33 = vld [vmem:[#allocation5 + $0x9b4] ss:$40 sps:$4 sm:$0xff]   ;;  %v20284_v34 = vld [vmem:[#allocation5 + $0x4b0] ss:$40 sps:$4 sm:$0xff]  }
  0x7b   :  { %4139 = vmatprep.subr.bf16.mxu1 %v20252_v13  ;;  %v20285_v35 = vld [vmem:[#allocation5 + $0x9b0] ss:$40 sps:$4 sm:$0xff]   ;;  %v20286_v36 = vld [vmem:[#allocation5 + $0x464] ss:$40 sps:$4 sm:$0xff]   ;;  %v20290_v38 = vld [vmem:[#allocation5 + $0x460] ss:$40 sps:$4 sm:$0xff]  }
  0x7c   :  { %v20288_v37 = vld [vmem:[#allocation5 + $0x964] ss:$40 sps:$4 sm:$0xff]   ;;  %v20291_v39 = vld [vmem:[#allocation5 + $0x960] ss:$40 sps:$4 sm:$0xff]   ;;  %v20292_v40 = vld [vmem:[#allocation5 + $0x414] ss:$40 sps:$4 sm:$0xff]  }
  0x7d   :  { %4097 = vmatpush1.bf16.msra.mxu0 %v20254_v14  ;;  %v20294_v41 = vld [vmem:[#allocation5 + $0x914] ss:$40 sps:$4 sm:$0xff]   ;;  %v20296_v42 = vld [vmem:[#allocation5 + $0x410] ss:$40 sps:$4 sm:$0xff]   ;;  %v20298_v44 = vld [vmem:[#allocation5 + $0x3c4] ss:$40 sps:$4 sm:$0xff]  }
  0x7e   :  { %4140 = vmatpush1.bf16.msra.mxu1 %v20255_v15  ;;  %4098 = vmatprep.subr.bf16.mxu0 %v20256_v16  ;;  %v20297_v43 = vld [vmem:[#allocation5 + $0x910] ss:$40 sps:$4 sm:$0xff]   ;;  %v20300_v45 = vld [vmem:[#allocation5 + $0x8c4] ss:$40 sps:$4 sm:$0xff]   ;;  %v20302_v46 = vld [vmem:[#allocation5 + $0x3c0] ss:$40 sps:$4 sm:$0xff]  }
  0x7f   :  { %4141 = vmatprep.subr.bf16.mxu1 %v20258_v17  ;;  %v20303_v47 = vld [vmem:[#allocation5 + $0x8c0] ss:$40 sps:$4 sm:$0xff]   ;;  %v20304_v52 = vld [vmem:[#allocation5 + $0x374] ss:$40 sps:$4 sm:$0xff]   ;;  %v20308_v56 = vld [vmem:[#allocation5 + $0x370] ss:$40 sps:$4 sm:$0xff]  }
  0x80   :  { %v148_v48 = vld [vmem:[#allocation2] sm:$0xff]  ;;  %v149_v50 = vld [vmem:[#allocation2 + $0x8] sm:$0xff]  ;;  %v20306_v55 = vld [vmem:[#allocation5 + $0x874] ss:$40 sps:$4 sm:$0xff]   ;;  %s23906_s6 = smov [#allocation17]  }
  0x81   :  { %4099 = vmatpush1.bf16.msra.mxu0 %v20260_v18  ;;  %v152_v49 = vld [vmem:[#allocation2 + $0x20] sm:$0xff]  ;;  %v153_v51 = vld [vmem:[#allocation2 + $0x28] sm:$0xff]  ;;  %v20309_v57 = vld [vmem:[#allocation5 + $0x870] ss:$40 sps:$4 sm:$0xff]   ;;  %s17759_s8 = sshll.u32 %s23906_s6, 4  ;;  %s17760_s8 = int_to_ptr.vmem [resolvable:$true] %s17759_s8 }
  0x82   :  { %4142 = vmatpush1.bf16.msra.mxu1 %v20261_v19  ;;  %4100 = vmatprep.subr.bf16.mxu0 %v20262_v20  ;;  %v23986_v53 = vcombine.high %v148_v48, %v152_v49  ;;  %v23988_v54 = vcombine.high %v149_v50, %v153_v51  ;;  %v20310_v58 = vld [vmem:[#allocation5 + $0x324] ss:$40 sps:$4 sm:$0xff]   ;;  %v20314_v60 = vld [vmem:[#allocation5 + $0x320] ss:$40 sps:$4 sm:$0xff]   ;;  %v20316_v62 = vld [vmem:[#allocation5 + $0x2d4] ss:$40 sps:$4 sm:$0xff]   ;;  %v23992_v8 = vcombine.low %v148_v48, %v152_v49  ;;  %p23864_p4 = scmp.lt.s32.totalorder %s17760_s8, %s17760_s8 }
  0x83   :  { %4143 = vmatprep.subr.bf16.mxu1 %v20264_v21  ;;  %v20312_v59 = vld [vmem:[#allocation5 + $0x824] ss:$40 sps:$4 sm:$0xff]   ;;  %v20315_v61 = vld [vmem:[#allocation5 + $0x820] ss:$40 sps:$4 sm:$0xff]   ;;  %v20318_v63 = vld [vmem:[#allocation5 + $0x7d4] ss:$40 sps:$4 sm:$0xff]   ;;  %v23994_v9 = vcombine.low %v149_v50, %v153_v51 }
  0x84   :  { %4122 = vmatprep.mubr.bf16.mxu0 %v23986_v53  ;;  %4165 = vmatprep.mubr.bf16.mxu1 %v23988_v54  ;;  %v20320_v0 = vld [vmem:[#allocation5 + $0x2d0] ss:$40 sps:$4 sm:$0xff]   ;;  %v20322_v2 = vld [vmem:[#allocation5 + $0x284] ss:$40 sps:$4 sm:$0xff]   ;;  %v20326_v4 = vld [vmem:[#allocation5 + $0x280] ss:$40 sps:$4 sm:$0xff]  }
  0x85   :  { %4101 = vmatpush1.bf16.msra.mxu0 %v20266_v22  ;;  %v20321_v1 = vld [vmem:[#allocation5 + $0x7d0] ss:$40 sps:$4 sm:$0xff]   ;;  %v20324_v3 = vld [vmem:[#allocation5 + $0x784] ss:$40 sps:$4 sm:$0xff]   ;;  %v20327_v5 = vld [vmem:[#allocation5 + $0x780] ss:$40 sps:$4 sm:$0xff]  }
  0x86   :  { %4144 = vmatpush1.bf16.msra.mxu1 %v20267_v23  ;;  %4102 = vmatprep.subr.bf16.mxu0 %v20268_v24  ;;  %v20330_v6 = vld [vmem:[#allocation5 + $0xc34] ss:$40 sps:$4 sm:$0xff]   ;;  %v20328_v10 = vld [vmem:[#allocation5 + $0xc30] ss:$40 sps:$4 sm:$0xff]   ;;  %v20336_v12 = vld [vmem:[#allocation5 + $0xbe4] ss:$40 sps:$4 sm:$0xff]  }
  0x87   :  { %4145 = vmatprep.subr.bf16.mxu1 %v20270_v25  ;;  %v20333_v7 = vld [vmem:[#allocation5 + $0x1134] ss:$40 sps:$4 sm:$0xff]   ;;  %v20331_v11 = vld [vmem:[#allocation5 + $0x1130] ss:$40 sps:$4 sm:$0xff]   ;;  %v20339_v13 = vld [vmem:[#allocation5 + $0x10e4] ss:$40 sps:$4 sm:$0xff]  }
  0x88   :  { %v20334_v14 = vld [vmem:[#allocation5 + $0xbe0] ss:$40 sps:$4 sm:$0xff]   ;;  %v20342_v16 = vld [vmem:[#allocation5 + $0xb94] ss:$40 sps:$4 sm:$0xff]   ;;  %v20340_v18 = vld [vmem:[#allocation5 + $0xb90] ss:$40 sps:$4 sm:$0xff]  }
  0x89   :  { %4103 = vmatpush1.bf16.msra.mxu0 %v20272_v26  ;;  %v20337_v15 = vld [vmem:[#allocation5 + $0x10e0] ss:$40 sps:$4 sm:$0xff]   ;;  %v20345_v17 = vld [vmem:[#allocation5 + $0x1094] ss:$40 sps:$4 sm:$0xff]   ;;  %v20343_v19 = vld [vmem:[#allocation5 + $0x1090] ss:$40 sps:$4 sm:$0xff]  }
  0x8a   :  { %4146 = vmatpush1.bf16.msra.mxu1 %v20273_v27  ;;  %4104 = vmatprep.subr.bf16.mxu0 %v20274_v28  ;;  %v20348_v20 = vld [vmem:[#allocation5 + $0xb44] ss:$40 sps:$4 sm:$0xff]   ;;  %v20346_v22 = vld [vmem:[#allocation5 + $0xb40] ss:$40 sps:$4 sm:$0xff]   ;;  %v20354_v24 = vld [vmem:[#allocation5 + $0xaf4] ss:$40 sps:$4 sm:$0xff]  }
  0x8b   :  { %4147 = vmatprep.subr.bf16.mxu1 %v20276_v29  ;;  %v20351_v21 = vld [vmem:[#allocation5 + $0x1044] ss:$40 sps:$4 sm:$0xff]   ;;  %v20349_v23 = vld [vmem:[#allocation5 + $0x1040] ss:$40 sps:$4 sm:$0xff]   ;;  %v20357_v25 = vld [vmem:[#allocation5 + $0xff4] ss:$40 sps:$4 sm:$0xff]  }
  0x8c   :  { %v20352_v26 = vld [vmem:[#allocation5 + $0xaf0] ss:$40 sps:$4 sm:$0xff]   ;;  %v20360_v28 = vld [vmem:[#allocation5 + $0xaa4] ss:$40 sps:$4 sm:$0xff]   ;;  %s23859_s10 = scalar_lea.vmem %s17760_s8, 256 }
  0x8d   :  { %4105 = vmatpush1.bf16.msra.mxu0 %v20278_v30  ;;  %v20355_v27 = vld [vmem:[#allocation5 + $0xff0] ss:$40 sps:$4 sm:$0xff]   ;;  %v20363_v29 = vld [vmem:[#allocation5 + $0xfa4] ss:$40 sps:$4 sm:$0xff]   ;;  %v20358_v30 = vld [vmem:[#allocation5 + $0xaa0] ss:$40 sps:$4 sm:$0xff]   ;;  %p23860_p3 = scmp.ne.s32.totalorder %s17760_s8, %s23859_s10  ;;  %p23865_p5 = scmp.lt.s32.totalorder %s23859_s10, %s23859_s10 }
  0x8e   :  { %4148 = vmatpush1.bf16.msra.mxu1 %v20279_v31  ;;  %4106 = vmatprep.subr.bf16.mxu0 %v20280_v32  ;;  %v20361_v31 = vld [vmem:[#allocation5 + $0xfa0] ss:$40 sps:$4 sm:$0xff]   ;;  %v20366_v32 = vld [vmem:[#allocation5 + $0xa54] ss:$40 sps:$4 sm:$0xff]   ;;  %v20376_v48 = vld [vmem:[#allocation5 + $0xeb0] ss:$40 sps:$4 sm:$0xff]  }
  0x8f   :  { %4149 = vmatprep.subr.bf16.mxu1 %v20282_v33  ;;  %v20369_v33 = vld [vmem:[#allocation5 + $0xf54] ss:$40 sps:$4 sm:$0xff]   ;;  %v20379_v49 = vld [vmem:[#allocation5 + $0x13b0] ss:$40 sps:$4 sm:$0xff]   ;;  %v20384_v50 = vld [vmem:[#allocation5 + $0xe64] ss:$40 sps:$4 sm:$0xff]   ;;  %p23866_p6 = por %p23865_p5, %p23864_p4 }
  0x90   :  { %v20387_v51 = vld [vmem:[#allocation5 + $0x1364] ss:$40 sps:$4 sm:$0xff]  }
  0x91   :  { %4107 = vmatpush2.bf16.msra.mxu0 %v20284_v34  ;;  %v20364_v34 = vld [vmem:[#allocation5 + $0xa50] ss:$40 sps:$4 sm:$0xff]   ;;  %p23867_p7 = pnand %p23866_p6, %p23860_p3 }
  0x92   :  { %4150 = vmatpush2.bf16.msra.mxu1 %v20285_v35  ;;  %4108 = vmatprep.subr.bf16.mxu0 %v20286_v36  ;;  %v20367_v35 = vld [vmem:[#allocation5 + $0xf50] ss:$40 sps:$4 sm:$0xff]  }
  0x93   :  { %4151 = vmatprep.subr.bf16.mxu1 %v20288_v37  ;;  %v23998_v36 = vld [vmem:[#allocation2 + $0x10] sm:$0xff] }
  0x94   :  { %v24000_v37 = vld [vmem:[#allocation2 + $0x30] sm:$0xff] }
  0x95   :  { %4109 = vmatpush2.bf16.msra.mxu0 %v20290_v38  ;;  %v24002_v38 = vld [vmem:[#allocation2 + $0x18] sm:$0xff] }
  0x96   :  { %4152 = vmatpush2.bf16.msra.mxu1 %v20291_v39  ;;  %4110 = vmatprep.subr.bf16.mxu0 %v20292_v40  ;;  %v24004_v39 = vld [vmem:[#allocation2 + $0x38] sm:$0xff]  ;;  %v20372_v40 = vld [vmem:[#allocation5 + $0xa04] ss:$40 sps:$4 sm:$0xff]  }
  0x97   :  { %4153 = vmatprep.subr.bf16.mxu1 %v20294_v41  ;;  %v24008_v41 = vcombine.high %v23998_v36, %v24000_v37 }
  0x99   :  { %4111 = vmatpush2.bf16.msra.mxu0 %v20296_v42  ;;  %v24012_v42 = vcombine.high %v24002_v38, %v24004_v39 }
  0x9a   :  { %4154 = vmatpush2.bf16.msra.mxu1 %v20297_v43  ;;  %4112 = vmatprep.subr.bf16.mxu0 %v20298_v44  ;;  %v20375_v43 = vld [vmem:[#allocation5 + $0xf04] ss:$40 sps:$4 sm:$0xff]   ;;  %v20370_v44 = vld [vmem:[#allocation5 + $0xa00] ss:$40 sps:$4 sm:$0xff]  }
  0x9b   :  { %4155 = vmatprep.subr.bf16.mxu1 %v20300_v45  ;;  %v20373_v45 = vld [vmem:[#allocation5 + $0xf00] ss:$40 sps:$4 sm:$0xff]  }
  0x9d   :  { %4113 = vmatpush2.bf16.msra.mxu0 %v20302_v46  ;;  %v20378_v46 = vld [vmem:[#allocation5 + $0xeb4] ss:$40 sps:$4 sm:$0xff]  }
  0x9e   :  { %4156 = vmatpush2.bf16.msra.mxu1 %v20303_v47  ;;  %4114 = vmatprep.subr.bf16.mxu0 %v20304_v52  ;;  %v20381_v47 = vld [vmem:[#allocation5 + $0x13b4] ss:$40 sps:$4 sm:$0xff]   ;;  %v20382_v52 = vld [vmem:[#allocation5 + $0xe60] ss:$40 sps:$4 sm:$0xff]  }
  0x9f   :  { %4157 = vmatprep.subr.bf16.mxu1 %v20306_v55  ;;  %v20385_v55 = vld [vmem:[#allocation5 + $0x1360] ss:$40 sps:$4 sm:$0xff]  }
  0xa1   :  { %4115 = vmatpush2.bf16.msra.mxu0 %v20308_v56  ;;  %v20390_v56 = vld [vmem:[#allocation5 + $0xe14] ss:$40 sps:$4 sm:$0xff]  }
  0xa2   :  { %4158 = vmatpush2.bf16.msra.mxu1 %v20309_v57  ;;  %4116 = vmatprep.subr.bf16.mxu0 %v20310_v58  ;;  %v20393_v57 = vld [vmem:[#allocation5 + $0x1314] ss:$40 sps:$4 sm:$0xff]   ;;  %v20388_v58 = vld [vmem:[#allocation5 + $0xe10] ss:$40 sps:$4 sm:$0xff]  }
  0xa3   :  { %4159 = vmatprep.subr.bf16.mxu1 %v20312_v59  ;;  %v20391_v59 = vld [vmem:[#allocation5 + $0x1310] ss:$40 sps:$4 sm:$0xff]  }
  0xa5   :  { %4117 = vmatpush2.bf16.msra.mxu0 %v20314_v60  ;;  %v20396_v60 = vld [vmem:[#allocation5 + $0xdc4] ss:$40 sps:$4 sm:$0xff]  }
  0xa6   :  { %4160 = vmatpush2.bf16.msra.mxu1 %v20315_v61  ;;  %4118 = vmatprep.subr.bf16.mxu0 %v20316_v62  ;;  %v20399_v61 = vld [vmem:[#allocation5 + $0x12c4] ss:$40 sps:$4 sm:$0xff]   ;;  %v20394_v62 = vld [vmem:[#allocation5 + $0xdc0] ss:$40 sps:$4 sm:$0xff]  }
  0xa7   :  { %4161 = vmatprep.subr.bf16.mxu1 %v20318_v63  ;;  %v20397_v63 = vld [vmem:[#allocation5 + $0x12c0] ss:$40 sps:$4 sm:$0xff]  }
  0xa9   :  { %4119 = vmatpush2.bf16.msra.mxu0 %v20320_v0  ;;  %v20402_v0 = vld [vmem:[#allocation5 + $0xd74] ss:$40 sps:$4 sm:$0xff]  }
  0xaa   :  { %4162 = vmatpush2.bf16.msra.mxu1 %v20321_v1  ;;  %4120 = vmatprep.subr.bf16.mxu0 %v20322_v2  ;;  %v20405_v1 = vld [vmem:[#allocation5 + $0x1274] ss:$40 sps:$4 sm:$0xff]   ;;  %v20400_v2 = vld [vmem:[#allocation5 + $0xd70] ss:$40 sps:$4 sm:$0xff]  }
  0xab   :  { %4163 = vmatprep.subr.bf16.mxu1 %v20324_v3  ;;  %v20403_v3 = vld [vmem:[#allocation5 + $0x1270] ss:$40 sps:$4 sm:$0xff]  }
  0xad   :  { %4121 = vmatpush2.bf16.msra.mxu0 %v20326_v4  ;;  %v20408_v4 = vld [vmem:[#allocation5 + $0xd24] ss:$40 sps:$4 sm:$0xff]  }
  0xae   :  { %4164 = vmatpush2.bf16.msra.mxu1 %v20327_v5  ;;  %4176 = vmatprep.subr.bf16.mxu0 %v20330_v6  ;;  %v20411_v5 = vld [vmem:[#allocation5 + $0x1224] ss:$40 sps:$4 sm:$0xff]   ;;  %v20406_v6 = vld [vmem:[#allocation5 + $0xd20] ss:$40 sps:$4 sm:$0xff]  }
  0xaf   :  { %4219 = vmatprep.subr.bf16.mxu1 %v20333_v7  ;;  %v20409_v7 = vld [vmem:[#allocation5 + $0x1220] ss:$40 sps:$4 sm:$0xff]  }
  0xb0   :  { %4123 = vmatmul.mubr.bf16.vlgmr.msra.gmra.mxu0 %v23992_v8 }
  0xb1   :  { %4166 = vmatmul.mubr.bf16.vlgmr.msra.gmra.mxu1 %v23994_v9  ;;  %4177 = vmatpush1.bf16.msra.mxu0 %v20328_v10  ;;  %v20414_v10 = vld [vmem:[#allocation5 + $0xcd4] ss:$40 sps:$4 sm:$0xff]  }
  0xb2   :  { %4220 = vmatpush1.bf16.msra.mxu1 %v20331_v11  ;;  %4178 = vmatprep.subr.bf16.mxu0 %v20336_v12  ;;  %v20417_v11 = vld [vmem:[#allocation5 + $0x11d4] ss:$40 sps:$4 sm:$0xff]   ;;  %v20412_v12 = vld [vmem:[#allocation5 + $0xcd0] ss:$40 sps:$4 sm:$0xff]  }
  0xb3   :  { %4221 = vmatprep.subr.bf16.mxu1 %v20339_v13  ;;  %4208 = vmatprep.mubr.bf16.mxu0 %v24008_v41  ;;  %v20415_v13 = vld [vmem:[#allocation5 + $0x11d0] ss:$40 sps:$4 sm:$0xff]  }
  0xb4   :  { %4251 = vmatprep.mubr.bf16.mxu1 %v24012_v42 }
  0xb5   :  { %4179 = vmatpush1.bf16.msra.mxu0 %v20334_v14  ;;  %v20420_v14 = vld [vmem:[#allocation5 + $0xc84] ss:$40 sps:$4 sm:$0xff]  }
  0xb6   :  { %4222 = vmatpush1.bf16.msra.mxu1 %v20337_v15  ;;  %4180 = vmatprep.subr.bf16.mxu0 %v20342_v16  ;;  %v20423_v15 = vld [vmem:[#allocation5 + $0x1184] ss:$40 sps:$4 sm:$0xff]   ;;  %v20418_v16 = vld [vmem:[#allocation5 + $0xc80] ss:$40 sps:$4 sm:$0xff]  }
  0xb7   :  { %4223 = vmatprep.subr.bf16.mxu1 %v20345_v17  ;;  %v20421_v17 = vld [vmem:[#allocation5 + $0x1180] ss:$40 sps:$4 sm:$0xff]  }
  0xb9   :  { %4181 = vmatpush1.bf16.msra.mxu0 %v20340_v18  ;;  %v20426_v18 = vld [vmem:[#allocation5 + $0x23c] ss:$40 sps:$4 sm:$0xff]  }
  0xba   :  { %4224 = vmatpush1.bf16.msra.mxu1 %v20343_v19  ;;  %4182 = vmatprep.subr.bf16.mxu0 %v20348_v20  ;;  %v20429_v19 = vld [vmem:[#allocation5 + $0x73c] ss:$40 sps:$4 sm:$0xff]   ;;  %v24018_v20 = vcombine.low %v23998_v36, %v24000_v37 }
  0xbb   :  { %4225 = vmatprep.subr.bf16.mxu1 %v20351_v21  ;;  %v24022_v21 = vcombine.low %v24002_v38, %v24004_v39  ;;  %v20450_v36 = vld [vmem:[#allocation5 + $0xfc] ss:$40 sps:$4 sm:$0xff]   ;;  %v20448_v38 = vld [vmem:[#allocation5 + $0xf8] ss:$40 sps:$4 sm:$0xff]  }
  0xbc   :  { %v20453_v37 = vld [vmem:[#allocation5 + $0x5fc] ss:$40 sps:$4 sm:$0xff]   ;;  %v20451_v39 = vld [vmem:[#allocation5 + $0x5f8] ss:$40 sps:$4 sm:$0xff]  }
  0xbd   :  { %4183 = vmatpush1.bf16.msra.mxu0 %v20346_v22  ;;  %v20424_v22 = vld [vmem:[#allocation5 + $0x238] ss:$40 sps:$4 sm:$0xff]  }
  0xbe   :  { %4226 = vmatpush1.bf16.msra.mxu1 %v20349_v23  ;;  %4184 = vmatprep.subr.bf16.mxu0 %v20354_v24  ;;  %v20427_v23 = vld [vmem:[#allocation5 + $0x738] ss:$40 sps:$4 sm:$0xff]   ;;  %v20432_v24 = vld [vmem:[#allocation5 + $0x1ec] ss:$40 sps:$4 sm:$0xff]  }
  0xbf   :  { %4227 = vmatprep.subr.bf16.mxu1 %v20357_v25  ;;  %v20435_v25 = vld [vmem:[#allocation5 + $0x6ec] ss:$40 sps:$4 sm:$0xff]  }
  0xc1   :  { %4185 = vmatpush1.bf16.msra.mxu0 %v20352_v26  ;;  %v20430_v26 = vld [vmem:[#allocation5 + $0x1e8] ss:$40 sps:$4 sm:$0xff]  }
  0xc2   :  { %4228 = vmatpush1.bf16.msra.mxu1 %v20355_v27  ;;  %4186 = vmatprep.subr.bf16.mxu0 %v20360_v28  ;;  %v20433_v27 = vld [vmem:[#allocation5 + $0x6e8] ss:$40 sps:$4 sm:$0xff]   ;;  %v20438_v28 = vld [vmem:[#allocation5 + $0x19c] ss:$40 sps:$4 sm:$0xff]  }
  0xc3   :  { %4229 = vmatprep.subr.bf16.mxu1 %v20363_v29  ;;  %v20441_v29 = vld [vmem:[#allocation5 + $0x69c] ss:$40 sps:$4 sm:$0xff]  }
  0xc5   :  { %4187 = vmatpush1.bf16.msra.mxu0 %v20358_v30  ;;  %v20436_v30 = vld [vmem:[#allocation5 + $0x198] ss:$40 sps:$4 sm:$0xff]  }
  0xc6   :  { %4230 = vmatpush1.bf16.msra.mxu1 %v20361_v31  ;;  %4188 = vmatprep.subr.bf16.mxu0 %v20366_v32  ;;  %v20439_v31 = vld [vmem:[#allocation5 + $0x698] ss:$40 sps:$4 sm:$0xff]   ;;  %v20444_v32 = vld [vmem:[#allocation5 + $0x14c] ss:$40 sps:$4 sm:$0xff]  }
  0xc7   :  { %4231 = vmatprep.subr.bf16.mxu1 %v20369_v33  ;;  %v20447_v33 = vld [vmem:[#allocation5 + $0x64c] ss:$40 sps:$4 sm:$0xff]  }
  0xc9   :  { %4189 = vmatpush1.bf16.msra.mxu0 %v20364_v34  ;;  %v20442_v34 = vld [vmem:[#allocation5 + $0x148] ss:$40 sps:$4 sm:$0xff]  }
  0xca   :  { %4232 = vmatpush1.bf16.msra.mxu1 %v20367_v35  ;;  %4190 = vmatprep.subr.bf16.mxu0 %v20372_v40  ;;  %v20445_v35 = vld [vmem:[#allocation5 + $0x648] ss:$40 sps:$4 sm:$0xff]   ;;  %v20456_v40 = vld [vmem:[#allocation5 + $0xac] ss:$40 sps:$4 sm:$0xff]  }
  0xcb   :  { %4233 = vmatprep.subr.bf16.mxu1 %v20375_v43  ;;  %v20459_v43 = vld [vmem:[#allocation5 + $0x5ac] ss:$40 sps:$4 sm:$0xff]  }
  0xcd   :  { %4191 = vmatpush1.bf16.msra.mxu0 %v20370_v44  ;;  %v20454_v44 = vld [vmem:[#allocation5 + $0xa8] ss:$40 sps:$4 sm:$0xff]  }
  0xce   :  { %4234 = vmatpush1.bf16.msra.mxu1 %v20373_v45  ;;  %4192 = vmatprep.subr.bf16.mxu0 %v20378_v46  ;;  %v20457_v45 = vld [vmem:[#allocation5 + $0x5a8] ss:$40 sps:$4 sm:$0xff]   ;;  %v20462_v46 = vld [vmem:[#allocation5 + $0x5c] ss:$40 sps:$4 sm:$0xff]  }
  0xcf   :  { %4235 = vmatprep.subr.bf16.mxu1 %v20381_v47  ;;  %v20465_v47 = vld [vmem:[#allocation5 + $0x55c] ss:$40 sps:$4 sm:$0xff]  }
  0xd1   :  { %4193 = vmatpush2.bf16.msra.mxu0 %v20376_v48  ;;  %v20460_v48 = vld [vmem:[#allocation5 + $0x58] ss:$40 sps:$4 sm:$0xff]  }
  0xd2   :  { %4236 = vmatpush2.bf16.msra.mxu1 %v20379_v49  ;;  %4194 = vmatprep.subr.bf16.mxu0 %v20384_v50  ;;  %v20463_v49 = vld [vmem:[#allocation5 + $0x558] ss:$40 sps:$4 sm:$0xff]   ;;  %v20468_v50 = vld [vmem:[#allocation5 + $0xc] ss:$40 sps:$4 sm:$0xff]  }
  0xd3   :  { %4237 = vmatprep.subr.bf16.mxu1 %v20387_v51  ;;  %v20471_v51 = vld [vmem:[#allocation5 + $0x50c] ss:$40 sps:$4 sm:$0xff]  }
  0xd5   :  { %4195 = vmatpush2.bf16.msra.mxu0 %v20382_v52  ;;  %v20466_v52 = vld [vmem:[#allocation5 + $0x8] ss:$40 sps:$4 sm:$0xff]  }
  0xd6   :  { %4238 = vmatpush2.bf16.msra.mxu1 %v20385_v55  ;;  %4196 = vmatprep.subr.bf16.mxu0 %v20390_v56  ;;  %v20469_v55 = vld [vmem:[#allocation5 + $0x508] ss:$40 sps:$4 sm:$0xff]   ;;  %v20474_v56 = vld [vmem:[#allocation5 + $0x4bc] ss:$40 sps:$4 sm:$0xff]  }
  0xd7   :  { %4239 = vmatprep.subr.bf16.mxu1 %v20393_v57  ;;  %v20477_v57 = vld [vmem:[#allocation5 + $0x9bc] ss:$40 sps:$4 sm:$0xff]  }
  0xd9   :  { %4197 = vmatpush2.bf16.msra.mxu0 %v20388_v58  ;;  %v20472_v58 = vld [vmem:[#allocation5 + $0x4b8] ss:$40 sps:$4 sm:$0xff]  }
  0xda   :  { %4240 = vmatpush2.bf16.msra.mxu1 %v20391_v59  ;;  %4198 = vmatprep.subr.bf16.mxu0 %v20396_v60  ;;  %v20475_v59 = vld [vmem:[#allocation5 + $0x9b8] ss:$40 sps:$4 sm:$0xff]   ;;  %v20480_v60 = vld [vmem:[#allocation5 + $0x46c] ss:$40 sps:$4 sm:$0xff]  }
  0xdb   :  { %4241 = vmatprep.subr.bf16.mxu1 %v20399_v61  ;;  %v20483_v61 = vld [vmem:[#allocation5 + $0x96c] ss:$40 sps:$4 sm:$0xff]  }
  0xdd   :  { %4199 = vmatpush2.bf16.msra.mxu0 %v20394_v62  ;;  %v20478_v62 = vld [vmem:[#allocation5 + $0x468] ss:$40 sps:$4 sm:$0xff]  }
  0xde   :  { %4242 = vmatpush2.bf16.msra.mxu1 %v20397_v63  ;;  %4200 = vmatprep.subr.bf16.mxu0 %v20402_v0  ;;  %v20481_v63 = vld [vmem:[#allocation5 + $0x968] ss:$40 sps:$4 sm:$0xff]   ;;  %v20486_v0 = vld [vmem:[#allocation5 + $0x41c] ss:$40 sps:$4 sm:$0xff]  }
  0xdf   :  { %4243 = vmatprep.subr.bf16.mxu1 %v20405_v1  ;;  %v20489_v1 = vld [vmem:[#allocation5 + $0x91c] ss:$40 sps:$4 sm:$0xff]  }
  0xe1   :  { %4201 = vmatpush2.bf16.msra.mxu0 %v20400_v2  ;;  %v20484_v2 = vld [vmem:[#allocation5 + $0x418] ss:$40 sps:$4 sm:$0xff]  }
  0xe2   :  { %4244 = vmatpush2.bf16.msra.mxu1 %v20403_v3  ;;  %4202 = vmatprep.subr.bf16.mxu0 %v20408_v4  ;;  %v20487_v3 = vld [vmem:[#allocation5 + $0x918] ss:$40 sps:$4 sm:$0xff]   ;;  %v20492_v4 = vld [vmem:[#allocation5 + $0x3cc] ss:$40 sps:$4 sm:$0xff]  }
  0xe3   :  { %4245 = vmatprep.subr.bf16.mxu1 %v20411_v5  ;;  %v20495_v5 = vld [vmem:[#allocation5 + $0x8cc] ss:$40 sps:$4 sm:$0xff]  }
  0xe5   :  { %4203 = vmatpush2.bf16.msra.mxu0 %v20406_v6  ;;  %v20490_v6 = vld [vmem:[#allocation5 + $0x3c8] ss:$40 sps:$4 sm:$0xff]  }
  0xe6   :  { %4246 = vmatpush2.bf16.msra.mxu1 %v20409_v7  ;;  %4204 = vmatprep.subr.bf16.mxu0 %v20414_v10  ;;  %v20493_v7 = vld [vmem:[#allocation5 + $0x8c8] ss:$40 sps:$4 sm:$0xff]   ;;  %v20498_v10 = vld [vmem:[#allocation5 + $0x37c] ss:$40 sps:$4 sm:$0xff]  }
  0xe7   :  { %4247 = vmatprep.subr.bf16.mxu1 %v20417_v11  ;;  %v20501_v11 = vld [vmem:[#allocation5 + $0x87c] ss:$40 sps:$4 sm:$0xff]  }
  0xe9   :  { %4205 = vmatpush2.bf16.msra.mxu0 %v20412_v12  ;;  %v20496_v12 = vld [vmem:[#allocation5 + $0x378] ss:$40 sps:$4 sm:$0xff]  }
  0xea   :  { %4248 = vmatpush2.bf16.msra.mxu1 %v20415_v13  ;;  %4206 = vmatprep.subr.bf16.mxu0 %v20420_v14  ;;  %v20499_v13 = vld [vmem:[#allocation5 + $0x878] ss:$40 sps:$4 sm:$0xff]   ;;  %v20504_v14 = vld [vmem:[#allocation5 + $0x32c] ss:$40 sps:$4 sm:$0xff]  }
  0xeb   :  { %4249 = vmatprep.subr.bf16.mxu1 %v20423_v15  ;;  %v20507_v15 = vld [vmem:[#allocation5 + $0x82c] ss:$40 sps:$4 sm:$0xff]  }
  0xed   :  { %4207 = vmatpush2.bf16.msra.mxu0 %v20418_v16  ;;  %v20502_v16 = vld [vmem:[#allocation5 + $0x328] ss:$40 sps:$4 sm:$0xff]  }
  0xee   :  { %4250 = vmatpush2.bf16.msra.mxu1 %v20421_v17  ;;  %4262 = vmatprep.subr.bf16.mxu0 %v20426_v18  ;;  %v20505_v17 = vld [vmem:[#allocation5 + $0x828] ss:$40 sps:$4 sm:$0xff]   ;;  %v20510_v18 = vld [vmem:[#allocation5 + $0x2dc] ss:$40 sps:$4 sm:$0xff]  }
  0xef   :  { %4305 = vmatprep.subr.bf16.mxu1 %v20429_v19  ;;  %v20513_v19 = vld [vmem:[#allocation5 + $0x7dc] ss:$40 sps:$4 sm:$0xff]  }
  0xf0   :  { %4209 = vmatmul.mubr.bf16.vlgmr.msra.gmra.mxu0 %v24018_v20 }
  0xf1   :  { %4252 = vmatmul.mubr.bf16.vlgmr.msra.gmra.mxu1 %v24022_v21  ;;  %4263 = vmatpush1.bf16.msra.mxu0 %v20424_v22  ;;  %v20508_v22 = vld [vmem:[#allocation5 + $0x2d8] ss:$40 sps:$4 sm:$0xff]  }
  0xf2   :  { %4306 = vmatpush1.bf16.msra.mxu1 %v20427_v23  ;;  %4264 = vmatprep.subr.bf16.mxu0 %v20432_v24  ;;  %v20511_v23 = vld [vmem:[#allocation5 + $0x7d8] ss:$40 sps:$4 sm:$0xff]   ;;  %v20516_v24 = vld [vmem:[#allocation5 + $0x28c] ss:$40 sps:$4 sm:$0xff]  }
  0xf3   :  { %4307 = vmatprep.subr.bf16.mxu1 %v20435_v25  ;;  %4294 = vmatprep.mubr.bf16.mxu0 %v23986_v53  ;;  %v20519_v25 = vld [vmem:[#allocation5 + $0x78c] ss:$40 sps:$4 sm:$0xff]  }
  0xf4   :  { %4337 = vmatprep.mubr.bf16.mxu1 %v23988_v54 }
  0xf5   :  { %4265 = vmatpush1.bf16.msra.mxu0 %v20430_v26  ;;  %v20514_v26 = vld [vmem:[#allocation5 + $0x288] ss:$40 sps:$4 sm:$0xff]  }
  0xf6   :  { %4308 = vmatpush1.bf16.msra.mxu1 %v20433_v27  ;;  %4266 = vmatprep.subr.bf16.mxu0 %v20438_v28  ;;  %v20517_v27 = vld [vmem:[#allocation5 + $0x788] ss:$40 sps:$4 sm:$0xff]   ;;  %v20522_v28 = vld [vmem:[#allocation5 + $0xc3c] ss:$40 sps:$4 sm:$0xff]  }
  0xf7   :  { %4309 = vmatprep.subr.bf16.mxu1 %v20441_v29  ;;  %v20525_v29 = vld [vmem:[#allocation5 + $0x113c] ss:$40 sps:$4 sm:$0xff]  }
  0xf9   :  { %4267 = vmatpush1.bf16.msra.mxu0 %v20436_v30  ;;  %v20520_v30 = vld [vmem:[#allocation5 + $0xc38] ss:$40 sps:$4 sm:$0xff]  }
  0xfa   :  { %4310 = vmatpush1.bf16.msra.mxu1 %v20439_v31  ;;  %4268 = vmatprep.subr.bf16.mxu0 %v20444_v32  ;;  %v20523_v31 = vld [vmem:[#allocation5 + $0x1138] ss:$40 sps:$4 sm:$0xff]   ;;  %v20528_v32 = vld [vmem:[#allocation5 + $0xbec] ss:$40 sps:$4 sm:$0xff]  }
  0xfb   :  { %4311 = vmatprep.subr.bf16.mxu1 %v20447_v33  ;;  %v20531_v33 = vld [vmem:[#allocation5 + $0x10ec] ss:$40 sps:$4 sm:$0xff]  }
  0xfd   :  { %4269 = vmatpush1.bf16.msra.mxu0 %v20442_v34  ;;  %v20526_v34 = vld [vmem:[#allocation5 + $0xbe8] ss:$40 sps:$4 sm:$0xff]  }
  0xfe   :  { %4312 = vmatpush1.bf16.msra.mxu1 %v20445_v35  ;;  %4270 = vmatprep.subr.bf16.mxu0 %v20450_v36  ;;  %v20529_v35 = vld [vmem:[#allocation5 + $0x10e8] ss:$40 sps:$4 sm:$0xff]   ;;  %v20534_v36 = vld [vmem:[#allocation5 + $0xb9c] ss:$40 sps:$4 sm:$0xff]  }
  0xff   :  { %4313 = vmatprep.subr.bf16.mxu1 %v20453_v37  ;;  %v20537_v37 = vld [vmem:[#allocation5 + $0x109c] ss:$40 sps:$4 sm:$0xff]  }
 0x101   :  { %4271 = vmatpush1.bf16.msra.mxu0 %v20448_v38  ;;  %v20532_v38 = vld [vmem:[#allocation5 + $0xb98] ss:$40 sps:$4 sm:$0xff]  }
 0x102   :  { %4314 = vmatpush1.bf16.msra.mxu1 %v20451_v39  ;;  %4272 = vmatprep.subr.bf16.mxu0 %v20456_v40  ;;  %v20535_v39 = vld [vmem:[#allocation5 + $0x1098] ss:$40 sps:$4 sm:$0xff]   ;;  %v20540_v40 = vld [vmem:[#allocation5 + $0xb4c] ss:$40 sps:$4 sm:$0xff]  }
 0x103   :  { %4315 = vmatprep.subr.bf16.mxu1 %v20459_v43  ;;  %v20543_v43 = vld [vmem:[#allocation5 + $0x104c] ss:$40 sps:$4 sm:$0xff]  }
 0x105   :  { %4273 = vmatpush1.bf16.msra.mxu0 %v20454_v44  ;;  %v20538_v44 = vld [vmem:[#allocation5 + $0xb48] ss:$40 sps:$4 sm:$0xff]  }
 0x106   :  { %4316 = vmatpush1.bf16.msra.mxu1 %v20457_v45  ;;  %4274 = vmatprep.subr.bf16.mxu0 %v20462_v46  ;;  %v20541_v45 = vld [vmem:[#allocation5 + $0x1048] ss:$40 sps:$4 sm:$0xff]   ;;  %v20546_v46 = vld [vmem:[#allocation5 + $0xafc] ss:$40 sps:$4 sm:$0xff]  }
 0x107   :  { %4317 = vmatprep.subr.bf16.mxu1 %v20465_v47  ;;  %v20549_v47 = vld [vmem:[#allocation5 + $0xffc] ss:$40 sps:$4 sm:$0xff]  }
 0x109   :  { %4275 = vmatpush1.bf16.msra.mxu0 %v20460_v48  ;;  %v20544_v48 = vld [vmem:[#allocation5 + $0xaf8] ss:$40 sps:$4 sm:$0xff]  }
 0x10a   :  { %4318 = vmatpush1.bf16.msra.mxu1 %v20463_v49  ;;  %4276 = vmatprep.subr.bf16.mxu0 %v20468_v50  ;;  %v20547_v49 = vld [vmem:[#allocation5 + $0xff8] ss:$40 sps:$4 sm:$0xff]   ;;  %v20552_v50 = vld [vmem:[#allocation5 + $0xaac] ss:$40 sps:$4 sm:$0xff]  }
 0x10b   :  { %4319 = vmatprep.subr.bf16.mxu1 %v20471_v51  ;;  %v20555_v51 = vld [vmem:[#allocation5 + $0xfac] ss:$40 sps:$4 sm:$0xff]  }
 0x10d   :  { %4277 = vmatpush1.bf16.msra.mxu0 %v20466_v52  ;;  %v20550_v52 = vld [vmem:[#allocation5 + $0xaa8] ss:$40 sps:$4 sm:$0xff]  }
 0x10e   :  { %4320 = vmatpush1.bf16.msra.mxu1 %v20469_v55  ;;  %4278 = vmatprep.subr.bf16.mxu0 %v20474_v56  ;;  %v20553_v55 = vld [vmem:[#allocation5 + $0xfa8] ss:$40 sps:$4 sm:$0xff]   ;;  %v20558_v56 = vld [vmem:[#allocation5 + $0xa5c] ss:$40 sps:$4 sm:$0xff]  }
 0x10f   :  { %4321 = vmatprep.subr.bf16.mxu1 %v20477_v57  ;;  %v20561_v57 = vld [vmem:[#allocation5 + $0xf5c] ss:$40 sps:$4 sm:$0xff]  }
 0x111   :  { %4279 = vmatpush2.bf16.msra.mxu0 %v20472_v58  ;;  %v20556_v58 = vld [vmem:[#allocation5 + $0xa58] ss:$40 sps:$4 sm:$0xff]  }
 0x112   :  { %4322 = vmatpush2.bf16.msra.mxu1 %v20475_v59  ;;  %4280 = vmatprep.subr.bf16.mxu0 %v20480_v60  ;;  %v20559_v59 = vld [vmem:[#allocation5 + $0xf58] ss:$40 sps:$4 sm:$0xff]   ;;  %v20564_v60 = vld [vmem:[#allocation5 + $0xa0c] ss:$40 sps:$4 sm:$0xff]  }
 0x113   :  { %4323 = vmatprep.subr.bf16.mxu1 %v20483_v61  ;;  %v20567_v61 = vld [vmem:[#allocation5 + $0xf0c] ss:$40 sps:$4 sm:$0xff]  }
 0x115   :  { %4281 = vmatpush2.bf16.msra.mxu0 %v20478_v62  ;;  %v20562_v62 = vld [vmem:[#allocation5 + $0xa08] ss:$40 sps:$4 sm:$0xff]  }
 0x116   :  { %4324 = vmatpush2.bf16.msra.mxu1 %v20481_v63  ;;  %4282 = vmatprep.subr.bf16.mxu0 %v20486_v0  ;;  %v20565_v63 = vld [vmem:[#allocation5 + $0xf08] ss:$40 sps:$4 sm:$0xff]   ;;  %v20570_v0 = vld [vmem:[#allocation5 + $0xebc] ss:$40 sps:$4 sm:$0xff]  }
 0x117   :  { %4325 = vmatprep.subr.bf16.mxu1 %v20489_v1  ;;  %v20573_v1 = vld [vmem:[#allocation5 + $0x13bc] ss:$40 sps:$4 sm:$0xff]  }
 0x119   :  { %4283 = vmatpush2.bf16.msra.mxu0 %v20484_v2  ;;  %v20568_v2 = vld [vmem:[#allocation5 + $0xeb8] ss:$40 sps:$4 sm:$0xff]  }
 0x11a   :  { %4326 = vmatpush2.bf16.msra.mxu1 %v20487_v3  ;;  %4284 = vmatprep.subr.bf16.mxu0 %v20492_v4  ;;  %v20571_v3 = vld [vmem:[#allocation5 + $0x13b8] ss:$40 sps:$4 sm:$0xff]   ;;  %v20576_v4 = vld [vmem:[#allocation5 + $0xe6c] ss:$40 sps:$4 sm:$0xff]  }
 0x11b   :  { %4327 = vmatprep.subr.bf16.mxu1 %v20495_v5  ;;  %v20579_v5 = vld [vmem:[#allocation5 + $0x136c] ss:$40 sps:$4 sm:$0xff]  }
 0x11d   :  { %4285 = vmatpush2.bf16.msra.mxu0 %v20490_v6  ;;  %v20574_v6 = vld [vmem:[#allocation5 + $0xe68] ss:$40 sps:$4 sm:$0xff]  }
 0x11e   :  { %4328 = vmatpush2.bf16.msra.mxu1 %v20493_v7  ;;  %4286 = vmatprep.subr.bf16.mxu0 %v20498_v10  ;;  %v20577_v7 = vld [vmem:[#allocation5 + $0x1368] ss:$40 sps:$4 sm:$0xff]   ;;  %v20582_v10 = vld [vmem:[#allocation5 + $0xe1c] ss:$40 sps:$4 sm:$0xff]  }
 0x11f   :  { %4329 = vmatprep.subr.bf16.mxu1 %v20501_v11  ;;  %v20585_v11 = vld [vmem:[#allocation5 + $0x131c] ss:$40 sps:$4 sm:$0xff]  }
 0x121   :  { %4287 = vmatpush2.bf16.msra.mxu0 %v20496_v12  ;;  %v20580_v12 = vld [vmem:[#allocation5 + $0xe18] ss:$40 sps:$4 sm:$0xff]  }
 0x122   :  { %4330 = vmatpush2.bf16.msra.mxu1 %v20499_v13  ;;  %4288 = vmatprep.subr.bf16.mxu0 %v20504_v14  ;;  %v20583_v13 = vld [vmem:[#allocation5 + $0x1318] ss:$40 sps:$4 sm:$0xff]   ;;  %v20588_v14 = vld [vmem:[#allocation5 + $0xdcc] ss:$40 sps:$4 sm:$0xff]  }
 0x123   :  { %4331 = vmatprep.subr.bf16.mxu1 %v20507_v15  ;;  %v20591_v15 = vld [vmem:[#allocation5 + $0x12cc] ss:$40 sps:$4 sm:$0xff]  }
 0x125   :  { %4289 = vmatpush2.bf16.msra.mxu0 %v20502_v16  ;;  %v20586_v16 = vld [vmem:[#allocation5 + $0xdc8] ss:$40 sps:$4 sm:$0xff]  }
 0x126   :  { %4332 = vmatpush2.bf16.msra.mxu1 %v20505_v17  ;;  %4290 = vmatprep.subr.bf16.mxu0 %v20510_v18  ;;  %v20589_v17 = vld [vmem:[#allocation5 + $0x12c8] ss:$40 sps:$4 sm:$0xff]   ;;  %v20594_v18 = vld [vmem:[#allocation5 + $0xd7c] ss:$40 sps:$4 sm:$0xff]  }
 0x127   :  { %4333 = vmatprep.subr.bf16.mxu1 %v20513_v19  ;;  %v20597_v19 = vld [vmem:[#allocation5 + $0x127c] ss:$40 sps:$4 sm:$0xff]  }
 0x129   :  { %4291 = vmatpush2.bf16.msra.mxu0 %v20508_v22  ;;  %v20592_v22 = vld [vmem:[#allocation5 + $0xd78] ss:$40 sps:$4 sm:$0xff]  }
 0x12a   :  { %4334 = vmatpush2.bf16.msra.mxu1 %v20511_v23  ;;  %4292 = vmatprep.subr.bf16.mxu0 %v20516_v24  ;;  %v20595_v23 = vld [vmem:[#allocation5 + $0x1278] ss:$40 sps:$4 sm:$0xff]   ;;  %v20600_v24 = vld [vmem:[#allocation5 + $0xd2c] ss:$40 sps:$4 sm:$0xff]  }
 0x12b   :  { %4335 = vmatprep.subr.bf16.mxu1 %v20519_v25  ;;  %v20603_v25 = vld [vmem:[#allocation5 + $0x122c] ss:$40 sps:$4 sm:$0xff]  }
 0x12d   :  { %4293 = vmatpush2.bf16.msra.mxu0 %v20514_v26  ;;  %v20598_v26 = vld [vmem:[#allocation5 + $0xd28] ss:$40 sps:$4 sm:$0xff]  }
 0x12e   :  { %4336 = vmatpush2.bf16.msra.mxu1 %v20517_v27  ;;  %4348 = vmatprep.subr.bf16.mxu0 %v20522_v28  ;;  %v20601_v27 = vld [vmem:[#allocation5 + $0x1228] ss:$40 sps:$4 sm:$0xff]   ;;  %v800_v28 = vlaneseq }
 0x12f   :  { %4391 = vmatprep.subr.bf16.mxu1 %v20525_v29  ;;  %v20606_v29 = vld [vmem:[#allocation5 + $0xcdc] ss:$40 sps:$4 sm:$0xff]  }
 0x130   :  { %4295 = vmatmul.mubr.bf16.vlgmr.msra.gmra.mxu0 %v23992_v8 }
 0x131   :  { %4338 = vmatmul.mubr.bf16.vlgmr.msra.gmra.mxu1 %v23994_v9  ;;  %4349 = vmatpush1.bf16.msra.mxu0 %v20520_v30  ;;  %v20609_v30 = vld [vmem:[#allocation5 + $0x11dc] ss:$40 sps:$4 sm:$0xff]  }
 0x132   :  { %4392 = vmatpush1.bf16.msra.mxu1 %v20523_v31  ;;  %4350 = vmatprep.subr.bf16.mxu0 %v20528_v32  ;;  %v20604_v31 = vld [vmem:[#allocation5 + $0xcd8] ss:$40 sps:$4 sm:$0xff]  }
 0x133   :  { %4393 = vmatprep.subr.bf16.mxu1 %v20531_v33  ;;  %4380 = vmatprep.mubr.bf16.mxu0 %v24008_v41  ;;  %v20607_v32 = vld [vmem:[#allocation5 + $0x11d8] ss:$40 sps:$4 sm:$0xff]   ;;  %v24032_v33 = vshrl.u32 %v800_v28, 7  ;;  %v20669_v28 = vld [vmem:[#allocation5 + $0x9c4] ss:$40 sps:$4 sm:$0xff]  }
 0x134   :  { %4423 = vmatprep.mubr.bf16.mxu1 %v24012_v42 }
 0x135   :  { %4351 = vmatpush1.bf16.msra.mxu0 %v20526_v34  ;;  %v20612_v34 = vld [vmem:[#allocation5 + $0xc8c] ss:$40 sps:$4 sm:$0xff]  }
 0x136   :  { %4394 = vmatpush1.bf16.msra.mxu1 %v20529_v35  ;;  %4352 = vmatprep.subr.bf16.mxu0 %v20534_v36  ;;  %v20615_v35 = vld [vmem:[#allocation5 + $0x118c] ss:$40 sps:$4 sm:$0xff]   ;;  %v20610_v36 = vld [vmem:[#allocation5 + $0xc88] ss:$40 sps:$4 sm:$0xff]  }
 0x137   :  { %4395 = vmatprep.subr.bf16.mxu1 %v20537_v37  ;;  %v20613_v37 = vld [vmem:[#allocation5 + $0x1188] ss:$40 sps:$4 sm:$0xff]  }
 0x139   :  { %4353 = vmatpush1.bf16.msra.mxu0 %v20532_v38  ;;  %v796_v38 = vld [vmem:[#allocation7] sm:$0xff] }
 0x13a   :  { %4396 = vmatpush1.bf16.msra.mxu1 %v20535_v39  ;;  %4354 = vmatprep.subr.bf16.mxu0 %v20540_v40  ;;  %v24035_v39 = vsub.s32 0, %v24032_v33  ;;  %v20618_v40 = vld [vmem:[#allocation5 + $0x244] ss:$40 sps:$4 sm:$0xff]  }
 0x13b   :  { %4397 = vmatprep.subr.bf16.mxu1 %v20543_v43  ;;  %v20621_v43 = vld [vmem:[#allocation5 + $0x744] ss:$40 sps:$4 sm:$0xff]  }
 0x13d   :  { %4355 = vmatpush1.bf16.msra.mxu0 %v20538_v44  ;;  %v20616_v44 = vld [vmem:[#allocation5 + $0x240] ss:$40 sps:$4 sm:$0xff]  }
 0x13e   :  { %4398 = vmatpush1.bf16.msra.mxu1 %v20541_v45  ;;  %4356 = vmatprep.subr.bf16.mxu0 %v20546_v46  ;;  %v803_v45 = vrot.slane %v796_v38, %v24035_v39  ;;  %v20619_v46 = vld [vmem:[#allocation5 + $0x740] ss:$40 sps:$4 sm:$0xff]  }
 0x13f   :  { %4399 = vmatprep.subr.bf16.mxu1 %v20549_v47  ;;  %v20624_v47 = vld [vmem:[#allocation5 + $0x1f4] ss:$40 sps:$4 sm:$0xff]   ;;  %v20676_v38 = vld [vmem:[#allocation5 + $0x420] ss:$40 sps:$4 sm:$0xff]  }
 0x141   :  { %4357 = vmatpush1.bf16.msra.mxu0 %v20544_v48  ;;  %v20627_v48 = vld [vmem:[#allocation5 + $0x6f4] ss:$40 sps:$4 sm:$0xff]  }
 0x142   :  { %4400 = vmatpush1.bf16.msra.mxu1 %v20547_v49  ;;  %4358 = vmatprep.subr.bf16.mxu0 %v20552_v50 }
 0x143   :  { %4401 = vmatprep.subr.bf16.mxu1 %v20555_v51  ;;  %v20622_v51 = vld [vmem:[#allocation5 + $0x1f0] ss:$40 sps:$4 sm:$0xff]  }
 0x145   :  { %4359 = vmatpush1.bf16.msra.mxu0 %v20550_v52 }
 0x146   :  { %4402 = vmatpush1.bf16.msra.mxu1 %v20553_v55  ;;  %4360 = vmatprep.subr.bf16.mxu0 %v20558_v56  ;;  %v20625_v55 = vld [vmem:[#allocation5 + $0x6f0] ss:$40 sps:$4 sm:$0xff]  }
 0x147   :  { %4403 = vmatprep.subr.bf16.mxu1 %v20561_v57 }
 0x149   :  { %4361 = vmatpush1.bf16.msra.mxu0 %v20556_v58  ;;  %v20630_v58 = vld [vmem:[#allocation5 + $0x1a4] ss:$40 sps:$4 sm:$0xff]  }
 0x14a   :  { %4404 = vmatpush1.bf16.msra.mxu1 %v20559_v59  ;;  %4362 = vmatprep.subr.bf16.mxu0 %v20564_v60  ;;  %v20633_v59 = vld [vmem:[#allocation5 + $0x6a4] ss:$40 sps:$4 sm:$0xff]  }
 0x14b   :  { %4405 = vmatprep.subr.bf16.mxu1 %v20567_v61  ;;  %v20628_v61 = vld [vmem:[#allocation5 + $0x1a0] ss:$40 sps:$4 sm:$0xff]  }
 0x14d   :  { %4363 = vmatpush1.bf16.msra.mxu0 %v20562_v62 }
 0x14e   :  { %4406 = vmatpush1.bf16.msra.mxu1 %v20565_v63  ;;  %4364 = vmatprep.subr.bf16.mxu0 %v20570_v0  ;;  %v20631_v63 = vld [vmem:[#allocation5 + $0x6a0] ss:$40 sps:$4 sm:$0xff]  }
 0x14f   :  { %4407 = vmatprep.subr.bf16.mxu1 %v20573_v1  ;;  %v20636_v1 = vld [vmem:[#allocation5 + $0x154] ss:$40 sps:$4 sm:$0xff]  }
 0x151   :  { %4365 = vmatpush2.bf16.msra.mxu0 %v20568_v2 }
 0x152   :  { %4408 = vmatpush2.bf16.msra.mxu1 %v20571_v3  ;;  %4366 = vmatprep.subr.bf16.mxu0 %v20576_v4  ;;  %v20639_v3 = vld [vmem:[#allocation5 + $0x654] ss:$40 sps:$4 sm:$0xff]  }
 0x153   :  { %4409 = vmatprep.subr.bf16.mxu1 %v20579_v5  ;;  %v20634_v5 = vld [vmem:[#allocation5 + $0x150] ss:$40 sps:$4 sm:$0xff]  }
 0x155   :  { %4367 = vmatpush2.bf16.msra.mxu0 %v20574_v6  ;;  %v20637_v6 = vld [vmem:[#allocation5 + $0x650] ss:$40 sps:$4 sm:$0xff]  }
 0x156   :  { %4410 = vmatpush2.bf16.msra.mxu1 %v20577_v7  ;;  %4368 = vmatprep.subr.bf16.mxu0 %v20582_v10  ;;  %v20642_v7 = vld [vmem:[#allocation5 + $0x104] ss:$40 sps:$4 sm:$0xff]  }
 0x157   :  { %4411 = vmatprep.subr.bf16.mxu1 %v20585_v11  ;;  %v20645_v10 = vld [vmem:[#allocation5 + $0x604] ss:$40 sps:$4 sm:$0xff]   ;;  %v20640_v11 = vld [vmem:[#allocation5 + $0x100] ss:$40 sps:$4 sm:$0xff]  }
 0x159   :  { %4369 = vmatpush2.bf16.msra.mxu0 %v20580_v12  ;;  %v20643_v12 = vld [vmem:[#allocation5 + $0x600] ss:$40 sps:$4 sm:$0xff]  }
 0x15a   :  { %4412 = vmatpush2.bf16.msra.mxu1 %v20583_v13  ;;  %4370 = vmatprep.subr.bf16.mxu0 %v20588_v14  ;;  %v20648_v13 = vld [vmem:[#allocation5 + $0xb4] ss:$40 sps:$4 sm:$0xff]  }
 0x15b   :  { %4413 = vmatprep.subr.bf16.mxu1 %v20591_v15  ;;  %v20651_v14 = vld [vmem:[#allocation5 + $0x5b4] ss:$40 sps:$4 sm:$0xff]   ;;  %v20646_v15 = vld [vmem:[#allocation5 + $0xb0] ss:$40 sps:$4 sm:$0xff]  }
 0x15d   :  { %4371 = vmatpush2.bf16.msra.mxu0 %v20586_v16  ;;  %v20649_v16 = vld [vmem:[#allocation5 + $0x5b0] ss:$40 sps:$4 sm:$0xff]  }
 0x15e   :  { %4414 = vmatpush2.bf16.msra.mxu1 %v20589_v17  ;;  %4372 = vmatprep.subr.bf16.mxu0 %v20594_v18  ;;  %v20654_v17 = vld [vmem:[#allocation5 + $0x64] ss:$40 sps:$4 sm:$0xff]  }
 0x15f   :  { %4415 = vmatprep.subr.bf16.mxu1 %v20597_v19  ;;  %v20657_v18 = vld [vmem:[#allocation5 + $0x564] ss:$40 sps:$4 sm:$0xff]   ;;  %v20652_v19 = vld [vmem:[#allocation5 + $0x60] ss:$40 sps:$4 sm:$0xff]  }
 0x161   :  { %4373 = vmatpush2.bf16.msra.mxu0 %v20592_v22  ;;  %v20655_v22 = vld [vmem:[#allocation5 + $0x560] ss:$40 sps:$4 sm:$0xff]  }
 0x162   :  { %4416 = vmatpush2.bf16.msra.mxu1 %v20595_v23  ;;  %4374 = vmatprep.subr.bf16.mxu0 %v20600_v24  ;;  %v20660_v23 = vld [vmem:[#allocation5 + $0x14] ss:$40 sps:$4 sm:$0xff]  }
 0x163   :  { %4417 = vmatprep.subr.bf16.mxu1 %v20603_v25  ;;  %v20663_v24 = vld [vmem:[#allocation5 + $0x514] ss:$40 sps:$4 sm:$0xff]   ;;  %v20658_v25 = vld [vmem:[#allocation5 + $0x10] ss:$40 sps:$4 sm:$0xff]  }
 0x165   :  { %4375 = vmatpush2.bf16.msra.mxu0 %v20598_v26  ;;  %v20661_v26 = vld [vmem:[#allocation5 + $0x510] ss:$40 sps:$4 sm:$0xff]  }
 0x166   :  { %4418 = vmatpush2.bf16.msra.mxu1 %v20601_v27  ;;  %4376 = vmatprep.subr.bf16.mxu0 %v20606_v29  ;;  %v20666_v27 = vld [vmem:[#allocation5 + $0x4c4] ss:$40 sps:$4 sm:$0xff]   ;;  %v20664_v29 = vld [vmem:[#allocation5 + $0x4c0] ss:$40 sps:$4 sm:$0xff]  }
 0x167   :  { %4419 = vmatprep.subr.bf16.mxu1 %v20609_v30  ;;  %v20667_v30 = vld [vmem:[#allocation5 + $0x9c0] ss:$40 sps:$4 sm:$0xff]  }
 0x169   :  { %4377 = vmatpush2.bf16.msra.mxu0 %v20604_v31  ;;  %v20672_v31 = vld [vmem:[#allocation5 + $0x474] ss:$40 sps:$4 sm:$0xff]  }
 0x16a   :  { %4420 = vmatpush2.bf16.msra.mxu1 %v20607_v32  ;;  %4378 = vmatprep.subr.bf16.mxu0 %v20612_v34  ;;  %v20675_v32 = vld [vmem:[#allocation5 + $0x974] ss:$40 sps:$4 sm:$0xff]   ;;  %v20670_v34 = vld [vmem:[#allocation5 + $0x470] ss:$40 sps:$4 sm:$0xff]  }
 0x16b   :  { %4421 = vmatprep.subr.bf16.mxu1 %v20615_v35  ;;  %v20673_v35 = vld [vmem:[#allocation5 + $0x970] ss:$40 sps:$4 sm:$0xff]  }
 0x16d   :  { %4379 = vmatpush2.bf16.msra.mxu0 %v20610_v36  ;;  %v20678_v36 = vld [vmem:[#allocation5 + $0x424] ss:$40 sps:$4 sm:$0xff]  }
 0x16e   :  { %4422 = vmatpush2.bf16.msra.mxu1 %v20613_v37  ;;  %4434 = vmatprep.subr.bf16.mxu0 %v20618_v40  ;;  %v20681_v37 = vld [vmem:[#allocation5 + $0x924] ss:$40 sps:$4 sm:$0xff]   ;;  %v20679_v40 = vld [vmem:[#allocation5 + $0x920] ss:$40 sps:$4 sm:$0xff]  }
 0x16f   :  { %4477 = vmatprep.subr.bf16.mxu1 %v20621_v43  ;;  %v20684_v43 = vld [vmem:[#allocation5 + $0x3d4] ss:$40 sps:$4 sm:$0xff]  }
 0x170   :  { %v4124_v49 = vpop.f32.mrf.mxu0  ;;  %4381 = vmatmul.mubr.bf16.vlgmr.msra.gmra.mxu0 %v24018_v20 }
 0x171   :  { %v4167_v50 = vpop.f32.mrf.mxu1  ;;  %4424 = vmatmul.mubr.bf16.vlgmr.msra.gmra.mxu1 %v24022_v21  ;;  %v4125_v52 = vadd.f32 %v4124_v49, %v803_v45  ;;  %4435 = vmatpush1.bf16.msra.mxu0 %v20616_v44  ;;  %v20687_v44 = vld [vmem:[#allocation5 + $0x8d4] ss:$40 sps:$4 sm:$0xff]   ;;  %v20688_v49 = vld [vmem:[#allocation5 + $0x380] ss:$40 sps:$4 sm:$0xff]  }
 0x172   :  { %4478 = vmatpush1.bf16.msra.mxu1 %v20619_v46  ;;  %v24040_v56 = vpop.f32.mrf.mxu0  ;;  %4436 = vmatprep.subr.bf16.mxu0 %v20624_v47  ;;  %v20685_v46 = vld [vmem:[#allocation5 + $0x8d0] ss:$40 sps:$4 sm:$0xff]   ;;  %v20690_v47 = vld [vmem:[#allocation5 + $0x384] ss:$40 sps:$4 sm:$0xff]  }
 0x173   :  { %v24042_v57 = vpop.f32.mrf.mxu1  ;;  %4479 = vmatprep.subr.bf16.mxu1 %v20627_v48  ;;  %v24044_v60 = vadd.f32 %v4167_v50, %v4125_v52  ;;  %4466 = vmatprep.mubr.bf16.mxu0 %v23986_v53  ;;  %v20693_v48 = vld [vmem:[#allocation5 + $0x884] ss:$40 sps:$4 sm:$0xff]   ;;  %v20691_v50 = vld [vmem:[#allocation5 + $0x880] ss:$40 sps:$4 sm:$0xff]   ;;  %v20699_v52 = vld [vmem:[#allocation5 + $0x834] ss:$40 sps:$4 sm:$0xff]  }
 0x174   :  { %4509 = vmatprep.mubr.bf16.mxu1 %v23988_v54  ;;  %v4128_v62 = vpop.f32.mrf.mxu0 }
 0x175   :  { %v4129_v0 = vadd.f32 %v4128_v62, %v803_v45  ;;  %4437 = vmatpush1.bf16.msra.mxu0 %v20622_v51  ;;  %v4171_v2 = vpop.f32.mrf.mxu1  ;;  %v20682_v45 = vld [vmem:[#allocation5 + $0x3d0] ss:$40 sps:$4 sm:$0xff]   ;;  %v20696_v51 = vld [vmem:[#allocation5 + $0x334] ss:$40 sps:$4 sm:$0xff]   ;;  %v20700_v62 = vld [vmem:[#allocation5 + $0x2e0] ss:$40 sps:$4 sm:$0xff]  }
 0x176   :  { %4480 = vmatpush1.bf16.msra.mxu1 %v20625_v55  ;;  %4438 = vmatprep.subr.bf16.mxu0 %v20630_v58  ;;  %v20694_v55 = vld [vmem:[#allocation5 + $0x330] ss:$40 sps:$4 sm:$0xff]  }
 0x177   :  { %4481 = vmatprep.subr.bf16.mxu1 %v20633_v59  ;;  %v24048_v4 = vadd.f32 %v4171_v2, %v4129_v0  ;;  %v20697_v58 = vld [vmem:[#allocation5 + $0x830] ss:$40 sps:$4 sm:$0xff]   ;;  %v20702_v59 = vld [vmem:[#allocation5 + $0x2e4] ss:$40 sps:$4 sm:$0xff]   ;;  %v20708_v0 = vld [vmem:[#allocation5 + $0x294] ss:$40 sps:$4 sm:$0xff]  }
 0x178   :  { %v20706_v2 = vld [vmem:[#allocation5 + $0x290] ss:$40 sps:$4 sm:$0xff]  }
 0x179   :  { %4439 = vmatpush1.bf16.msra.mxu0 %v20628_v61  ;;  %v20705_v61 = vld [vmem:[#allocation5 + $0x7e4] ss:$40 sps:$4 sm:$0xff]  }
 0x17a   :  { %4482 = vmatpush1.bf16.msra.mxu1 %v20631_v63  ;;  %4440 = vmatprep.subr.bf16.mxu0 %v20636_v1  ;;  %v20703_v63 = vld [vmem:[#allocation5 + $0x7e0] ss:$40 sps:$4 sm:$0xff]   ;;  %v20711_v1 = vld [vmem:[#allocation5 + $0x794] ss:$40 sps:$4 sm:$0xff]  }
 0x17b   :  { %4483 = vmatprep.subr.bf16.mxu1 %v20639_v3  ;;  %v20709_v3 = vld [vmem:[#allocation5 + $0x790] ss:$40 sps:$4 sm:$0xff]  }
 0x17d   :  { %4441 = vmatpush1.bf16.msra.mxu0 %v20634_v5  ;;  %v20714_v5 = vld [vmem:[#allocation5 + $0xc44] ss:$40 sps:$4 sm:$0xff]  }
 0x17e   :  { %4484 = vmatpush1.bf16.msra.mxu1 %v20637_v6  ;;  %4442 = vmatprep.subr.bf16.mxu0 %v20642_v7  ;;  %v20717_v6 = vld [vmem:[#allocation5 + $0x1144] ss:$40 sps:$4 sm:$0xff]   ;;  %v20712_v7 = vld [vmem:[#allocation5 + $0xc40] ss:$40 sps:$4 sm:$0xff]  }
 0x17f   :  { %4485 = vmatprep.subr.bf16.mxu1 %v20645_v10  ;;  %v20715_v10 = vld [vmem:[#allocation5 + $0x1140] ss:$40 sps:$4 sm:$0xff]  }
 0x181   :  { %4443 = vmatpush1.bf16.msra.mxu0 %v20640_v11  ;;  %v24050_v11 = vpop.f32.mrf.mxu0 }
 0x182   :  { %4486 = vmatpush1.bf16.msra.mxu1 %v20643_v12  ;;  %4444 = vmatprep.subr.bf16.mxu0 %v20648_v13  ;;  %v24052_v12 = vpop.f32.mrf.mxu1  ;;  %v20720_v13 = vld [vmem:[#allocation5 + $0xbf4] ss:$40 sps:$4 sm:$0xff]  }
 0x183   :  { %4487 = vmatprep.subr.bf16.mxu1 %v20651_v14  ;;  %v20723_v14 = vld [vmem:[#allocation5 + $0x10f4] ss:$40 sps:$4 sm:$0xff]  }
 0x185   :  { %4445 = vmatpush1.bf16.msra.mxu0 %v20646_v15  ;;  %v20718_v15 = vld [vmem:[#allocation5 + $0xbf0] ss:$40 sps:$4 sm:$0xff]  }
 0x186   :  { %4488 = vmatpush1.bf16.msra.mxu1 %v20649_v16  ;;  %4446 = vmatprep.subr.bf16.mxu0 %v20654_v17  ;;  %v20721_v16 = vld [vmem:[#allocation5 + $0x10f0] ss:$40 sps:$4 sm:$0xff]  }
 0x187   :  { %4489 = vmatprep.subr.bf16.mxu1 %v20657_v18 }
 0x189   :  { %4447 = vmatpush1.bf16.msra.mxu0 %v20652_v19 }
 0x18a   :  { %4490 = vmatpush1.bf16.msra.mxu1 %v20655_v22  ;;  %4448 = vmatprep.subr.bf16.mxu0 %v20660_v23 }
 0x18b   :  { %4491 = vmatprep.subr.bf16.mxu1 %v20663_v24  ;;  %v20726_v24 = vld [vmem:[#allocation5 + $0xba4] ss:$40 sps:$4 sm:$0xff]  }
 0x18d   :  { %4449 = vmatpush1.bf16.msra.mxu0 %v20658_v25  ;;  %v20729_v25 = vld [vmem:[#allocation5 + $0x10a4] ss:$40 sps:$4 sm:$0xff]  }
 0x18e   :  { %4492 = vmatpush1.bf16.msra.mxu1 %v20661_v26  ;;  %4450 = vmatprep.subr.bf16.mxu0 %v20666_v27  ;;  %v20724_v27 = vld [vmem:[#allocation5 + $0xba0] ss:$40 sps:$4 sm:$0xff]  }
 0x18f   :  { %4493 = vmatprep.subr.bf16.mxu1 %v20669_v28  ;;  %v20727_v28 = vld [vmem:[#allocation5 + $0x10a0] ss:$40 sps:$4 sm:$0xff]  }
 0x191   :  { %4451 = vmatpush2.bf16.msra.mxu0 %v20664_v29 }
 0x192   :  { %4494 = vmatpush2.bf16.msra.mxu1 %v20667_v30  ;;  %4452 = vmatprep.subr.bf16.mxu0 %v20672_v31  ;;  %v20732_v31 = vld [vmem:[#allocation5 + $0xb54] ss:$40 sps:$4 sm:$0xff]  }
 0x193   :  { %4495 = vmatprep.subr.bf16.mxu1 %v20675_v32  ;;  %v20735_v32 = vld [vmem:[#allocation5 + $0x1054] ss:$40 sps:$4 sm:$0xff]  }
 0x195   :  { %4453 = vmatpush2.bf16.msra.mxu0 %v20670_v34 }
 0x196   :  { %4496 = vmatpush2.bf16.msra.mxu1 %v20673_v35  ;;  %4454 = vmatprep.subr.bf16.mxu0 %v20678_v36  ;;  %v20730_v35 = vld [vmem:[#allocation5 + $0xb50] ss:$40 sps:$4 sm:$0xff]  }
 0x197   :  { %4497 = vmatprep.subr.bf16.mxu1 %v20681_v37  ;;  %v20733_v36 = vld [vmem:[#allocation5 + $0x1050] ss:$40 sps:$4 sm:$0xff]  }
 0x199   :  { %4455 = vmatpush2.bf16.msra.mxu0 %v20676_v38 }
 0x19a   :  { %4498 = vmatpush2.bf16.msra.mxu1 %v20679_v40  ;;  %4456 = vmatprep.subr.bf16.mxu0 %v20684_v43  ;;  %v20738_v40 = vld [vmem:[#allocation5 + $0xb04] ss:$40 sps:$4 sm:$0xff]  }
 0x19b   :  { %4499 = vmatprep.subr.bf16.mxu1 %v20687_v44  ;;  %v20741_v43 = vld [vmem:[#allocation5 + $0x1004] ss:$40 sps:$4 sm:$0xff]  }
 0x19d   :  { %4457 = vmatpush2.bf16.msra.mxu0 %v20682_v45  ;;  %v20739_v45 = vld [vmem:[#allocation5 + $0x1000] ss:$40 sps:$4 sm:$0xff]  }
 0x19e   :  { %4500 = vmatpush2.bf16.msra.mxu1 %v20685_v46  ;;  %4458 = vmatprep.subr.bf16.mxu0 %v20690_v47  ;;  %v20744_v46 = vld [vmem:[#allocation5 + $0xab4] ss:$40 sps:$4 sm:$0xff]  }
 0x19f   :  { %4501 = vmatprep.subr.bf16.mxu1 %v20693_v48  ;;  %v20747_v47 = vld [vmem:[#allocation5 + $0xfb4] ss:$40 sps:$4 sm:$0xff]   ;;  %v20742_v48 = vld [vmem:[#allocation5 + $0xab0] ss:$40 sps:$4 sm:$0xff]  }
 0x1a1   :  { %4459 = vmatpush2.bf16.msra.mxu0 %v20688_v49  ;;  %v20745_v49 = vld [vmem:[#allocation5 + $0xfb0] ss:$40 sps:$4 sm:$0xff]  }
 0x1a2   :  { %4502 = vmatpush2.bf16.msra.mxu1 %v20691_v50  ;;  %4460 = vmatprep.subr.bf16.mxu0 %v20696_v51  ;;  %v20750_v50 = vld [vmem:[#allocation5 + $0xa64] ss:$40 sps:$4 sm:$0xff]  }
 0x1a3   :  { %4503 = vmatprep.subr.bf16.mxu1 %v20699_v52  ;;  %v20753_v51 = vld [vmem:[#allocation5 + $0xf64] ss:$40 sps:$4 sm:$0xff]   ;;  %v20748_v52 = vld [vmem:[#allocation5 + $0xa60] ss:$40 sps:$4 sm:$0xff]  }
 0x1a5   :  { %4461 = vmatpush2.bf16.msra.mxu0 %v20694_v55  ;;  %v20751_v55 = vld [vmem:[#allocation5 + $0xf60] ss:$40 sps:$4 sm:$0xff]  }
 0x1a6   :  { %4504 = vmatpush2.bf16.msra.mxu1 %v20697_v58  ;;  %4462 = vmatprep.subr.bf16.mxu0 %v20702_v59  ;;  %v20756_v58 = vld [vmem:[#allocation5 + $0xa14] ss:$40 sps:$4 sm:$0xff]  }
 0x1a7   :  { %4505 = vmatprep.subr.bf16.mxu1 %v20705_v61  ;;  %v20759_v59 = vld [vmem:[#allocation5 + $0xf14] ss:$40 sps:$4 sm:$0xff]   ;;  %v20754_v61 = vld [vmem:[#allocation5 + $0xa10] ss:$40 sps:$4 sm:$0xff]  }
 0x1a9   :  { %4463 = vmatpush2.bf16.msra.mxu0 %v20700_v62  ;;  %v20757_v62 = vld [vmem:[#allocation5 + $0xf10] ss:$40 sps:$4 sm:$0xff]  }
 0x1aa   :  { %4506 = vmatpush2.bf16.msra.mxu1 %v20703_v63  ;;  %4464 = vmatprep.subr.bf16.mxu0 %v20708_v0  ;;  %v20762_v63 = vld [vmem:[#allocation5 + $0xec4] ss:$40 sps:$4 sm:$0xff]  }
 0x1ab   :  { %4507 = vmatprep.subr.bf16.mxu1 %v20711_v1  ;;  %v20765_v0 = vld [vmem:[#allocation5 + $0x13c4] ss:$40 sps:$4 sm:$0xff]   ;;  %v20760_v1 = vld [vmem:[#allocation5 + $0xec0] ss:$40 sps:$4 sm:$0xff]  }
 0x1ad   :  { %4465 = vmatpush2.bf16.msra.mxu0 %v20706_v2  ;;  %v20763_v2 = vld [vmem:[#allocation5 + $0x13c0] ss:$40 sps:$4 sm:$0xff]  }
 0x1ae   :  { %4508 = vmatpush2.bf16.msra.mxu1 %v20709_v3  ;;  %4520 = vmatprep.subr.bf16.mxu0 %v20714_v5  ;;  %v20768_v3 = vld [vmem:[#allocation5 + $0xe74] ss:$40 sps:$4 sm:$0xff]  }
 0x1af   :  { %4563 = vmatprep.subr.bf16.mxu1 %v20717_v6  ;;  %v20771_v5 = vld [vmem:[#allocation5 + $0x1374] ss:$40 sps:$4 sm:$0xff]   ;;  %v20766_v6 = vld [vmem:[#allocation5 + $0xe70] ss:$40 sps:$4 sm:$0xff]  }
 0x1b0   :  { %v4210_v17 = vpop.f32.mrf.mxu0  ;;  %4467 = vmatmul.mubr.bf16.vlgmr.msra.gmra.mxu0 %v23992_v8 }
 0x1b1   :  { %v4253_v18 = vpop.f32.mrf.mxu1  ;;  %4510 = vmatmul.mubr.bf16.vlgmr.msra.gmra.mxu1 %v23994_v9  ;;  %v4211_v19 = vadd.f32 %v4210_v17, %v24044_v60  ;;  %4521 = vmatpush1.bf16.msra.mxu0 %v20712_v7  ;;  %v20769_v7 = vld [vmem:[#allocation5 + $0x1370] ss:$40 sps:$4 sm:$0xff]   ;;  %v20783_v17 = vld [vmem:[#allocation5 + $0x12d4] ss:$40 sps:$4 sm:$0xff]  }
 0x1b2   :  { %4564 = vmatpush1.bf16.msra.mxu1 %v20715_v10  ;;  %v24057_v22 = vpop.f32.mrf.mxu0  ;;  %4522 = vmatprep.subr.bf16.mxu0 %v20720_v13  ;;  %v20774_v10 = vld [vmem:[#allocation5 + $0xe24] ss:$40 sps:$4 sm:$0xff]  }
 0x1b3   :  { %v24059_v23 = vpop.f32.mrf.mxu1  ;;  %4565 = vmatprep.subr.bf16.mxu1 %v20723_v14  ;;  %v4254_v26 = vadd.f32 %v4253_v18, %v4211_v19  ;;  %4552 = vmatprep.mubr.bf16.mxu0 %v24008_v41  ;;  %v20777_v13 = vld [vmem:[#allocation5 + $0x1324] ss:$40 sps:$4 sm:$0xff]   ;;  %v20772_v14 = vld [vmem:[#allocation5 + $0xe20] ss:$40 sps:$4 sm:$0xff]   ;;  %v20778_v18 = vld [vmem:[#allocation5 + $0xdd0] ss:$40 sps:$4 sm:$0xff]  }
 0x1b4   :  { %4595 = vmatprep.mubr.bf16.mxu1 %v24012_v42  ;;  %v4214_v29 = vpop.f32.mrf.mxu0  ;;  %v20781_v19 = vld [vmem:[#allocation5 + $0x12d0] ss:$40 sps:$4 sm:$0xff]  }
 0x1b5   :  { %v4215_v60 = vadd.f32 %v4214_v29, %v24048_v4  ;;  %4523 = vmatpush1.bf16.msra.mxu0 %v20718_v15  ;;  %v4257_v30 = vpop.f32.mrf.mxu1  ;;  %v4950_v37 = vmax.f32 %v4254_v26, 0.0  ;;  %v20736_v4 = vld [vmem:[#allocation5 + $0xb00] ss:$40 sps:$4 sm:$0xff]   ;;  %v20795_v29 = vld [vmem:[#allocation5 + $0x1234] ss:$40 sps:$4 sm:$0xff]  }
 0x1b6   :  { %4566 = vmatpush1.bf16.msra.mxu1 %v20721_v16  ;;  %4524 = vmatprep.subr.bf16.mxu0 %v20726_v24  ;;  %v20775_v15 = vld [vmem:[#allocation5 + $0x1320] ss:$40 sps:$4 sm:$0xff]   ;;  %v20780_v16 = vld [vmem:[#allocation5 + $0xdd4] ss:$40 sps:$4 sm:$0xff]   ;;  %v20786_v24 = vld [vmem:[#allocation5 + $0xd84] ss:$40 sps:$4 sm:$0xff]  }
 0x1b7   :  { %4567 = vmatprep.subr.bf16.mxu1 %v20729_v25  ;;  %v4258_v34 = vadd.f32 %v4257_v30, %v4215_v60  ;;  %v20789_v25 = vld [vmem:[#allocation5 + $0x1284] ss:$40 sps:$4 sm:$0xff]   ;;  %v20784_v26 = vld [vmem:[#allocation5 + $0xd80] ss:$40 sps:$4 sm:$0xff]   ;;  %v20790_v60 = vld [vmem:[#allocation5 + $0xd30] ss:$40 sps:$4 sm:$0xff]  }
 0x1b8   :  { %v20793_v30 = vld [vmem:[#allocation5 + $0x1230] ss:$40 sps:$4 sm:$0xff]  }
 0x1b9   :  { %v4960_v38 = vmax.f32 %v4258_v34, 0.0  ;;  %4525 = vmatpush1.bf16.msra.mxu0 %v20724_v27  ;;  %v20787_v27 = vld [vmem:[#allocation5 + $0x1280] ss:$40 sps:$4 sm:$0xff]  }
 0x1ba   :  { %4568 = vmatpush1.bf16.msra.mxu1 %v20727_v28  ;;  %4526 = vmatprep.subr.bf16.mxu0 %v20732_v31  ;;  %v20792_v28 = vld [vmem:[#allocation5 + $0xd34] ss:$40 sps:$4 sm:$0xff]   ;;  %v20798_v31 = vld [vmem:[#allocation5 + $0xce4] ss:$40 sps:$4 sm:$0xff]   ;;  %v20796_v34 = vld [vmem:[#allocation5 + $0xce0] ss:$40 sps:$4 sm:$0xff]  }
 0x1bb   :  { %4569 = vmatprep.subr.bf16.mxu1 %v20735_v32  ;;  %v24064_v44 = vpack.c.bf16 %v4960_v38, %v4950_v37  ;;  %v20801_v32 = vld [vmem:[#allocation5 + $0x11e4] ss:$40 sps:$4 sm:$0xff]   ;;  %v20807_v37 = vld [vmem:[#allocation5 + $0x1194] ss:$40 sps:$4 sm:$0xff]   ;;  %v20802_v38 = vld [vmem:[#allocation5 + $0xc90] ss:$40 sps:$4 sm:$0xff]  }
 0x1bd   :  { %4527 = vmatpush1.bf16.msra.mxu0 %v20730_v35  ;;  %v20799_v35 = vld [vmem:[#allocation5 + $0x11e0] ss:$40 sps:$4 sm:$0xff]  }
 0x1be   :  { %4570 = vmatpush1.bf16.msra.mxu1 %v20733_v36  ;;  %4528 = vmatprep.subr.bf16.mxu0 %v20738_v40  ;;  %v20804_v36 = vld [vmem:[#allocation5 + $0xc94] ss:$40 sps:$4 sm:$0xff]   ;;  %v20805_v40 = vld [vmem:[#allocation5 + $0x1190] ss:$40 sps:$4 sm:$0xff]  }
 0x1bf   :  { %4571 = vmatprep.subr.bf16.mxu1 %v20741_v43  ;;  %v24067_v43 = vsub.s32 2, %v24032_v33 }
 0x1c1   :  { %4529 = vmatpush1.bf16.msra.mxu0 %v20736_v4  ;;  %v20810_v4 = vld [vmem:[#allocation5 + $0x24c] ss:$40 sps:$4 sm:$0xff]  }
 0x1c2   :  { %4572 = vmatpush1.bf16.msra.mxu1 %v20739_v45  ;;  %4530 = vmatprep.subr.bf16.mxu0 %v20744_v46  ;;  %v20813_v45 = vld [vmem:[#allocation5 + $0x74c] ss:$40 sps:$4 sm:$0xff]   ;;  %v20808_v46 = vld [vmem:[#allocation5 + $0x248] ss:$40 sps:$4 sm:$0xff]  }
 0x1c3   :  { %4573 = vmatprep.subr.bf16.mxu1 %v20747_v47  ;;  %v20811_v47 = vld [vmem:[#allocation5 + $0x748] ss:$40 sps:$4 sm:$0xff]  }
 0x1c5   :  { %4531 = vmatpush1.bf16.msra.mxu0 %v20742_v48  ;;  %v23672_v48 = vld [vmem:[#allocation7] sm:$0xff] }
 0x1c6   :  { %4574 = vmatpush1.bf16.msra.mxu1 %v20745_v49  ;;  %4532 = vmatprep.subr.bf16.mxu0 %v20750_v50  ;;  %v811_v49 = vrot.slane %v23672_v48, %v24067_v43  ;;  %v24070_v50 = vpop.f32.mrf.mxu0  ;;  %v20864_v48 = vld [vmem:[#allocation5 + $0x47c] ss:$40 sps:$4 sm:$0xff]  }
 0x1c7   :  { %4575 = vmatprep.subr.bf16.mxu1 %v20753_v51  ;;  %v24072_v51 = vpop.f32.mrf.mxu1 }
 0x1c9   :  { %4533 = vmatpush1.bf16.msra.mxu0 %v20748_v52  ;;  %v20816_v52 = vld [vmem:[#allocation5 + $0x1fc] ss:$40 sps:$4 sm:$0xff]  }
 0x1ca   :  { %4576 = vmatpush1.bf16.msra.mxu1 %v20751_v55  ;;  %4534 = vmatprep.subr.bf16.mxu0 %v20756_v58  ;;  %v20819_v55 = vld [vmem:[#allocation5 + $0x6fc] ss:$40 sps:$4 sm:$0xff]   ;;  %v20814_v58 = vld [vmem:[#allocation5 + $0x1f8] ss:$40 sps:$4 sm:$0xff]  }
 0x1cb   :  { %4577 = vmatprep.subr.bf16.mxu1 %v20759_v59  ;;  %v20817_v59 = vld [vmem:[#allocation5 + $0x6f8] ss:$40 sps:$4 sm:$0xff]  }
 0x1cd   :  { %4535 = vmatpush1.bf16.msra.mxu0 %v20754_v61 }
 0x1ce   :  { %4578 = vmatpush1.bf16.msra.mxu1 %v20757_v62  ;;  %4536 = vmatprep.subr.bf16.mxu0 %v20762_v63 }
 0x1cf   :  { %4579 = vmatprep.subr.bf16.mxu1 %v20765_v0 }
 0x1d1   :  { %4537 = vmatpush2.bf16.msra.mxu0 %v20760_v1 }
 0x1d2   :  { %4580 = vmatpush2.bf16.msra.mxu1 %v20763_v2  ;;  %4538 = vmatprep.subr.bf16.mxu0 %v20768_v3  ;;  %v20822_v2 = vld [vmem:[#allocation5 + $0x1ac] ss:$40 sps:$4 sm:$0xff]  }
 0x1d3   :  { %4581 = vmatprep.subr.bf16.mxu1 %v20771_v5  ;;  %v20825_v3 = vld [vmem:[#allocation5 + $0x6ac] ss:$40 sps:$4 sm:$0xff]  }
 0x1d5   :  { %4539 = vmatpush2.bf16.msra.mxu0 %v20766_v6  ;;  %v20820_v6 = vld [vmem:[#allocation5 + $0x1a8] ss:$40 sps:$4 sm:$0xff]  }
 0x1d6   :  { %4582 = vmatpush2.bf16.msra.mxu1 %v20769_v7  ;;  %4540 = vmatprep.subr.bf16.mxu0 %v20774_v10  ;;  %v20823_v7 = vld [vmem:[#allocation5 + $0x6a8] ss:$40 sps:$4 sm:$0xff]  }
 0x1d7   :  { %4583 = vmatprep.subr.bf16.mxu1 %v20777_v13 }
 0x1d9   :  { %4541 = vmatpush2.bf16.msra.mxu0 %v20772_v14 }
 0x1da   :  { %4584 = vmatpush2.bf16.msra.mxu1 %v20775_v15  ;;  %4542 = vmatprep.subr.bf16.mxu0 %v20780_v16  ;;  %v20828_v15 = vld [vmem:[#allocation5 + $0x15c] ss:$40 sps:$4 sm:$0xff]  }
 0x1db   :  { %4585 = vmatprep.subr.bf16.mxu1 %v20783_v17  ;;  %v20831_v16 = vld [vmem:[#allocation5 + $0x65c] ss:$40 sps:$4 sm:$0xff]  }
 0x1dd   :  { %4543 = vmatpush2.bf16.msra.mxu0 %v20778_v18  ;;  %v20826_v18 = vld [vmem:[#allocation5 + $0x158] ss:$40 sps:$4 sm:$0xff]  }
 0x1de   :  { %4586 = vmatpush2.bf16.msra.mxu1 %v20781_v19  ;;  %4544 = vmatprep.subr.bf16.mxu0 %v20786_v24  ;;  %v20829_v19 = vld [vmem:[#allocation5 + $0x658] ss:$40 sps:$4 sm:$0xff]   ;;  %v20834_v24 = vld [vmem:[#allocation5 + $0x10c] ss:$40 sps:$4 sm:$0xff]  }
 0x1df   :  { %4587 = vmatprep.subr.bf16.mxu1 %v20789_v25  ;;  %v20837_v25 = vld [vmem:[#allocation5 + $0x60c] ss:$40 sps:$4 sm:$0xff]  }
 0x1e1   :  { %4545 = vmatpush2.bf16.msra.mxu0 %v20784_v26  ;;  %v20832_v26 = vld [vmem:[#allocation5 + $0x108] ss:$40 sps:$4 sm:$0xff]  }
 0x1e2   :  { %4588 = vmatpush2.bf16.msra.mxu1 %v20787_v27  ;;  %4546 = vmatprep.subr.bf16.mxu0 %v20792_v28  ;;  %v20835_v27 = vld [vmem:[#allocation5 + $0x608] ss:$40 sps:$4 sm:$0xff]   ;;  %v20840_v28 = vld [vmem:[#allocation5 + $0xbc] ss:$40 sps:$4 sm:$0xff]  }
 0x1e3   :  { %4589 = vmatprep.subr.bf16.mxu1 %v20795_v29  ;;  %v20843_v29 = vld [vmem:[#allocation5 + $0x5bc] ss:$40 sps:$4 sm:$0xff]  }
 0x1e5   :  { %4547 = vmatpush2.bf16.msra.mxu0 %v20790_v60  ;;  %v20838_v60 = vld [vmem:[#allocation5 + $0xb8] ss:$40 sps:$4 sm:$0xff]  }
 0x1e6   :  { %4590 = vmatpush2.bf16.msra.mxu1 %v20793_v30  ;;  %4548 = vmatprep.subr.bf16.mxu0 %v20798_v31  ;;  %v20841_v30 = vld [vmem:[#allocation5 + $0x5b8] ss:$40 sps:$4 sm:$0xff]   ;;  %v20846_v31 = vld [vmem:[#allocation5 + $0x6c] ss:$40 sps:$4 sm:$0xff]  }
 0x1e7   :  { %4591 = vmatprep.subr.bf16.mxu1 %v20801_v32  ;;  %v20849_v32 = vld [vmem:[#allocation5 + $0x56c] ss:$40 sps:$4 sm:$0xff]  }
 0x1e9   :  { %4549 = vmatpush2.bf16.msra.mxu0 %v20796_v34  ;;  %v20844_v34 = vld [vmem:[#allocation5 + $0x68] ss:$40 sps:$4 sm:$0xff]  }
 0x1ea   :  { %4592 = vmatpush2.bf16.msra.mxu1 %v20799_v35  ;;  %4550 = vmatprep.subr.bf16.mxu0 %v20804_v36  ;;  %v20847_v35 = vld [vmem:[#allocation5 + $0x568] ss:$40 sps:$4 sm:$0xff]   ;;  %v20852_v36 = vld [vmem:[#allocation5 + $0x1c] ss:$40 sps:$4 sm:$0xff]  }
 0x1eb   :  { %4593 = vmatprep.subr.bf16.mxu1 %v20807_v37  ;;  %v20855_v37 = vld [vmem:[#allocation5 + $0x51c] ss:$40 sps:$4 sm:$0xff]  }
 0x1ed   :  { %4551 = vmatpush2.bf16.msra.mxu0 %v20802_v38  ;;  %v20850_v38 = vld [vmem:[#allocation5 + $0x18] ss:$40 sps:$4 sm:$0xff]  }
 0x1ee   :  { %4594 = vmatpush2.bf16.msra.mxu1 %v20805_v40  ;;  %4606 = vmatprep.subr.bf16.mxu0 %v20810_v4  ;;  %v20853_v40 = vld [vmem:[#allocation5 + $0x518] ss:$40 sps:$4 sm:$0xff]   ;;  %v20858_v4 = vld [vmem:[#allocation5 + $0x4cc] ss:$40 sps:$4 sm:$0xff]  }
 0x1ef   :  { %4649 = vmatprep.subr.bf16.mxu1 %v20813_v45  ;;  %v20861_v45 = vld [vmem:[#allocation5 + $0x9cc] ss:$40 sps:$4 sm:$0xff]  }
 0x1f0   :  { %v4296_v61 = vpop.f32.mrf.mxu0  ;;  %4553 = vmatmul.mubr.bf16.vlgmr.msra.gmra.mxu0 %v24018_v20 }
 0x1f1   :  { %v4339_v62 = vpop.f32.mrf.mxu1  ;;  %4596 = vmatmul.mubr.bf16.vlgmr.msra.gmra.mxu1 %v24022_v21  ;;  %v4297_v63 = vadd.f32 %v4296_v61, %v811_v49  ;;  %4607 = vmatpush1.bf16.msra.mxu0 %v20808_v46  ;;  %v20856_v46 = vld [vmem:[#allocation5 + $0x4c8] ss:$40 sps:$4 sm:$0xff]  }
 0x1f2   :  { %4650 = vmatpush1.bf16.msra.mxu1 %v20811_v47  ;;  %v24076_v0 = vpop.f32.mrf.mxu0  ;;  %4608 = vmatprep.subr.bf16.mxu0 %v20816_v52  ;;  %v20859_v47 = vld [vmem:[#allocation5 + $0x9c8] ss:$40 sps:$4 sm:$0xff]   ;;  %v20862_v52 = vld [vmem:[#allocation5 + $0x478] ss:$40 sps:$4 sm:$0xff]  }
 0x1f3   :  { %v24078_v1 = vpop.f32.mrf.mxu1  ;;  %4651 = vmatprep.subr.bf16.mxu1 %v20819_v55  ;;  %v24080_v5 = vadd.f32 %v4339_v62, %v4297_v63  ;;  %4638 = vmatprep.mubr.bf16.mxu0 %v23986_v53  ;;  %v20865_v55 = vld [vmem:[#allocation5 + $0x978] ss:$40 sps:$4 sm:$0xff]   ;;  %v20868_v61 = vld [vmem:[#allocation5 + $0x428] ss:$40 sps:$4 sm:$0xff]   ;;  %v20876_v63 = vld [vmem:[#allocation5 + $0x3dc] ss:$40 sps:$4 sm:$0xff]  }
 0x1f4   :  { %4681 = vmatprep.mubr.bf16.mxu1 %v23988_v54  ;;  %v4300_v10 = vpop.f32.mrf.mxu0  ;;  %v20871_v62 = vld [vmem:[#allocation5 + $0x928] ss:$40 sps:$4 sm:$0xff]  }
 0x1f5   :  { %v4301_v13 = vadd.f32 %v4300_v10, %v811_v49  ;;  %4609 = vmatpush1.bf16.msra.mxu0 %v20814_v58  ;;  %v4343_v14 = vpop.f32.mrf.mxu1  ;;  %v20867_v49 = vld [vmem:[#allocation5 + $0x97c] ss:$40 sps:$4 sm:$0xff]   ;;  %v20870_v58 = vld [vmem:[#allocation5 + $0x42c] ss:$40 sps:$4 sm:$0xff]  }
 0x1f6   :  { %4652 = vmatpush1.bf16.msra.mxu1 %v20817_v59  ;;  %4610 = vmatprep.subr.bf16.mxu0 %v20822_v2  ;;  %v20873_v59 = vld [vmem:[#allocation5 + $0x92c] ss:$40 sps:$4 sm:$0xff]   ;;  %v20879_v2 = vld [vmem:[#allocation5 + $0x8dc] ss:$40 sps:$4 sm:$0xff]  }
 0x1f7   :  { %4653 = vmatprep.subr.bf16.mxu1 %v20825_v3  ;;  %v24084_v17 = vadd.f32 %v4343_v14, %v4301_v13  ;;  %v20874_v3 = vld [vmem:[#allocation5 + $0x3d8] ss:$40 sps:$4 sm:$0xff]   ;;  %v20885_v10 = vld [vmem:[#allocation5 + $0x88c] ss:$40 sps:$4 sm:$0xff]   ;;  %v20880_v13 = vld [vmem:[#allocation5 + $0x388] ss:$40 sps:$4 sm:$0xff]  }
 0x1f8   :  { %v20883_v14 = vld [vmem:[#allocation5 + $0x888] ss:$40 sps:$4 sm:$0xff]  }
 0x1f9   :  { %4611 = vmatpush1.bf16.msra.mxu0 %v20820_v6  ;;  %v20877_v6 = vld [vmem:[#allocation5 + $0x8d8] ss:$40 sps:$4 sm:$0xff]  }
 0x1fa   :  { %4654 = vmatpush1.bf16.msra.mxu1 %v20823_v7  ;;  %4612 = vmatprep.subr.bf16.mxu0 %v20828_v15  ;;  %v20882_v7 = vld [vmem:[#allocation5 + $0x38c] ss:$40 sps:$4 sm:$0xff]   ;;  %v20888_v15 = vld [vmem:[#allocation5 + $0x33c] ss:$40 sps:$4 sm:$0xff]  }
 0x1fb   :  { %4655 = vmatprep.subr.bf16.mxu1 %v20831_v16  ;;  %v20891_v16 = vld [vmem:[#allocation5 + $0x83c] ss:$40 sps:$4 sm:$0xff]  }
 0x1fd   :  { %4613 = vmatpush1.bf16.msra.mxu0 %v20826_v18  ;;  %v20886_v18 = vld [vmem:[#allocation5 + $0x338] ss:$40 sps:$4 sm:$0xff]  }
 0x1fe   :  { %4656 = vmatpush1.bf16.msra.mxu1 %v20829_v19  ;;  %4614 = vmatprep.subr.bf16.mxu0 %v20834_v24  ;;  %v20889_v19 = vld [vmem:[#allocation5 + $0x838] ss:$40 sps:$4 sm:$0xff]   ;;  %v20894_v24 = vld [vmem:[#allocation5 + $0x2ec] ss:$40 sps:$4 sm:$0xff]  }
 0x1ff   :  { %4657 = vmatprep.subr.bf16.mxu1 %v20837_v25  ;;  %v20897_v25 = vld [vmem:[#allocation5 + $0x7ec] ss:$40 sps:$4 sm:$0xff]  }
 0x201   :  { %4615 = vmatpush1.bf16.msra.mxu0 %v20832_v26  ;;  %v20892_v26 = vld [vmem:[#allocation5 + $0x2e8] ss:$40 sps:$4 sm:$0xff]  }
 0x202   :  { %4658 = vmatpush1.bf16.msra.mxu1 %v20835_v27  ;;  %4616 = vmatprep.subr.bf16.mxu0 %v20840_v28  ;;  %v20895_v27 = vld [vmem:[#allocation5 + $0x7e8] ss:$40 sps:$4 sm:$0xff]   ;;  %v20900_v28 = vld [vmem:[#allocation5 + $0x29c] ss:$40 sps:$4 sm:$0xff]  }
 0x203   :  { %4659 = vmatprep.subr.bf16.mxu1 %v20843_v29  ;;  %v20903_v29 = vld [vmem:[#allocation5 + $0x79c] ss:$40 sps:$4 sm:$0xff]  }
 0x205   :  { %4617 = vmatpush1.bf16.msra.mxu0 %v20838_v60  ;;  %v20898_v60 = vld [vmem:[#allocation5 + $0x298] ss:$40 sps:$4 sm:$0xff]  }
 0x206   :  { %4660 = vmatpush1.bf16.msra.mxu1 %v20841_v30  ;;  %4618 = vmatprep.subr.bf16.mxu0 %v20846_v31  ;;  %v20901_v30 = vld [vmem:[#allocation5 + $0x798] ss:$40 sps:$4 sm:$0xff]   ;;  %v20906_v31 = vld [vmem:[#allocation5 + $0xc4c] ss:$40 sps:$4 sm:$0xff]  }
 0x207   :  { %4661 = vmatprep.subr.bf16.mxu1 %v20849_v32  ;;  %v20909_v32 = vld [vmem:[#allocation5 + $0x114c] ss:$40 sps:$4 sm:$0xff]  }
 0x209   :  { %4619 = vmatpush1.bf16.msra.mxu0 %v20844_v34  ;;  %v20904_v34 = vld [vmem:[#allocation5 + $0xc48] ss:$40 sps:$4 sm:$0xff]  }
 0x20a   :  { %4662 = vmatpush1.bf16.msra.mxu1 %v20847_v35  ;;  %4620 = vmatprep.subr.bf16.mxu0 %v20852_v36  ;;  %v20907_v35 = vld [vmem:[#allocation5 + $0x1148] ss:$40 sps:$4 sm:$0xff]   ;;  %v24086_v36 = vpop.f32.mrf.mxu0 }
 0x20b   :  { %4663 = vmatprep.subr.bf16.mxu1 %v20855_v37  ;;  %v24088_v37 = vpop.f32.mrf.mxu1 }
 0x20d   :  { %4621 = vmatpush1.bf16.msra.mxu0 %v20850_v38  ;;  %v20912_v38 = vld [vmem:[#allocation5 + $0xbfc] ss:$40 sps:$4 sm:$0xff]  }
 0x20e   :  { %4664 = vmatpush1.bf16.msra.mxu1 %v20853_v40  ;;  %4622 = vmatprep.subr.bf16.mxu0 %v20858_v4  ;;  %v20915_v40 = vld [vmem:[#allocation5 + $0x10fc] ss:$40 sps:$4 sm:$0xff]   ;;  %v20910_v4 = vld [vmem:[#allocation5 + $0xbf8] ss:$40 sps:$4 sm:$0xff]  }
 0x20f   :  { %4665 = vmatprep.subr.bf16.mxu1 %v20861_v45  ;;  %v20913_v45 = vld [vmem:[#allocation5 + $0x10f8] ss:$40 sps:$4 sm:$0xff]  }
 0x211   :  { %4623 = vmatpush2.bf16.msra.mxu0 %v20856_v46 }
 0x212   :  { %4666 = vmatpush2.bf16.msra.mxu1 %v20859_v47  ;;  %4624 = vmatprep.subr.bf16.mxu0 %v20864_v48 }
 0x213   :  { %4667 = vmatprep.subr.bf16.mxu1 %v20867_v49 }
 0x215   :  { %4625 = vmatpush2.bf16.msra.mxu0 %v20862_v52 }
 0x216   :  { %4668 = vmatpush2.bf16.msra.mxu1 %v20865_v55  ;;  %4626 = vmatprep.subr.bf16.mxu0 %v20870_v58  ;;  %v20918_v55 = vld [vmem:[#allocation5 + $0xbac] ss:$40 sps:$4 sm:$0xff]  }
 0x217   :  { %4669 = vmatprep.subr.bf16.mxu1 %v20873_v59  ;;  %v20921_v58 = vld [vmem:[#allocation5 + $0x10ac] ss:$40 sps:$4 sm:$0xff]  }
 0x219   :  { %4627 = vmatpush2.bf16.msra.mxu0 %v20868_v61  ;;  %v20916_v61 = vld [vmem:[#allocation5 + $0xba8] ss:$40 sps:$4 sm:$0xff]  }
 0x21a   :  { %4670 = vmatpush2.bf16.msra.mxu1 %v20871_v62  ;;  %4628 = vmatprep.subr.bf16.mxu0 %v20876_v63  ;;  %v20919_v62 = vld [vmem:[#allocation5 + $0x10a8] ss:$40 sps:$4 sm:$0xff]  }
 0x21b   :  { %4671 = vmatprep.subr.bf16.mxu1 %v20879_v2 }
 0x21d   :  { %4629 = vmatpush2.bf16.msra.mxu0 %v20874_v3  ;;  %v20924_v3 = vld [vmem:[#allocation5 + $0xb5c] ss:$40 sps:$4 sm:$0xff]  }
 0x21e   :  { %4672 = vmatpush2.bf16.msra.mxu1 %v20877_v6  ;;  %4630 = vmatprep.subr.bf16.mxu0 %v20882_v7  ;;  %v20927_v6 = vld [vmem:[#allocation5 + $0x105c] ss:$40 sps:$4 sm:$0xff]  }
 0x21f   :  { %4673 = vmatprep.subr.bf16.mxu1 %v20885_v10  ;;  %v20922_v10 = vld [vmem:[#allocation5 + $0xb58] ss:$40 sps:$4 sm:$0xff]  }
 0x221   :  { %4631 = vmatpush2.bf16.msra.mxu0 %v20880_v13  ;;  %v20925_v13 = vld [vmem:[#allocation5 + $0x1058] ss:$40 sps:$4 sm:$0xff]  }
 0x222   :  { %4674 = vmatpush2.bf16.msra.mxu1 %v20883_v14  ;;  %4632 = vmatprep.subr.bf16.mxu0 %v20888_v15 }
 0x223   :  { %4675 = vmatprep.subr.bf16.mxu1 %v20891_v16  ;;  %v20930_v16 = vld [vmem:[#allocation5 + $0xb0c] ss:$40 sps:$4 sm:$0xff]  }
 0x225   :  { %4633 = vmatpush2.bf16.msra.mxu0 %v20886_v18  ;;  %v20933_v18 = vld [vmem:[#allocation5 + $0x100c] ss:$40 sps:$4 sm:$0xff]  }
 0x226   :  { %4676 = vmatpush2.bf16.msra.mxu1 %v20889_v19  ;;  %4634 = vmatprep.subr.bf16.mxu0 %v20894_v24  ;;  %v20931_v24 = vld [vmem:[#allocation5 + $0x1008] ss:$40 sps:$4 sm:$0xff]  }
 0x227   :  { %4677 = vmatprep.subr.bf16.mxu1 %v20897_v25  ;;  %v20936_v25 = vld [vmem:[#allocation5 + $0xabc] ss:$40 sps:$4 sm:$0xff]  }
 0x229   :  { %4635 = vmatpush2.bf16.msra.mxu0 %v20892_v26  ;;  %v20939_v26 = vld [vmem:[#allocation5 + $0xfbc] ss:$40 sps:$4 sm:$0xff]  }
 0x22a   :  { %4678 = vmatpush2.bf16.msra.mxu1 %v20895_v27  ;;  %4636 = vmatprep.subr.bf16.mxu0 %v20900_v28  ;;  %v20934_v27 = vld [vmem:[#allocation5 + $0xab8] ss:$40 sps:$4 sm:$0xff]  }
 0x22b   :  { %4679 = vmatprep.subr.bf16.mxu1 %v20903_v29  ;;  %v20937_v28 = vld [vmem:[#allocation5 + $0xfb8] ss:$40 sps:$4 sm:$0xff]   ;;  %v20942_v29 = vld [vmem:[#allocation5 + $0xa6c] ss:$40 sps:$4 sm:$0xff]  }
 0x22d   :  { %4637 = vmatpush2.bf16.msra.mxu0 %v20898_v60  ;;  %v20945_v60 = vld [vmem:[#allocation5 + $0xf6c] ss:$40 sps:$4 sm:$0xff]  }
 0x22e   :  { %4680 = vmatpush2.bf16.msra.mxu1 %v20901_v30  ;;  %4692 = vmatprep.subr.bf16.mxu0 %v20906_v31  ;;  %v20940_v30 = vld [vmem:[#allocation5 + $0xa68] ss:$40 sps:$4 sm:$0xff]  }
 0x22f   :  { %4735 = vmatprep.subr.bf16.mxu1 %v20909_v32  ;;  %v20943_v31 = vld [vmem:[#allocation5 + $0xf68] ss:$40 sps:$4 sm:$0xff]   ;;  %v20948_v32 = vld [vmem:[#allocation5 + $0xa1c] ss:$40 sps:$4 sm:$0xff]  }
 0x230   :  { %v4382_v46 = vpop.f32.mrf.mxu0  ;;  %4639 = vmatmul.mubr.bf16.vlgmr.msra.gmra.mxu0 %v23992_v8 }
 0x231   :  { %v4425_v47 = vpop.f32.mrf.mxu1  ;;  %4682 = vmatmul.mubr.bf16.vlgmr.msra.gmra.mxu1 %v23994_v9  ;;  %v4383_v48 = vadd.f32 %v4382_v46, %v24080_v5  ;;  %4693 = vmatpush1.bf16.msra.mxu0 %v20904_v34  ;;  %v20951_v34 = vld [vmem:[#allocation5 + $0xf1c] ss:$40 sps:$4 sm:$0xff]   ;;  %v20955_v46 = vld [vmem:[#allocation5 + $0x13c8] ss:$40 sps:$4 sm:$0xff]  }
 0x232   :  { %4736 = vmatpush1.bf16.msra.mxu1 %v20907_v35  ;;  %v24093_v49 = vpop.f32.mrf.mxu0  ;;  %4694 = vmatprep.subr.bf16.mxu0 %v20912_v38  ;;  %v20946_v35 = vld [vmem:[#allocation5 + $0xa18] ss:$40 sps:$4 sm:$0xff]  }
 0x233   :  { %v24095_v52 = vpop.f32.mrf.mxu1  ;;  %4737 = vmatprep.subr.bf16.mxu1 %v20915_v40  ;;  %v4426_v59 = vadd.f32 %v4425_v47, %v4383_v48  ;;  %4724 = vmatprep.mubr.bf16.mxu0 %v24008_v41  ;;  %v20949_v38 = vld [vmem:[#allocation5 + $0xf18] ss:$40 sps:$4 sm:$0xff]   ;;  %v20954_v40 = vld [vmem:[#allocation5 + $0xecc] ss:$40 sps:$4 sm:$0xff]   ;;  %v20960_v47 = vld [vmem:[#allocation5 + $0xe7c] ss:$40 sps:$4 sm:$0xff]  }
 0x234   :  { %4767 = vmatprep.mubr.bf16.mxu1 %v24012_v42  ;;  %v4386_v63 = vpop.f32.mrf.mxu0  ;;  %v20963_v48 = vld [vmem:[#allocation5 + $0x137c] ss:$40 sps:$4 sm:$0xff]  }
 0x235   :  { %v4387_v5 = vadd.f32 %v4386_v63, %v24084_v17  ;;  %4695 = vmatpush1.bf16.msra.mxu0 %v20910_v4  ;;  %v4429_v2 = vpop.f32.mrf.mxu1  ;;  %v4952_v14 = vmax.f32 %v4426_v59, 0.0  ;;  %v20928_v17 = vld [vmem:[#allocation5 + $0xb08] ss:$40 sps:$4 sm:$0xff]   ;;  %v20957_v4 = vld [vmem:[#allocation5 + $0x13cc] ss:$40 sps:$4 sm:$0xff]  }
 0x236   :  { %4738 = vmatpush1.bf16.msra.mxu1 %v20913_v45  ;;  %4696 = vmatprep.subr.bf16.mxu0 %v20918_v55  ;;  %v20952_v45 = vld [vmem:[#allocation5 + $0xec8] ss:$40 sps:$4 sm:$0xff]   ;;  %v20958_v55 = vld [vmem:[#allocation5 + $0xe78] ss:$40 sps:$4 sm:$0xff]   ;;  %v20966_v59 = vld [vmem:[#allocation5 + $0xe2c] ss:$40 sps:$4 sm:$0xff]  }
 0x237   :  { %4739 = vmatprep.subr.bf16.mxu1 %v20921_v58  ;;  %v4430_v7 = vadd.f32 %v4429_v2, %v4387_v5  ;;  %v20961_v58 = vld [vmem:[#allocation5 + $0x1378] ss:$40 sps:$4 sm:$0xff]   ;;  %v20967_v63 = vld [vmem:[#allocation5 + $0x1328] ss:$40 sps:$4 sm:$0xff]   ;;  %v20972_v5 = vld [vmem:[#allocation5 + $0xddc] ss:$40 sps:$4 sm:$0xff]  }
 0x238   :  { %v20975_v2 = vld [vmem:[#allocation5 + $0x12dc] ss:$40 sps:$4 sm:$0xff]  }
 0x239   :  { %v4962_v15 = vmax.f32 %v4430_v7, 0.0  ;;  %4697 = vmatpush1.bf16.msra.mxu0 %v20916_v61  ;;  %v20969_v61 = vld [vmem:[#allocation5 + $0x132c] ss:$40 sps:$4 sm:$0xff]  }
 0x23a   :  { %4740 = vmatpush1.bf16.msra.mxu1 %v20919_v62  ;;  %4698 = vmatprep.subr.bf16.mxu0 %v20924_v3  ;;  %v20964_v62 = vld [vmem:[#allocation5 + $0xe28] ss:$40 sps:$4 sm:$0xff]   ;;  %v20970_v3 = vld [vmem:[#allocation5 + $0xdd8] ss:$40 sps:$4 sm:$0xff]   ;;  %v20978_v7 = vld [vmem:[#allocation5 + $0xd8c] ss:$40 sps:$4 sm:$0xff]  }
 0x23b   :  { %4741 = vmatprep.subr.bf16.mxu1 %v20927_v6  ;;  %v24100_v19 = vpack.c.bf16 %v4962_v15, %v4952_v14  ;;  %v20973_v6 = vld [vmem:[#allocation5 + $0x12d8] ss:$40 sps:$4 sm:$0xff]   ;;  %v20979_v14 = vld [vmem:[#allocation5 + $0x1288] ss:$40 sps:$4 sm:$0xff]   ;;  %v20984_v15 = vld [vmem:[#allocation5 + $0xd3c] ss:$40 sps:$4 sm:$0xff]  }
 0x23d   :  { %4699 = vmatpush1.bf16.msra.mxu0 %v20922_v10  ;;  %v20981_v10 = vld [vmem:[#allocation5 + $0x128c] ss:$40 sps:$4 sm:$0xff]  }
 0x23e   :  { %4742 = vmatpush1.bf16.msra.mxu1 %v20925_v13  ;;  %4700 = vmatprep.subr.bf16.mxu0 %v20930_v16  ;;  %v20976_v13 = vld [vmem:[#allocation5 + $0xd88] ss:$40 sps:$4 sm:$0xff]   ;;  %v20987_v16 = vld [vmem:[#allocation5 + $0x123c] ss:$40 sps:$4 sm:$0xff]  }
 0x23f   :  { %4743 = vmatprep.subr.bf16.mxu1 %v20933_v18  ;;  %v20982_v18 = vld [vmem:[#allocation5 + $0xd38] ss:$40 sps:$4 sm:$0xff]  }
 0x241   :  { %4701 = vmatpush1.bf16.msra.mxu0 %v20928_v17  ;;  %v20985_v17 = vld [vmem:[#allocation5 + $0x1238] ss:$40 sps:$4 sm:$0xff]  }
 0x242   :  { %4744 = vmatpush1.bf16.msra.mxu1 %v20931_v24  ;;  %4702 = vmatprep.subr.bf16.mxu0 %v20936_v25  ;;  %v20990_v24 = vld [vmem:[#allocation5 + $0xcec] ss:$40 sps:$4 sm:$0xff]  }
 0x243   :  { %4745 = vmatprep.subr.bf16.mxu1 %v20939_v26  ;;  %v20993_v25 = vld [vmem:[#allocation5 + $0x11ec] ss:$40 sps:$4 sm:$0xff]   ;;  %v20988_v26 = vld [vmem:[#allocation5 + $0xce8] ss:$40 sps:$4 sm:$0xff]  }
 0x245   :  { %4703 = vmatpush1.bf16.msra.mxu0 %v20934_v27  ;;  %v20991_v27 = vld [vmem:[#allocation5 + $0x11e8] ss:$40 sps:$4 sm:$0xff]  }
 0x246   :  { %4746 = vmatpush1.bf16.msra.mxu1 %v20937_v28  ;;  %4704 = vmatprep.subr.bf16.mxu0 %v20942_v29  ;;  %v20996_v28 = vld [vmem:[#allocation5 + $0xc9c] ss:$40 sps:$4 sm:$0xff]  }
 0x247   :  { %4747 = vmatprep.subr.bf16.mxu1 %v20945_v60  ;;  %v20999_v29 = vld [vmem:[#allocation5 + $0x119c] ss:$40 sps:$4 sm:$0xff]   ;;  %v20994_v60 = vld [vmem:[#allocation5 + $0xc98] ss:$40 sps:$4 sm:$0xff]  }
 0x249   :  { %4705 = vmatpush1.bf16.msra.mxu0 %v20940_v30  ;;  %v20997_v30 = vld [vmem:[#allocation5 + $0x1198] ss:$40 sps:$4 sm:$0xff]  }
 0x24a   :  { %4748 = vmatpush1.bf16.msra.mxu1 %v20943_v31  ;;  %4706 = vmatprep.subr.bf16.mxu0 %v20948_v32  ;;  %v24103_v31 = vsub.s32 4, %v24032_v33  ;;  %v21002_v32 = vld [vmem:[#allocation5 + $0x254] ss:$40 sps:$4 sm:$0xff]  }
 0x24b   :  { %4749 = vmatprep.subr.bf16.mxu1 %v20951_v34  ;;  %v21005_v34 = vld [vmem:[#allocation5 + $0x754] ss:$40 sps:$4 sm:$0xff]  }
 0x24d   :  { %4707 = vmatpush1.bf16.msra.mxu0 %v20946_v35  ;;  %v21000_v35 = vld [vmem:[#allocation5 + $0x250] ss:$40 sps:$4 sm:$0xff]  }
 0x24e   :  { %4750 = vmatpush1.bf16.msra.mxu1 %v20949_v38  ;;  %4708 = vmatprep.subr.bf16.mxu0 %v20954_v40  ;;  %v21003_v38 = vld [vmem:[#allocation5 + $0x750] ss:$40 sps:$4 sm:$0xff]   ;;  %v24105_v40 = vld [vmem:[#allocation7] sm:$0xff] }
 0x24f   :  { %4751 = vmatprep.subr.bf16.mxu1 %v20957_v4  ;;  %v819_v4 = vrot.slane %v24105_v40, %v24103_v31 }
 0x251   :  { %4709 = vmatpush2.bf16.msra.mxu0 %v20952_v45  ;;  %v24109_v45 = vpop.f32.mrf.mxu0 }
 0x252   :  { %4752 = vmatpush2.bf16.msra.mxu1 %v20955_v46  ;;  %4710 = vmatprep.subr.bf16.mxu0 %v20960_v47  ;;  %v24111_v46 = vpop.f32.mrf.mxu1  ;;  %v21008_v47 = vld [vmem:[#allocation5 + $0x204] ss:$40 sps:$4 sm:$0xff]  }
 0x253   :  { %4753 = vmatprep.subr.bf16.mxu1 %v20963_v48  ;;  %v21011_v48 = vld [vmem:[#allocation5 + $0x704] ss:$40 sps:$4 sm:$0xff]  }
 0x255   :  { %4711 = vmatpush2.bf16.msra.mxu0 %v20958_v55  ;;  %v21006_v55 = vld [vmem:[#allocation5 + $0x200] ss:$40 sps:$4 sm:$0xff]  }
 0x256   :  { %4754 = vmatpush2.bf16.msra.mxu1 %v20961_v58  ;;  %4712 = vmatprep.subr.bf16.mxu0 %v20966_v59  ;;  %v21009_v58 = vld [vmem:[#allocation5 + $0x700] ss:$40 sps:$4 sm:$0xff]  }
 0x257   :  { %4755 = vmatprep.subr.bf16.mxu1 %v20969_v61 }
 0x259   :  { %4713 = vmatpush2.bf16.msra.mxu0 %v20964_v62  ;;  %v21014_v62 = vld [vmem:[#allocation5 + $0x1b4] ss:$40 sps:$4 sm:$0xff]  }
 0x25a   :  { %4756 = vmatpush2.bf16.msra.mxu1 %v20967_v63  ;;  %4714 = vmatprep.subr.bf16.mxu0 %v20972_v5  ;;  %v21017_v63 = vld [vmem:[#allocation5 + $0x6b4] ss:$40 sps:$4 sm:$0xff]  }
 0x25b   :  { %4757 = vmatprep.subr.bf16.mxu1 %v20975_v2 }
 0x25d   :  { %4715 = vmatpush2.bf16.msra.mxu0 %v20970_v3 }
 0x25e   :  { %4758 = vmatpush2.bf16.msra.mxu1 %v20973_v6  ;;  %4716 = vmatprep.subr.bf16.mxu0 %v20978_v7  ;;  %v21012_v7 = vld [vmem:[#allocation5 + $0x1b0] ss:$40 sps:$4 sm:$0xff]  }
 0x25f   :  { %4759 = vmatprep.subr.bf16.mxu1 %v20981_v10  ;;  %v21015_v10 = vld [vmem:[#allocation5 + $0x6b0] ss:$40 sps:$4 sm:$0xff]  }
 0x261   :  { %4717 = vmatpush2.bf16.msra.mxu0 %v20976_v13 }
 0x262   :  { %4760 = vmatpush2.bf16.msra.mxu1 %v20979_v14  ;;  %4718 = vmatprep.subr.bf16.mxu0 %v20984_v15  ;;  %v21020_v14 = vld [vmem:[#allocation5 + $0x164] ss:$40 sps:$4 sm:$0xff]  }
 0x263   :  { %4761 = vmatprep.subr.bf16.mxu1 %v20987_v16  ;;  %v21023_v15 = vld [vmem:[#allocation5 + $0x664] ss:$40 sps:$4 sm:$0xff]  }
 0x265   :  { %4719 = vmatpush2.bf16.msra.mxu0 %v20982_v18 }
 0x266   :  { %4762 = vmatpush2.bf16.msra.mxu1 %v20985_v17  ;;  %4720 = vmatprep.subr.bf16.mxu0 %v20990_v24  ;;  %v21018_v24 = vld [vmem:[#allocation5 + $0x160] ss:$40 sps:$4 sm:$0xff]  }
 0x267   :  { %4763 = vmatprep.subr.bf16.mxu1 %v20993_v25  ;;  %v21021_v25 = vld [vmem:[#allocation5 + $0x660] ss:$40 sps:$4 sm:$0xff]  }
 0x269   :  { %4721 = vmatpush2.bf16.msra.mxu0 %v20988_v26  ;;  %v21029_v26 = vld [vmem:[#allocation5 + $0x614] ss:$40 sps:$4 sm:$0xff]  }
 0x26a   :  { %4764 = vmatpush2.bf16.msra.mxu1 %v20991_v27  ;;  %4722 = vmatprep.subr.bf16.mxu0 %v20996_v28  ;;  %v21027_v27 = vld [vmem:[#allocation5 + $0x610] ss:$40 sps:$4 sm:$0xff]   ;;  %v21032_v28 = vld [vmem:[#allocation5 + $0xc4] ss:$40 sps:$4 sm:$0xff]  }
 0x26b   :  { %4765 = vmatprep.subr.bf16.mxu1 %v20999_v29  ;;  %v21035_v29 = vld [vmem:[#allocation5 + $0x5c4] ss:$40 sps:$4 sm:$0xff]  }
 0x26d   :  { %4723 = vmatpush2.bf16.msra.mxu0 %v20994_v60  ;;  %v21030_v60 = vld [vmem:[#allocation5 + $0xc0] ss:$40 sps:$4 sm:$0xff]  }
 0x26e   :  { %4766 = vmatpush2.bf16.msra.mxu1 %v20997_v30  ;;  %4778 = vmatprep.subr.bf16.mxu0 %v21002_v32  ;;  %v21033_v30 = vld [vmem:[#allocation5 + $0x5c0] ss:$40 sps:$4 sm:$0xff]   ;;  %v21038_v32 = vld [vmem:[#allocation5 + $0x74] ss:$40 sps:$4 sm:$0xff]  }
 0x26f   :  { %4821 = vmatprep.subr.bf16.mxu1 %v21005_v34  ;;  %v21041_v34 = vld [vmem:[#allocation5 + $0x574] ss:$40 sps:$4 sm:$0xff]  }
 0x270   :  { %v4468_v59 = vpop.f32.mrf.mxu0  ;;  %4725 = vmatmul.mubr.bf16.vlgmr.msra.gmra.mxu0 %v24018_v20 }
 0x271   :  { %v4511_v61 = vpop.f32.mrf.mxu1  ;;  %4768 = vmatmul.mubr.bf16.vlgmr.msra.gmra.mxu1 %v24022_v21  ;;  %v4469_v5 = vadd.f32 %v4468_v59, %v819_v4  ;;  %4779 = vmatpush1.bf16.msra.mxu0 %v21000_v35  ;;  %v21036_v35 = vld [vmem:[#allocation5 + $0x70] ss:$40 sps:$4 sm:$0xff]   ;;  %v21053_v59 = vld [vmem:[#allocation5 + $0x9d4] ss:$40 sps:$4 sm:$0xff]  }
 0x272   :  { %4822 = vmatpush1.bf16.msra.mxu1 %v21003_v38  ;;  %v24115_v2 = vpop.f32.mrf.mxu0  ;;  %4780 = vmatprep.subr.bf16.mxu0 %v21008_v47  ;;  %v21039_v38 = vld [vmem:[#allocation5 + $0x570] ss:$40 sps:$4 sm:$0xff]   ;;  %v21047_v47 = vld [vmem:[#allocation5 + $0x524] ss:$40 sps:$4 sm:$0xff]  }
 0x273   :  { %v24117_v3 = vpop.f32.mrf.mxu1  ;;  %4823 = vmatprep.subr.bf16.mxu1 %v21011_v48  ;;  %v24119_v6 = vadd.f32 %v4511_v61, %v4469_v5  ;;  %4810 = vmatprep.mubr.bf16.mxu0 %v23986_v53  ;;  %v21026_v53 = vld [vmem:[#allocation5 + $0x114] ss:$40 sps:$4 sm:$0xff]   ;;  %v21042_v48 = vld [vmem:[#allocation5 + $0x20] ss:$40 sps:$4 sm:$0xff]   ;;  %v21048_v61 = vld [vmem:[#allocation5 + $0x4d0] ss:$40 sps:$4 sm:$0xff]  }
 0x274   :  { %4853 = vmatprep.mubr.bf16.mxu1 %v23988_v54  ;;  %v4472_v13 = vpop.f32.mrf.mxu0  ;;  %v21024_v54 = vld [vmem:[#allocation5 + $0x110] ss:$40 sps:$4 sm:$0xff]   ;;  %v21059_v5 = vld [vmem:[#allocation5 + $0x984] ss:$40 sps:$4 sm:$0xff]  }
 0x275   :  { %v4473_v16 = vadd.f32 %v4472_v13, %v819_v4  ;;  %4781 = vmatpush1.bf16.msra.mxu0 %v21006_v55  ;;  %v4515_v18 = vpop.f32.mrf.mxu1  ;;  %v21044_v4 = vld [vmem:[#allocation5 + $0x24] ss:$40 sps:$4 sm:$0xff]   ;;  %v21045_v55 = vld [vmem:[#allocation5 + $0x520] ss:$40 sps:$4 sm:$0xff]   ;;  %v21062_v13 = vld [vmem:[#allocation5 + $0x434] ss:$40 sps:$4 sm:$0xff]  }
 0x276   :  { %4824 = vmatpush1.bf16.msra.mxu1 %v21009_v58  ;;  %4782 = vmatprep.subr.bf16.mxu0 %v21014_v62  ;;  %v21050_v58 = vld [vmem:[#allocation5 + $0x4d4] ss:$40 sps:$4 sm:$0xff]   ;;  %v21051_v62 = vld [vmem:[#allocation5 + $0x9d0] ss:$40 sps:$4 sm:$0xff]  }
 0x277   :  { %4825 = vmatprep.subr.bf16.mxu1 %v21017_v63  ;;  %v24123_v17 = vadd.f32 %v4515_v18, %v4473_v16  ;;  %v21056_v63 = vld [vmem:[#allocation5 + $0x484] ss:$40 sps:$4 sm:$0xff]   ;;  %v21063_v16 = vld [vmem:[#allocation5 + $0x930] ss:$40 sps:$4 sm:$0xff]  }
 0x278   :  { %v21068_v18 = vld [vmem:[#allocation5 + $0x3e4] ss:$40 sps:$4 sm:$0xff]  }
 0x279   :  { %4783 = vmatpush1.bf16.msra.mxu0 %v21012_v7  ;;  %v21054_v7 = vld [vmem:[#allocation5 + $0x480] ss:$40 sps:$4 sm:$0xff]  }
 0x27a   :  { %4826 = vmatpush1.bf16.msra.mxu1 %v21015_v10  ;;  %4784 = vmatprep.subr.bf16.mxu0 %v21020_v14  ;;  %v21057_v10 = vld [vmem:[#allocation5 + $0x980] ss:$40 sps:$4 sm:$0xff]   ;;  %v21065_v14 = vld [vmem:[#allocation5 + $0x934] ss:$40 sps:$4 sm:$0xff]  }
 0x27b   :  { %4827 = vmatprep.subr.bf16.mxu1 %v21023_v15  ;;  %v21060_v15 = vld [vmem:[#allocation5 + $0x430] ss:$40 sps:$4 sm:$0xff]  }
 0x27d   :  { %4785 = vmatpush1.bf16.msra.mxu0 %v21018_v24  ;;  %v21071_v24 = vld [vmem:[#allocation5 + $0x8e4] ss:$40 sps:$4 sm:$0xff]  }
 0x27e   :  { %4828 = vmatpush1.bf16.msra.mxu1 %v21021_v25  ;;  %4786 = vmatprep.subr.bf16.mxu0 %v21026_v53  ;;  %v21066_v25 = vld [vmem:[#allocation5 + $0x3e0] ss:$40 sps:$4 sm:$0xff]  }
 0x27f   :  { %4829 = vmatprep.subr.bf16.mxu1 %v21029_v26  ;;  %v21069_v53 = vld [vmem:[#allocation5 + $0x8e0] ss:$40 sps:$4 sm:$0xff]   ;;  %v21074_v26 = vld [vmem:[#allocation5 + $0x394] ss:$40 sps:$4 sm:$0xff]  }
 0x281   :  { %4787 = vmatpush1.bf16.msra.mxu0 %v21024_v54  ;;  %v21077_v54 = vld [vmem:[#allocation5 + $0x894] ss:$40 sps:$4 sm:$0xff]  }
 0x282   :  { %4830 = vmatpush1.bf16.msra.mxu1 %v21027_v27  ;;  %4788 = vmatprep.subr.bf16.mxu0 %v21032_v28  ;;  %v21072_v27 = vld [vmem:[#allocation5 + $0x390] ss:$40 sps:$4 sm:$0xff]  }
 0x283   :  { %4831 = vmatprep.subr.bf16.mxu1 %v21035_v29  ;;  %v21075_v28 = vld [vmem:[#allocation5 + $0x890] ss:$40 sps:$4 sm:$0xff]   ;;  %v21080_v29 = vld [vmem:[#allocation5 + $0x344] ss:$40 sps:$4 sm:$0xff]  }
 0x285   :  { %4789 = vmatpush1.bf16.msra.mxu0 %v21030_v60  ;;  %v21083_v60 = vld [vmem:[#allocation5 + $0x844] ss:$40 sps:$4 sm:$0xff]  }
 0x286   :  { %4832 = vmatpush1.bf16.msra.mxu1 %v21033_v30  ;;  %4790 = vmatprep.subr.bf16.mxu0 %v21038_v32  ;;  %v21078_v30 = vld [vmem:[#allocation5 + $0x340] ss:$40 sps:$4 sm:$0xff]  }
 0x287   :  { %4833 = vmatprep.subr.bf16.mxu1 %v21041_v34  ;;  %v21081_v32 = vld [vmem:[#allocation5 + $0x840] ss:$40 sps:$4 sm:$0xff]   ;;  %v21086_v34 = vld [vmem:[#allocation5 + $0x2f4] ss:$40 sps:$4 sm:$0xff]  }
 0x289   :  { %4791 = vmatpush1.bf16.msra.mxu0 %v21036_v35  ;;  %v21089_v35 = vld [vmem:[#allocation5 + $0x7f4] ss:$40 sps:$4 sm:$0xff]  }
 0x28a   :  { %4834 = vmatpush1.bf16.msra.mxu1 %v21039_v38  ;;  %4792 = vmatprep.subr.bf16.mxu0 %v21044_v4  ;;  %v21084_v38 = vld [vmem:[#allocation5 + $0x2f0] ss:$40 sps:$4 sm:$0xff]  }
 0x28b   :  { %4835 = vmatprep.subr.bf16.mxu1 %v21047_v47  ;;  %v21087_v4 = vld [vmem:[#allocation5 + $0x7f0] ss:$40 sps:$4 sm:$0xff]   ;;  %v21092_v47 = vld [vmem:[#allocation5 + $0x2a4] ss:$40 sps:$4 sm:$0xff]  }
 0x28d   :  { %4793 = vmatpush1.bf16.msra.mxu0 %v21042_v48  ;;  %v21095_v48 = vld [vmem:[#allocation5 + $0x7a4] ss:$40 sps:$4 sm:$0xff]  }
 0x28e   :  { %4836 = vmatpush1.bf16.msra.mxu1 %v21045_v55  ;;  %4794 = vmatprep.subr.bf16.mxu0 %v21050_v58  ;;  %v21090_v55 = vld [vmem:[#allocation5 + $0x2a0] ss:$40 sps:$4 sm:$0xff]  }
 0x28f   :  { %4837 = vmatprep.subr.bf16.mxu1 %v21053_v59  ;;  %v21093_v58 = vld [vmem:[#allocation5 + $0x7a0] ss:$40 sps:$4 sm:$0xff]   ;;  %v21098_v59 = vld [vmem:[#allocation5 + $0xc54] ss:$40 sps:$4 sm:$0xff]  }
 0x291   :  { %4795 = vmatpush2.bf16.msra.mxu0 %v21048_v61  ;;  %v21101_v61 = vld [vmem:[#allocation5 + $0x1154] ss:$40 sps:$4 sm:$0xff]  }
 0x292   :  { %4838 = vmatpush2.bf16.msra.mxu1 %v21051_v62  ;;  %4796 = vmatprep.subr.bf16.mxu0 %v21056_v63  ;;  %v21096_v62 = vld [vmem:[#allocation5 + $0xc50] ss:$40 sps:$4 sm:$0xff]  }
 0x293   :  { %4839 = vmatprep.subr.bf16.mxu1 %v21059_v5  ;;  %v21099_v63 = vld [vmem:[#allocation5 + $0x1150] ss:$40 sps:$4 sm:$0xff]   ;;  %v21104_v5 = vld [vmem:[#allocation5 + $0xc04] ss:$40 sps:$4 sm:$0xff]  }
 0x295   :  { %4797 = vmatpush2.bf16.msra.mxu0 %v21054_v7  ;;  %v21107_v7 = vld [vmem:[#allocation5 + $0x1104] ss:$40 sps:$4 sm:$0xff]  }
 0x296   :  { %4840 = vmatpush2.bf16.msra.mxu1 %v21057_v10  ;;  %4798 = vmatprep.subr.bf16.mxu0 %v21062_v13  ;;  %v24125_v10 = vpop.f32.mrf.mxu0  ;;  %v24127_v13 = vpop.f32.mrf.mxu1 }
 0x297   :  { %4841 = vmatprep.subr.bf16.mxu1 %v21065_v14  ;;  %v21102_v14 = vld [vmem:[#allocation5 + $0xc00] ss:$40 sps:$4 sm:$0xff]  }
 0x299   :  { %4799 = vmatpush2.bf16.msra.mxu0 %v21060_v15  ;;  %v21105_v15 = vld [vmem:[#allocation5 + $0x1100] ss:$40 sps:$4 sm:$0xff]  }
 0x29a   :  { %4842 = vmatpush2.bf16.msra.mxu1 %v21063_v16  ;;  %4800 = vmatprep.subr.bf16.mxu0 %v21068_v18 }
 0x29b   :  { %4843 = vmatprep.subr.bf16.mxu1 %v21071_v24  ;;  %v21110_v24 = vld [vmem:[#allocation5 + $0xbb4] ss:$40 sps:$4 sm:$0xff]  }
 0x29d   :  { %4801 = vmatpush2.bf16.msra.mxu0 %v21066_v25  ;;  %v21113_v25 = vld [vmem:[#allocation5 + $0x10b4] ss:$40 sps:$4 sm:$0xff]  }
 0x29e   :  { %4844 = vmatpush2.bf16.msra.mxu1 %v21069_v53  ;;  %4802 = vmatprep.subr.bf16.mxu0 %v21074_v26 }
 0x29f   :  { %4845 = vmatprep.subr.bf16.mxu1 %v21077_v54 }
 0x2a1   :  { %4803 = vmatpush2.bf16.msra.mxu0 %v21072_v27 }
 0x2a2   :  { %4846 = vmatpush2.bf16.msra.mxu1 %v21075_v28  ;;  %4804 = vmatprep.subr.bf16.mxu0 %v21080_v29  ;;  %v21108_v28 = vld [vmem:[#allocation5 + $0xbb0] ss:$40 sps:$4 sm:$0xff]  }
 0x2a3   :  { %4847 = vmatprep.subr.bf16.mxu1 %v21083_v60  ;;  %v21111_v29 = vld [vmem:[#allocation5 + $0x10b0] ss:$40 sps:$4 sm:$0xff]   ;;  %v21119_v60 = vld [vmem:[#allocation5 + $0x1064] ss:$40 sps:$4 sm:$0xff]  }
 0x2a5   :  { %4805 = vmatpush2.bf16.msra.mxu0 %v21078_v30 }
 0x2a6   :  { %4848 = vmatpush2.bf16.msra.mxu1 %v21081_v32  ;;  %4806 = vmatprep.subr.bf16.mxu0 %v21086_v34  ;;  %v21114_v34 = vld [vmem:[#allocation5 + $0xb60] ss:$40 sps:$4 sm:$0xff]  }
 0x2a7   :  { %4849 = vmatprep.subr.bf16.mxu1 %v21089_v35  ;;  %v21117_v35 = vld [vmem:[#allocation5 + $0x1060] ss:$40 sps:$4 sm:$0xff]  }
 0x2a9   :  { %4807 = vmatpush2.bf16.msra.mxu0 %v21084_v38  ;;  %v21122_v38 = vld [vmem:[#allocation5 + $0xb14] ss:$40 sps:$4 sm:$0xff]  }
 0x2aa   :  { %4850 = vmatpush2.bf16.msra.mxu1 %v21087_v4  ;;  %4808 = vmatprep.subr.bf16.mxu0 %v21092_v47  ;;  %v21125_v4 = vld [vmem:[#allocation5 + $0x1014] ss:$40 sps:$4 sm:$0xff]  }
 0x2ab   :  { %4851 = vmatprep.subr.bf16.mxu1 %v21095_v48 }
 0x2ad   :  { %4809 = vmatpush2.bf16.msra.mxu0 %v21090_v55  ;;  %v21128_v55 = vld [vmem:[#allocation5 + $0xac4] ss:$40 sps:$4 sm:$0xff]  }
 0x2ae   :  { %4852 = vmatpush2.bf16.msra.mxu1 %v21093_v58  ;;  %4864 = vmatprep.subr.bf16.mxu0 %v21098_v59  ;;  %v21131_v58 = vld [vmem:[#allocation5 + $0xfc4] ss:$40 sps:$4 sm:$0xff]   ;;  %v21126_v59 = vld [vmem:[#allocation5 + $0xac0] ss:$40 sps:$4 sm:$0xff]  }
 0x2af   :  { %4907 = vmatprep.subr.bf16.mxu1 %v21101_v61  ;;  %v21129_v61 = vld [vmem:[#allocation5 + $0xfc0] ss:$40 sps:$4 sm:$0xff]  }
 0x2b0   :  { %v4554_v16 = vpop.f32.mrf.mxu0  ;;  %4811 = vmatmul.mubr.bf16.vlgmr.msra.gmra.mxu0 %v23992_v8 }
 0x2b1   :  { %v4597_v18 = vpop.f32.mrf.mxu1  ;;  %4854 = vmatmul.mubr.bf16.vlgmr.msra.gmra.mxu1 %v23994_v9  ;;  %v4555_v53 = vadd.f32 %v4554_v16, %v24119_v6  ;;  %4865 = vmatpush1.bf16.msra.mxu0 %v21096_v62  ;;  %v21116_v9 = vld [vmem:[#allocation5 + $0xb64] ss:$40 sps:$4 sm:$0xff]   ;;  %v21134_v62 = vld [vmem:[#allocation5 + $0xa74] ss:$40 sps:$4 sm:$0xff]   ;;  %v21138_v16 = vld [vmem:[#allocation5 + $0xa20] ss:$40 sps:$4 sm:$0xff]  }
 0x2b2   :  { %4908 = vmatpush1.bf16.msra.mxu1 %v21099_v63  ;;  %v24132_v26 = vpop.f32.mrf.mxu0  ;;  %4866 = vmatprep.subr.bf16.mxu0 %v21104_v5  ;;  %v21137_v63 = vld [vmem:[#allocation5 + $0xf74] ss:$40 sps:$4 sm:$0xff]   ;;  %v21132_v5 = vld [vmem:[#allocation5 + $0xa70] ss:$40 sps:$4 sm:$0xff]  }
 0x2b3   :  { %v24134_v54 = vpop.f32.mrf.mxu1  ;;  %4909 = vmatprep.subr.bf16.mxu1 %v21107_v7  ;;  %v4598_v27 = vadd.f32 %v4597_v18, %v4555_v53  ;;  %4896 = vmatprep.mubr.bf16.mxu0 %v24008_v41  ;;  %v21135_v7 = vld [vmem:[#allocation5 + $0xf70] ss:$40 sps:$4 sm:$0xff]   ;;  %v21141_v18 = vld [vmem:[#allocation5 + $0xf20] ss:$40 sps:$4 sm:$0xff]  }
 0x2b4   :  { %4939 = vmatprep.mubr.bf16.mxu1 %v24012_v42  ;;  %v4558_v8 = vpop.f32.mrf.mxu0  ;;  %v21120_v42 = vld [vmem:[#allocation5 + $0xb10] ss:$40 sps:$4 sm:$0xff]  }
 0x2b5   :  { %v4559_v6 = vadd.f32 %v4558_v8, %v24123_v17  ;;  %4867 = vmatpush1.bf16.msra.mxu0 %v21102_v14  ;;  %v4601_v30 = vpop.f32.mrf.mxu1  ;;  %v4954_v47 = vmax.f32 %v4598_v27, 0.0  ;;  %v21123_v17 = vld [vmem:[#allocation5 + $0x1010] ss:$40 sps:$4 sm:$0xff]   ;;  %v21140_v14 = vld [vmem:[#allocation5 + $0xa24] ss:$40 sps:$4 sm:$0xff]  }
 0x2b6   :  { %4910 = vmatpush1.bf16.msra.mxu1 %v21105_v15  ;;  %4868 = vmatprep.subr.bf16.mxu0 %v21110_v24  ;;  %v21143_v15 = vld [vmem:[#allocation5 + $0xf24] ss:$40 sps:$4 sm:$0xff]   ;;  %v21146_v24 = vld [vmem:[#allocation5 + $0xed4] ss:$40 sps:$4 sm:$0xff]   ;;  %v21144_v53 = vld [vmem:[#allocation5 + $0xed0] ss:$40 sps:$4 sm:$0xff]  }
 0x2b7   :  { %4911 = vmatprep.subr.bf16.mxu1 %v21113_v25  ;;  %v4602_v32 = vadd.f32 %v4601_v30, %v4559_v6  ;;  %v21149_v25 = vld [vmem:[#allocation5 + $0x13d4] ss:$40 sps:$4 sm:$0xff]   ;;  %v21147_v27 = vld [vmem:[#allocation5 + $0x13d0] ss:$40 sps:$4 sm:$0xff]   ;;  %v21150_v8 = vld [vmem:[#allocation5 + $0xe80] ss:$40 sps:$4 sm:$0xff]  }
 0x2b8   :  { %v21161_v6 = vld [vmem:[#allocation5 + $0x1334] ss:$40 sps:$4 sm:$0xff]   ;;  %v21156_v30 = vld [vmem:[#allocation5 + $0xe30] ss:$40 sps:$4 sm:$0xff]  }
 0x2b9   :  { %v4964_v48 = vmax.f32 %v4602_v32, 0.0  ;;  %4869 = vmatpush1.bf16.msra.mxu0 %v21108_v28  ;;  %v21152_v28 = vld [vmem:[#allocation5 + $0xe84] ss:$40 sps:$4 sm:$0xff]   ;;  %v21159_v32 = vld [vmem:[#allocation5 + $0x1330] ss:$40 sps:$4 sm:$0xff]  }
 0x2ba   :  { %4912 = vmatpush1.bf16.msra.mxu1 %v21111_v29  ;;  %4870 = vmatprep.subr.bf16.mxu0 %v21116_v9  ;;  %v21155_v29 = vld [vmem:[#allocation5 + $0x1384] ss:$40 sps:$4 sm:$0xff]   ;;  %v21153_v9 = vld [vmem:[#allocation5 + $0x1380] ss:$40 sps:$4 sm:$0xff]  }
 0x2bb   :  { %4913 = vmatprep.subr.bf16.mxu1 %v21119_v60  ;;  %v24139_v41 = vpack.c.bf16 %v4964_v48, %v4954_v47  ;;  %v21158_v60 = vld [vmem:[#allocation5 + $0xe34] ss:$40 sps:$4 sm:$0xff]   ;;  %v21165_v47 = vld [vmem:[#allocation5 + $0x12e0] ss:$40 sps:$4 sm:$0xff]   ;;  %v24145_v48 = vsub.s32 3, %v24032_v33 }
 0x2bd   :  { %4871 = vmatpush1.bf16.msra.mxu0 %v21114_v34  ;;  %v21164_v34 = vld [vmem:[#allocation5 + $0xde4] ss:$40 sps:$4 sm:$0xff]  }
 0x2be   :  { %4914 = vmatpush1.bf16.msra.mxu1 %v21117_v35  ;;  %4872 = vmatprep.subr.bf16.mxu0 %v21122_v38  ;;  %v21167_v35 = vld [vmem:[#allocation5 + $0x12e4] ss:$40 sps:$4 sm:$0xff]   ;;  %v24142_v38 = vsub.s32 1, %v24032_v33 }
 0x2bf   :  { %4915 = vmatprep.subr.bf16.mxu1 %v21125_v4  ;;  %v21162_v4 = vld [vmem:[#allocation5 + $0xde0] ss:$40 sps:$4 sm:$0xff]  }
 0x2c1   :  { %4873 = vmatpush1.bf16.msra.mxu0 %v21120_v42  ;;  %v21170_v42 = vld [vmem:[#allocation5 + $0xd94] ss:$40 sps:$4 sm:$0xff]  }
 0x2c2   :  { %4916 = vmatpush1.bf16.msra.mxu1 %v21123_v17  ;;  %4874 = vmatprep.subr.bf16.mxu0 %v21128_v55  ;;  %v21173_v17 = vld [vmem:[#allocation5 + $0x1294] ss:$40 sps:$4 sm:$0xff]   ;;  %v807_v55 = vrot.slane %v24105_v40, %v24142_v38 }
 0x2c3   :  { %4917 = vmatprep.subr.bf16.mxu1 %v21131_v58  ;;  %v21168_v58 = vld [vmem:[#allocation5 + $0xd90] ss:$40 sps:$4 sm:$0xff]  }
 0x2c5   :  { %4875 = vmatpush1.bf16.msra.mxu0 %v21126_v59  ;;  %v21171_v59 = vld [vmem:[#allocation5 + $0x1290] ss:$40 sps:$4 sm:$0xff]  }
 0x2c6   :  { %4918 = vmatpush1.bf16.msra.mxu1 %v21129_v61  ;;  %4876 = vmatprep.subr.bf16.mxu0 %v21134_v62  ;;  %v815_v61 = vrot.slane %v24105_v40, %v24145_v48  ;;  %v4131_v62 = vadd.f32 %v24050_v11, %v807_v55  ;;  %v21182_v40 = vld [vmem:[#allocation5 + $0xcf4] ss:$40 sps:$4 sm:$0xff]  }
 0x2c7   :  { %4919 = vmatprep.subr.bf16.mxu1 %v21137_v63 }
 0x2c8   :  { %v4303_v63 = vadd.f32 %v24086_v36, %v815_v61  ;;  %v21185_v36 = vld [vmem:[#allocation5 + $0x11f4] ss:$40 sps:$4 sm:$0xff]  }
 0x2c9   :  { %4877 = vmatpush1.bf16.msra.mxu0 %v21132_v5  ;;  %v21176_v5 = vld [vmem:[#allocation5 + $0xd44] ss:$40 sps:$4 sm:$0xff]  }
 0x2ca   :  { %4920 = vmatpush1.bf16.msra.mxu1 %v21135_v7  ;;  %4878 = vmatprep.subr.bf16.mxu0 %v21140_v14  ;;  %v21179_v7 = vld [vmem:[#allocation5 + $0x1244] ss:$40 sps:$4 sm:$0xff]   ;;  %v4127_v14 = vadd.f32 %v24040_v56, %v807_v55  ;;  %v4346_v11 = vadd.f32 %v24088_v37, %v4303_v63  ;;  %v21183_v56 = vld [vmem:[#allocation5 + $0x11f0] ss:$40 sps:$4 sm:$0xff]  }
 0x2cb   :  { %4921 = vmatprep.subr.bf16.mxu1 %v21143_v15  ;;  %v21174_v15 = vld [vmem:[#allocation5 + $0xd40] ss:$40 sps:$4 sm:$0xff]  }
 0x2cc   :  { %v21209_v55 = vld [vmem:[#allocation8 + $0x694] ss:$40 sps:$4 sm:$0xff]  }
 0x2cd   :  { %4879 = vmatpush1.bf16.msra.mxu0 %v21138_v16  ;;  %v21177_v16 = vld [vmem:[#allocation5 + $0x1240] ss:$40 sps:$4 sm:$0xff]  }
 0x2ce   :  { %4922 = vmatpush1.bf16.msra.mxu1 %v21141_v18  ;;  %4880 = vmatprep.subr.bf16.mxu0 %v21146_v24  ;;  %v4299_v18 = vadd.f32 %v24076_v0, %v815_v61  ;;  %v4174_v24 = vadd.f32 %v24052_v12, %v4131_v62  ;;  %v4389_v0 = vadd.f32 %v24109_v45, %v4346_v11  ;;  %v21194_v45 = vld [vmem:[#allocation8 + $0x234] ss:$40 sps:$4 sm:$0xff]   ;;  %v21212_v61 = vld [vmem:[#allocation8 + $0x144] ss:$40 sps:$4 sm:$0xff]   ;;  %v21213_v62 = vld [vmem:[#allocation8 + $0x640] ss:$40 sps:$4 sm:$0xff]  }
 0x2cf   :  { %4923 = vmatprep.subr.bf16.mxu1 %v21149_v25  ;;  %v4170_v25 = vadd.f32 %v24042_v57, %v4127_v14  ;;  %v21218_v63 = vld [vmem:[#allocation8 + $0xf4] ss:$40 sps:$4 sm:$0xff]   ;;  %v21219_v14 = vld [vmem:[#allocation8 + $0x5f0] ss:$40 sps:$4 sm:$0xff]  }
 0x2d0   :  { %v21230_v11 = vld [vmem:[#allocation8 + $0x54] ss:$40 sps:$4 sm:$0xff]  }
 0x2d1   :  { %4881 = vmatpush2.bf16.msra.mxu0 %v21144_v53  ;;  %v4217_v53 = vadd.f32 %v24070_v50, %v4174_v24  ;;  %v4213_v12 = vadd.f32 %v24057_v22, %v4170_v25  ;;  %v21189_v50 = vld [vmem:[#allocation5 + $0x11a0] ss:$40 sps:$4 sm:$0xff]  }
 0x2d2   :  { %4924 = vmatpush2.bf16.msra.mxu1 %v21147_v27  ;;  %4882 = vmatprep.subr.bf16.mxu0 %v21152_v28  ;;  %v21180_v27 = vld [vmem:[#allocation5 + $0xcf0] ss:$40 sps:$4 sm:$0xff]   ;;  %v4342_v28 = vadd.f32 %v24078_v1, %v4299_v18 }
 0x2d3   :  { %4925 = vmatprep.subr.bf16.mxu1 %v21155_v29  ;;  %v21188_v29 = vld [vmem:[#allocation5 + $0xca4] ss:$40 sps:$4 sm:$0xff]   ;;  %v4260_v57 = vadd.f32 %v24072_v51, %v4217_v53  ;;  %v4256_v1 = vadd.f32 %v24059_v23, %v4213_v12 }
 0x2d4   :  { %v4385_v37 = vadd.f32 %v24093_v49, %v4342_v28  ;;  %v21197_v49 = vld [vmem:[#allocation8 + $0x734] ss:$40 sps:$4 sm:$0xff]   ;;  %v21200_v51 = vld [vmem:[#allocation8 + $0x1e4] ss:$40 sps:$4 sm:$0xff]   ;;  %v21225_v24 = vld [vmem:[#allocation8 + $0x5a0] ss:$40 sps:$4 sm:$0xff]  }
 0x2d5   :  { %4883 = vmatpush2.bf16.msra.mxu0 %v21150_v8  ;;  %v21191_v8 = vld [vmem:[#allocation5 + $0x11a4] ss:$40 sps:$4 sm:$0xff]  }
 0x2d6   :  { %4926 = vmatpush2.bf16.msra.mxu1 %v21153_v9  ;;  %4884 = vmatprep.subr.bf16.mxu0 %v21158_v60  ;;  %v21186_v9 = vld [vmem:[#allocation5 + $0xca0] ss:$40 sps:$4 sm:$0xff]   ;;  %v4432_v60 = vadd.f32 %v24111_v46, %v4389_v0  ;;  %v4428_v22 = vadd.f32 %v24095_v52, %v4385_v37  ;;  %v21203_v23 = vld [vmem:[#allocation8 + $0x6e4] ss:$40 sps:$4 sm:$0xff]  }
 0x2d7   :  { %4927 = vmatprep.subr.bf16.mxu1 %v21161_v6  ;;  %v4961_v6 = vmax.f32 %v4260_v57, 0.0  ;;  %v21227_v18 = vld [vmem:[#allocation8 + $0x5a4] ss:$40 sps:$4 sm:$0xff]   ;;  %v21231_v25 = vld [vmem:[#allocation8 + $0x550] ss:$40 sps:$4 sm:$0xff]  }
 0x2d8   :  { %v21236_v53 = vld [vmem:[#allocation8 + $0x4] ss:$40 sps:$4 sm:$0xff]   ;;  %v21237_v28 = vld [vmem:[#allocation8 + $0x500] ss:$40 sps:$4 sm:$0xff]   ;;  %v21242_v0 = vld [vmem:[#allocation8 + $0x4b4] ss:$40 sps:$4 sm:$0xff]  }
 0x2d9   :  { %4885 = vmatpush2.bf16.msra.mxu0 %v21156_v30  ;;  %v21192_v30 = vld [vmem:[#allocation8 + $0x230] ss:$40 sps:$4 sm:$0xff]   ;;  %v21245_v37 = vld [vmem:[#allocation8 + $0x9b4] ss:$40 sps:$4 sm:$0xff]   ;;  %v21246_v57 = vld [vmem:[#allocation8 + $0x460] ss:$40 sps:$4 sm:$0xff]  }
 0x2da   :  { %4928 = vmatpush2.bf16.msra.mxu1 %v21159_v32  ;;  %4886 = vmatprep.subr.bf16.mxu0 %v21164_v34  ;;  %v4963_v32 = vmax.f32 %v4432_v60, 0.0  ;;  %v21195_v34 = vld [vmem:[#allocation8 + $0x730] ss:$40 sps:$4 sm:$0xff]   ;;  %v21254_v60 = vld [vmem:[#allocation8 + $0x414] ss:$40 sps:$4 sm:$0xff]  }
 0x2db   :  { %4929 = vmatprep.subr.bf16.mxu1 %v21167_v35  ;;  %v4951_v35 = vmax.f32 %v4256_v1, 0.0  ;;  %v21240_v12 = vld [vmem:[#allocation8 + $0x4b0] ss:$40 sps:$4 sm:$0xff]  }
 0x2dc   :  { %v21252_v1 = vld [vmem:[#allocation8 + $0x410] ss:$40 sps:$4 sm:$0xff]  }
 0x2dd   :  { %4887 = vmatpush2.bf16.msra.mxu0 %v21162_v4  ;;  %v4953_v4 = vmax.f32 %v4428_v22, 0.0  ;;  %v24167_v46 = vpack.c.bf16 %v4961_v6, %v4951_v35  ;;  %v21257_v22 = vld [vmem:[#allocation8 + $0x914] ss:$40 sps:$4 sm:$0xff]   ;;  %v21258_v6 = vld [vmem:[#allocation8 + $0x3c0] ss:$40 sps:$4 sm:$0xff]  }
 0x2de   :  { %4930 = vmatpush2.bf16.msra.mxu1 %v21165_v47  ;;  %4888 = vmatprep.subr.bf16.mxu0 %v21170_v42  ;;  %v21198_v47 = vld [vmem:[#allocation8 + $0x1e0] ss:$40 sps:$4 sm:$0xff]   ;;  %v21266_v35 = vld [vmem:[#allocation8 + $0x374] ss:$40 sps:$4 sm:$0xff]  }
 0x2df   :  { %4931 = vmatprep.subr.bf16.mxu1 %v21173_v17  ;;  %v24169_v52 = vpack.c.bf16 %v4963_v32, %v4953_v4  ;;  %v21201_v42 = vld [vmem:[#allocation8 + $0x6e0] ss:$40 sps:$4 sm:$0xff]   ;;  %v21206_v17 = vld [vmem:[#allocation8 + $0x194] ss:$40 sps:$4 sm:$0xff]   ;;  %v24176_v32 = vsub.s32 5, %v24032_v33 }
 0x2e0   :  { %v21269_v4 = vld [vmem:[#allocation8 + $0x874] ss:$40 sps:$4 sm:$0xff]  }
 0x2e1   :  { %4889 = vmatpush2.bf16.msra.mxu0 %v21168_v58  ;;  %v21204_v58 = vld [vmem:[#allocation8 + $0x190] ss:$40 sps:$4 sm:$0xff]  }
 0x2e2   :  { %4932 = vmatpush2.bf16.msra.mxu1 %v21171_v59  ;;  %4890 = vmatprep.subr.bf16.mxu0 %v21176_v5  ;;  %v21207_v59 = vld [vmem:[#allocation8 + $0x690] ss:$40 sps:$4 sm:$0xff]   ;;  %v21221_v5 = vld [vmem:[#allocation8 + $0x5f4] ss:$40 sps:$4 sm:$0xff]  }
 0x2e3   :  { %4933 = vmatprep.subr.bf16.mxu1 %v21179_v7  ;;  %v21216_v7 = vld [vmem:[#allocation8 + $0xf0] ss:$40 sps:$4 sm:$0xff]  }
 0x2e5   :  { %4891 = vmatpush2.bf16.msra.mxu0 %v21174_v15  ;;  %v21224_v15 = vld [vmem:[#allocation8 + $0xa4] ss:$40 sps:$4 sm:$0xff]  }
 0x2e6   :  { %4934 = vmatpush2.bf16.msra.mxu1 %v21177_v16  ;;  %4892 = vmatprep.subr.bf16.mxu0 %v21182_v40  ;;  %v21222_v16 = vld [vmem:[#allocation8 + $0xa0] ss:$40 sps:$4 sm:$0xff]   ;;  %v21228_v40 = vld [vmem:[#allocation8 + $0x50] ss:$40 sps:$4 sm:$0xff]  }
 0x2e7   :  { %4935 = vmatprep.subr.bf16.mxu1 %v21185_v36  ;;  %v21233_v36 = vld [vmem:[#allocation8 + $0x554] ss:$40 sps:$4 sm:$0xff]  }
 0x2e9   :  { %4893 = vmatpush2.bf16.msra.mxu0 %v21180_v27  ;;  %v21234_v27 = vld [vmem:[#allocation8] ss:$40 sps:$4 sm:$0xff]  }
 0x2ea   :  { %4936 = vmatpush2.bf16.msra.mxu1 %v21183_v56  ;;  %4894 = vmatprep.subr.bf16.mxu0 %v21188_v29  ;;  %v21239_v56 = vld [vmem:[#allocation8 + $0x504] ss:$40 sps:$4 sm:$0xff]   ;;  %v21243_v29 = vld [vmem:[#allocation8 + $0x9b0] ss:$40 sps:$4 sm:$0xff]  }
 0x2eb   :  { %4937 = vmatprep.subr.bf16.mxu1 %v21191_v8  ;;  %v21248_v8 = vld [vmem:[#allocation8 + $0x464] ss:$40 sps:$4 sm:$0xff]  }
 0x2ed   :  { %4895 = vmatpush2.bf16.msra.mxu0 %v21186_v9  ;;  %v21251_v9 = vld [vmem:[#allocation8 + $0x964] ss:$40 sps:$4 sm:$0xff]  }
 0x2ee   :  { %4938 = vmatpush2.bf16.msra.mxu1 %v21189_v50  ;;  %9834 = vmatprep.subr.bf16.mxu0 %v21194_v45  ;;  %v21249_v50 = vld [vmem:[#allocation8 + $0x960] ss:$40 sps:$4 sm:$0xff]   ;;  %v21255_v45 = vld [vmem:[#allocation8 + $0x910] ss:$40 sps:$4 sm:$0xff]  }
 0x2ef   :  { %9877 = vmatprep.subr.bf16.mxu1 %v21197_v49  ;;  %v21260_v49 = vld [vmem:[#allocation8 + $0x3c4] ss:$40 sps:$4 sm:$0xff]  }
 0x2f0   :  { %4897 = vmatmul.mubr.bf16.vlgmr.msra.gmra.mxu0 %v24018_v20  ;;  %v21210_v20 = vld [vmem:[#allocation8 + $0x140] ss:$40 sps:$4 sm:$0xff]  }
 0x2f1   :  { %4940 = vmatmul.mubr.bf16.vlgmr.msra.gmra.mxu1 %v24022_v21  ;;  %9835 = vmatpush1.bf16.msra.mxu0 %v21192_v30  ;;  %v21215_v21 = vld [vmem:[#allocation8 + $0x644] ss:$40 sps:$4 sm:$0xff]  }
 0x2f2   :  { %9866 = vmatprep.mubr.bf16.mxu0 %v24167_v46  ;;  %9878 = vmatpush1.bf16.msra.mxu1 %v21195_v34  ;;  %v21263_v30 = vld [vmem:[#allocation8 + $0x8c4] ss:$40 sps:$4 sm:$0xff]   ;;  %v21261_v34 = vld [vmem:[#allocation8 + $0x8c0] ss:$40 sps:$4 sm:$0xff]  }
 0x2f3   :  { %9909 = vmatprep.mubr.bf16.mxu1 %v24169_v52  ;;  %9836 = vmatprep.subr.bf16.mxu0 %v21200_v51  ;;  %v21264_v51 = vld [vmem:[#allocation8 + $0x370] ss:$40 sps:$4 sm:$0xff]  }
 0x2f4   :  { %9879 = vmatprep.subr.bf16.mxu1 %v21203_v23  ;;  %v24178_v23 = vld [vmem:[#allocation7] sm:$0xff] }
 0x2f5   :  { %9837 = vmatpush1.bf16.msra.mxu0 %v21198_v47  ;;  %v823_v47 = vrot.slane %v24178_v23, %v24176_v32 }
 0x2f6   :  { %9880 = vmatpush1.bf16.msra.mxu1 %v21201_v42  ;;  %9838 = vmatprep.subr.bf16.mxu0 %v21206_v17  ;;  %v21267_v17 = vld [vmem:[#allocation8 + $0x870] ss:$40 sps:$4 sm:$0xff]  }
 0x2f7   :  { %9881 = vmatprep.subr.bf16.mxu1 %v21209_v55  ;;  %v4475_v42 = vadd.f32 %v24125_v10, %v823_v47  ;;  %v21272_v55 = vld [vmem:[#allocation8 + $0x324] ss:$40 sps:$4 sm:$0xff]   ;;  %v21273_v10 = vld [vmem:[#allocation8 + $0x820] ss:$40 sps:$4 sm:$0xff]  }
 0x2f9   :  { %9839 = vmatpush1.bf16.msra.mxu0 %v21204_v58  ;;  %v21270_v58 = vld [vmem:[#allocation8 + $0x320] ss:$40 sps:$4 sm:$0xff]  }
 0x2fa   :  { %9882 = vmatpush1.bf16.msra.mxu1 %v21207_v59  ;;  %9840 = vmatprep.subr.bf16.mxu0 %v21212_v61  ;;  %v21275_v59 = vld [vmem:[#allocation8 + $0x824] ss:$40 sps:$4 sm:$0xff]   ;;  %v4471_v61 = vadd.f32 %v24115_v2, %v823_v47  ;;  %v24191_v2 = vsub.s32 7, %v24032_v33 }
 0x2fb   :  { %9883 = vmatprep.subr.bf16.mxu1 %v21215_v21  ;;  %v4603_v21 = vpop.f32.mrf.mxu1 }
 0x2fd   :  { %9841 = vmatpush1.bf16.msra.mxu0 %v21210_v20  ;;  %v4560_v20 = vpop.f32.mrf.mxu0 }
 0x2fe   :  { %9884 = vmatpush1.bf16.msra.mxu1 %v21213_v62  ;;  %9842 = vmatprep.subr.bf16.mxu0 %v21218_v63  ;;  %v4518_v62 = vadd.f32 %v24127_v13, %v4475_v42  ;;  %v21302_v42 = vld [vmem:[#allocation8 + $0xb94] ss:$40 sps:$4 sm:$0xff]  }
 0x2ff   :  { %9885 = vmatprep.subr.bf16.mxu1 %v21221_v5  ;;  %v24185_v63 = vpop.f32.mrf.mxu0  ;;  %v24187_v5 = vpop.f32.mrf.mxu1 }
 0x301   :  { %9843 = vmatpush1.bf16.msra.mxu0 %v21216_v7  ;;  %v21278_v7 = vld [vmem:[#allocation8 + $0x2d4] ss:$40 sps:$4 sm:$0xff]  }
 0x302   :  { %9886 = vmatpush1.bf16.msra.mxu1 %v21219_v14  ;;  %9844 = vmatprep.subr.bf16.mxu0 %v21224_v15  ;;  %v21276_v14 = vld [vmem:[#allocation8 + $0x2d0] ss:$40 sps:$4 sm:$0xff]   ;;  %v21281_v15 = vld [vmem:[#allocation8 + $0x7d4] ss:$40 sps:$4 sm:$0xff]  }
 0x303   :  { %9887 = vmatprep.subr.bf16.mxu1 %v21227_v18  ;;  %v4561_v18 = vadd.f32 %v4560_v20, %v4518_v62  ;;  %v21303_v20 = vld [vmem:[#allocation8 + $0x1090] ss:$40 sps:$4 sm:$0xff]  }
 0x305   :  { %9845 = vmatpush1.bf16.msra.mxu0 %v21222_v16  ;;  %v4514_v16 = vadd.f32 %v24117_v3, %v4471_v61  ;;  %v831_v3 = vrot.slane %v24178_v23, %v24191_v2 }
 0x306   :  { %9888 = vmatpush1.bf16.msra.mxu1 %v21225_v24  ;;  %9846 = vmatprep.subr.bf16.mxu0 %v21230_v11  ;;  %v4642_v24 = vpop.f32.mrf.mxu0  ;;  %v4685_v11 = vpop.f32.mrf.mxu1 }
 0x307   :  { %9889 = vmatprep.subr.bf16.mxu1 %v21233_v36  ;;  %v4557_v13 = vadd.f32 %v24132_v26, %v4514_v16  ;;  %v21284_v36 = vld [vmem:[#allocation8 + $0x284] ss:$40 sps:$4 sm:$0xff]   ;;  %v21285_v26 = vld [vmem:[#allocation8 + $0x780] ss:$40 sps:$4 sm:$0xff]  }
 0x308   :  { %v21311_v16 = vld [vmem:[#allocation8 + $0x1044] ss:$40 sps:$4 sm:$0xff]  }
 0x309   :  { %9847 = vmatpush1.bf16.msra.mxu0 %v21228_v40  ;;  %v21279_v40 = vld [vmem:[#allocation8 + $0x7d0] ss:$40 sps:$4 sm:$0xff]  }
 0x30a   :  { %9890 = vmatpush1.bf16.msra.mxu1 %v21231_v25  ;;  %9848 = vmatprep.subr.bf16.mxu0 %v21236_v53  ;;  %v21282_v25 = vld [vmem:[#allocation8 + $0x280] ss:$40 sps:$4 sm:$0xff]   ;;  %v21287_v53 = vld [vmem:[#allocation8 + $0x784] ss:$40 sps:$4 sm:$0xff]  }
 0x30b   :  { %9891 = vmatprep.subr.bf16.mxu1 %v21239_v56  ;;  %v4600_v56 = vadd.f32 %v24134_v54, %v4557_v13  ;;  %v21296_v54 = vld [vmem:[#allocation8 + $0xbe4] ss:$40 sps:$4 sm:$0xff]   ;;  %v21309_v13 = vld [vmem:[#allocation8 + $0x1040] ss:$40 sps:$4 sm:$0xff]  }
 0x30d   :  { %9849 = vmatpush1.bf16.msra.mxu0 %v21234_v27  ;;  %v4604_v27 = vadd.f32 %v4603_v21, %v4561_v18 }
 0x30e   :  { %9892 = vmatpush1.bf16.msra.mxu1 %v21237_v28  ;;  %9850 = vmatprep.subr.bf16.mxu0 %v21242_v0  ;;  %v24197_v28 = vpop.f32.mrf.mxu0  ;;  %v24199_v0 = vpop.f32.mrf.mxu1 }
 0x30f   :  { %9893 = vmatprep.subr.bf16.mxu1 %v21245_v37  ;;  %v21293_v37 = vld [vmem:[#allocation8 + $0x1134] ss:$40 sps:$4 sm:$0xff]  }
 0x311   :  { %9851 = vmatpush2.bf16.msra.mxu0 %v21240_v12  ;;  %v21290_v12 = vld [vmem:[#allocation8 + $0xc34] ss:$40 sps:$4 sm:$0xff]  }
 0x312   :  { %9894 = vmatpush2.bf16.msra.mxu1 %v21243_v29  ;;  %9852 = vmatprep.subr.bf16.mxu0 %v21248_v8  ;;  %v21288_v29 = vld [vmem:[#allocation8 + $0xc30] ss:$40 sps:$4 sm:$0xff]   ;;  %v4965_v8 = vmax.f32 %v4604_v27, 0.0 }
 0x313   :  { %9895 = vmatprep.subr.bf16.mxu1 %v21251_v9  ;;  %v4643_v9 = vadd.f32 %v4642_v24, %v831_v3  ;;  %v21315_v27 = vld [vmem:[#allocation8 + $0xff0] ss:$40 sps:$4 sm:$0xff]  }
 0x315   :  { %9853 = vmatpush2.bf16.msra.mxu0 %v21246_v57  ;;  %v21291_v57 = vld [vmem:[#allocation8 + $0x1130] ss:$40 sps:$4 sm:$0xff]  }
 0x316   :  { %9896 = vmatpush2.bf16.msra.mxu1 %v21249_v50  ;;  %9854 = vmatprep.subr.bf16.mxu0 %v21254_v60  ;;  %v4955_v50 = vmax.f32 %v4600_v56, 0.0  ;;  %v4646_v60 = vpop.f32.mrf.mxu0  ;;  %v21320_v56 = vld [vmem:[#allocation8 + $0xaa4] ss:$40 sps:$4 sm:$0xff]  }
 0x317   :  { %9897 = vmatprep.subr.bf16.mxu1 %v21257_v22  ;;  %v21299_v22 = vld [vmem:[#allocation8 + $0x10e4] ss:$40 sps:$4 sm:$0xff]  }
 0x319   :  { %9855 = vmatpush2.bf16.msra.mxu0 %v21252_v1  ;;  %v4689_v1 = vpop.f32.mrf.mxu1 }
 0x31a   :  { %9898 = vmatpush2.bf16.msra.mxu1 %v21255_v45  ;;  %9856 = vmatprep.subr.bf16.mxu0 %v21260_v49  ;;  %v21294_v45 = vld [vmem:[#allocation8 + $0xbe0] ss:$40 sps:$4 sm:$0xff]   ;;  %v24201_v49 = vpack.c.bf16 %v4965_v8, %v4955_v50  ;;  %v21329_v8 = vld [vmem:[#allocation8 + $0xf54] ss:$40 sps:$4 sm:$0xff]   ;;  %v21332_v50 = vld [vmem:[#allocation8 + $0xa04] ss:$40 sps:$4 sm:$0xff]  }
 0x31b   :  { %9899 = vmatprep.subr.bf16.mxu1 %v21263_v30 }
 0x31d   :  { %9857 = vmatpush2.bf16.msra.mxu0 %v21258_v6 }
 0x31e   :  { %9900 = vmatpush2.bf16.msra.mxu1 %v21261_v34  ;;  %9858 = vmatprep.subr.bf16.mxu0 %v21266_v35  ;;  %v21297_v34 = vld [vmem:[#allocation8 + $0x10e0] ss:$40 sps:$4 sm:$0xff]   ;;  %v4686_v35 = vadd.f32 %v4685_v11, %v4643_v9  ;;  %v21314_v11 = vld [vmem:[#allocation8 + $0xaf4] ss:$40 sps:$4 sm:$0xff]   ;;  %v21327_v9 = vld [vmem:[#allocation8 + $0xf50] ss:$40 sps:$4 sm:$0xff]  }
 0x31f   :  { %9901 = vmatprep.subr.bf16.mxu1 %v21269_v4 }
 0x321   :  { %9859 = vmatpush2.bf16.msra.mxu0 %v21264_v51  ;;  %v4647_v51 = vadd.f32 %v4646_v60, %v831_v3  ;;  %v21335_v60 = vld [vmem:[#allocation8 + $0xf04] ss:$40 sps:$4 sm:$0xff]  }
 0x322   :  { %9902 = vmatpush2.bf16.msra.mxu1 %v21267_v17  ;;  %9860 = vmatprep.subr.bf16.mxu0 %v21272_v55  ;;  %v21300_v55 = vld [vmem:[#allocation8 + $0xb90] ss:$40 sps:$4 sm:$0xff]  }
 0x323   :  { %9903 = vmatprep.subr.bf16.mxu1 %v21275_v59  ;;  %v4690_v21 = vadd.f32 %v4689_v1, %v4647_v51  ;;  %v21330_v1 = vld [vmem:[#allocation8 + $0xa00] ss:$40 sps:$4 sm:$0xff]   ;;  %v21344_v51 = vld [vmem:[#allocation8 + $0xe64] ss:$40 sps:$4 sm:$0xff]  }
 0x325   :  { %9861 = vmatpush2.bf16.msra.mxu0 %v21270_v58  ;;  %v21305_v58 = vld [vmem:[#allocation8 + $0x1094] ss:$40 sps:$4 sm:$0xff]  }
 0x326   :  { %9904 = vmatpush2.bf16.msra.mxu1 %v21273_v10  ;;  %9862 = vmatprep.subr.bf16.mxu0 %v21278_v7  ;;  %v21308_v10 = vld [vmem:[#allocation8 + $0xb44] ss:$40 sps:$4 sm:$0xff]  }
 0x327   :  { %9905 = vmatprep.subr.bf16.mxu1 %v21281_v15  ;;  %v21306_v15 = vld [vmem:[#allocation8 + $0xb40] ss:$40 sps:$4 sm:$0xff]  }
 0x329   :  { %9863 = vmatpush2.bf16.msra.mxu0 %v21276_v14 }
 0x32a   :  { %9906 = vmatpush2.bf16.msra.mxu1 %v21279_v40  ;;  %9864 = vmatprep.subr.bf16.mxu0 %v21284_v36 }
 0x32b   :  { %9907 = vmatprep.subr.bf16.mxu1 %v21287_v53  ;;  %v21317_v53 = vld [vmem:[#allocation8 + $0xff4] ss:$40 sps:$4 sm:$0xff]  }
 0x32d   :  { %9865 = vmatpush2.bf16.msra.mxu0 %v21282_v25  ;;  %v21312_v25 = vld [vmem:[#allocation8 + $0xaf0] ss:$40 sps:$4 sm:$0xff]  }
 0x32e   :  { %9908 = vmatpush2.bf16.msra.mxu1 %v21285_v26  ;;  %9920 = vmatprep.subr.bf16.mxu0 %v21290_v12  ;;  %v21323_v26 = vld [vmem:[#allocation8 + $0xfa4] ss:$40 sps:$4 sm:$0xff]   ;;  %v21318_v12 = vld [vmem:[#allocation8 + $0xaa0] ss:$40 sps:$4 sm:$0xff]  }
 0x32f   :  { %9963 = vmatprep.subr.bf16.mxu1 %v21293_v37  ;;  %v21321_v37 = vld [vmem:[#allocation8 + $0xfa0] ss:$40 sps:$4 sm:$0xff]  }
 0x330   :  { %v24203_v6 = vpop.f32.mrf.mxu0  ;;  %9867 = vmatmul.mubr.bf16.vlgmr.msra.gmra.mxu0 %v24064_v44 }
 0x331   :  { %v24205_v30 = vpop.f32.mrf.mxu1  ;;  %9910 = vmatmul.mubr.bf16.vlgmr.msra.gmra.mxu1 %v24100_v19  ;;  %9921 = vmatpush1.bf16.msra.mxu0 %v21288_v29  ;;  %v21326_v29 = vld [vmem:[#allocation8 + $0xa54] ss:$40 sps:$4 sm:$0xff]  }
 0x332   :  { %9952 = vmatprep.mubr.bf16.mxu0 %v24201_v49  ;;  %9964 = vmatpush1.bf16.msra.mxu1 %v21291_v57  ;;  %v4728_v4 = vpop.f32.mrf.mxu0  ;;  %v21324_v57 = vld [vmem:[#allocation8 + $0xa50] ss:$40 sps:$4 sm:$0xff]  }
 0x333   :  { %v4771_v47 = vpop.f32.mrf.mxu1  ;;  %v4729_v17 = vadd.f32 %v4728_v4, %v4686_v35  ;;  %9922 = vmatprep.subr.bf16.mxu0 %v21296_v54  ;;  %9965 = vmatprep.subr.bf16.mxu1 %v21299_v22  ;;  %v21333_v54 = vld [vmem:[#allocation8 + $0xf00] ss:$40 sps:$4 sm:$0xff]   ;;  %v21338_v22 = vld [vmem:[#allocation8 + $0xeb4] ss:$40 sps:$4 sm:$0xff]   ;;  %v21339_v35 = vld [vmem:[#allocation8 + $0x13b0] ss:$40 sps:$4 sm:$0xff]  }
 0x334   :  { %v24210_v59 = vpop.f32.mrf.mxu0  ;;  %v21347_v4 = vld [vmem:[#allocation8 + $0x1364] ss:$40 sps:$4 sm:$0xff]  }
 0x335   :  { %v24212_v61 = vpop.f32.mrf.mxu1  ;;  %9923 = vmatpush1.bf16.msra.mxu0 %v21294_v45  ;;  %v4772_v7 = vadd.f32 %v4771_v47, %v4729_v17  ;;  %v21341_v45 = vld [vmem:[#allocation8 + $0x13b4] ss:$40 sps:$4 sm:$0xff]   ;;  %v21342_v47 = vld [vmem:[#allocation8 + $0xe60] ss:$40 sps:$4 sm:$0xff]  }
 0x336   :  { %9966 = vmatpush1.bf16.msra.mxu1 %v21297_v34  ;;  %v4732_v62 = vpop.f32.mrf.mxu0  ;;  %9924 = vmatprep.subr.bf16.mxu0 %v21302_v42  ;;  %v21336_v34 = vld [vmem:[#allocation8 + $0xeb0] ss:$40 sps:$4 sm:$0xff]   ;;  %v21345_v42 = vld [vmem:[#allocation8 + $0x1360] ss:$40 sps:$4 sm:$0xff]   ;;  %v21350_v17 = vld [vmem:[#allocation8 + $0xe14] ss:$40 sps:$4 sm:$0xff]  }
 0x337   :  { %v4733_v14 = vadd.f32 %v4732_v62, %v4690_v21  ;;  %9967 = vmatprep.subr.bf16.mxu1 %v21305_v58  ;;  %v4775_v18 = vpop.f32.mrf.mxu1  ;;  %v4957_v40 = vmax.f32 %v4772_v7, 0.0  ;;  %v21348_v58 = vld [vmem:[#allocation8 + $0xe10] ss:$40 sps:$4 sm:$0xff]   ;;  %v21356_v21 = vld [vmem:[#allocation8 + $0xdc4] ss:$40 sps:$4 sm:$0xff]   ;;  %v24218_v62 = vsub.s32 6, %v24032_v33 }
 0x338   :  { %v21354_v7 = vld [vmem:[#allocation8 + $0xdc0] ss:$40 sps:$4 sm:$0xff]   ;;  %v21363_v33 = vld [vmem:[#allocation8 + $0x1270] ss:$40 sps:$4 sm:$0xff]  }
 0x339   :  { %v4776_v24 = vadd.f32 %v4775_v18, %v4733_v14  ;;  %9925 = vmatpush1.bf16.msra.mxu0 %v21300_v55  ;;  %v21353_v55 = vld [vmem:[#allocation8 + $0x1314] ss:$40 sps:$4 sm:$0xff]   ;;  %v21357_v14 = vld [vmem:[#allocation8 + $0x12c0] ss:$40 sps:$4 sm:$0xff]  }
 0x33a   :  { %9968 = vmatpush1.bf16.msra.mxu1 %v21303_v20  ;;  %9926 = vmatprep.subr.bf16.mxu0 %v21308_v10  ;;  %v21351_v20 = vld [vmem:[#allocation8 + $0x1310] ss:$40 sps:$4 sm:$0xff]   ;;  %v21359_v10 = vld [vmem:[#allocation8 + $0x12c4] ss:$40 sps:$4 sm:$0xff]   ;;  %v21365_v18 = vld [vmem:[#allocation8 + $0x1274] ss:$40 sps:$4 sm:$0xff]  }
 0x33b   :  { %v4967_v36 = vmax.f32 %v4776_v24, 0.0  ;;  %9969 = vmatprep.subr.bf16.mxu1 %v21311_v16  ;;  %v827_v16 = vrot.slane %v24178_v23, %v24218_v62  ;;  %v21369_v23 = vld [vmem:[#allocation8 + $0x1220] ss:$40 sps:$4 sm:$0xff]  }
 0x33d   :  { %v24214_v3 = vpack.c.bf16 %v4967_v36, %v4957_v40  ;;  %9927 = vmatpush1.bf16.msra.mxu0 %v21306_v15  ;;  %v21362_v15 = vld [vmem:[#allocation8 + $0xd74] ss:$40 sps:$4 sm:$0xff]   ;;  %v4645_v24 = vadd.f32 %v24197_v28, %v827_v16  ;;  %v4641_v40 = vadd.f32 %v24185_v63, %v827_v16  ;;  %v21371_v36 = vld [vmem:[#allocation8 + $0x1224] ss:$40 sps:$4 sm:$0xff]   ;;  %v21375_v63 = vld [vmem:[#allocation8 + $0x11d0] ss:$40 sps:$4 sm:$0xff]  }
 0x33e   :  { %9970 = vmatpush1.bf16.msra.mxu1 %v21309_v13  ;;  %9928 = vmatprep.subr.bf16.mxu0 %v21314_v11  ;;  %v21360_v13 = vld [vmem:[#allocation8 + $0xd70] ss:$40 sps:$4 sm:$0xff]   ;;  %v21368_v11 = vld [vmem:[#allocation8 + $0xd24] ss:$40 sps:$4 sm:$0xff]   ;;  %v21426_v16 = vld [vmem:[#allocation8 + $0x14a0] ss:$40 sps:$4 sm:$0xff]  }
 0x33f   :  { %9995 = vmatprep.mubr.bf16.mxu1 %v24214_v3  ;;  %9971 = vmatprep.subr.bf16.mxu1 %v21317_v53  ;;  %v4688_v53 = vadd.f32 %v24199_v0, %v4645_v24  ;;  %v21413_v24 = vld [vmem:[#allocation8 + $0x5c] ss:$40 sps:$4 sm:$0xff]  }
 0x341   :  { %9929 = vmatpush1.bf16.msra.mxu0 %v21312_v25  ;;  %v21366_v25 = vld [vmem:[#allocation8 + $0xd20] ss:$40 sps:$4 sm:$0xff]   ;;  %v4731_v28 = vadd.f32 %v24210_v59, %v4688_v53  ;;  %v21398_v59 = vld [vmem:[#allocation8 + $0x1634] ss:$40 sps:$4 sm:$0xff]  }
 0x342   :  { %9972 = vmatpush1.bf16.msra.mxu1 %v21315_v27  ;;  %9930 = vmatprep.subr.bf16.mxu0 %v21320_v56  ;;  %v21374_v27 = vld [vmem:[#allocation8 + $0xcd4] ss:$40 sps:$4 sm:$0xff]   ;;  %v4684_v56 = vadd.f32 %v24187_v5, %v4641_v40  ;;  %v21381_v5 = vld [vmem:[#allocation8 + $0x1180] ss:$40 sps:$4 sm:$0xff]   ;;  %v21440_v40 = vld [vmem:[#allocation8 + $0x1404] ss:$40 sps:$4 sm:$0xff]  }
 0x343   :  { %9973 = vmatprep.subr.bf16.mxu1 %v21323_v26  ;;  %v21377_v26 = vld [vmem:[#allocation8 + $0x11d4] ss:$40 sps:$4 sm:$0xff]   ;;  %v4774_v0 = vadd.f32 %v24212_v61, %v4731_v28  ;;  %v21417_v53 = vld [vmem:[#allocation8 + $0x8] ss:$40 sps:$4 sm:$0xff]   ;;  %v21423_v28 = vld [vmem:[#allocation8 + $0x4b8] ss:$40 sps:$4 sm:$0xff]  }
 0x345   :  { %9931 = vmatpush1.bf16.msra.mxu0 %v21318_v12  ;;  %v21372_v12 = vld [vmem:[#allocation8 + $0xcd0] ss:$40 sps:$4 sm:$0xff]  }
 0x346   :  { %9974 = vmatpush1.bf16.msra.mxu1 %v21321_v37  ;;  %9932 = vmatprep.subr.bf16.mxu0 %v21326_v29  ;;  %v4727_v37 = vadd.f32 %v24203_v6, %v4684_v56  ;;  %v21380_v29 = vld [vmem:[#allocation8 + $0xc84] ss:$40 sps:$4 sm:$0xff]   ;;  %v21444_v56 = vld [vmem:[#allocation8 + $0x18b0] ss:$40 sps:$4 sm:$0xff]  }
 0x347   :  { %9975 = vmatprep.subr.bf16.mxu1 %v21329_v8  ;;  %v21383_v8 = vld [vmem:[#allocation8 + $0x1184] ss:$40 sps:$4 sm:$0xff]  }
 0x348   :  { %v21386_v6 = vld [vmem:[#allocation8 + $0x23c] ss:$40 sps:$4 sm:$0xff]  }
 0x349   :  { %9933 = vmatpush1.bf16.msra.mxu0 %v21324_v57  ;;  %v21378_v57 = vld [vmem:[#allocation8 + $0xc80] ss:$40 sps:$4 sm:$0xff]  }
 0x34a   :  { %9976 = vmatpush1.bf16.msra.mxu1 %v21327_v9  ;;  %9934 = vmatprep.subr.bf16.mxu0 %v21332_v50  ;;  %v4770_v9 = vadd.f32 %v24205_v30, %v4727_v37  ;;  %v4966_v50 = vmax.f32 %v4774_v0, 0.0  ;;  %v21387_v30 = vld [vmem:[#allocation8 + $0x1e8] ss:$40 sps:$4 sm:$0xff]   ;;  %v21437_v0 = vld [vmem:[#allocation8 + $0x41c] ss:$40 sps:$4 sm:$0xff]  }
 0x34b   :  { %9977 = vmatprep.subr.bf16.mxu1 %v21335_v60  ;;  %v21396_v60 = vld [vmem:[#allocation8 + $0x1630] ss:$40 sps:$4 sm:$0xff]   ;;  %v21450_v37 = vld [vmem:[#allocation8 + $0x1860] ss:$40 sps:$4 sm:$0xff]  }
 0x34d   :  { %9935 = vmatpush1.bf16.msra.mxu0 %v21330_v1  ;;  %v4956_v1 = vmax.f32 %v4770_v9, 0.0  ;;  %v21464_v9 = vld [vmem:[#allocation8 + $0x17c4] ss:$40 sps:$4 sm:$0xff]  }
 0x34e   :  { %9978 = vmatpush1.bf16.msra.mxu1 %v21333_v54  ;;  %9936 = vmatprep.subr.bf16.mxu0 %v21338_v22  ;;  %v21384_v54 = vld [vmem:[#allocation8 + $0x238] ss:$40 sps:$4 sm:$0xff]   ;;  %v21389_v22 = vld [vmem:[#allocation8 + $0x1ec] ss:$40 sps:$4 sm:$0xff]  }
 0x34f   :  { %9979 = vmatprep.subr.bf16.mxu1 %v21341_v45  ;;  %v24230_v61 = vpack.c.bf16 %v4966_v50, %v4956_v1  ;;  %v21404_v45 = vld [vmem:[#allocation8 + $0x15e4] ss:$40 sps:$4 sm:$0xff]   ;;  %v21441_v50 = vld [vmem:[#allocation8 + $0x3c8] ss:$40 sps:$4 sm:$0xff]  }
 0x350   :  { %v21468_v1 = vld [vmem:[#allocation8 + $0x1770] ss:$40 sps:$4 sm:$0xff]  }
 0x351   :  { %9937 = vmatpush2.bf16.msra.mxu0 %v21336_v34  ;;  %v21402_v34 = vld [vmem:[#allocation8 + $0x15e0] ss:$40 sps:$4 sm:$0xff]  }
 0x352   :  { %9980 = vmatpush2.bf16.msra.mxu1 %v21339_v35  ;;  %9938 = vmatprep.subr.bf16.mxu0 %v21344_v51  ;;  %v21410_v35 = vld [vmem:[#allocation8 + $0x1594] ss:$40 sps:$4 sm:$0xff]  }
 0x353   :  { %9981 = vmatprep.subr.bf16.mxu1 %v21347_v4  ;;  %v21392_v51 = vld [vmem:[#allocation8 + $0x19c] ss:$40 sps:$4 sm:$0xff]   ;;  %v21390_v4 = vld [vmem:[#allocation8 + $0x198] ss:$40 sps:$4 sm:$0xff]  }
 0x355   :  { %9939 = vmatpush2.bf16.msra.mxu0 %v21342_v47  ;;  %v21408_v47 = vld [vmem:[#allocation8 + $0x1590] ss:$40 sps:$4 sm:$0xff]  }
 0x356   :  { %9982 = vmatpush2.bf16.msra.mxu1 %v21345_v42  ;;  %9940 = vmatprep.subr.bf16.mxu0 %v21350_v17  ;;  %v21416_v42 = vld [vmem:[#allocation8 + $0x1544] ss:$40 sps:$4 sm:$0xff]  }
 0x357   :  { %9983 = vmatprep.subr.bf16.mxu1 %v21353_v55  ;;  %v21395_v17 = vld [vmem:[#allocation8 + $0x14c] ss:$40 sps:$4 sm:$0xff]   ;;  %v21414_v55 = vld [vmem:[#allocation8 + $0x1540] ss:$40 sps:$4 sm:$0xff]  }
 0x359   :  { %9941 = vmatpush2.bf16.msra.mxu0 %v21348_v58  ;;  %v21393_v58 = vld [vmem:[#allocation8 + $0x148] ss:$40 sps:$4 sm:$0xff]  }
 0x35a   :  { %9984 = vmatpush2.bf16.msra.mxu1 %v21351_v20  ;;  %9942 = vmatprep.subr.bf16.mxu0 %v21356_v21  ;;  %v21422_v20 = vld [vmem:[#allocation8 + $0x14f4] ss:$40 sps:$4 sm:$0xff]  }
 0x35b   :  { %9985 = vmatprep.subr.bf16.mxu1 %v21359_v10  ;;  %v21401_v21 = vld [vmem:[#allocation8 + $0xfc] ss:$40 sps:$4 sm:$0xff]   ;;  %v21399_v10 = vld [vmem:[#allocation8 + $0xf8] ss:$40 sps:$4 sm:$0xff]  }
 0x35d   :  { %9943 = vmatpush2.bf16.msra.mxu0 %v21354_v7  ;;  %v21420_v7 = vld [vmem:[#allocation8 + $0x14f0] ss:$40 sps:$4 sm:$0xff]  }
 0x35e   :  { %9986 = vmatpush2.bf16.msra.mxu1 %v21357_v14  ;;  %9944 = vmatprep.subr.bf16.mxu0 %v21362_v15  ;;  %v21428_v14 = vld [vmem:[#allocation8 + $0x14a4] ss:$40 sps:$4 sm:$0xff]  }
 0x35f   :  { %9987 = vmatprep.subr.bf16.mxu1 %v21365_v18  ;;  %v21407_v15 = vld [vmem:[#allocation8 + $0xac] ss:$40 sps:$4 sm:$0xff]   ;;  %v21405_v18 = vld [vmem:[#allocation8 + $0xa8] ss:$40 sps:$4 sm:$0xff]  }
 0x361   :  { %9945 = vmatpush2.bf16.msra.mxu0 %v21360_v13  ;;  %v21434_v13 = vld [vmem:[#allocation8 + $0x1454] ss:$40 sps:$4 sm:$0xff]  }
 0x362   :  { %9988 = vmatpush2.bf16.msra.mxu1 %v21363_v33  ;;  %9946 = vmatprep.subr.bf16.mxu0 %v21368_v11  ;;  %v21432_v33 = vld [vmem:[#allocation8 + $0x1450] ss:$40 sps:$4 sm:$0xff]  }
 0x363   :  { %9989 = vmatprep.subr.bf16.mxu1 %v21371_v36  ;;  %v21411_v11 = vld [vmem:[#allocation8 + $0x58] ss:$40 sps:$4 sm:$0xff]   ;;  %v21419_v36 = vld [vmem:[#allocation8 + $0xc] ss:$40 sps:$4 sm:$0xff]  }
 0x365   :  { %9947 = vmatpush2.bf16.msra.mxu0 %v21366_v25  ;;  %v21438_v25 = vld [vmem:[#allocation8 + $0x1400] ss:$40 sps:$4 sm:$0xff]  }
 0x366   :  { %9990 = vmatpush2.bf16.msra.mxu1 %v21369_v23  ;;  %9948 = vmatprep.subr.bf16.mxu0 %v21374_v27  ;;  %v21446_v23 = vld [vmem:[#allocation8 + $0x18b4] ss:$40 sps:$4 sm:$0xff]  }
 0x367   :  { %9991 = vmatprep.subr.bf16.mxu1 %v21377_v26  ;;  %v21425_v27 = vld [vmem:[#allocation8 + $0x4bc] ss:$40 sps:$4 sm:$0xff]  }
 0x368   :  { %v21452_v26 = vld [vmem:[#allocation8 + $0x1864] ss:$40 sps:$4 sm:$0xff]  }
 0x369   :  { %9949 = vmatpush2.bf16.msra.mxu0 %v21372_v12  ;;  %v21431_v12 = vld [vmem:[#allocation8 + $0x46c] ss:$40 sps:$4 sm:$0xff]  }
 0x36a   :  { %9992 = vmatpush2.bf16.msra.mxu1 %v21375_v63  ;;  %9950 = vmatprep.subr.bf16.mxu0 %v21380_v29  ;;  %v21429_v63 = vld [vmem:[#allocation8 + $0x468] ss:$40 sps:$4 sm:$0xff]   ;;  %v21458_v29 = vld [vmem:[#allocation8 + $0x1814] ss:$40 sps:$4 sm:$0xff]  }
 0x36b   :  { %9993 = vmatprep.subr.bf16.mxu1 %v21383_v8  ;;  %v21456_v8 = vld [vmem:[#allocation8 + $0x1810] ss:$40 sps:$4 sm:$0xff]  }
 0x36d   :  { %9951 = vmatpush2.bf16.msra.mxu0 %v21378_v57  ;;  %v21435_v57 = vld [vmem:[#allocation8 + $0x418] ss:$40 sps:$4 sm:$0xff]  }
 0x36e   :  { %9994 = vmatpush2.bf16.msra.mxu1 %v21381_v5  ;;  %10006 = vmatprep.subr.bf16.mxu0 %v21398_v59  ;;  %v21443_v5 = vld [vmem:[#allocation8 + $0x3cc] ss:$40 sps:$4 sm:$0xff]   ;;  %v21462_v59 = vld [vmem:[#allocation8 + $0x17c0] ss:$40 sps:$4 sm:$0xff]  }
 0x36f   :  { %10049 = vmatprep.subr.bf16.mxu1 %v21386_v6  ;;  %v21470_v6 = vld [vmem:[#allocation8 + $0x1774] ss:$40 sps:$4 sm:$0xff]  }
 0x370   :  { %9953 = vmatmul.mubr.bf16.vlgmr.msra.gmra.mxu0 %v24139_v41 }
 0x371   :  { %9996 = vmatmul.mubr.bf16.vlgmr.msra.gmra.mxu1 %v24230_v61  ;;  %10007 = vmatpush1.bf16.msra.mxu0 %v21396_v60  ;;  %v21449_v60 = vld [vmem:[#allocation8 + $0x37c] ss:$40 sps:$4 sm:$0xff]  }
 0x372   :  { %10050 = vmatpush1.bf16.msra.mxu1 %v21384_v54  ;;  %10081 = vmatprep.mubr.bf16.mxu1 %v24167_v46  ;;  %v21447_v54 = vld [vmem:[#allocation8 + $0x378] ss:$40 sps:$4 sm:$0xff]  }
 0x373   :  { %10051 = vmatprep.subr.bf16.mxu1 %v21389_v22  ;;  %10008 = vmatprep.subr.bf16.mxu0 %v21404_v45  ;;  %v21476_v22 = vld [vmem:[#allocation8 + $0x1724] ss:$40 sps:$4 sm:$0xff]  }
 0x374   :  { %v21455_v45 = vld [vmem:[#allocation8 + $0x32c] ss:$40 sps:$4 sm:$0xff]  }
 0x375   :  { %10009 = vmatpush1.bf16.msra.mxu0 %v21402_v34  ;;  %v4812_v34 = vpop.f32.mrf.mxu0 }
 0x376   :  { %10052 = vmatpush1.bf16.msra.mxu1 %v21387_v30  ;;  %10010 = vmatprep.subr.bf16.mxu0 %v21410_v35  ;;  %v21474_v30 = vld [vmem:[#allocation8 + $0x1720] ss:$40 sps:$4 sm:$0xff]   ;;  %v4855_v35 = vpop.f32.mrf.mxu1 }
 0x377   :  { %10053 = vmatprep.subr.bf16.mxu1 %v21392_v51  ;;  %v21453_v51 = vld [vmem:[#allocation8 + $0x328] ss:$40 sps:$4 sm:$0xff]  }
 0x379   :  { %10011 = vmatpush1.bf16.msra.mxu0 %v21408_v47  ;;  %v21461_v47 = vld [vmem:[#allocation8 + $0x2dc] ss:$40 sps:$4 sm:$0xff]  }
 0x37a   :  { %10054 = vmatpush1.bf16.msra.mxu1 %v21390_v4  ;;  %10012 = vmatprep.subr.bf16.mxu0 %v21416_v42  ;;  %v21482_v4 = vld [vmem:[#allocation8 + $0x16d4] ss:$40 sps:$4 sm:$0xff]  }
 0x37b   :  { %10055 = vmatprep.subr.bf16.mxu1 %v21395_v17  ;;  %v797_v42 = vld [vmem:[#allocation7 + $0x8] sm:$0x3]  ;;  %v21480_v17 = vld [vmem:[#allocation8 + $0x16d0] ss:$40 sps:$4 sm:$0xff]  }
 0x37d   :  { %10013 = vmatpush1.bf16.msra.mxu0 %v21414_v55  ;;  %v4814_v55 = vpop.f32.mrf.mxu0 }
 0x37e   :  { %10056 = vmatpush1.bf16.msra.mxu1 %v21393_v58  ;;  %10014 = vmatprep.subr.bf16.mxu0 %v21422_v20  ;;  %v4857_v58 = vpop.f32.mrf.mxu1  ;;  %v21459_v20 = vld [vmem:[#allocation8 + $0x2d8] ss:$40 sps:$4 sm:$0xff]  }
 0x37f   :  { %10057 = vmatprep.subr.bf16.mxu1 %v21401_v21  ;;  %v21488_v21 = vld [vmem:[#allocation8 + $0x1684] ss:$40 sps:$4 sm:$0xff]  }
 0x381   :  { %10015 = vmatpush1.bf16.msra.mxu0 %v21420_v7  ;;  %v21486_v7 = vld [vmem:[#allocation8 + $0x1680] ss:$40 sps:$4 sm:$0xff]  }
 0x382   :  { %10058 = vmatpush1.bf16.msra.mxu1 %v21399_v10  ;;  %10016 = vmatprep.subr.bf16.mxu0 %v21428_v14  ;;  %v21467_v10 = vld [vmem:[#allocation8 + $0x28c] ss:$40 sps:$4 sm:$0xff]   ;;  %v839_v14 = vrot.slane %v797_v42, %v24142_v38 }
 0x383   :  { %10059 = vmatprep.subr.bf16.mxu1 %v21407_v15  ;;  %v835_v15 = vrot.slane %v797_v42, %v24035_v39  ;;  %v21489_v42 = vld [vmem:[#allocation8 + $0xb48] ss:$40 sps:$4 sm:$0xff]  }
 0x385   :  { %10017 = vmatpush1.bf16.msra.mxu0 %v21426_v16  ;;  %v4816_v16 = vpop.f32.mrf.mxu0 }
 0x386   :  { %10060 = vmatpush1.bf16.msra.mxu1 %v21405_v18  ;;  %10018 = vmatprep.subr.bf16.mxu0 %v21434_v13  ;;  %v4859_v18 = vpop.f32.mrf.mxu1  ;;  %v21465_v13 = vld [vmem:[#allocation8 + $0x288] ss:$40 sps:$4 sm:$0xff]  }
 0x387   :  { %10061 = vmatprep.subr.bf16.mxu1 %v21413_v24  ;;  %v21494_v24 = vld [vmem:[#allocation8 + $0x73c] ss:$40 sps:$4 sm:$0xff]  }
 0x389   :  { %10019 = vmatpush1.bf16.msra.mxu0 %v21432_v33  ;;  %v21473_v33 = vld [vmem:[#allocation8 + $0xc3c] ss:$40 sps:$4 sm:$0xff]  }
 0x38a   :  { %10062 = vmatpush1.bf16.msra.mxu1 %v21411_v11  ;;  %10020 = vmatprep.subr.bf16.mxu0 %v21440_v40  ;;  %v4815_v11 = vadd.f32 %v4814_v55, %v839_v14  ;;  %v4813_v40 = vadd.f32 %v4812_v34, %v835_v15  ;;  %v21491_v34 = vld [vmem:[#allocation8 + $0xb4c] ss:$40 sps:$4 sm:$0xff]  }
 0x38b   :  { %10063 = vmatprep.subr.bf16.mxu1 %v21419_v36  ;;  %v4818_v36 = vpop.f32.mrf.mxu0 }
 0x38d   :  { %10021 = vmatpush1.bf16.msra.mxu0 %v21438_v25  ;;  %v4861_v25 = vpop.f32.mrf.mxu1 }
 0x38e   :  { %10064 = vmatpush1.bf16.msra.mxu1 %v21417_v53  ;;  %10022 = vmatprep.subr.bf16.mxu0 %v21446_v23  ;;  %v21471_v53 = vld [vmem:[#allocation8 + $0xc38] ss:$40 sps:$4 sm:$0xff]   ;;  %v4817_v23 = vadd.f32 %v4816_v16, %v835_v15  ;;  %v21500_v15 = vld [vmem:[#allocation8 + $0x6ec] ss:$40 sps:$4 sm:$0xff]  }
 0x38f   :  { %10065 = vmatprep.subr.bf16.mxu1 %v21425_v27  ;;  %v21479_v27 = vld [vmem:[#allocation8 + $0xbec] ss:$40 sps:$4 sm:$0xff]  }
 0x390   :  { %v21503_v16 = vld [vmem:[#allocation8 + $0xaac] ss:$40 sps:$4 sm:$0xff]  }
 0x391   :  { %10023 = vmatpush2.bf16.msra.mxu0 %v21444_v56 }
 0x392   :  { %10066 = vmatpush2.bf16.msra.mxu1 %v21423_v28  ;;  %10024 = vmatprep.subr.bf16.mxu0 %v21452_v26  ;;  %v4858_v26 = vadd.f32 %v4857_v58, %v4815_v11  ;;  %v21492_v58 = vld [vmem:[#allocation8 + $0x738] ss:$40 sps:$4 sm:$0xff]  }
 0x393   :  { %10067 = vmatprep.subr.bf16.mxu1 %v21431_v12  ;;  %v4819_v12 = vadd.f32 %v4818_v36, %v839_v14  ;;  %v21504_v11 = vld [vmem:[#allocation8 + $0x698] ss:$40 sps:$4 sm:$0xff]   ;;  %v21512_v36 = vld [vmem:[#allocation8 + $0x64c] ss:$40 sps:$4 sm:$0xff]  }
 0x395   :  { %10025 = vmatpush2.bf16.msra.mxu0 %v21450_v37  ;;  %v4856_v37 = vadd.f32 %v4855_v35, %v4813_v40  ;;  %v21507_v40 = vld [vmem:[#allocation8 + $0xa58] ss:$40 sps:$4 sm:$0xff]  }
 0x396   :  { %10068 = vmatpush2.bf16.msra.mxu1 %v21429_v63  ;;  %10026 = vmatprep.subr.bf16.mxu0 %v21458_v29 }
 0x397   :  { %10069 = vmatprep.subr.bf16.mxu1 %v21437_v0  ;;  %v21477_v0 = vld [vmem:[#allocation8 + $0xbe8] ss:$40 sps:$4 sm:$0xff]  }
 0x399   :  { %10027 = vmatpush2.bf16.msra.mxu0 %v21456_v8  ;;  %v4860_v8 = vadd.f32 %v4859_v18, %v4817_v23  ;;  %v21498_v18 = vld [vmem:[#allocation8 + $0x6e8] ss:$40 sps:$4 sm:$0xff]  }
 0x39a   :  { %10070 = vmatpush2.bf16.msra.mxu1 %v21435_v57  ;;  %10028 = vmatprep.subr.bf16.mxu0 %v21464_v9  ;;  %v21485_v9 = vld [vmem:[#allocation8 + $0xb9c] ss:$40 sps:$4 sm:$0xff]   ;;  %v21513_v23 = vld [vmem:[#allocation8 + $0xa08] ss:$40 sps:$4 sm:$0xff]  }
 0x39b   :  { %10071 = vmatprep.subr.bf16.mxu1 %v21443_v5 }
 0x39d   :  { %10029 = vmatpush2.bf16.msra.mxu0 %v21462_v59 }
 0x39e   :  { %10072 = vmatpush2.bf16.msra.mxu1 %v21441_v50  ;;  %10030 = vmatprep.subr.bf16.mxu0 %v21470_v6  ;;  %v4862_v6 = vadd.f32 %v4861_v25, %v4819_v12  ;;  %v21515_v25 = vld [vmem:[#allocation8 + $0xa0c] ss:$40 sps:$4 sm:$0xff]  }
 0x39f   :  { %10073 = vmatprep.subr.bf16.mxu1 %v21449_v60  ;;  %v21524_v12 = vld [vmem:[#allocation8 + $0x5ac] ss:$40 sps:$4 sm:$0xff]  }
 0x3a1   :  { %10031 = vmatpush2.bf16.msra.mxu0 %v21468_v1 }
 0x3a2   :  { %10074 = vmatpush2.bf16.msra.mxu1 %v21447_v54  ;;  %10032 = vmatprep.subr.bf16.mxu0 %v21476_v22  ;;  %v21483_v54 = vld [vmem:[#allocation8 + $0xb98] ss:$40 sps:$4 sm:$0xff]  }
 0x3a3   :  { %10075 = vmatprep.subr.bf16.mxu1 %v21455_v45 }
 0x3a5   :  { %10033 = vmatpush2.bf16.msra.mxu0 %v21474_v30 }
 0x3a6   :  { %10076 = vmatpush2.bf16.msra.mxu1 %v21453_v51  ;;  %10034 = vmatprep.subr.bf16.mxu0 %v21482_v4 }
 0x3a7   :  { %10077 = vmatprep.subr.bf16.mxu1 %v21461_v47 }
 0x3a9   :  { %10035 = vmatpush2.bf16.msra.mxu0 %v21480_v17 }
 0x3aa   :  { %10078 = vmatpush2.bf16.msra.mxu1 %v21459_v20  ;;  %10036 = vmatprep.subr.bf16.mxu0 %v21488_v21  ;;  %v21497_v20 = vld [vmem:[#allocation8 + $0xafc] ss:$40 sps:$4 sm:$0xff]  }
 0x3ab   :  { %10079 = vmatprep.subr.bf16.mxu1 %v21467_v10  ;;  %v21495_v10 = vld [vmem:[#allocation8 + $0xaf8] ss:$40 sps:$4 sm:$0xff]  }
 0x3ad   :  { %10037 = vmatpush2.bf16.msra.mxu0 %v21486_v7 }
 0x3ae   :  { %10080 = vmatpush2.bf16.msra.mxu1 %v21465_v13  ;;  %10092 = vmatprep.subr.bf16.mxu0 %v21494_v24  ;;  %v21501_v13 = vld [vmem:[#allocation8 + $0xaa8] ss:$40 sps:$4 sm:$0xff]   ;;  %v21506_v24 = vld [vmem:[#allocation8 + $0x69c] ss:$40 sps:$4 sm:$0xff]  }
 0x3af   :  { %10135 = vmatprep.subr.bf16.mxu1 %v21473_v33  ;;  %v21509_v33 = vld [vmem:[#allocation8 + $0xa5c] ss:$40 sps:$4 sm:$0xff]  }
 0x3b0   :  { %v4898_v56 = vpop.f32.mrf.mxu0 }
 0x3b1   :  { %v4941_v28 = vpop.f32.mrf.mxu1  ;;  %10082 = vmatmul.mubr.bf16.vlgmr.msra.gmra.mxu1 %v24064_v44  ;;  %v4899_v5 = vadd.f32 %v4898_v56, %v4856_v37  ;;  %v21521_v56 = vld [vmem:[#allocation8 + $0xebc] ss:$40 sps:$4 sm:$0xff]   ;;  %v21527_v37 = vld [vmem:[#allocation8 + $0xe6c] ss:$40 sps:$4 sm:$0xff]  }
 0x3b2   :  { %10136 = vmatpush1.bf16.msra.mxu1 %v21471_v53  ;;  %10167 = vmatprep.mubr.bf16.mxu1 %v24201_v49  ;;  %v4900_v63 = vpop.f32.mrf.mxu0  ;;  %v21510_v53 = vld [vmem:[#allocation8 + $0x648] ss:$40 sps:$4 sm:$0xff]  }
 0x3b3   :  { %v4943_v29 = vpop.f32.mrf.mxu1  ;;  %v4901_v57 = vadd.f32 %v4900_v63, %v4858_v26  ;;  %10137 = vmatprep.subr.bf16.mxu1 %v21479_v27  ;;  %v4942_v35 = vadd.f32 %v4941_v28, %v4899_v5  ;;  %v21518_v27 = vld [vmem:[#allocation8 + $0x5fc] ss:$40 sps:$4 sm:$0xff]   ;;  %v21516_v28 = vld [vmem:[#allocation8 + $0x5f8] ss:$40 sps:$4 sm:$0xff]   ;;  %v21522_v63 = vld [vmem:[#allocation8 + $0x5a8] ss:$40 sps:$4 sm:$0xff]  }
 0x3b4   :  { %v4902_v59 = vpop.f32.mrf.mxu0  ;;  %v21519_v26 = vld [vmem:[#allocation8 + $0xeb8] ss:$40 sps:$4 sm:$0xff]   ;;  %v21536_v5 = vld [vmem:[#allocation8 + $0x50c] ss:$40 sps:$4 sm:$0xff]  }
 0x3b5   :  { %v4945_v50 = vpop.f32.mrf.mxu1  ;;  %v4903_v60 = vadd.f32 %v4902_v59, %v4860_v8  ;;  %v4944_v22 = vadd.f32 %v4943_v29, %v4901_v57  ;;  %v4958_v21 = vmax.f32 %v4942_v35, 0.0  ;;  %v21525_v29 = vld [vmem:[#allocation8 + $0xe68] ss:$40 sps:$4 sm:$0xff]   ;;  %v21533_v8 = vld [vmem:[#allocation8 + $0xe1c] ss:$40 sps:$4 sm:$0xff]  }
 0x3b6   :  { %10138 = vmatpush1.bf16.msra.mxu1 %v21477_v0  ;;  %v4904_v1 = vpop.f32.mrf.mxu0  ;;  %v21530_v0 = vld [vmem:[#allocation8 + $0x55c] ss:$40 sps:$4 sm:$0xff]   ;;  %v21528_v57 = vld [vmem:[#allocation8 + $0x558] ss:$40 sps:$4 sm:$0xff]   ;;  %v21539_v59 = vld [vmem:[#allocation8 + $0xdcc] ss:$40 sps:$4 sm:$0xff]  }
 0x3b7   :  { %v4946_v45 = vadd.f32 %v4945_v50, %v4903_v60  ;;  %v4905_v30 = vadd.f32 %v4904_v1, %v4862_v6  ;;  %10139 = vmatprep.subr.bf16.mxu1 %v21485_v9  ;;  %v4947_v51 = vpop.f32.mrf.mxu1  ;;  %v4959_v17 = vmax.f32 %v4944_v22, 0.0  ;;  %v21531_v9 = vld [vmem:[#allocation8 + $0xe18] ss:$40 sps:$4 sm:$0xff]   ;;  %v21534_v50 = vld [vmem:[#allocation8 + $0x508] ss:$40 sps:$4 sm:$0xff]  }
 0x3b8   :  { %v21537_v6 = vld [vmem:[#allocation8 + $0xdc8] ss:$40 sps:$4 sm:$0xff]   ;;  %v21542_v60 = vld [vmem:[#allocation8 + $0x9bc] ss:$40 sps:$4 sm:$0xff]   ;;  %v21543_v22 = vld [vmem:[#allocation8 + $0xd78] ss:$40 sps:$4 sm:$0xff]  }
 0x3b9   :  { %v4948_v4 = vadd.f32 %v4947_v51, %v4905_v30  ;;  %v4968_v47 = vmax.f32 %v4946_v45, 0.0  ;;  %v21545_v1 = vld [vmem:[#allocation8 + $0xd7c] ss:$40 sps:$4 sm:$0xff]   ;;  %v21548_v45 = vld [vmem:[#allocation8 + $0x96c] ss:$40 sps:$4 sm:$0xff]  }
 0x3ba   :  { %10140 = vmatpush1.bf16.msra.mxu1 %v21483_v54  ;;  %v21540_v54 = vld [vmem:[#allocation8 + $0x9b8] ss:$40 sps:$4 sm:$0xff]   ;;  %v21551_v30 = vld [vmem:[#allocation8 + $0xd2c] ss:$40 sps:$4 sm:$0xff]   ;;  %v21549_v35 = vld [vmem:[#allocation8 + $0xd28] ss:$40 sps:$4 sm:$0xff]  }
 0x3bb   :  { %v4969_v55 = vmax.f32 %v4948_v4, 0.0  ;;  %10141 = vmatprep.subr.bf16.mxu1 %v21491_v34  ;;  %v24241_v14 = vpack.c.bf16 %v4968_v47, %v4958_v21  ;;  %v21546_v34 = vld [vmem:[#allocation8 + $0x968] ss:$40 sps:$4 sm:$0xff]   ;;  %v21554_v51 = vld [vmem:[#allocation8 + $0x91c] ss:$40 sps:$4 sm:$0xff]  }
 0x3bc   :  { %v21557_v4 = vld [vmem:[#allocation8 + $0xcdc] ss:$40 sps:$4 sm:$0xff]   ;;  %v21552_v47 = vld [vmem:[#allocation8 + $0x918] ss:$40 sps:$4 sm:$0xff]  }
 0x3bd   :  { %v24239_v7 = vpack.c.bf16 %v4969_v55, %v4959_v17  ;;  %v21560_v17 = vld [vmem:[#allocation8 + $0x8cc] ss:$40 sps:$4 sm:$0xff]   ;;  %v21558_v55 = vld [vmem:[#allocation8 + $0x8c8] ss:$40 sps:$4 sm:$0xff]   ;;  %v21566_v21 = vld [vmem:[#allocation8 + $0x87c] ss:$40 sps:$4 sm:$0xff]  }
 0x3be   :  { %10142 = vmatpush1.bf16.msra.mxu1 %v21489_v42  ;;  %v21555_v42 = vld [vmem:[#allocation8 + $0xcd8] ss:$40 sps:$4 sm:$0xff]  }
 0x3bf   :  { %10038 = vmatprep.mubr.bf16.mxu0 %v24239_v7  ;;  %10143 = vmatprep.subr.bf16.mxu1 %v21497_v20  ;;  %v21561_v20 = vld [vmem:[#allocation8 + $0xc88] ss:$40 sps:$4 sm:$0xff]  }
 0x3c0   :  { %10039 = vmatmul.mubr.bf16.vlgmr.msra.gmra.mxu0 %v24241_v14 }
 0x3c1   :  { %10093 = vmatpush1.bf16.msra.mxu0 %v21492_v58  ;;  %10124 = vmatprep.mubr.bf16.mxu0 %v24169_v52  ;;  %v21563_v58 = vld [vmem:[#allocation8 + $0xc8c] ss:$40 sps:$4 sm:$0xff]  }
 0x3c2   :  { %10144 = vmatpush1.bf16.msra.mxu1 %v21495_v10  ;;  %10094 = vmatprep.subr.bf16.mxu0 %v21500_v15  ;;  %v5780_v10 = vld [vmem:[#allocation10] sm:$0xff] }
 0x3c3   :  { %10145 = vmatprep.subr.bf16.mxu1 %v21503_v16  ;;  %v21569_v15 = vld [vmem:[#allocation8 + $0x163c] ss:$40 sps:$4 sm:$0xff]   ;;  %v21564_v16 = vld [vmem:[#allocation8 + $0x878] ss:$40 sps:$4 sm:$0xff]  }
 0x3c5   :  { %10095 = vmatpush1.bf16.msra.mxu0 %v21498_v18  ;;  %v5787_v18 = vrot.slane %v5780_v10, %v24035_v39  ;;  %v21615_v10 = vld [vmem:[#allocation8 + $0x18b8] ss:$40 sps:$4 sm:$0xff]  }
 0x3c6   :  { %10146 = vmatpush1.bf16.msra.mxu1 %v21501_v13  ;;  %10096 = vmatprep.subr.bf16.mxu0 %v21506_v24  ;;  %v21567_v13 = vld [vmem:[#allocation8 + $0x1638] ss:$40 sps:$4 sm:$0xff]   ;;  %v21572_v24 = vld [vmem:[#allocation8 + $0x82c] ss:$40 sps:$4 sm:$0xff]  }
 0x3c7   :  { %10147 = vmatprep.subr.bf16.mxu1 %v21509_v33  ;;  %v21570_v33 = vld [vmem:[#allocation8 + $0x828] ss:$40 sps:$4 sm:$0xff]  }
 0x3c9   :  { %10097 = vmatpush1.bf16.msra.mxu0 %v21504_v11  ;;  %v21575_v11 = vld [vmem:[#allocation8 + $0x15ec] ss:$40 sps:$4 sm:$0xff]  }
 0x3ca   :  { %10148 = vmatpush1.bf16.msra.mxu1 %v21507_v40  ;;  %10098 = vmatprep.subr.bf16.mxu0 %v21512_v36  ;;  %v21573_v36 = vld [vmem:[#allocation8 + $0x15e8] ss:$40 sps:$4 sm:$0xff]  }
 0x3cb   :  { %10149 = vmatprep.subr.bf16.mxu1 %v21515_v25 }
 0x3cd   :  { %10099 = vmatpush1.bf16.msra.mxu0 %v21510_v53 }
 0x3ce   :  { %10150 = vmatpush1.bf16.msra.mxu1 %v21513_v23  ;;  %10100 = vmatprep.subr.bf16.mxu0 %v21518_v27  ;;  %v21578_v27 = vld [vmem:[#allocation8 + $0x7dc] ss:$40 sps:$4 sm:$0xff]  }
 0x3cf   :  { %10151 = vmatprep.subr.bf16.mxu1 %v21521_v56 }
 0x3d1   :  { %10101 = vmatpush1.bf16.msra.mxu0 %v21516_v28 }
 0x3d2   :  { %10152 = vmatpush2.bf16.msra.mxu1 %v21519_v26  ;;  %10102 = vmatprep.subr.bf16.mxu0 %v21524_v12  ;;  %v21576_v26 = vld [vmem:[#allocation8 + $0x7d8] ss:$40 sps:$4 sm:$0xff]   ;;  %v21581_v12 = vld [vmem:[#allocation8 + $0x159c] ss:$40 sps:$4 sm:$0xff]  }
 0x3d3   :  { %10153 = vmatprep.subr.bf16.mxu1 %v21527_v37 }
 0x3d5   :  { %10103 = vmatpush1.bf16.msra.mxu0 %v21522_v63  ;;  %v21579_v63 = vld [vmem:[#allocation8 + $0x1598] ss:$40 sps:$4 sm:$0xff]  }
 0x3d6   :  { %10154 = vmatpush2.bf16.msra.mxu1 %v21525_v29  ;;  %10104 = vmatprep.subr.bf16.mxu0 %v21530_v0 }
 0x3d7   :  { %10155 = vmatprep.subr.bf16.mxu1 %v21533_v8  ;;  %v21584_v8 = vld [vmem:[#allocation8 + $0x78c] ss:$40 sps:$4 sm:$0xff]  }
 0x3d9   :  { %10105 = vmatpush1.bf16.msra.mxu0 %v21528_v57 }
 0x3da   :  { %10156 = vmatpush2.bf16.msra.mxu1 %v21531_v9  ;;  %10106 = vmatprep.subr.bf16.mxu0 %v21536_v5  ;;  %v21587_v9 = vld [vmem:[#allocation8 + $0x154c] ss:$40 sps:$4 sm:$0xff]   ;;  %v21582_v5 = vld [vmem:[#allocation8 + $0x788] ss:$40 sps:$4 sm:$0xff]  }
 0x3db   :  { %10157 = vmatprep.subr.bf16.mxu1 %v21539_v59  ;;  %v21585_v59 = vld [vmem:[#allocation8 + $0x1548] ss:$40 sps:$4 sm:$0xff]  }
 0x3dd   :  { %10107 = vmatpush1.bf16.msra.mxu0 %v21534_v50  ;;  %v21590_v50 = vld [vmem:[#allocation8 + $0x113c] ss:$40 sps:$4 sm:$0xff]  }
 0x3de   :  { %10158 = vmatpush2.bf16.msra.mxu1 %v21537_v6  ;;  %10108 = vmatprep.subr.bf16.mxu0 %v21542_v60  ;;  %v21588_v6 = vld [vmem:[#allocation8 + $0x1138] ss:$40 sps:$4 sm:$0xff]   ;;  %v21593_v60 = vld [vmem:[#allocation8 + $0x14fc] ss:$40 sps:$4 sm:$0xff]  }
 0x3df   :  { %10159 = vmatprep.subr.bf16.mxu1 %v21545_v1  ;;  %v21591_v1 = vld [vmem:[#allocation8 + $0x14f8] ss:$40 sps:$4 sm:$0xff]  }
 0x3e1   :  { %10109 = vmatpush2.bf16.msra.mxu0 %v21540_v54  ;;  %v21596_v54 = vld [vmem:[#allocation8 + $0x10ec] ss:$40 sps:$4 sm:$0xff]  }
 0x3e2   :  { %10160 = vmatpush2.bf16.msra.mxu1 %v21543_v22  ;;  %10110 = vmatprep.subr.bf16.mxu0 %v21548_v45  ;;  %v21594_v22 = vld [vmem:[#allocation8 + $0x10e8] ss:$40 sps:$4 sm:$0xff]   ;;  %v21599_v45 = vld [vmem:[#allocation8 + $0x14ac] ss:$40 sps:$4 sm:$0xff]  }
 0x3e3   :  { %10161 = vmatprep.subr.bf16.mxu1 %v21551_v30  ;;  %v21597_v30 = vld [vmem:[#allocation8 + $0x14a8] ss:$40 sps:$4 sm:$0xff]  }
 0x3e5   :  { %10111 = vmatpush2.bf16.msra.mxu0 %v21546_v34  ;;  %v21602_v34 = vld [vmem:[#allocation8 + $0x109c] ss:$40 sps:$4 sm:$0xff]  }
 0x3e6   :  { %10162 = vmatpush2.bf16.msra.mxu1 %v21549_v35  ;;  %10112 = vmatprep.subr.bf16.mxu0 %v21554_v51  ;;  %v21600_v35 = vld [vmem:[#allocation8 + $0x1098] ss:$40 sps:$4 sm:$0xff]   ;;  %v21605_v51 = vld [vmem:[#allocation8 + $0x145c] ss:$40 sps:$4 sm:$0xff]  }
 0x3e7   :  { %10163 = vmatprep.subr.bf16.mxu1 %v21557_v4  ;;  %v21603_v4 = vld [vmem:[#allocation8 + $0x1458] ss:$40 sps:$4 sm:$0xff]  }
 0x3e9   :  { %10113 = vmatpush2.bf16.msra.mxu0 %v21552_v47  ;;  %v21608_v47 = vld [vmem:[#allocation8 + $0x104c] ss:$40 sps:$4 sm:$0xff]  }
 0x3ea   :  { %10164 = vmatpush2.bf16.msra.mxu1 %v21555_v42  ;;  %10114 = vmatprep.subr.bf16.mxu0 %v21560_v17  ;;  %v21606_v42 = vld [vmem:[#allocation8 + $0x1048] ss:$40 sps:$4 sm:$0xff]   ;;  %v21611_v17 = vld [vmem:[#allocation8 + $0x140c] ss:$40 sps:$4 sm:$0xff]  }
 0x3eb   :  { %10165 = vmatprep.subr.bf16.mxu1 %v21563_v58  ;;  %v21614_v58 = vld [vmem:[#allocation8 + $0xffc] ss:$40 sps:$4 sm:$0xff]  }
 0x3ed   :  { %10115 = vmatpush2.bf16.msra.mxu0 %v21558_v55  ;;  %v21609_v55 = vld [vmem:[#allocation8 + $0x1408] ss:$40 sps:$4 sm:$0xff]  }
 0x3ee   :  { %10166 = vmatpush2.bf16.msra.mxu1 %v21561_v20  ;;  %10116 = vmatprep.subr.bf16.mxu0 %v21566_v21  ;;  %v21617_v20 = vld [vmem:[#allocation8 + $0x18bc] ss:$40 sps:$4 sm:$0xff]   ;;  %v21612_v21 = vld [vmem:[#allocation8 + $0xff8] ss:$40 sps:$4 sm:$0xff]  }
 0x3ef   :  { %10221 = vmatprep.subr.bf16.mxu1 %v21569_v15  ;;  %v21620_v15 = vld [vmem:[#allocation8 + $0xfac] ss:$40 sps:$4 sm:$0xff]  }
 0x3f0   :  { %v9868_v40 = vpop.f32.mrf.mxu0 }
 0x3f1   :  { %v9869_v25 = vadd.f32 %v9868_v40, %v5787_v18  ;;  %v9911_v53 = vpop.f32.mrf.mxu1  ;;  %10117 = vmatpush2.bf16.msra.mxu0 %v21564_v16  ;;  %10168 = vmatmul.mubr.bf16.vlgmr.msra.gmra.mxu1 %v24139_v41  ;;  %v21623_v16 = vld [vmem:[#allocation8 + $0x186c] ss:$40 sps:$4 sm:$0xff]   ;;  %v21627_v40 = vld [vmem:[#allocation8 + $0x1818] ss:$40 sps:$4 sm:$0xff]  }
 0x3f2   :  { %10222 = vmatpush1.bf16.msra.mxu1 %v21567_v13  ;;  %10253 = vmatprep.mubr.bf16.mxu1 %v24239_v7  ;;  %v24249_v23 = vpop.f32.mrf.mxu0  ;;  %v21621_v13 = vld [vmem:[#allocation8 + $0x1868] ss:$40 sps:$4 sm:$0xff]  }
 0x3f3   :  { %v24251_v56 = vadd.f32 %v9911_v53, %v9869_v25  ;;  %v24253_v28 = vpop.f32.mrf.mxu1  ;;  %10118 = vmatprep.subr.bf16.mxu0 %v21572_v24  ;;  %10223 = vmatprep.subr.bf16.mxu1 %v21575_v11  ;;  %v21626_v24 = vld [vmem:[#allocation8 + $0xf5c] ss:$40 sps:$4 sm:$0xff]   ;;  %v21624_v11 = vld [vmem:[#allocation8 + $0xf58] ss:$40 sps:$4 sm:$0xff]   ;;  %v21635_v25 = vld [vmem:[#allocation8 + $0x17cc] ss:$40 sps:$4 sm:$0xff]  }
 0x3f4   :  { %v9872_v37 = vpop.f32.mrf.mxu0  ;;  %v21630_v53 = vld [vmem:[#allocation8 + $0xf08] ss:$40 sps:$4 sm:$0xff]  }
 0x3f5   :  { %v9873_v29 = vadd.f32 %v9872_v37, %v5787_v18  ;;  %10119 = vmatpush2.bf16.msra.mxu0 %v21570_v33  ;;  %v9915_v0 = vpop.f32.mrf.mxu1  ;;  %v21618_v18 = vld [vmem:[#allocation8 + $0xfa8] ss:$40 sps:$4 sm:$0xff]   ;;  %v21629_v33 = vld [vmem:[#allocation8 + $0x181c] ss:$40 sps:$4 sm:$0xff]   ;;  %v21636_v37 = vld [vmem:[#allocation8 + $0x13b8] ss:$40 sps:$4 sm:$0xff]  }
 0x3f6   :  { %10224 = vmatpush1.bf16.msra.mxu1 %v21573_v36  ;;  %10120 = vmatprep.subr.bf16.mxu0 %v21578_v27  ;;  %v21632_v36 = vld [vmem:[#allocation8 + $0xf0c] ss:$40 sps:$4 sm:$0xff]   ;;  %v21633_v27 = vld [vmem:[#allocation8 + $0x17c8] ss:$40 sps:$4 sm:$0xff]  }
 0x3f7   :  { %v24255_v57 = vadd.f32 %v9915_v0, %v9873_v29  ;;  %10225 = vmatprep.subr.bf16.mxu1 %v21581_v12  ;;  %v21641_v12 = vld [vmem:[#allocation8 + $0x177c] ss:$40 sps:$4 sm:$0xff]   ;;  %v21644_v29 = vld [vmem:[#allocation8 + $0x136c] ss:$40 sps:$4 sm:$0xff]  }
 0x3f8   :  { %v21647_v0 = vld [vmem:[#allocation8 + $0x172c] ss:$40 sps:$4 sm:$0xff]  }
 0x3f9   :  { %10121 = vmatpush2.bf16.msra.mxu0 %v21576_v26  ;;  %v21638_v26 = vld [vmem:[#allocation8 + $0x13bc] ss:$40 sps:$4 sm:$0xff]  }
 0x3fa   :  { %10226 = vmatpush1.bf16.msra.mxu1 %v21579_v63  ;;  %10122 = vmatprep.subr.bf16.mxu0 %v21584_v8  ;;  %v21639_v63 = vld [vmem:[#allocation8 + $0x1778] ss:$40 sps:$4 sm:$0xff]   ;;  %v21642_v8 = vld [vmem:[#allocation8 + $0x1368] ss:$40 sps:$4 sm:$0xff]  }
 0x3fb   :  { %10227 = vmatprep.subr.bf16.mxu1 %v21587_v9  ;;  %v21645_v9 = vld [vmem:[#allocation8 + $0x1728] ss:$40 sps:$4 sm:$0xff]  }
 0x3fd   :  { %10123 = vmatpush2.bf16.msra.mxu0 %v21582_v5  ;;  %v21650_v5 = vld [vmem:[#allocation8 + $0x131c] ss:$40 sps:$4 sm:$0xff]  }
 0x3fe   :  { %10228 = vmatpush1.bf16.msra.mxu1 %v21585_v59  ;;  %10178 = vmatprep.subr.bf16.mxu0 %v21590_v50  ;;  %v21653_v59 = vld [vmem:[#allocation8 + $0x16dc] ss:$40 sps:$4 sm:$0xff]   ;;  %v21648_v50 = vld [vmem:[#allocation8 + $0x1318] ss:$40 sps:$4 sm:$0xff]  }
 0x3ff   :  { %10229 = vmatprep.subr.bf16.mxu1 %v21593_v60  ;;  %v21656_v60 = vld [vmem:[#allocation8 + $0x12cc] ss:$40 sps:$4 sm:$0xff]  }
 0x400   :  { %10125 = vmatmul.mubr.bf16.vlgmr.msra.gmra.mxu0 %v24100_v19 }
 0x401   :  { %10179 = vmatpush1.bf16.msra.mxu0 %v21588_v6  ;;  %10210 = vmatprep.mubr.bf16.mxu0 %v24214_v3  ;;  %v21651_v6 = vld [vmem:[#allocation8 + $0x16d8] ss:$40 sps:$4 sm:$0xff]  }
 0x402   :  { %10230 = vmatpush1.bf16.msra.mxu1 %v21591_v1  ;;  %10180 = vmatprep.subr.bf16.mxu0 %v21596_v54  ;;  %v21659_v1 = vld [vmem:[#allocation8 + $0x168c] ss:$40 sps:$4 sm:$0xff]   ;;  %v21654_v54 = vld [vmem:[#allocation8 + $0x12c8] ss:$40 sps:$4 sm:$0xff]  }
 0x403   :  { %10231 = vmatprep.subr.bf16.mxu1 %v21599_v45  ;;  %v21662_v45 = vld [vmem:[#allocation8 + $0x127c] ss:$40 sps:$4 sm:$0xff]  }
 0x405   :  { %10181 = vmatpush1.bf16.msra.mxu0 %v21594_v22  ;;  %v21657_v22 = vld [vmem:[#allocation8 + $0x1688] ss:$40 sps:$4 sm:$0xff]  }
 0x406   :  { %10232 = vmatpush1.bf16.msra.mxu1 %v21597_v30  ;;  %10182 = vmatprep.subr.bf16.mxu0 %v21602_v34  ;;  %v21665_v30 = vld [vmem:[#allocation8 + $0x744] ss:$40 sps:$4 sm:$0xff]   ;;  %v21660_v34 = vld [vmem:[#allocation8 + $0x1278] ss:$40 sps:$4 sm:$0xff]  }
 0x407   :  { %10233 = vmatprep.subr.bf16.mxu1 %v21605_v51  ;;  %v21663_v51 = vld [vmem:[#allocation8 + $0x740] ss:$40 sps:$4 sm:$0xff]  }
 0x409   :  { %10183 = vmatpush1.bf16.msra.mxu0 %v21600_v35  ;;  %v24259_v35 = vpop.f32.mrf.mxu0 }
 0x40a   :  { %10234 = vmatpush1.bf16.msra.mxu1 %v21603_v4  ;;  %10184 = vmatprep.subr.bf16.mxu0 %v21608_v47  ;;  %v21668_v4 = vld [vmem:[#allocation8 + $0x122c] ss:$40 sps:$4 sm:$0xff]   ;;  %v24261_v47 = vpop.f32.mrf.mxu1 }
 0x40b   :  { %10235 = vmatprep.subr.bf16.mxu1 %v21611_v17  ;;  %v21671_v17 = vld [vmem:[#allocation8 + $0x6f4] ss:$40 sps:$4 sm:$0xff]  }
 0x40d   :  { %10185 = vmatpush1.bf16.msra.mxu0 %v21606_v42  ;;  %v21666_v42 = vld [vmem:[#allocation8 + $0x1228] ss:$40 sps:$4 sm:$0xff]  }
 0x40e   :  { %10236 = vmatpush1.bf16.msra.mxu1 %v21609_v55  ;;  %10186 = vmatprep.subr.bf16.mxu0 %v21614_v58  ;;  %v21669_v58 = vld [vmem:[#allocation8 + $0x6f0] ss:$40 sps:$4 sm:$0xff]  }
 0x40f   :  { %10237 = vmatprep.subr.bf16.mxu1 %v21617_v20 }
 0x411   :  { %10187 = vmatpush1.bf16.msra.mxu0 %v21612_v21 }
 0x412   :  { %10238 = vmatpush2.bf16.msra.mxu1 %v21615_v10  ;;  %10188 = vmatprep.subr.bf16.mxu0 %v21620_v15  ;;  %v21674_v15 = vld [vmem:[#allocation8 + $0x11dc] ss:$40 sps:$4 sm:$0xff]  }
 0x413   :  { %10239 = vmatprep.subr.bf16.mxu1 %v21623_v16 }
 0x415   :  { %10189 = vmatpush1.bf16.msra.mxu0 %v21618_v18 }
 0x416   :  { %10240 = vmatpush2.bf16.msra.mxu1 %v21621_v13  ;;  %10190 = vmatprep.subr.bf16.mxu0 %v21626_v24  ;;  %v21672_v13 = vld [vmem:[#allocation8 + $0x11d8] ss:$40 sps:$4 sm:$0xff]   ;;  %v21677_v24 = vld [vmem:[#allocation8 + $0x6a4] ss:$40 sps:$4 sm:$0xff]  }
 0x417   :  { %10241 = vmatprep.subr.bf16.mxu1 %v21629_v33 }
 0x419   :  { %10191 = vmatpush1.bf16.msra.mxu0 %v21624_v11 }
 0x41a   :  { %10242 = vmatpush2.bf16.msra.mxu1 %v21627_v40  ;;  %10192 = vmatprep.subr.bf16.mxu0 %v21632_v36  ;;  %v21680_v36 = vld [vmem:[#allocation8 + $0x118c] ss:$40 sps:$4 sm:$0xff]  }
 0x41b   :  { %10243 = vmatprep.subr.bf16.mxu1 %v21635_v25 }
 0x41d   :  { %10193 = vmatpush1.bf16.msra.mxu0 %v21630_v53  ;;  %v21683_v53 = vld [vmem:[#allocation8 + $0x654] ss:$40 sps:$4 sm:$0xff]  }
 0x41e   :  { %10244 = vmatpush2.bf16.msra.mxu1 %v21633_v27  ;;  %10194 = vmatprep.subr.bf16.mxu0 %v21638_v26  ;;  %v21678_v27 = vld [vmem:[#allocation8 + $0x1188] ss:$40 sps:$4 sm:$0xff]  }
 0x41f   :  { %10245 = vmatprep.subr.bf16.mxu1 %v21641_v12  ;;  %v21681_v26 = vld [vmem:[#allocation8 + $0x650] ss:$40 sps:$4 sm:$0xff]   ;;  %v21686_v12 = vld [vmem:[#allocation8 + $0x244] ss:$40 sps:$4 sm:$0xff]  }
 0x421   :  { %10195 = vmatpush2.bf16.msra.mxu0 %v21636_v37  ;;  %v21684_v37 = vld [vmem:[#allocation8 + $0x240] ss:$40 sps:$4 sm:$0xff]  }
 0x422   :  { %10246 = vmatpush2.bf16.msra.mxu1 %v21639_v63  ;;  %10196 = vmatprep.subr.bf16.mxu0 %v21644_v29  ;;  %v21689_v63 = vld [vmem:[#allocation8 + $0x604] ss:$40 sps:$4 sm:$0xff]   ;;  %v21687_v29 = vld [vmem:[#allocation8 + $0x600] ss:$40 sps:$4 sm:$0xff]  }
 0x423   :  { %10247 = vmatprep.subr.bf16.mxu1 %v21647_v0  ;;  %v21690_v0 = vld [vmem:[#allocation8 + $0x1f0] ss:$40 sps:$4 sm:$0xff]  }
 0x425   :  { %10197 = vmatpush2.bf16.msra.mxu0 %v21642_v8  ;;  %v21695_v8 = vld [vmem:[#allocation8 + $0x5b4] ss:$40 sps:$4 sm:$0xff]  }
 0x426   :  { %10248 = vmatpush2.bf16.msra.mxu1 %v21645_v9  ;;  %10198 = vmatprep.subr.bf16.mxu0 %v21650_v5  ;;  %v21693_v9 = vld [vmem:[#allocation8 + $0x5b0] ss:$40 sps:$4 sm:$0xff]   ;;  %v21698_v5 = vld [vmem:[#allocation8 + $0x1a4] ss:$40 sps:$4 sm:$0xff]  }
 0x427   :  { %10249 = vmatprep.subr.bf16.mxu1 %v21653_v59  ;;  %v21696_v59 = vld [vmem:[#allocation8 + $0x1a0] ss:$40 sps:$4 sm:$0xff]  }
 0x429   :  { %10199 = vmatpush2.bf16.msra.mxu0 %v21648_v50  ;;  %v21701_v50 = vld [vmem:[#allocation8 + $0x564] ss:$40 sps:$4 sm:$0xff]  }
 0x42a   :  { %10250 = vmatpush2.bf16.msra.mxu1 %v21651_v6  ;;  %10200 = vmatprep.subr.bf16.mxu0 %v21656_v60  ;;  %v21699_v6 = vld [vmem:[#allocation8 + $0x560] ss:$40 sps:$4 sm:$0xff]   ;;  %v21704_v60 = vld [vmem:[#allocation8 + $0x154] ss:$40 sps:$4 sm:$0xff]  }
 0x42b   :  { %10251 = vmatprep.subr.bf16.mxu1 %v21659_v1  ;;  %v21707_v1 = vld [vmem:[#allocation8 + $0x514] ss:$40 sps:$4 sm:$0xff]  }
 0x42d   :  { %10201 = vmatpush2.bf16.msra.mxu0 %v21654_v54  ;;  %v21702_v54 = vld [vmem:[#allocation8 + $0x150] ss:$40 sps:$4 sm:$0xff]  }
 0x42e   :  { %10252 = vmatpush2.bf16.msra.mxu1 %v21657_v22  ;;  %10202 = vmatprep.subr.bf16.mxu0 %v21662_v45  ;;  %v21705_v22 = vld [vmem:[#allocation8 + $0x510] ss:$40 sps:$4 sm:$0xff]   ;;  %v21710_v45 = vld [vmem:[#allocation8 + $0x104] ss:$40 sps:$4 sm:$0xff]  }
 0x42f   :  { %10307 = vmatprep.subr.bf16.mxu1 %v21665_v30  ;;  %v21713_v30 = vld [vmem:[#allocation8 + $0x9c4] ss:$40 sps:$4 sm:$0xff]  }
 0x430   :  { %v9954_v55 = vpop.f32.mrf.mxu0 }
 0x431   :  { %v9955_v20 = vadd.f32 %v9954_v55, %v24251_v56  ;;  %v9997_v21 = vpop.f32.mrf.mxu1  ;;  %10203 = vmatpush2.bf16.msra.mxu0 %v21660_v34  ;;  %10254 = vmatmul.mubr.bf16.vlgmr.msra.gmra.mxu1 %v24241_v14  ;;  %v21675_v56 = vld [vmem:[#allocation8 + $0x6a0] ss:$40 sps:$4 sm:$0xff]   ;;  %v21717_v55 = vld [vmem:[#allocation8 + $0x970] ss:$40 sps:$4 sm:$0xff]  }
 0x432   :  { %10308 = vmatpush1.bf16.msra.mxu1 %v21663_v51  ;;  %10339 = vmatprep.mubr.bf16.mxu1 %v24169_v52  ;;  %v24266_v10 = vpop.f32.mrf.mxu0  ;;  %v21708_v34 = vld [vmem:[#allocation8 + $0x100] ss:$40 sps:$4 sm:$0xff]  }
 0x433   :  { %v24268_v16 = vadd.f32 %v9997_v21, %v9955_v20  ;;  %v24270_v18 = vpop.f32.mrf.mxu1  ;;  %10204 = vmatprep.subr.bf16.mxu0 %v21668_v4  ;;  %10309 = vmatprep.subr.bf16.mxu1 %v21671_v17  ;;  %v21711_v51 = vld [vmem:[#allocation8 + $0x9c0] ss:$40 sps:$4 sm:$0xff]   ;;  %v21716_v4 = vld [vmem:[#allocation8 + $0xb4] ss:$40 sps:$4 sm:$0xff]   ;;  %v21714_v17 = vld [vmem:[#allocation8 + $0xb0] ss:$40 sps:$4 sm:$0xff]  }
 0x434   :  { %v9958_v33 = vpop.f32.mrf.mxu0  ;;  %v21725_v20 = vld [vmem:[#allocation8 + $0x924] ss:$40 sps:$4 sm:$0xff]   ;;  %v21720_v21 = vld [vmem:[#allocation8 + $0x60] ss:$40 sps:$4 sm:$0xff]  }
 0x435   :  { %v9959_v11 = vadd.f32 %v9958_v33, %v24255_v57  ;;  %10205 = vmatpush2.bf16.msra.mxu0 %v21666_v42  ;;  %v10001_v40 = vpop.f32.mrf.mxu1  ;;  %v21692_v57 = vld [vmem:[#allocation8 + $0x1f4] ss:$40 sps:$4 sm:$0xff]   ;;  %v21726_v33 = vld [vmem:[#allocation8 + $0x10] ss:$40 sps:$4 sm:$0xff]  }
 0x436   :  { %10310 = vmatpush1.bf16.msra.mxu1 %v21669_v58  ;;  %10206 = vmatprep.subr.bf16.mxu0 %v21674_v15  ;;  %v21719_v42 = vld [vmem:[#allocation8 + $0x974] ss:$40 sps:$4 sm:$0xff]   ;;  %v21722_v58 = vld [vmem:[#allocation8 + $0x64] ss:$40 sps:$4 sm:$0xff]   ;;  %v21723_v15 = vld [vmem:[#allocation8 + $0x920] ss:$40 sps:$4 sm:$0xff]  }
 0x437   :  { %v24273_v25 = vadd.f32 %v10001_v40, %v9959_v11  ;;  %10311 = vmatprep.subr.bf16.mxu1 %v21677_v24  ;;  %v21731_v24 = vld [vmem:[#allocation8 + $0x8d4] ss:$40 sps:$4 sm:$0xff]   ;;  %v21734_v11 = vld [vmem:[#allocation8 + $0x4c4] ss:$40 sps:$4 sm:$0xff]  }
 0x438   :  { %v21737_v40 = vld [vmem:[#allocation8 + $0x884] ss:$40 sps:$4 sm:$0xff]  }
 0x439   :  { %10207 = vmatpush2.bf16.msra.mxu0 %v21672_v13  ;;  %v21728_v13 = vld [vmem:[#allocation8 + $0x14] ss:$40 sps:$4 sm:$0xff]  }
 0x43a   :  { %10312 = vmatpush1.bf16.msra.mxu1 %v21675_v56  ;;  %10208 = vmatprep.subr.bf16.mxu0 %v21680_v36  ;;  %v21729_v56 = vld [vmem:[#allocation8 + $0x8d0] ss:$40 sps:$4 sm:$0xff]   ;;  %v21732_v36 = vld [vmem:[#allocation8 + $0x4c0] ss:$40 sps:$4 sm:$0xff]  }
 0x43b   :  { %10313 = vmatprep.subr.bf16.mxu1 %v21683_v53  ;;  %v21735_v53 = vld [vmem:[#allocation8 + $0x880] ss:$40 sps:$4 sm:$0xff]  }
 0x43d   :  { %10209 = vmatpush2.bf16.msra.mxu0 %v21678_v27  ;;  %v21740_v27 = vld [vmem:[#allocation8 + $0x474] ss:$40 sps:$4 sm:$0xff]  }
 0x43e   :  { %10314 = vmatpush1.bf16.msra.mxu1 %v21681_v26  ;;  %10264 = vmatprep.subr.bf16.mxu0 %v21686_v12  ;;  %v21743_v26 = vld [vmem:[#allocation8 + $0x834] ss:$40 sps:$4 sm:$0xff]   ;;  %v21738_v12 = vld [vmem:[#allocation8 + $0x470] ss:$40 sps:$4 sm:$0xff]  }
 0x43f   :  { %10315 = vmatprep.subr.bf16.mxu1 %v21689_v63  ;;  %v21746_v63 = vld [vmem:[#allocation8 + $0x424] ss:$40 sps:$4 sm:$0xff]  }
 0x440   :  { %10211 = vmatmul.mubr.bf16.vlgmr.msra.gmra.mxu0 %v24230_v61 }
 0x441   :  { %10265 = vmatpush1.bf16.msra.mxu0 %v21684_v37  ;;  %10296 = vmatprep.mubr.bf16.mxu0 %v24167_v46  ;;  %v21741_v37 = vld [vmem:[#allocation8 + $0x830] ss:$40 sps:$4 sm:$0xff]  }
 0x442   :  { %10316 = vmatpush1.bf16.msra.mxu1 %v21687_v29  ;;  %10266 = vmatprep.subr.bf16.mxu0 %v21692_v57  ;;  %v21749_v29 = vld [vmem:[#allocation8 + $0x7e4] ss:$40 sps:$4 sm:$0xff]   ;;  %v21744_v57 = vld [vmem:[#allocation8 + $0x420] ss:$40 sps:$4 sm:$0xff]  }
 0x443   :  { %10317 = vmatprep.subr.bf16.mxu1 %v21695_v8  ;;  %v21752_v8 = vld [vmem:[#allocation8 + $0x3d4] ss:$40 sps:$4 sm:$0xff]  }
 0x445   :  { %10267 = vmatpush1.bf16.msra.mxu0 %v21690_v0  ;;  %v21747_v0 = vld [vmem:[#allocation8 + $0x7e0] ss:$40 sps:$4 sm:$0xff]  }
 0x446   :  { %10318 = vmatpush1.bf16.msra.mxu1 %v21693_v9  ;;  %10268 = vmatprep.subr.bf16.mxu0 %v21698_v5  ;;  %v21755_v9 = vld [vmem:[#allocation8 + $0x794] ss:$40 sps:$4 sm:$0xff]   ;;  %v21750_v5 = vld [vmem:[#allocation8 + $0x3d0] ss:$40 sps:$4 sm:$0xff]  }
 0x447   :  { %10319 = vmatprep.subr.bf16.mxu1 %v21701_v50  ;;  %v21758_v50 = vld [vmem:[#allocation8 + $0x384] ss:$40 sps:$4 sm:$0xff]  }
 0x449   :  { %10269 = vmatpush1.bf16.msra.mxu0 %v21696_v59  ;;  %v21753_v59 = vld [vmem:[#allocation8 + $0x790] ss:$40 sps:$4 sm:$0xff]  }
 0x44a   :  { %10320 = vmatpush1.bf16.msra.mxu1 %v21699_v6  ;;  %10270 = vmatprep.subr.bf16.mxu0 %v21704_v60  ;;  %v21761_v6 = vld [vmem:[#allocation8 + $0x1144] ss:$40 sps:$4 sm:$0xff]   ;;  %v21756_v60 = vld [vmem:[#allocation8 + $0x380] ss:$40 sps:$4 sm:$0xff]  }
 0x44b   :  { %10321 = vmatprep.subr.bf16.mxu1 %v21707_v1  ;;  %v21759_v1 = vld [vmem:[#allocation8 + $0x1140] ss:$40 sps:$4 sm:$0xff]  }
 0x44d   :  { %10271 = vmatpush1.bf16.msra.mxu0 %v21702_v54  ;;  %v21764_v54 = vld [vmem:[#allocation8 + $0x334] ss:$40 sps:$4 sm:$0xff]  }
 0x44e   :  { %10322 = vmatpush1.bf16.msra.mxu1 %v21705_v22  ;;  %10272 = vmatprep.subr.bf16.mxu0 %v21710_v45  ;;  %v21762_v22 = vld [vmem:[#allocation8 + $0x330] ss:$40 sps:$4 sm:$0xff]   ;;  %v21767_v45 = vld [vmem:[#allocation8 + $0x10f4] ss:$40 sps:$4 sm:$0xff]  }
 0x44f   :  { %10323 = vmatprep.subr.bf16.mxu1 %v21713_v30  ;;  %v21765_v30 = vld [vmem:[#allocation8 + $0x10f0] ss:$40 sps:$4 sm:$0xff]  }
 0x451   :  { %10273 = vmatpush1.bf16.msra.mxu0 %v21708_v34  ;;  %v21770_v34 = vld [vmem:[#allocation8 + $0x2e4] ss:$40 sps:$4 sm:$0xff]  }
 0x452   :  { %10324 = vmatpush2.bf16.msra.mxu1 %v21711_v51  ;;  %10274 = vmatprep.subr.bf16.mxu0 %v21716_v4  ;;  %v21768_v51 = vld [vmem:[#allocation8 + $0x2e0] ss:$40 sps:$4 sm:$0xff]   ;;  %v21773_v4 = vld [vmem:[#allocation8 + $0x10a4] ss:$40 sps:$4 sm:$0xff]  }
 0x453   :  { %10325 = vmatprep.subr.bf16.mxu1 %v21719_v42  ;;  %v21771_v42 = vld [vmem:[#allocation8 + $0x10a0] ss:$40 sps:$4 sm:$0xff]  }
 0x455   :  { %10275 = vmatpush1.bf16.msra.mxu0 %v21714_v17  ;;  %v21776_v17 = vld [vmem:[#allocation8 + $0x294] ss:$40 sps:$4 sm:$0xff]  }
 0x456   :  { %10326 = vmatpush2.bf16.msra.mxu1 %v21717_v55  ;;  %10276 = vmatprep.subr.bf16.mxu0 %v21722_v58  ;;  %v21779_v55 = vld [vmem:[#allocation8 + $0x1054] ss:$40 sps:$4 sm:$0xff]   ;;  %v21774_v58 = vld [vmem:[#allocation8 + $0x290] ss:$40 sps:$4 sm:$0xff]  }
 0x457   :  { %10327 = vmatprep.subr.bf16.mxu1 %v21725_v20  ;;  %v21777_v20 = vld [vmem:[#allocation8 + $0x1050] ss:$40 sps:$4 sm:$0xff]  }
 0x459   :  { %10277 = vmatpush1.bf16.msra.mxu0 %v21720_v21  ;;  %v21782_v21 = vld [vmem:[#allocation8 + $0xc44] ss:$40 sps:$4 sm:$0xff]  }
 0x45a   :  { %10328 = vmatpush2.bf16.msra.mxu1 %v21723_v15  ;;  %10278 = vmatprep.subr.bf16.mxu0 %v21728_v13  ;;  %v21780_v15 = vld [vmem:[#allocation8 + $0xc40] ss:$40 sps:$4 sm:$0xff]   ;;  %v21785_v13 = vld [vmem:[#allocation8 + $0x1004] ss:$40 sps:$4 sm:$0xff]  }
 0x45b   :  { %10329 = vmatprep.subr.bf16.mxu1 %v21731_v24  ;;  %v21783_v24 = vld [vmem:[#allocation8 + $0x1000] ss:$40 sps:$4 sm:$0xff]  }
 0x45d   :  { %10279 = vmatpush1.bf16.msra.mxu0 %v21726_v33  ;;  %v24279_v33 = vpop.f32.mrf.mxu0 }
 0x45e   :  { %10330 = vmatpush2.bf16.msra.mxu1 %v21729_v56  ;;  %10280 = vmatprep.subr.bf16.mxu0 %v21734_v11  ;;  %v21788_v56 = vld [vmem:[#allocation8 + $0xbf4] ss:$40 sps:$4 sm:$0xff]   ;;  %v21786_v11 = vld [vmem:[#allocation8 + $0xbf0] ss:$40 sps:$4 sm:$0xff]  }
 0x45f   :  { %10331 = vmatprep.subr.bf16.mxu1 %v21737_v40  ;;  %v21791_v40 = vld [vmem:[#allocation8 + $0xfb4] ss:$40 sps:$4 sm:$0xff]  }
 0x461   :  { %10281 = vmatpush2.bf16.msra.mxu0 %v21732_v36 }
 0x462   :  { %10332 = vmatpush2.bf16.msra.mxu1 %v21735_v53  ;;  %10282 = vmatprep.subr.bf16.mxu0 %v21740_v27  ;;  %v21789_v53 = vld [vmem:[#allocation8 + $0xfb0] ss:$40 sps:$4 sm:$0xff]  }
 0x463   :  { %10333 = vmatprep.subr.bf16.mxu1 %v21743_v26 }
 0x465   :  { %10283 = vmatpush2.bf16.msra.mxu0 %v21738_v12  ;;  %v21794_v12 = vld [vmem:[#allocation8 + $0xba4] ss:$40 sps:$4 sm:$0xff]  }
 0x466   :  { %10334 = vmatpush2.bf16.msra.mxu1 %v21741_v37  ;;  %10284 = vmatprep.subr.bf16.mxu0 %v21746_v63  ;;  %v21792_v37 = vld [vmem:[#allocation8 + $0xba0] ss:$40 sps:$4 sm:$0xff]   ;;  %v21797_v63 = vld [vmem:[#allocation8 + $0xf64] ss:$40 sps:$4 sm:$0xff]  }
 0x467   :  { %10335 = vmatprep.subr.bf16.mxu1 %v21749_v29 }
 0x469   :  { %10285 = vmatpush2.bf16.msra.mxu0 %v21744_v57  ;;  %v21795_v57 = vld [vmem:[#allocation8 + $0xf60] ss:$40 sps:$4 sm:$0xff]  }
 0x46a   :  { %10336 = vmatpush2.bf16.msra.mxu1 %v21747_v0  ;;  %10286 = vmatprep.subr.bf16.mxu0 %v21752_v8  ;;  %v21800_v8 = vld [vmem:[#allocation8 + $0xb54] ss:$40 sps:$4 sm:$0xff]  }
 0x46b   :  { %10337 = vmatprep.subr.bf16.mxu1 %v21755_v9 }
 0x46d   :  { %10287 = vmatpush2.bf16.msra.mxu0 %v21750_v5  ;;  %v21798_v5 = vld [vmem:[#allocation8 + $0xb50] ss:$40 sps:$4 sm:$0xff]  }
 0x46e   :  { %10338 = vmatpush2.bf16.msra.mxu1 %v21753_v59  ;;  %10288 = vmatprep.subr.bf16.mxu0 %v21758_v50  ;;  %v21803_v59 = vld [vmem:[#allocation8 + $0xf14] ss:$40 sps:$4 sm:$0xff]   ;;  %v21801_v50 = vld [vmem:[#allocation8 + $0xf10] ss:$40 sps:$4 sm:$0xff]  }
 0x46f   :  { %10393 = vmatprep.subr.bf16.mxu1 %v21761_v6 }
 0x471   :  { %10289 = vmatpush2.bf16.msra.mxu0 %v21756_v60  ;;  %10340 = vmatmul.mubr.bf16.vlgmr.msra.gmra.mxu1 %v24100_v19  ;;  %v21806_v60 = vld [vmem:[#allocation8 + $0xb04] ss:$40 sps:$4 sm:$0xff]  }
 0x472   :  { %10394 = vmatpush1.bf16.msra.mxu1 %v21759_v1  ;;  %10425 = vmatprep.mubr.bf16.mxu1 %v24214_v3  ;;  %v21809_v1 = vld [vmem:[#allocation8 + $0x13c4] ss:$40 sps:$4 sm:$0xff]  }
 0x473   :  { %10290 = vmatprep.subr.bf16.mxu0 %v21764_v54  ;;  %10395 = vmatprep.subr.bf16.mxu1 %v21767_v45  ;;  %v21804_v54 = vld [vmem:[#allocation8 + $0xb00] ss:$40 sps:$4 sm:$0xff]   ;;  %v21815_v45 = vld [vmem:[#allocation8 + $0x1374] ss:$40 sps:$4 sm:$0xff]  }
 0x475   :  { %10291 = vmatpush2.bf16.msra.mxu0 %v21762_v22  ;;  %v21812_v22 = vld [vmem:[#allocation8 + $0xab4] ss:$40 sps:$4 sm:$0xff]  }
 0x476   :  { %10396 = vmatpush1.bf16.msra.mxu1 %v21765_v30  ;;  %10292 = vmatprep.subr.bf16.mxu0 %v21770_v34  ;;  %v21810_v30 = vld [vmem:[#allocation8 + $0xab0] ss:$40 sps:$4 sm:$0xff]  }
 0x477   :  { %10397 = vmatprep.subr.bf16.mxu1 %v21773_v4  ;;  %v21813_v34 = vld [vmem:[#allocation8 + $0x1370] ss:$40 sps:$4 sm:$0xff]   ;;  %v21821_v4 = vld [vmem:[#allocation8 + $0x1324] ss:$40 sps:$4 sm:$0xff]  }
 0x479   :  { %10293 = vmatpush2.bf16.msra.mxu0 %v21768_v51  ;;  %v21818_v51 = vld [vmem:[#allocation8 + $0xa64] ss:$40 sps:$4 sm:$0xff]  }
 0x47a   :  { %10398 = vmatpush1.bf16.msra.mxu1 %v21771_v42  ;;  %10294 = vmatprep.subr.bf16.mxu0 %v21776_v17  ;;  %v21816_v42 = vld [vmem:[#allocation8 + $0xa60] ss:$40 sps:$4 sm:$0xff]  }
 0x47b   :  { %10399 = vmatprep.subr.bf16.mxu1 %v21779_v55  ;;  %v21819_v17 = vld [vmem:[#allocation8 + $0x1320] ss:$40 sps:$4 sm:$0xff]   ;;  %v21824_v55 = vld [vmem:[#allocation8 + $0xa14] ss:$40 sps:$4 sm:$0xff]  }
 0x47d   :  { %10295 = vmatpush2.bf16.msra.mxu0 %v21774_v58  ;;  %v21827_v58 = vld [vmem:[#allocation8 + $0x12d4] ss:$40 sps:$4 sm:$0xff]  }
 0x47e   :  { %10400 = vmatpush1.bf16.msra.mxu1 %v21777_v20  ;;  %10350 = vmatprep.subr.bf16.mxu0 %v21782_v21  ;;  %v21822_v20 = vld [vmem:[#allocation8 + $0xa10] ss:$40 sps:$4 sm:$0xff]  }
 0x47f   :  { %10401 = vmatprep.subr.bf16.mxu1 %v21785_v13  ;;  %v21825_v21 = vld [vmem:[#allocation8 + $0x12d0] ss:$40 sps:$4 sm:$0xff]   ;;  %v21833_v13 = vld [vmem:[#allocation8 + $0x1284] ss:$40 sps:$4 sm:$0xff]  }
 0x480   :  { %10297 = vmatmul.mubr.bf16.vlgmr.msra.gmra.mxu0 %v24064_v44  ;;  %v10040_v36 = vpop.f32.mrf.mxu0 }
 0x481   :  { %v10041_v27 = vadd.f32 %v10040_v36, %v24268_v16  ;;  %10351 = vmatpush1.bf16.msra.mxu0 %v21780_v15  ;;  %10382 = vmatprep.mubr.bf16.mxu0 %v24201_v49  ;;  %v21830_v15 = vld [vmem:[#allocation8 + $0xec4] ss:$40 sps:$4 sm:$0xff]   ;;  %v21834_v36 = vld [vmem:[#allocation8 + $0xe70] ss:$40 sps:$4 sm:$0xff]  }
 0x482   :  { %10402 = vmatpush1.bf16.msra.mxu1 %v21783_v24  ;;  %v24284_v26 = vpop.f32.mrf.mxu0  ;;  %10352 = vmatprep.subr.bf16.mxu0 %v21788_v56  ;;  %v21828_v24 = vld [vmem:[#allocation8 + $0xec0] ss:$40 sps:$4 sm:$0xff]  }
 0x483   :  { %10403 = vmatprep.subr.bf16.mxu1 %v21791_v40  ;;  %v10909_v16 = vmax.f32 %v10041_v27, 0.0  ;;  %v21831_v56 = vld [vmem:[#allocation8 + $0x1280] ss:$40 sps:$4 sm:$0xff]   ;;  %v21839_v40 = vld [vmem:[#allocation8 + $0x1234] ss:$40 sps:$4 sm:$0xff]  }
 0x484   :  { %v10044_v29 = vpop.f32.mrf.mxu0  ;;  %v21842_v27 = vld [vmem:[#allocation8 + $0xe24] ss:$40 sps:$4 sm:$0xff]  }
 0x485   :  { %v10045_v0 = vadd.f32 %v10044_v29, %v24273_v25  ;;  %10353 = vmatpush1.bf16.msra.mxu0 %v21786_v11  ;;  %v21807_v25 = vld [vmem:[#allocation8 + $0x13c0] ss:$40 sps:$4 sm:$0xff]   ;;  %v21836_v11 = vld [vmem:[#allocation8 + $0xe74] ss:$40 sps:$4 sm:$0xff]  }
 0x486   :  { %10404 = vmatpush1.bf16.msra.mxu1 %v21789_v53  ;;  %10354 = vmatprep.subr.bf16.mxu0 %v21794_v12  ;;  %v21837_v53 = vld [vmem:[#allocation8 + $0x1230] ss:$40 sps:$4 sm:$0xff]   ;;  %v21845_v12 = vld [vmem:[#allocation8 + $0x11e4] ss:$40 sps:$4 sm:$0xff]   ;;  %v21848_v29 = vld [vmem:[#allocation8 + $0xdd4] ss:$40 sps:$4 sm:$0xff]  }
 0x487   :  { %v10919_v9 = vmax.f32 %v10045_v0, 0.0  ;;  %10405 = vmatprep.subr.bf16.mxu1 %v21797_v63  ;;  %v21843_v63 = vld [vmem:[#allocation8 + $0x11e0] ss:$40 sps:$4 sm:$0xff]   ;;  %v21846_v0 = vld [vmem:[#allocation8 + $0xdd0] ss:$40 sps:$4 sm:$0xff]  }
 0x489   :  { %v24287_v6 = vpack.c.bf16 %v10919_v9, %v10909_v16  ;;  %10355 = vmatpush1.bf16.msra.mxu0 %v21792_v37  ;;  %v21840_v37 = vld [vmem:[#allocation8 + $0xe20] ss:$40 sps:$4 sm:$0xff]   ;;  %v21854_v16 = vld [vmem:[#allocation8 + $0xd84] ss:$40 sps:$4 sm:$0xff]  }
 0x48a   :  { %10406 = vmatpush1.bf16.msra.mxu1 %v21795_v57  ;;  %10356 = vmatprep.subr.bf16.mxu0 %v21800_v8  ;;  %v21851_v57 = vld [vmem:[#allocation8 + $0x1194] ss:$40 sps:$4 sm:$0xff]   ;;  %v21849_v8 = vld [vmem:[#allocation8 + $0x1190] ss:$40 sps:$4 sm:$0xff]  }
 0x48b   :  { %10407 = vmatprep.subr.bf16.mxu1 %v21803_v59  ;;  %v21857_v9 = vld [vmem:[#allocation8 + $0x24c] ss:$40 sps:$4 sm:$0xff]   ;;  %v24289_v59 = vpop.f32.mrf.mxu1 }
 0x48d   :  { %10357 = vmatpush1.bf16.msra.mxu0 %v21798_v5  ;;  %v21852_v5 = vld [vmem:[#allocation8 + $0xd80] ss:$40 sps:$4 sm:$0xff]  }
 0x48e   :  { %10408 = vmatpush1.bf16.msra.mxu1 %v21801_v50  ;;  %10358 = vmatprep.subr.bf16.mxu0 %v21806_v60  ;;  %v21855_v50 = vld [vmem:[#allocation8 + $0x248] ss:$40 sps:$4 sm:$0xff]   ;;  %v21860_v60 = vld [vmem:[#allocation8 + $0xd34] ss:$40 sps:$4 sm:$0xff]  }
 0x48f   :  { %10409 = vmatprep.subr.bf16.mxu1 %v21809_v1  ;;  %v21858_v1 = vld [vmem:[#allocation8 + $0xd30] ss:$40 sps:$4 sm:$0xff]  }
 0x491   :  { %10359 = vmatpush1.bf16.msra.mxu0 %v21804_v54  ;;  %v21863_v54 = vld [vmem:[#allocation8 + $0x1fc] ss:$40 sps:$4 sm:$0xff]  }
 0x492   :  { %10410 = vmatpush2.bf16.msra.mxu1 %v21807_v25  ;;  %10360 = vmatprep.subr.bf16.mxu0 %v21812_v22  ;;  %v10083_v25 = vpop.f32.mrf.mxu1  ;;  %v21861_v22 = vld [vmem:[#allocation8 + $0x1f8] ss:$40 sps:$4 sm:$0xff]  }
 0x493   :  { %10411 = vmatprep.subr.bf16.mxu1 %v21815_v45  ;;  %v21866_v45 = vld [vmem:[#allocation8 + $0xce4] ss:$40 sps:$4 sm:$0xff]  }
 0x495   :  { %10361 = vmatpush1.bf16.msra.mxu0 %v21810_v30  ;;  %v21864_v30 = vld [vmem:[#allocation8 + $0xce0] ss:$40 sps:$4 sm:$0xff]  }
 0x496   :  { %10412 = vmatpush2.bf16.msra.mxu1 %v21813_v34  ;;  %10362 = vmatprep.subr.bf16.mxu0 %v21818_v51  ;;  %v21869_v34 = vld [vmem:[#allocation8 + $0x1ac] ss:$40 sps:$4 sm:$0xff]   ;;  %v24293_v51 = vpop.f32.mrf.mxu1 }
 0x497   :  { %10413 = vmatprep.subr.bf16.mxu1 %v21821_v4  ;;  %v21867_v4 = vld [vmem:[#allocation8 + $0x1a8] ss:$40 sps:$4 sm:$0xff]  }
 0x499   :  { %10363 = vmatpush1.bf16.msra.mxu0 %v21816_v42  ;;  %v21872_v42 = vld [vmem:[#allocation8 + $0xc94] ss:$40 sps:$4 sm:$0xff]  }
 0x49a   :  { %10414 = vmatpush2.bf16.msra.mxu1 %v21819_v17  ;;  %10364 = vmatprep.subr.bf16.mxu0 %v21824_v55  ;;  %v21875_v17 = vld [vmem:[#allocation8 + $0x15c] ss:$40 sps:$4 sm:$0xff]   ;;  %v10087_v55 = vpop.f32.mrf.mxu1 }
 0x49b   :  { %10415 = vmatprep.subr.bf16.mxu1 %v21827_v58  ;;  %v21870_v58 = vld [vmem:[#allocation8 + $0xc90] ss:$40 sps:$4 sm:$0xff]  }
 0x49d   :  { %10365 = vmatpush1.bf16.msra.mxu0 %v21822_v20  ;;  %v21873_v20 = vld [vmem:[#allocation8 + $0x158] ss:$40 sps:$4 sm:$0xff]  }
 0x49e   :  { %10416 = vmatpush2.bf16.msra.mxu1 %v21825_v21  ;;  %10366 = vmatprep.subr.bf16.mxu0 %v21830_v15  ;;  %v21878_v21 = vld [vmem:[#allocation8 + $0x1644] ss:$40 sps:$4 sm:$0xff]  }
 0x49f   :  { %10417 = vmatprep.subr.bf16.mxu1 %v21833_v13  ;;  %v23675_v15 = vld [vmem:[#allocation10] sm:$0xff] }
 0x4a0   :  { %v5795_v13 = vrot.slane %v23675_v15, %v24067_v43  ;;  %v21908_v15 = vld [vmem:[#allocation8 + $0x14b4] ss:$40 sps:$4 sm:$0xff]  }
 0x4a1   :  { %10367 = vmatpush2.bf16.msra.mxu0 %v21828_v24  ;;  %v21876_v24 = vld [vmem:[#allocation8 + $0x1640] ss:$40 sps:$4 sm:$0xff]  }
 0x4a2   :  { %10418 = vmatpush2.bf16.msra.mxu1 %v21831_v56  ;;  %10368 = vmatprep.subr.bf16.mxu0 %v21836_v11  ;;  %v21881_v56 = vld [vmem:[#allocation8 + $0x10c] ss:$40 sps:$4 sm:$0xff]   ;;  %v24296_v11 = vpop.f32.mrf.mxu1 }
 0x4a3   :  { %10419 = vmatprep.subr.bf16.mxu1 %v21839_v40  ;;  %v21879_v40 = vld [vmem:[#allocation8 + $0x108] ss:$40 sps:$4 sm:$0xff]  }
 0x4a5   :  { %10369 = vmatpush2.bf16.msra.mxu0 %v21834_v36  ;;  %v24298_v36 = vpop.f32.mrf.mxu0 }
 0x4a6   :  { %10420 = vmatpush2.bf16.msra.mxu1 %v21837_v53  ;;  %10370 = vmatprep.subr.bf16.mxu0 %v21842_v27  ;;  %v21884_v27 = vld [vmem:[#allocation8 + $0x15f4] ss:$40 sps:$4 sm:$0xff]  }
 0x4a7   :  { %10421 = vmatprep.subr.bf16.mxu1 %v21845_v12  ;;  %v10084_v12 = vadd.f32 %v10083_v25, %v5795_v13  ;;  %v21891_v25 = vld [vmem:[#allocation8 + $0x68] ss:$40 sps:$4 sm:$0xff]  }
 0x4a9   :  { %10371 = vmatpush2.bf16.msra.mxu0 %v21840_v37  ;;  %v21882_v37 = vld [vmem:[#allocation8 + $0x15f0] ss:$40 sps:$4 sm:$0xff]  }
 0x4aa   :  { %10422 = vmatpush2.bf16.msra.mxu1 %v21843_v63  ;;  %10372 = vmatprep.subr.bf16.mxu0 %v21848_v29  ;;  %v21887_v63 = vld [vmem:[#allocation8 + $0xbc] ss:$40 sps:$4 sm:$0xff]  }
 0x4ab   :  { %10423 = vmatprep.subr.bf16.mxu1 %v21851_v57  ;;  %v21885_v57 = vld [vmem:[#allocation8 + $0xb8] ss:$40 sps:$4 sm:$0xff]  }
 0x4ad   :  { %10373 = vmatpush2.bf16.msra.mxu0 %v21846_v0 }
 0x4ae   :  { %10424 = vmatpush2.bf16.msra.mxu1 %v21849_v8  ;;  %10374 = vmatprep.subr.bf16.mxu0 %v21854_v16 }
 0x4af   :  { %10479 = vmatprep.subr.bf16.mxu1 %v21857_v9  ;;  %v21890_v9 = vld [vmem:[#allocation8 + $0x15a4] ss:$40 sps:$4 sm:$0xff]  }
 0x4b1   :  { %10375 = vmatpush2.bf16.msra.mxu0 %v21852_v5  ;;  %10426 = vmatmul.mubr.bf16.vlgmr.msra.gmra.mxu1 %v24230_v61  ;;  %v10169_v53 = vpop.f32.mrf.mxu1  ;;  %v10088_v5 = vadd.f32 %v10087_v55, %v5795_v13  ;;  %v21902_v55 = vld [vmem:[#allocation8 + $0x1504] ss:$40 sps:$4 sm:$0xff]  }
 0x4b2   :  { %10480 = vmatpush1.bf16.msra.mxu1 %v21855_v50  ;;  %10511 = vmatprep.mubr.bf16.mxu1 %v24167_v46  ;;  %v21888_v50 = vld [vmem:[#allocation8 + $0x15a0] ss:$40 sps:$4 sm:$0xff]   ;;  %v21911_v13 = vld [vmem:[#allocation8 + $0x47c] ss:$40 sps:$4 sm:$0xff]  }
 0x4b3   :  { %10376 = vmatprep.subr.bf16.mxu0 %v21860_v60  ;;  %10481 = vmatprep.subr.bf16.mxu1 %v21863_v54  ;;  %v24302_v8 = vpop.f32.mrf.mxu1  ;;  %v21893_v60 = vld [vmem:[#allocation8 + $0x6c] ss:$40 sps:$4 sm:$0xff]  }
 0x4b5   :  { %10377 = vmatpush2.bf16.msra.mxu0 %v21858_v1 }
 0x4b6   :  { %10482 = vmatpush1.bf16.msra.mxu1 %v21861_v22  ;;  %10378 = vmatprep.subr.bf16.mxu0 %v21866_v45  ;;  %v10173_v45 = vpop.f32.mrf.mxu1 }
 0x4b7   :  { %10483 = vmatprep.subr.bf16.mxu1 %v21869_v34  ;;  %v21899_v34 = vld [vmem:[#allocation8 + $0x1c] ss:$40 sps:$4 sm:$0xff]  }
 0x4b9   :  { %10379 = vmatpush2.bf16.msra.mxu0 %v21864_v30  ;;  %v21896_v30 = vld [vmem:[#allocation8 + $0x1554] ss:$40 sps:$4 sm:$0xff]  }
 0x4ba   :  { %10484 = vmatpush1.bf16.msra.mxu1 %v21867_v4  ;;  %10380 = vmatprep.subr.bf16.mxu0 %v21872_v42  ;;  %v21894_v42 = vld [vmem:[#allocation8 + $0x1550] ss:$40 sps:$4 sm:$0xff]  }
 0x4bb   :  { %10485 = vmatprep.subr.bf16.mxu1 %v21875_v17  ;;  %v21897_v17 = vld [vmem:[#allocation8 + $0x18] ss:$40 sps:$4 sm:$0xff]  }
 0x4bd   :  { %10381 = vmatpush2.bf16.msra.mxu0 %v21870_v58  ;;  %v21905_v58 = vld [vmem:[#allocation8 + $0x4cc] ss:$40 sps:$4 sm:$0xff]  }
 0x4be   :  { %10486 = vmatpush1.bf16.msra.mxu1 %v21873_v20  ;;  %10436 = vmatprep.subr.bf16.mxu0 %v21878_v21  ;;  %v21900_v20 = vld [vmem:[#allocation8 + $0x1500] ss:$40 sps:$4 sm:$0xff]  }
 0x4bf   :  { %10487 = vmatprep.subr.bf16.mxu1 %v21881_v56  ;;  %v21903_v21 = vld [vmem:[#allocation8 + $0x4c8] ss:$40 sps:$4 sm:$0xff]   ;;  %v21909_v56 = vld [vmem:[#allocation8 + $0x478] ss:$40 sps:$4 sm:$0xff]  }
 0x4c0   :  { %v10126_v29 = vpop.f32.mrf.mxu0  ;;  %10383 = vmatmul.mubr.bf16.vlgmr.msra.gmra.mxu0 %v24139_v41 }
 0x4c1   :  { %v10127_v0 = vadd.f32 %v10126_v29, %v10084_v12  ;;  %10437 = vmatpush1.bf16.msra.mxu0 %v21876_v24  ;;  %10468 = vmatprep.mubr.bf16.mxu0 %v24239_v7  ;;  %v21906_v24 = vld [vmem:[#allocation8 + $0x14b0] ss:$40 sps:$4 sm:$0xff]  }
 0x4c2   :  { %v24304_v16 = vpop.f32.mrf.mxu0  ;;  %10488 = vmatpush1.bf16.msra.mxu1 %v21879_v40  ;;  %10438 = vmatprep.subr.bf16.mxu0 %v21884_v27  ;;  %v21914_v40 = vld [vmem:[#allocation8 + $0x1464] ss:$40 sps:$4 sm:$0xff]   ;;  %v21912_v27 = vld [vmem:[#allocation8 + $0x1460] ss:$40 sps:$4 sm:$0xff]   ;;  %v21918_v29 = vld [vmem:[#allocation8 + $0x1410] ss:$40 sps:$4 sm:$0xff]  }
 0x4c3   :  { %10489 = vmatprep.subr.bf16.mxu1 %v21887_v63  ;;  %v24306_v1 = vadd.f32 %v10169_v53, %v10127_v0  ;;  %v21917_v53 = vld [vmem:[#allocation8 + $0x42c] ss:$40 sps:$4 sm:$0xff]   ;;  %v21915_v12 = vld [vmem:[#allocation8 + $0x428] ss:$40 sps:$4 sm:$0xff]   ;;  %v21923_v63 = vld [vmem:[#allocation8 + $0x3dc] ss:$40 sps:$4 sm:$0xff]  }
 0x4c4   :  { %v10130_v54 = vpop.f32.mrf.mxu0  ;;  %v21926_v0 = vld [vmem:[#allocation8 + $0x18c4] ss:$40 sps:$4 sm:$0xff]  }
 0x4c5   :  { %v10131_v22 = vadd.f32 %v10130_v54, %v10088_v5  ;;  %10439 = vmatpush1.bf16.msra.mxu0 %v21882_v37  ;;  %v21920_v37 = vld [vmem:[#allocation8 + $0x1414] ss:$40 sps:$4 sm:$0xff]   ;;  %v21924_v5 = vld [vmem:[#allocation8 + $0x18c0] ss:$40 sps:$4 sm:$0xff]  }
 0x4c6   :  { %10490 = vmatpush1.bf16.msra.mxu1 %v21885_v57  ;;  %10440 = vmatprep.subr.bf16.mxu0 %v21890_v9  ;;  %v21921_v57 = vld [vmem:[#allocation8 + $0x3d8] ss:$40 sps:$4 sm:$0xff]   ;;  %v21929_v9 = vld [vmem:[#allocation8 + $0x38c] ss:$40 sps:$4 sm:$0xff]   ;;  %v21935_v54 = vld [vmem:[#allocation8 + $0x33c] ss:$40 sps:$4 sm:$0xff]  }
 0x4c7   :  { %10491 = vmatprep.subr.bf16.mxu1 %v21893_v60  ;;  %v24308_v4 = vadd.f32 %v10173_v45, %v10131_v22  ;;  %v21932_v60 = vld [vmem:[#allocation8 + $0x1874] ss:$40 sps:$4 sm:$0xff]   ;;  %v21933_v22 = vld [vmem:[#allocation8 + $0x338] ss:$40 sps:$4 sm:$0xff]   ;;  %v21938_v45 = vld [vmem:[#allocation8 + $0x1824] ss:$40 sps:$4 sm:$0xff]  }
 0x4c9   :  { %10441 = vmatpush1.bf16.msra.mxu0 %v21888_v50  ;;  %v21927_v50 = vld [vmem:[#allocation8 + $0x388] ss:$40 sps:$4 sm:$0xff]  }
 0x4ca   :  { %10492 = vmatpush1.bf16.msra.mxu1 %v21891_v25  ;;  %10442 = vmatprep.subr.bf16.mxu0 %v21896_v30  ;;  %v21930_v25 = vld [vmem:[#allocation8 + $0x1870] ss:$40 sps:$4 sm:$0xff]   ;;  %v21941_v30 = vld [vmem:[#allocation8 + $0x2ec] ss:$40 sps:$4 sm:$0xff]  }
 0x4cb   :  { %10493 = vmatprep.subr.bf16.mxu1 %v21899_v34  ;;  %v21936_v34 = vld [vmem:[#allocation8 + $0x1820] ss:$40 sps:$4 sm:$0xff]  }
 0x4cd   :  { %10443 = vmatpush1.bf16.msra.mxu0 %v21894_v42  ;;  %v21939_v42 = vld [vmem:[#allocation8 + $0x2e8] ss:$40 sps:$4 sm:$0xff]  }
 0x4ce   :  { %10494 = vmatpush1.bf16.msra.mxu1 %v21897_v17  ;;  %10444 = vmatprep.subr.bf16.mxu0 %v21902_v55  ;;  %v21944_v17 = vld [vmem:[#allocation8 + $0x17d4] ss:$40 sps:$4 sm:$0xff]  }
 0x4cf   :  { %10495 = vmatprep.subr.bf16.mxu1 %v21905_v58  ;;  %v21947_v55 = vld [vmem:[#allocation8 + $0x29c] ss:$40 sps:$4 sm:$0xff]   ;;  %v21942_v58 = vld [vmem:[#allocation8 + $0x17d0] ss:$40 sps:$4 sm:$0xff]  }
 0x4d1   :  { %10445 = vmatpush1.bf16.msra.mxu0 %v21900_v20  ;;  %v21945_v20 = vld [vmem:[#allocation8 + $0x298] ss:$40 sps:$4 sm:$0xff]  }
 0x4d2   :  { %10496 = vmatpush2.bf16.msra.mxu1 %v21903_v21  ;;  %10446 = vmatprep.subr.bf16.mxu0 %v21908_v15  ;;  %v21950_v21 = vld [vmem:[#allocation8 + $0x1784] ss:$40 sps:$4 sm:$0xff]  }
 0x4d3   :  { %10497 = vmatprep.subr.bf16.mxu1 %v21911_v13  ;;  %v21953_v15 = vld [vmem:[#allocation8 + $0xc4c] ss:$40 sps:$4 sm:$0xff]   ;;  %v21948_v13 = vld [vmem:[#allocation8 + $0x1780] ss:$40 sps:$4 sm:$0xff]  }
 0x4d5   :  { %10447 = vmatpush1.bf16.msra.mxu0 %v21906_v24  ;;  %v21951_v24 = vld [vmem:[#allocation8 + $0xc48] ss:$40 sps:$4 sm:$0xff]  }
 0x4d6   :  { %10498 = vmatpush2.bf16.msra.mxu1 %v21909_v56  ;;  %10448 = vmatprep.subr.bf16.mxu0 %v21914_v40  ;;  %v21956_v56 = vld [vmem:[#allocation8 + $0x1734] ss:$40 sps:$4 sm:$0xff]   ;;  %v21954_v40 = vld [vmem:[#allocation8 + $0x1730] ss:$40 sps:$4 sm:$0xff]  }
 0x4d7   :  { %10499 = vmatprep.subr.bf16.mxu1 %v21917_v53  ;;  %v21959_v53 = vld [vmem:[#allocation8 + $0xbfc] ss:$40 sps:$4 sm:$0xff]  }
 0x4d9   :  { %10449 = vmatpush1.bf16.msra.mxu0 %v21912_v27  ;;  %v21957_v27 = vld [vmem:[#allocation8 + $0xbf8] ss:$40 sps:$4 sm:$0xff]  }
 0x4da   :  { %10500 = vmatpush2.bf16.msra.mxu1 %v21915_v12  ;;  %10450 = vmatprep.subr.bf16.mxu0 %v21920_v37  ;;  %v21962_v12 = vld [vmem:[#allocation8 + $0x16e4] ss:$40 sps:$4 sm:$0xff]   ;;  %v21960_v37 = vld [vmem:[#allocation8 + $0x16e0] ss:$40 sps:$4 sm:$0xff]  }
 0x4db   :  { %10501 = vmatprep.subr.bf16.mxu1 %v21923_v63  ;;  %v21965_v63 = vld [vmem:[#allocation8 + $0xbac] ss:$40 sps:$4 sm:$0xff]  }
 0x4dd   :  { %10451 = vmatpush1.bf16.msra.mxu0 %v21918_v29  ;;  %v21963_v29 = vld [vmem:[#allocation8 + $0xba8] ss:$40 sps:$4 sm:$0xff]  }
 0x4de   :  { %10502 = vmatpush2.bf16.msra.mxu1 %v21921_v57  ;;  %10452 = vmatprep.subr.bf16.mxu0 %v21926_v0  ;;  %v21968_v57 = vld [vmem:[#allocation8 + $0x1694] ss:$40 sps:$4 sm:$0xff]  }
 0x4df   :  { %10503 = vmatprep.subr.bf16.mxu1 %v21929_v9  ;;  %v21971_v0 = vld [vmem:[#allocation8 + $0xb5c] ss:$40 sps:$4 sm:$0xff]   ;;  %v21966_v9 = vld [vmem:[#allocation8 + $0x1690] ss:$40 sps:$4 sm:$0xff]  }
 0x4e1   :  { %10453 = vmatpush2.bf16.msra.mxu0 %v21924_v5  ;;  %v21969_v5 = vld [vmem:[#allocation8 + $0xb58] ss:$40 sps:$4 sm:$0xff]  }
 0x4e2   :  { %10504 = vmatpush2.bf16.msra.mxu1 %v21927_v50  ;;  %10454 = vmatprep.subr.bf16.mxu0 %v21932_v60  ;;  %v21974_v50 = vld [vmem:[#allocation8 + $0x74c] ss:$40 sps:$4 sm:$0xff]   ;;  %v21972_v60 = vld [vmem:[#allocation8 + $0x748] ss:$40 sps:$4 sm:$0xff]  }
 0x4e3   :  { %10505 = vmatprep.subr.bf16.mxu1 %v21935_v54  ;;  %v21977_v54 = vld [vmem:[#allocation8 + $0xb0c] ss:$40 sps:$4 sm:$0xff]  }
 0x4e5   :  { %10455 = vmatpush2.bf16.msra.mxu0 %v21930_v25  ;;  %v24312_v25 = vpop.f32.mrf.mxu1 }
 0x4e6   :  { %10506 = vmatpush2.bf16.msra.mxu1 %v21933_v22  ;;  %10456 = vmatprep.subr.bf16.mxu0 %v21938_v45  ;;  %v21975_v22 = vld [vmem:[#allocation8 + $0xb08] ss:$40 sps:$4 sm:$0xff]   ;;  %v24314_v45 = vpop.f32.mrf.mxu0 }
 0x4e7   :  { %10507 = vmatprep.subr.bf16.mxu1 %v21941_v30 }
 0x4e9   :  { %10457 = vmatpush2.bf16.msra.mxu0 %v21936_v34  ;;  %v21980_v34 = vld [vmem:[#allocation8 + $0x6fc] ss:$40 sps:$4 sm:$0xff]  }
 0x4ea   :  { %10508 = vmatpush2.bf16.msra.mxu1 %v21939_v42  ;;  %10458 = vmatprep.subr.bf16.mxu0 %v21944_v17  ;;  %v21978_v42 = vld [vmem:[#allocation8 + $0x6f8] ss:$40 sps:$4 sm:$0xff]   ;;  %v21983_v17 = vld [vmem:[#allocation8 + $0xabc] ss:$40 sps:$4 sm:$0xff]  }
 0x4eb   :  { %10509 = vmatprep.subr.bf16.mxu1 %v21947_v55 }
 0x4ed   :  { %10459 = vmatpush2.bf16.msra.mxu0 %v21942_v58  ;;  %v21981_v58 = vld [vmem:[#allocation8 + $0xab8] ss:$40 sps:$4 sm:$0xff]  }
 0x4ee   :  { %10510 = vmatpush2.bf16.msra.mxu1 %v21945_v20  ;;  %10460 = vmatprep.subr.bf16.mxu0 %v21950_v21 }
 0x4ef   :  { %10565 = vmatprep.subr.bf16.mxu1 %v21953_v15 }
 0x4f1   :  { %10461 = vmatpush2.bf16.msra.mxu0 %v21948_v13  ;;  %10512 = vmatmul.mubr.bf16.vlgmr.msra.gmra.mxu1 %v24064_v44  ;;  %v10255_v30 = vpop.f32.mrf.mxu1  ;;  %v21986_v13 = vld [vmem:[#allocation8 + $0x6ac] ss:$40 sps:$4 sm:$0xff]  }
 0x4f2   :  { %10566 = vmatpush1.bf16.msra.mxu1 %v21951_v24  ;;  %10597 = vmatprep.mubr.bf16.mxu1 %v24201_v49 }
 0x4f3   :  { %10462 = vmatprep.subr.bf16.mxu0 %v21956_v56  ;;  %10567 = vmatprep.subr.bf16.mxu1 %v21959_v53  ;;  %v24319_v21 = vpop.f32.mrf.mxu1  ;;  %v21984_v56 = vld [vmem:[#allocation8 + $0x6a8] ss:$40 sps:$4 sm:$0xff]  }
 0x4f5   :  { %10463 = vmatpush2.bf16.msra.mxu0 %v21954_v40  ;;  %v21989_v40 = vld [vmem:[#allocation8 + $0xa6c] ss:$40 sps:$4 sm:$0xff]  }
 0x4f6   :  { %10568 = vmatpush1.bf16.msra.mxu1 %v21957_v27  ;;  %10464 = vmatprep.subr.bf16.mxu0 %v21962_v12  ;;  %v21987_v27 = vld [vmem:[#allocation8 + $0xa68] ss:$40 sps:$4 sm:$0xff]  }
 0x4f7   :  { %10569 = vmatprep.subr.bf16.mxu1 %v21965_v63 }
 0x4f9   :  { %10465 = vmatpush2.bf16.msra.mxu0 %v21960_v37  ;;  %v21992_v37 = vld [vmem:[#allocation8 + $0x65c] ss:$40 sps:$4 sm:$0xff]  }
 0x4fa   :  { %10570 = vmatpush1.bf16.msra.mxu1 %v21963_v29  ;;  %10466 = vmatprep.subr.bf16.mxu0 %v21968_v57  ;;  %v21990_v29 = vld [vmem:[#allocation8 + $0x658] ss:$40 sps:$4 sm:$0xff]   ;;  %v21995_v57 = vld [vmem:[#allocation8 + $0xa1c] ss:$40 sps:$4 sm:$0xff]  }
 0x4fb   :  { %10571 = vmatprep.subr.bf16.mxu1 %v21971_v0 }
 0x4fd   :  { %10467 = vmatpush2.bf16.msra.mxu0 %v21966_v9 }
 0x4fe   :  { %10572 = vmatpush1.bf16.msra.mxu1 %v21969_v5  ;;  %10522 = vmatprep.subr.bf16.mxu0 %v21974_v50  ;;  %v21993_v5 = vld [vmem:[#allocation8 + $0xa18] ss:$40 sps:$4 sm:$0xff]   ;;  %v21998_v50 = vld [vmem:[#allocation8 + $0x60c] ss:$40 sps:$4 sm:$0xff]  }
 0x4ff   :  { %10573 = vmatprep.subr.bf16.mxu1 %v21977_v54  ;;  %v21996_v54 = vld [vmem:[#allocation8 + $0x608] ss:$40 sps:$4 sm:$0xff]  }
 0x500   :  { %v10212_v55 = vpop.f32.mrf.mxu0  ;;  %10469 = vmatmul.mubr.bf16.vlgmr.msra.gmra.mxu0 %v24241_v14 }
 0x501   :  { %v10213_v20 = vadd.f32 %v10212_v55, %v24306_v1  ;;  %10523 = vmatpush1.bf16.msra.mxu0 %v21972_v60  ;;  %10554 = vmatprep.mubr.bf16.mxu0 %v24169_v52  ;;  %v10259_v1 = vpop.f32.mrf.mxu1  ;;  %v22010_v55 = vld [vmem:[#allocation8 + $0x56c] ss:$40 sps:$4 sm:$0xff]  }
 0x502   :  { %v24321_v15 = vpop.f32.mrf.mxu0  ;;  %10574 = vmatpush1.bf16.msra.mxu1 %v21975_v22  ;;  %10524 = vmatprep.subr.bf16.mxu0 %v21980_v34  ;;  %v21999_v22 = vld [vmem:[#allocation8 + $0xec8] ss:$40 sps:$4 sm:$0xff]   ;;  %v22007_v34 = vld [vmem:[#allocation8 + $0xe7c] ss:$40 sps:$4 sm:$0xff]  }
 0x503   :  { %v10256_v24 = vadd.f32 %v10255_v30, %v10213_v20  ;;  %10575 = vmatprep.subr.bf16.mxu1 %v21983_v17  ;;  %v22004_v30 = vld [vmem:[#allocation8 + $0x5bc] ss:$40 sps:$4 sm:$0xff]   ;;  %v22005_v17 = vld [vmem:[#allocation8 + $0xe78] ss:$40 sps:$4 sm:$0xff]   ;;  %v22008_v20 = vld [vmem:[#allocation8 + $0x568] ss:$40 sps:$4 sm:$0xff]  }
 0x504   :  { %v10216_v53 = vpop.f32.mrf.mxu0 }
 0x505   :  { %v10217_v12 = vadd.f32 %v10216_v53, %v24308_v4  ;;  %10525 = vmatpush1.bf16.msra.mxu0 %v21978_v42  ;;  %v10911_v0 = vmax.f32 %v10256_v24, 0.0  ;;  %v22001_v4 = vld [vmem:[#allocation8 + $0xecc] ss:$40 sps:$4 sm:$0xff]   ;;  %v22002_v42 = vld [vmem:[#allocation8 + $0x5b8] ss:$40 sps:$4 sm:$0xff]  }
 0x506   :  { %10576 = vmatpush1.bf16.msra.mxu1 %v21981_v58  ;;  %10526 = vmatprep.subr.bf16.mxu0 %v21986_v13  ;;  %v22013_v58 = vld [vmem:[#allocation8 + $0xe2c] ss:$40 sps:$4 sm:$0xff]   ;;  %v22011_v13 = vld [vmem:[#allocation8 + $0xe28] ss:$40 sps:$4 sm:$0xff]   ;;  %v22016_v24 = vld [vmem:[#allocation8 + $0x51c] ss:$40 sps:$4 sm:$0xff]  }
 0x507   :  { %v10260_v63 = vadd.f32 %v10259_v1, %v10217_v12  ;;  %10577 = vmatprep.subr.bf16.mxu1 %v21989_v40  ;;  %v22014_v40 = vld [vmem:[#allocation8 + $0x518] ss:$40 sps:$4 sm:$0xff]   ;;  %v22025_v12 = vld [vmem:[#allocation8 + $0xd8c] ss:$40 sps:$4 sm:$0xff]   ;;  %v22020_v1 = vld [vmem:[#allocation8 + $0x9c8] ss:$40 sps:$4 sm:$0xff]  }
 0x508   :  { %v22017_v53 = vld [vmem:[#allocation8 + $0xdd8] ss:$40 sps:$4 sm:$0xff]  }
 0x509   :  { %v10921_v9 = vmax.f32 %v10260_v63, 0.0  ;;  %10527 = vmatpush1.bf16.msra.mxu0 %v21984_v56  ;;  %v22019_v56 = vld [vmem:[#allocation8 + $0xddc] ss:$40 sps:$4 sm:$0xff]  }
 0x50a   :  { %10578 = vmatpush1.bf16.msra.mxu1 %v21987_v27  ;;  %10528 = vmatprep.subr.bf16.mxu0 %v21992_v37  ;;  %v22022_v27 = vld [vmem:[#allocation8 + $0x9cc] ss:$40 sps:$4 sm:$0xff]   ;;  %v22023_v37 = vld [vmem:[#allocation8 + $0xd88] ss:$40 sps:$4 sm:$0xff]   ;;  %v22028_v63 = vld [vmem:[#allocation8 + $0x97c] ss:$40 sps:$4 sm:$0xff]  }
 0x50b   :  { %v24324_v60 = vpack.c.bf16 %v10921_v9, %v10911_v0  ;;  %10579 = vmatprep.subr.bf16.mxu1 %v21995_v57  ;;  %v22026_v57 = vld [vmem:[#allocation8 + $0x978] ss:$40 sps:$4 sm:$0xff]   ;;  %v22034_v9 = vld [vmem:[#allocation8 + $0x92c] ss:$40 sps:$4 sm:$0xff]  }
 0x50c   :  { %v22029_v0 = vld [vmem:[#allocation8 + $0xd38] ss:$40 sps:$4 sm:$0xff]  }
 0x50d   :  { %10529 = vmatpush1.bf16.msra.mxu0 %v21990_v29  ;;  %v22031_v29 = vld [vmem:[#allocation8 + $0xd3c] ss:$40 sps:$4 sm:$0xff]  }
 0x50e   :  { %10580 = vmatpush1.bf16.msra.mxu1 %v21993_v5  ;;  %10530 = vmatprep.subr.bf16.mxu0 %v21998_v50  ;;  %v22037_v5 = vld [vmem:[#allocation8 + $0xcec] ss:$40 sps:$4 sm:$0xff]   ;;  %v22032_v50 = vld [vmem:[#allocation8 + $0x928] ss:$40 sps:$4 sm:$0xff]  }
 0x50f   :  { %10581 = vmatprep.subr.bf16.mxu1 %v22001_v4  ;;  %v22035_v4 = vld [vmem:[#allocation8 + $0xce8] ss:$40 sps:$4 sm:$0xff]  }
 0x511   :  { %10531 = vmatpush1.bf16.msra.mxu0 %v21996_v54  ;;  %v22040_v54 = vld [vmem:[#allocation8 + $0x8dc] ss:$40 sps:$4 sm:$0xff]  }
 0x512   :  { %10582 = vmatpush2.bf16.msra.mxu1 %v21999_v22  ;;  %10532 = vmatprep.subr.bf16.mxu0 %v22004_v30  ;;  %v22043_v22 = vld [vmem:[#allocation8 + $0xc9c] ss:$40 sps:$4 sm:$0xff]   ;;  %v22038_v30 = vld [vmem:[#allocation8 + $0x8d8] ss:$40 sps:$4 sm:$0xff]  }
 0x513   :  { %10583 = vmatprep.subr.bf16.mxu1 %v22007_v34  ;;  %v22041_v34 = vld [vmem:[#allocation8 + $0xc98] ss:$40 sps:$4 sm:$0xff]  }
 0x515   :  { %10533 = vmatpush1.bf16.msra.mxu0 %v22002_v42  ;;  %v22046_v42 = vld [vmem:[#allocation8 + $0x88c] ss:$40 sps:$4 sm:$0xff]  }
 0x516   :  { %10584 = vmatpush2.bf16.msra.mxu1 %v22005_v17  ;;  %10534 = vmatprep.subr.bf16.mxu0 %v22010_v55  ;;  %v22049_v17 = vld [vmem:[#allocation8 + $0x164c] ss:$40 sps:$4 sm:$0xff]   ;;  %v22044_v55 = vld [vmem:[#allocation8 + $0x888] ss:$40 sps:$4 sm:$0xff]  }
 0x517   :  { %10585 = vmatprep.subr.bf16.mxu1 %v22013_v58  ;;  %v22047_v58 = vld [vmem:[#allocation8 + $0x1648] ss:$40 sps:$4 sm:$0xff]  }
 0x519   :  { %10535 = vmatpush1.bf16.msra.mxu0 %v22008_v20  ;;  %v22052_v20 = vld [vmem:[#allocation8 + $0x83c] ss:$40 sps:$4 sm:$0xff]  }
 0x51a   :  { %10586 = vmatpush2.bf16.msra.mxu1 %v22011_v13  ;;  %10536 = vmatprep.subr.bf16.mxu0 %v22016_v24  ;;  %v22050_v13 = vld [vmem:[#allocation8 + $0x838] ss:$40 sps:$4 sm:$0xff]   ;;  %v22055_v24 = vld [vmem:[#allocation8 + $0x15fc] ss:$40 sps:$4 sm:$0xff]  }
 0x51b   :  { %10587 = vmatprep.subr.bf16.mxu1 %v22019_v56  ;;  %v22053_v56 = vld [vmem:[#allocation8 + $0x15f8] ss:$40 sps:$4 sm:$0xff]  }
 0x51d   :  { %10537 = vmatpush1.bf16.msra.mxu0 %v22014_v40  ;;  %v22058_v40 = vld [vmem:[#allocation8 + $0x7ec] ss:$40 sps:$4 sm:$0xff]  }
 0x51e   :  { %10588 = vmatpush2.bf16.msra.mxu1 %v22017_v53  ;;  %10538 = vmatprep.subr.bf16.mxu0 %v22022_v27  ;;  %v22056_v53 = vld [vmem:[#allocation8 + $0x7e8] ss:$40 sps:$4 sm:$0xff]   ;;  %v22061_v27 = vld [vmem:[#allocation8 + $0x15ac] ss:$40 sps:$4 sm:$0xff]  }
 0x51f   :  { %10589 = vmatprep.subr.bf16.mxu1 %v22025_v12  ;;  %v22059_v12 = vld [vmem:[#allocation8 + $0x15a8] ss:$40 sps:$4 sm:$0xff]  }
 0x521   :  { %10539 = vmatpush2.bf16.msra.mxu0 %v22020_v1  ;;  %v22064_v1 = vld [vmem:[#allocation8 + $0x79c] ss:$40 sps:$4 sm:$0xff]  }
 0x522   :  { %10590 = vmatpush2.bf16.msra.mxu1 %v22023_v37  ;;  %10540 = vmatprep.subr.bf16.mxu0 %v22028_v63  ;;  %v22067_v37 = vld [vmem:[#allocation8 + $0x155c] ss:$40 sps:$4 sm:$0xff]   ;;  %v22062_v63 = vld [vmem:[#allocation8 + $0x798] ss:$40 sps:$4 sm:$0xff]  }
 0x523   :  { %10591 = vmatprep.subr.bf16.mxu1 %v22031_v29  ;;  %v22065_v29 = vld [vmem:[#allocation8 + $0x1558] ss:$40 sps:$4 sm:$0xff]  }
 0x525   :  { %10541 = vmatpush2.bf16.msra.mxu0 %v22026_v57  ;;  %v22070_v57 = vld [vmem:[#allocation8 + $0x114c] ss:$40 sps:$4 sm:$0xff]  }
 0x526   :  { %10592 = vmatpush2.bf16.msra.mxu1 %v22029_v0  ;;  %10542 = vmatprep.subr.bf16.mxu0 %v22034_v9  ;;  %v22068_v0 = vld [vmem:[#allocation8 + $0x1148] ss:$40 sps:$4 sm:$0xff]   ;;  %v22073_v9 = vld [vmem:[#allocation8 + $0x150c] ss:$40 sps:$4 sm:$0xff]  }
 0x527   :  { %10593 = vmatprep.subr.bf16.mxu1 %v22037_v5  ;;  %v24328_v5 = vpop.f32.mrf.mxu1 }
 0x529   :  { %10543 = vmatpush2.bf16.msra.mxu0 %v22032_v50  ;;  %v22071_v50 = vld [vmem:[#allocation8 + $0x1508] ss:$40 sps:$4 sm:$0xff]  }
 0x52a   :  { %10594 = vmatpush2.bf16.msra.mxu1 %v22035_v4  ;;  %10544 = vmatprep.subr.bf16.mxu0 %v22040_v54  ;;  %v24330_v4 = vld [vmem:[#allocation10] sm:$0xff] }
 0x52b   :  { %10595 = vmatprep.subr.bf16.mxu1 %v22043_v22  ;;  %v5803_v54 = vrot.slane %v24330_v4, %v24103_v31  ;;  %v24334_v22 = vpop.f32.mrf.mxu0 }
 0x52d   :  { %10545 = vmatpush2.bf16.msra.mxu0 %v22038_v30 }
 0x52e   :  { %10596 = vmatpush2.bf16.msra.mxu1 %v22041_v34  ;;  %10546 = vmatprep.subr.bf16.mxu0 %v22046_v42  ;;  %v22076_v34 = vld [vmem:[#allocation8 + $0x10fc] ss:$40 sps:$4 sm:$0xff]   ;;  %v22074_v42 = vld [vmem:[#allocation8 + $0x10f8] ss:$40 sps:$4 sm:$0xff]  }
 0x52f   :  { %10651 = vmatprep.subr.bf16.mxu1 %v22049_v17  ;;  %v22079_v17 = vld [vmem:[#allocation8 + $0x14bc] ss:$40 sps:$4 sm:$0xff]  }
 0x531   :  { %10547 = vmatpush2.bf16.msra.mxu0 %v22044_v55  ;;  %10598 = vmatmul.mubr.bf16.vlgmr.msra.gmra.mxu1 %v24139_v41  ;;  %v10341_v30 = vpop.f32.mrf.mxu1 }
 0x532   :  { %10652 = vmatpush1.bf16.msra.mxu1 %v22047_v58  ;;  %10683 = vmatprep.mubr.bf16.mxu1 %v24239_v7  ;;  %v22077_v58 = vld [vmem:[#allocation8 + $0x14b8] ss:$40 sps:$4 sm:$0xff]  }
 0x533   :  { %10548 = vmatprep.subr.bf16.mxu0 %v22052_v20  ;;  %10653 = vmatprep.subr.bf16.mxu1 %v22055_v24 }
 0x535   :  { %10549 = vmatpush2.bf16.msra.mxu0 %v22050_v13  ;;  %v24338_v13 = vpop.f32.mrf.mxu1 }
 0x536   :  { %10654 = vmatpush1.bf16.msra.mxu1 %v22053_v56  ;;  %10550 = vmatprep.subr.bf16.mxu0 %v22058_v40  ;;  %v22082_v56 = vld [vmem:[#allocation8 + $0x10ac] ss:$40 sps:$4 sm:$0xff]   ;;  %v22080_v40 = vld [vmem:[#allocation8 + $0x10a8] ss:$40 sps:$4 sm:$0xff]  }
 0x537   :  { %10655 = vmatprep.subr.bf16.mxu1 %v22061_v27 }
 0x539   :  { %10551 = vmatpush2.bf16.msra.mxu0 %v22056_v53  ;;  %v22085_v53 = vld [vmem:[#allocation8 + $0x146c] ss:$40 sps:$4 sm:$0xff]  }
 0x53a   :  { %10656 = vmatpush1.bf16.msra.mxu1 %v22059_v12  ;;  %10552 = vmatprep.subr.bf16.mxu0 %v22064_v1  ;;  %v22083_v1 = vld [vmem:[#allocation8 + $0x1468] ss:$40 sps:$4 sm:$0xff]  }
 0x53b   :  { %10657 = vmatprep.subr.bf16.mxu1 %v22067_v37 }
 0x53d   :  { %10553 = vmatpush2.bf16.msra.mxu0 %v22062_v63  ;;  %v10345_v63 = vpop.f32.mrf.mxu1 }
 0x53e   :  { %10658 = vmatpush1.bf16.msra.mxu1 %v22065_v29  ;;  %10608 = vmatprep.subr.bf16.mxu0 %v22070_v57  ;;  %v22088_v29 = vld [vmem:[#allocation8 + $0x105c] ss:$40 sps:$4 sm:$0xff]   ;;  %v22086_v57 = vld [vmem:[#allocation8 + $0x1058] ss:$40 sps:$4 sm:$0xff]  }
 0x53f   :  { %10659 = vmatprep.subr.bf16.mxu1 %v22073_v9 }
 0x540   :  { %v10298_v55 = vpop.f32.mrf.mxu0  ;;  %10555 = vmatmul.mubr.bf16.vlgmr.msra.gmra.mxu0 %v24100_v19 }
 0x541   :  { %v10299_v20 = vadd.f32 %v10298_v55, %v5803_v54  ;;  %10609 = vmatpush1.bf16.msra.mxu0 %v22068_v0  ;;  %10640 = vmatprep.mubr.bf16.mxu0 %v24214_v3  ;;  %v22091_v0 = vld [vmem:[#allocation8 + $0x141c] ss:$40 sps:$4 sm:$0xff]  }
 0x542   :  { %v24340_v24 = vpop.f32.mrf.mxu0  ;;  %10660 = vmatpush1.bf16.msra.mxu1 %v22071_v50  ;;  %10610 = vmatprep.subr.bf16.mxu0 %v22076_v34  ;;  %v22089_v50 = vld [vmem:[#allocation8 + $0x1418] ss:$40 sps:$4 sm:$0xff]   ;;  %v22094_v34 = vld [vmem:[#allocation8 + $0x100c] ss:$40 sps:$4 sm:$0xff]   ;;  %v22103_v55 = vld [vmem:[#allocation8 + $0x187c] ss:$40 sps:$4 sm:$0xff]  }
 0x543   :  { %10661 = vmatprep.subr.bf16.mxu1 %v22079_v17  ;;  %v24342_v27 = vadd.f32 %v10341_v30, %v10299_v20  ;;  %v22097_v30 = vld [vmem:[#allocation8 + $0x18cc] ss:$40 sps:$4 sm:$0xff]   ;;  %v22092_v17 = vld [vmem:[#allocation8 + $0x1008] ss:$40 sps:$4 sm:$0xff]   ;;  %v22101_v20 = vld [vmem:[#allocation8 + $0x1878] ss:$40 sps:$4 sm:$0xff]  }
 0x544   :  { %v10302_v12 = vpop.f32.mrf.mxu0 }
 0x545   :  { %v10303_v37 = vadd.f32 %v10302_v12, %v5803_v54  ;;  %10611 = vmatpush1.bf16.msra.mxu0 %v22074_v42  ;;  %v22095_v54 = vld [vmem:[#allocation8 + $0x18c8] ss:$40 sps:$4 sm:$0xff]   ;;  %v22100_v42 = vld [vmem:[#allocation8 + $0xfbc] ss:$40 sps:$4 sm:$0xff]  }
 0x546   :  { %10662 = vmatpush1.bf16.msra.mxu1 %v22077_v58  ;;  %10612 = vmatprep.subr.bf16.mxu0 %v22082_v56  ;;  %v22098_v58 = vld [vmem:[#allocation8 + $0xfb8] ss:$40 sps:$4 sm:$0xff]   ;;  %v22106_v56 = vld [vmem:[#allocation8 + $0xf6c] ss:$40 sps:$4 sm:$0xff]   ;;  %v22107_v12 = vld [vmem:[#allocation8 + $0x1828] ss:$40 sps:$4 sm:$0xff]  }
 0x547   :  { %10663 = vmatprep.subr.bf16.mxu1 %v22085_v53  ;;  %v24344_v9 = vadd.f32 %v10345_v63, %v10303_v37  ;;  %v22104_v53 = vld [vmem:[#allocation8 + $0xf68] ss:$40 sps:$4 sm:$0xff]   ;;  %v22115_v37 = vld [vmem:[#allocation8 + $0x17dc] ss:$40 sps:$4 sm:$0xff]   ;;  %v22110_v63 = vld [vmem:[#allocation8 + $0xf18] ss:$40 sps:$4 sm:$0xff]  }
 0x549   :  { %10613 = vmatpush1.bf16.msra.mxu0 %v22080_v40  ;;  %v22109_v40 = vld [vmem:[#allocation8 + $0x182c] ss:$40 sps:$4 sm:$0xff]  }
 0x54a   :  { %10664 = vmatpush1.bf16.msra.mxu1 %v22083_v1  ;;  %10614 = vmatprep.subr.bf16.mxu0 %v22088_v29  ;;  %v22112_v1 = vld [vmem:[#allocation8 + $0xf1c] ss:$40 sps:$4 sm:$0xff]   ;;  %v22113_v29 = vld [vmem:[#allocation8 + $0x17d8] ss:$40 sps:$4 sm:$0xff]  }
 0x54b   :  { %10665 = vmatprep.subr.bf16.mxu1 %v22091_v0  ;;  %v22121_v0 = vld [vmem:[#allocation8 + $0x178c] ss:$40 sps:$4 sm:$0xff]  }
 0x54d   :  { %10615 = vmatpush1.bf16.msra.mxu0 %v22086_v57  ;;  %v22118_v57 = vld [vmem:[#allocation8 + $0x13cc] ss:$40 sps:$4 sm:$0xff]  }
 0x54e   :  { %10666 = vmatpush1.bf16.msra.mxu1 %v22089_v50  ;;  %10616 = vmatprep.subr.bf16.mxu0 %v22094_v34  ;;  %v22116_v50 = vld [vmem:[#allocation8 + $0x13c8] ss:$40 sps:$4 sm:$0xff]  }
 0x54f   :  { %10667 = vmatprep.subr.bf16.mxu1 %v22097_v30  ;;  %v22119_v34 = vld [vmem:[#allocation8 + $0x1788] ss:$40 sps:$4 sm:$0xff]   ;;  %v22124_v30 = vld [vmem:[#allocation8 + $0x137c] ss:$40 sps:$4 sm:$0xff]  }
 0x551   :  { %10617 = vmatpush1.bf16.msra.mxu0 %v22092_v17  ;;  %v22127_v17 = vld [vmem:[#allocation8 + $0x173c] ss:$40 sps:$4 sm:$0xff]  }
 0x552   :  { %10668 = vmatpush2.bf16.msra.mxu1 %v22095_v54  ;;  %10618 = vmatprep.subr.bf16.mxu0 %v22100_v42  ;;  %v22122_v54 = vld [vmem:[#allocation8 + $0x1378] ss:$40 sps:$4 sm:$0xff]  }
 0x553   :  { %10669 = vmatprep.subr.bf16.mxu1 %v22103_v55  ;;  %v22125_v42 = vld [vmem:[#allocation8 + $0x1738] ss:$40 sps:$4 sm:$0xff]   ;;  %v22130_v55 = vld [vmem:[#allocation8 + $0x132c] ss:$40 sps:$4 sm:$0xff]  }
 0x555   :  { %10619 = vmatpush1.bf16.msra.mxu0 %v22098_v58  ;;  %v22133_v58 = vld [vmem:[#allocation8 + $0x16ec] ss:$40 sps:$4 sm:$0xff]  }
 0x556   :  { %10670 = vmatpush2.bf16.msra.mxu1 %v22101_v20  ;;  %10620 = vmatprep.subr.bf16.mxu0 %v22106_v56  ;;  %v22128_v20 = vld [vmem:[#allocation8 + $0x1328] ss:$40 sps:$4 sm:$0xff]  }
 0x557   :  { %10671 = vmatprep.subr.bf16.mxu1 %v22109_v40  ;;  %v22131_v56 = vld [vmem:[#allocation8 + $0x16e8] ss:$40 sps:$4 sm:$0xff]   ;;  %v22136_v40 = vld [vmem:[#allocation8 + $0x12dc] ss:$40 sps:$4 sm:$0xff]  }
 0x559   :  { %10621 = vmatpush1.bf16.msra.mxu0 %v22104_v53  ;;  %v22139_v53 = vld [vmem:[#allocation8 + $0x169c] ss:$40 sps:$4 sm:$0xff]  }
 0x55a   :  { %10672 = vmatpush2.bf16.msra.mxu1 %v22107_v12  ;;  %10622 = vmatprep.subr.bf16.mxu0 %v22112_v1  ;;  %v22134_v12 = vld [vmem:[#allocation8 + $0x12d8] ss:$40 sps:$4 sm:$0xff]  }
 0x55b   :  { %10673 = vmatprep.subr.bf16.mxu1 %v22115_v37  ;;  %v22137_v1 = vld [vmem:[#allocation8 + $0x1698] ss:$40 sps:$4 sm:$0xff]   ;;  %v22142_v37 = vld [vmem:[#allocation8 + $0x128c] ss:$40 sps:$4 sm:$0xff]  }
 0x55d   :  { %10623 = vmatpush1.bf16.msra.mxu0 %v22110_v63  ;;  %v22145_v63 = vld [vmem:[#allocation8 + $0x754] ss:$40 sps:$4 sm:$0xff]  }
 0x55e   :  { %10674 = vmatpush2.bf16.msra.mxu1 %v22113_v29  ;;  %10624 = vmatprep.subr.bf16.mxu0 %v22118_v57  ;;  %v22140_v29 = vld [vmem:[#allocation8 + $0x1288] ss:$40 sps:$4 sm:$0xff]  }
 0x55f   :  { %10675 = vmatprep.subr.bf16.mxu1 %v22121_v0  ;;  %v22143_v57 = vld [vmem:[#allocation8 + $0x750] ss:$40 sps:$4 sm:$0xff]   ;;  %v22148_v0 = vld [vmem:[#allocation8 + $0x123c] ss:$40 sps:$4 sm:$0xff]  }
 0x561   :  { %10625 = vmatpush2.bf16.msra.mxu0 %v22116_v50  ;;  %v22151_v50 = vld [vmem:[#allocation8 + $0x704] ss:$40 sps:$4 sm:$0xff]  }
 0x562   :  { %10676 = vmatpush2.bf16.msra.mxu1 %v22119_v34  ;;  %10626 = vmatprep.subr.bf16.mxu0 %v22124_v30  ;;  %v22146_v34 = vld [vmem:[#allocation8 + $0x1238] ss:$40 sps:$4 sm:$0xff]  }
 0x563   :  { %10677 = vmatprep.subr.bf16.mxu1 %v22127_v17  ;;  %v22149_v30 = vld [vmem:[#allocation8 + $0x700] ss:$40 sps:$4 sm:$0xff]   ;;  %v22154_v17 = vld [vmem:[#allocation8 + $0x11ec] ss:$40 sps:$4 sm:$0xff]  }
 0x565   :  { %10627 = vmatpush2.bf16.msra.mxu0 %v22122_v54  ;;  %v22157_v54 = vld [vmem:[#allocation8 + $0x6b4] ss:$40 sps:$4 sm:$0xff]  }
 0x566   :  { %10678 = vmatpush2.bf16.msra.mxu1 %v22125_v42  ;;  %10628 = vmatprep.subr.bf16.mxu0 %v22130_v55  ;;  %v22152_v42 = vld [vmem:[#allocation8 + $0x11e8] ss:$40 sps:$4 sm:$0xff]  }
 0x567   :  { %10679 = vmatprep.subr.bf16.mxu1 %v22133_v58  ;;  %v22155_v55 = vld [vmem:[#allocation8 + $0x6b0] ss:$40 sps:$4 sm:$0xff]   ;;  %v22160_v58 = vld [vmem:[#allocation8 + $0x119c] ss:$40 sps:$4 sm:$0xff]  }
 0x569   :  { %10629 = vmatpush2.bf16.msra.mxu0 %v22128_v20  ;;  %v22163_v20 = vld [vmem:[#allocation8 + $0x664] ss:$40 sps:$4 sm:$0xff]  }
 0x56a   :  { %10680 = vmatpush2.bf16.msra.mxu1 %v22131_v56  ;;  %10630 = vmatprep.subr.bf16.mxu0 %v22136_v40  ;;  %v22158_v56 = vld [vmem:[#allocation8 + $0x1198] ss:$40 sps:$4 sm:$0xff]  }
 0x56b   :  { %10681 = vmatprep.subr.bf16.mxu1 %v22139_v53  ;;  %v22161_v40 = vld [vmem:[#allocation8 + $0x660] ss:$40 sps:$4 sm:$0xff]   ;;  %v22166_v53 = vld [vmem:[#allocation8 + $0x254] ss:$40 sps:$4 sm:$0xff]  }
 0x56d   :  { %10631 = vmatpush2.bf16.msra.mxu0 %v22134_v12  ;;  %v24348_v12 = vpop.f32.mrf.mxu1 }
 0x56e   :  { %10682 = vmatpush2.bf16.msra.mxu1 %v22137_v1  ;;  %10632 = vmatprep.subr.bf16.mxu0 %v22142_v37  ;;  %v22164_v1 = vld [vmem:[#allocation8 + $0x250] ss:$40 sps:$4 sm:$0xff]   ;;  %v24350_v37 = vpop.f32.mrf.mxu0 }
 0x56f   :  { %10737 = vmatprep.subr.bf16.mxu1 %v22145_v63 }
 0x571   :  { %10633 = vmatpush2.bf16.msra.mxu0 %v22140_v29  ;;  %10684 = vmatmul.mubr.bf16.vlgmr.msra.gmra.mxu1 %v24241_v14  ;;  %v10427_v63 = vpop.f32.mrf.mxu1  ;;  %v22167_v29 = vld [vmem:[#allocation8 + $0x610] ss:$40 sps:$4 sm:$0xff]  }
 0x572   :  { %10738 = vmatpush1.bf16.msra.mxu1 %v22143_v57  ;;  %10769 = vmatprep.mubr.bf16.mxu1 %v24169_v52  ;;  %v22169_v52 = vld [vmem:[#allocation8 + $0x614] ss:$40 sps:$4 sm:$0xff]   ;;  %v22172_v57 = vld [vmem:[#allocation8 + $0x204] ss:$40 sps:$4 sm:$0xff]  }
 0x573   :  { %10634 = vmatprep.subr.bf16.mxu0 %v22148_v0  ;;  %10739 = vmatprep.subr.bf16.mxu1 %v22151_v50  ;;  %v22175_v0 = vld [vmem:[#allocation8 + $0x5c4] ss:$40 sps:$4 sm:$0xff]  }
 0x575   :  { %10635 = vmatpush2.bf16.msra.mxu0 %v22146_v34 }
 0x576   :  { %10740 = vmatpush1.bf16.msra.mxu1 %v22149_v30  ;;  %10636 = vmatprep.subr.bf16.mxu0 %v22154_v17  ;;  %v22170_v30 = vld [vmem:[#allocation8 + $0x200] ss:$40 sps:$4 sm:$0xff]   ;;  %v24355_v17 = vpop.f32.mrf.mxu1 }
 0x577   :  { %10741 = vmatprep.subr.bf16.mxu1 %v22157_v54 }
 0x579   :  { %10637 = vmatpush2.bf16.msra.mxu0 %v22152_v42  ;;  %v22173_v42 = vld [vmem:[#allocation8 + $0x5c0] ss:$40 sps:$4 sm:$0xff]  }
 0x57a   :  { %10742 = vmatpush1.bf16.msra.mxu1 %v22155_v55  ;;  %10638 = vmatprep.subr.bf16.mxu0 %v22160_v58  ;;  %v22178_v55 = vld [vmem:[#allocation8 + $0x1b4] ss:$40 sps:$4 sm:$0xff]  }
 0x57b   :  { %10743 = vmatprep.subr.bf16.mxu1 %v22163_v20  ;;  %v22181_v58 = vld [vmem:[#allocation8 + $0x574] ss:$40 sps:$4 sm:$0xff]  }
 0x57d   :  { %10639 = vmatpush2.bf16.msra.mxu0 %v22158_v56 }
 0x57e   :  { %10744 = vmatpush1.bf16.msra.mxu1 %v22161_v40  ;;  %10694 = vmatprep.subr.bf16.mxu0 %v22166_v53  ;;  %v10431_v53 = vpop.f32.mrf.mxu1 }
 0x57f   :  { %10745 = vmatprep.subr.bf16.mxu1 %v22169_v52  ;;  %v22184_v52 = vld [vmem:[#allocation8 + $0x164] ss:$40 sps:$4 sm:$0xff]  }
 0x580   :  { %v10384_v50 = vpop.f32.mrf.mxu0  ;;  %10641 = vmatmul.mubr.bf16.vlgmr.msra.gmra.mxu0 %v24230_v61 }
 0x581   :  { %v10385_v34 = vadd.f32 %v10384_v50, %v24342_v27  ;;  %10695 = vmatpush1.bf16.msra.mxu0 %v22164_v1  ;;  %10726 = vmatprep.mubr.bf16.mxu0 %v24167_v46  ;;  %v22176_v27 = vld [vmem:[#allocation8 + $0x1b0] ss:$40 sps:$4 sm:$0xff]   ;;  %v22187_v1 = vld [vmem:[#allocation8 + $0x524] ss:$40 sps:$4 sm:$0xff]   ;;  %v22193_v50 = vld [vmem:[#allocation8 + $0x9d4] ss:$40 sps:$4 sm:$0xff]  }
 0x582   :  { %v24357_v54 = vpop.f32.mrf.mxu0  ;;  %10746 = vmatpush1.bf16.msra.mxu1 %v22167_v29  ;;  %10696 = vmatprep.subr.bf16.mxu0 %v22172_v57  ;;  %v22179_v46 = vld [vmem:[#allocation8 + $0x570] ss:$40 sps:$4 sm:$0xff]   ;;  %v22182_v57 = vld [vmem:[#allocation8 + $0x160] ss:$40 sps:$4 sm:$0xff]  }
 0x583   :  { %10747 = vmatprep.subr.bf16.mxu1 %v22175_v0  ;;  %v24359_v20 = vadd.f32 %v10427_v63, %v10385_v34  ;;  %v22185_v63 = vld [vmem:[#allocation8 + $0x520] ss:$40 sps:$4 sm:$0xff]   ;;  %v22190_v0 = vld [vmem:[#allocation8 + $0x114] ss:$40 sps:$4 sm:$0xff]   ;;  %v22191_v34 = vld [vmem:[#allocation8 + $0x9d0] ss:$40 sps:$4 sm:$0xff]  }
 0x584   :  { %v10388_v56 = vpop.f32.mrf.mxu0 }
 0x585   :  { %v10389_v40 = vadd.f32 %v10388_v56, %v24344_v9  ;;  %10697 = vmatpush1.bf16.msra.mxu0 %v22170_v30  ;;  %v22188_v9 = vld [vmem:[#allocation8 + $0x110] ss:$40 sps:$4 sm:$0xff]   ;;  %v22196_v30 = vld [vmem:[#allocation8 + $0xc4] ss:$40 sps:$4 sm:$0xff]   ;;  %v22202_v56 = vld [vmem:[#allocation8 + $0x74] ss:$40 sps:$4 sm:$0xff]  }
 0x586   :  { %10748 = vmatpush1.bf16.msra.mxu1 %v22173_v42  ;;  %10698 = vmatprep.subr.bf16.mxu0 %v22178_v55  ;;  %v22199_v42 = vld [vmem:[#allocation8 + $0x984] ss:$40 sps:$4 sm:$0xff]   ;;  %v22194_v55 = vld [vmem:[#allocation8 + $0xc0] ss:$40 sps:$4 sm:$0xff]  }
 0x587   :  { %10749 = vmatprep.subr.bf16.mxu1 %v22181_v58  ;;  %v24362_v29 = vadd.f32 %v10431_v53, %v10389_v40  ;;  %v22197_v58 = vld [vmem:[#allocation8 + $0x980] ss:$40 sps:$4 sm:$0xff]   ;;  %v22205_v40 = vld [vmem:[#allocation8 + $0x934] ss:$40 sps:$4 sm:$0xff]   ;;  %v22203_v53 = vld [vmem:[#allocation8 + $0x930] ss:$40 sps:$4 sm:$0xff]  }
 0x589   :  { %10699 = vmatpush1.bf16.msra.mxu0 %v22176_v27  ;;  %v22200_v27 = vld [vmem:[#allocation8 + $0x70] ss:$40 sps:$4 sm:$0xff]  }
 0x58a   :  { %10750 = vmatpush1.bf16.msra.mxu1 %v22179_v46  ;;  %10700 = vmatprep.subr.bf16.mxu0 %v22184_v52  ;;  %v22208_v46 = vld [vmem:[#allocation8 + $0x24] ss:$40 sps:$4 sm:$0xff]  }
 0x58b   :  { %10751 = vmatprep.subr.bf16.mxu1 %v22187_v1  ;;  %v22211_v52 = vld [vmem:[#allocation8 + $0x8e4] ss:$40 sps:$4 sm:$0xff]   ;;  %v22206_v1 = vld [vmem:[#allocation8 + $0x20] ss:$40 sps:$4 sm:$0xff]  }
 0x58d   :  { %10701 = vmatpush1.bf16.msra.mxu0 %v22182_v57  ;;  %v22209_v57 = vld [vmem:[#allocation8 + $0x8e0] ss:$40 sps:$4 sm:$0xff]  }
 0x58e   :  { %10752 = vmatpush1.bf16.msra.mxu1 %v22185_v63  ;;  %10702 = vmatprep.subr.bf16.mxu0 %v22190_v0  ;;  %v22214_v63 = vld [vmem:[#allocation8 + $0x4d4] ss:$40 sps:$4 sm:$0xff]  }
 0x58f   :  { %10753 = vmatprep.subr.bf16.mxu1 %v22193_v50  ;;  %v22217_v0 = vld [vmem:[#allocation8 + $0x894] ss:$40 sps:$4 sm:$0xff]   ;;  %v22212_v50 = vld [vmem:[#allocation8 + $0x4d0] ss:$40 sps:$4 sm:$0xff]  }
 0x591   :  { %10703 = vmatpush1.bf16.msra.mxu0 %v22188_v9  ;;  %v22215_v9 = vld [vmem:[#allocation8 + $0x890] ss:$40 sps:$4 sm:$0xff]  }
 0x592   :  { %10754 = vmatpush2.bf16.msra.mxu1 %v22191_v34  ;;  %10704 = vmatprep.subr.bf16.mxu0 %v22196_v30  ;;  %v22220_v34 = vld [vmem:[#allocation8 + $0x484] ss:$40 sps:$4 sm:$0xff]  }
 0x593   :  { %10755 = vmatprep.subr.bf16.mxu1 %v22199_v42  ;;  %v22223_v30 = vld [vmem:[#allocation8 + $0x844] ss:$40 sps:$4 sm:$0xff]   ;;  %v22218_v42 = vld [vmem:[#allocation8 + $0x480] ss:$40 sps:$4 sm:$0xff]  }
 0x595   :  { %10705 = vmatpush1.bf16.msra.mxu0 %v22194_v55  ;;  %v22221_v55 = vld [vmem:[#allocation8 + $0x840] ss:$40 sps:$4 sm:$0xff]  }
 0x596   :  { %10756 = vmatpush2.bf16.msra.mxu1 %v22197_v58  ;;  %10706 = vmatprep.subr.bf16.mxu0 %v22202_v56  ;;  %v22226_v58 = vld [vmem:[#allocation8 + $0x434] ss:$40 sps:$4 sm:$0xff]  }
 0x597   :  { %10757 = vmatprep.subr.bf16.mxu1 %v22205_v40  ;;  %v22229_v56 = vld [vmem:[#allocation8 + $0x7f4] ss:$40 sps:$4 sm:$0xff]   ;;  %v22224_v40 = vld [vmem:[#allocation8 + $0x430] ss:$40 sps:$4 sm:$0xff]  }
 0x599   :  { %10707 = vmatpush1.bf16.msra.mxu0 %v22200_v27  ;;  %v22227_v27 = vld [vmem:[#allocation8 + $0x7f0] ss:$40 sps:$4 sm:$0xff]  }
 0x59a   :  { %10758 = vmatpush2.bf16.msra.mxu1 %v22203_v53  ;;  %10708 = vmatprep.subr.bf16.mxu0 %v22208_v46  ;;  %v22232_v53 = vld [vmem:[#allocation8 + $0x3e4] ss:$40 sps:$4 sm:$0xff]  }
 0x59b   :  { %10759 = vmatprep.subr.bf16.mxu1 %v22211_v52  ;;  %v22235_v46 = vld [vmem:[#allocation8 + $0x7a4] ss:$40 sps:$4 sm:$0xff]   ;;  %v22230_v52 = vld [vmem:[#allocation8 + $0x3e0] ss:$40 sps:$4 sm:$0xff]  }
 0x59d   :  { %10709 = vmatpush1.bf16.msra.mxu0 %v22206_v1  ;;  %v22233_v1 = vld [vmem:[#allocation8 + $0x7a0] ss:$40 sps:$4 sm:$0xff]  }
 0x59e   :  { %10760 = vmatpush2.bf16.msra.mxu1 %v22209_v57  ;;  %10710 = vmatprep.subr.bf16.mxu0 %v22214_v63  ;;  %v22238_v57 = vld [vmem:[#allocation8 + $0x394] ss:$40 sps:$4 sm:$0xff]  }
 0x59f   :  { %10761 = vmatprep.subr.bf16.mxu1 %v22217_v0  ;;  %v22241_v63 = vld [vmem:[#allocation8 + $0x1154] ss:$40 sps:$4 sm:$0xff]   ;;  %v22236_v0 = vld [vmem:[#allocation8 + $0x390] ss:$40 sps:$4 sm:$0xff]  }
 0x5a1   :  { %10711 = vmatpush2.bf16.msra.mxu0 %v22212_v50  ;;  %v22239_v50 = vld [vmem:[#allocation8 + $0x1150] ss:$40 sps:$4 sm:$0xff]  }
 0x5a2   :  { %10762 = vmatpush2.bf16.msra.mxu1 %v22215_v9  ;;  %10712 = vmatprep.subr.bf16.mxu0 %v22220_v34  ;;  %v22244_v9 = vld [vmem:[#allocation8 + $0x344] ss:$40 sps:$4 sm:$0xff]  }
 0x5a3   :  { %10763 = vmatprep.subr.bf16.mxu1 %v22223_v30  ;;  %v22247_v34 = vld [vmem:[#allocation8 + $0x1104] ss:$40 sps:$4 sm:$0xff]   ;;  %v22242_v30 = vld [vmem:[#allocation8 + $0x340] ss:$40 sps:$4 sm:$0xff]  }
 0x5a5   :  { %10713 = vmatpush2.bf16.msra.mxu0 %v22218_v42  ;;  %v22245_v42 = vld [vmem:[#allocation8 + $0x1100] ss:$40 sps:$4 sm:$0xff]  }
 0x5a6   :  { %10764 = vmatpush2.bf16.msra.mxu1 %v22221_v55  ;;  %10714 = vmatprep.subr.bf16.mxu0 %v22226_v58  ;;  %v22250_v55 = vld [vmem:[#allocation8 + $0x2f4] ss:$40 sps:$4 sm:$0xff]  }
 0x5a7   :  { %10765 = vmatprep.subr.bf16.mxu1 %v22229_v56  ;;  %v22253_v58 = vld [vmem:[#allocation8 + $0x10b4] ss:$40 sps:$4 sm:$0xff]   ;;  %v22248_v56 = vld [vmem:[#allocation8 + $0x2f0] ss:$40 sps:$4 sm:$0xff]  }
 0x5a9   :  { %10715 = vmatpush2.bf16.msra.mxu0 %v22224_v40  ;;  %v22251_v40 = vld [vmem:[#allocation8 + $0x10b0] ss:$40 sps:$4 sm:$0xff]  }
 0x5aa   :  { %10766 = vmatpush2.bf16.msra.mxu1 %v22227_v27  ;;  %10716 = vmatprep.subr.bf16.mxu0 %v22232_v53  ;;  %v22256_v27 = vld [vmem:[#allocation8 + $0x2a4] ss:$40 sps:$4 sm:$0xff]  }
 0x5ab   :  { %10767 = vmatprep.subr.bf16.mxu1 %v22235_v46  ;;  %v22259_v53 = vld [vmem:[#allocation8 + $0x1064] ss:$40 sps:$4 sm:$0xff]   ;;  %v22254_v46 = vld [vmem:[#allocation8 + $0x2a0] ss:$40 sps:$4 sm:$0xff]  }
 0x5ad   :  { %10717 = vmatpush2.bf16.msra.mxu0 %v22230_v52  ;;  %v22262_v52 = vld [vmem:[#allocation8 + $0xc54] ss:$40 sps:$4 sm:$0xff]  }
 0x5ae   :  { %10768 = vmatpush2.bf16.msra.mxu1 %v22233_v1  ;;  %10718 = vmatprep.subr.bf16.mxu0 %v22238_v57  ;;  %v22260_v1 = vld [vmem:[#allocation8 + $0xc50] ss:$40 sps:$4 sm:$0xff]   ;;  %v24366_v57 = vpop.f32.mrf.mxu0 }
 0x5af   :  { %10823 = vmatprep.subr.bf16.mxu1 %v22241_v63  ;;  %v22263_v63 = vld [vmem:[#allocation8 + $0x1010] ss:$40 sps:$4 sm:$0xff]  }
 0x5b1   :  { %10719 = vmatpush2.bf16.msra.mxu0 %v22236_v0  ;;  %10770 = vmatmul.mubr.bf16.vlgmr.msra.gmra.mxu1 %v24100_v19  ;;  %v22257_v19 = vld [vmem:[#allocation8 + $0x1060] ss:$40 sps:$4 sm:$0xff]   ;;  %v22268_v0 = vld [vmem:[#allocation8 + $0xc04] ss:$40 sps:$4 sm:$0xff]  }
 0x5b2   :  { %10824 = vmatpush1.bf16.msra.mxu1 %v22239_v50  ;;  %10855 = vmatprep.mubr.bf16.mxu1 %v24214_v3  ;;  %v22265_v3 = vld [vmem:[#allocation8 + $0x1014] ss:$40 sps:$4 sm:$0xff]   ;;  %v22271_v50 = vld [vmem:[#allocation8 + $0xfc4] ss:$40 sps:$4 sm:$0xff]  }
 0x5b3   :  { %10720 = vmatprep.subr.bf16.mxu0 %v22244_v9  ;;  %10825 = vmatprep.subr.bf16.mxu1 %v22247_v34 }
 0x5b5   :  { %10721 = vmatpush2.bf16.msra.mxu0 %v22242_v30  ;;  %v22266_v30 = vld [vmem:[#allocation8 + $0xc00] ss:$40 sps:$4 sm:$0xff]  }
 0x5b6   :  { %10826 = vmatpush1.bf16.msra.mxu1 %v22245_v42  ;;  %10722 = vmatprep.subr.bf16.mxu0 %v22250_v55  ;;  %v22269_v55 = vld [vmem:[#allocation8 + $0xfc0] ss:$40 sps:$4 sm:$0xff]  }
 0x5b7   :  { %10827 = vmatprep.subr.bf16.mxu1 %v22253_v58  ;;  %v22274_v58 = vld [vmem:[#allocation8 + $0xbb4] ss:$40 sps:$4 sm:$0xff]  }
 0x5b9   :  { %10723 = vmatpush2.bf16.msra.mxu0 %v22248_v56  ;;  %v22277_v56 = vld [vmem:[#allocation8 + $0xf74] ss:$40 sps:$4 sm:$0xff]  }
 0x5ba   :  { %10828 = vmatpush1.bf16.msra.mxu1 %v22251_v40  ;;  %10724 = vmatprep.subr.bf16.mxu0 %v22256_v27 }
 0x5bb   :  { %10829 = vmatprep.subr.bf16.mxu1 %v22259_v53  ;;  %v22272_v53 = vld [vmem:[#allocation8 + $0xbb0] ss:$40 sps:$4 sm:$0xff]  }
 0x5bd   :  { %10725 = vmatpush2.bf16.msra.mxu0 %v22254_v46 }
 0x5be   :  { %10830 = vmatpush1.bf16.msra.mxu1 %v22257_v19  ;;  %10780 = vmatprep.subr.bf16.mxu0 %v22262_v52  ;;  %v22283_v19 = vld [vmem:[#allocation8 + $0xf24] ss:$40 sps:$4 sm:$0xff]  }
 0x5bf   :  { %10831 = vmatprep.subr.bf16.mxu1 %v22265_v3  ;;  %v22278_v3 = vld [vmem:[#allocation8 + $0xb60] ss:$40 sps:$4 sm:$0xff]  }
 0x5c0   :  { %v10470_v9 = vpop.f32.mrf.mxu0  ;;  %10727 = vmatmul.mubr.bf16.vlgmr.msra.gmra.mxu0 %v24064_v44  ;;  %v22275_v44 = vld [vmem:[#allocation8 + $0xf70] ss:$40 sps:$4 sm:$0xff]  }
 0x5c1   :  { %v10471_v34 = vadd.f32 %v10470_v9, %v24359_v20  ;;  %10781 = vmatpush1.bf16.msra.mxu0 %v22260_v1  ;;  %10812 = vmatprep.mubr.bf16.mxu0 %v24201_v49  ;;  %v22280_v20 = vld [vmem:[#allocation8 + $0xb64] ss:$40 sps:$4 sm:$0xff]   ;;  %v22281_v1 = vld [vmem:[#allocation8 + $0xf20] ss:$40 sps:$4 sm:$0xff]  }
 0x5c2   :  { %v24371_v42 = vpop.f32.mrf.mxu0  ;;  %10832 = vmatpush1.bf16.msra.mxu1 %v22263_v63  ;;  %10782 = vmatprep.subr.bf16.mxu0 %v22268_v0  ;;  %v22286_v63 = vld [vmem:[#allocation8 + $0xb14] ss:$40 sps:$4 sm:$0xff]   ;;  %v22284_v0 = vld [vmem:[#allocation8 + $0xb10] ss:$40 sps:$4 sm:$0xff]   ;;  %v22292_v9 = vld [vmem:[#allocation8 + $0xac4] ss:$40 sps:$4 sm:$0xff]  }
 0x5c3   :  { %10833 = vmatprep.subr.bf16.mxu1 %v22271_v50  ;;  %v10913_v46 = vmax.f32 %v10471_v34, 0.0  ;;  %v22287_v50 = vld [vmem:[#allocation8 + $0x13d0] ss:$40 sps:$4 sm:$0xff]   ;;  %v22295_v34 = vld [vmem:[#allocation8 + $0x1384] ss:$40 sps:$4 sm:$0xff]  }
 0x5c4   :  { %v10474_v40 = vpop.f32.mrf.mxu0 }
 0x5c5   :  { %v10475_v27 = vadd.f32 %v10474_v40, %v24362_v29  ;;  %10783 = vmatpush1.bf16.msra.mxu0 %v22266_v30  ;;  %v22289_v29 = vld [vmem:[#allocation8 + $0x13d4] ss:$40 sps:$4 sm:$0xff]   ;;  %v22290_v30 = vld [vmem:[#allocation8 + $0xac0] ss:$40 sps:$4 sm:$0xff]   ;;  %v22296_v40 = vld [vmem:[#allocation8 + $0xa70] ss:$40 sps:$4 sm:$0xff]  }
 0x5c6   :  { %10834 = vmatpush1.bf16.msra.mxu1 %v22269_v55  ;;  %10784 = vmatprep.subr.bf16.mxu0 %v22274_v58  ;;  %v22293_v55 = vld [vmem:[#allocation8 + $0x1380] ss:$40 sps:$4 sm:$0xff]   ;;  %v22298_v58 = vld [vmem:[#allocation8 + $0xa74] ss:$40 sps:$4 sm:$0xff]  }
 0x5c7   :  { %v10923_v49 = vmax.f32 %v10475_v27, 0.0  ;;  %10835 = vmatprep.subr.bf16.mxu1 %v22277_v56  ;;  %v22301_v56 = vld [vmem:[#allocation8 + $0x1334] ss:$40 sps:$4 sm:$0xff]   ;;  %v22299_v27 = vld [vmem:[#allocation8 + $0x1330] ss:$40 sps:$4 sm:$0xff]  }
 0x5c9   :  { %v24374_v52 = vpack.c.bf16 %v10923_v49, %v10913_v46  ;;  %10785 = vmatpush1.bf16.msra.mxu0 %v22272_v53  ;;  %v22304_v53 = vld [vmem:[#allocation8 + $0xa24] ss:$40 sps:$4 sm:$0xff]   ;;  %v5791_v46 = vrot.slane %v24330_v4, %v24142_v38  ;;  %v22305_v49 = vld [vmem:[#allocation8 + $0x12e0] ss:$40 sps:$4 sm:$0xff]  }
 0x5ca   :  { %10836 = vmatpush1.bf16.msra.mxu1 %v22275_v44  ;;  %10786 = vmatprep.subr.bf16.mxu0 %v22280_v20  ;;  %v22307_v44 = vld [vmem:[#allocation8 + $0x12e4] ss:$40 sps:$4 sm:$0xff]   ;;  %v22302_v20 = vld [vmem:[#allocation8 + $0xa20] ss:$40 sps:$4 sm:$0xff]  }
 0x5cb   :  { %10837 = vmatprep.subr.bf16.mxu1 %v22283_v19  ;;  %v22310_v19 = vld [vmem:[#allocation8 + $0xed4] ss:$40 sps:$4 sm:$0xff]  }
 0x5cd   :  { %10787 = vmatpush1.bf16.msra.mxu0 %v22278_v3  ;;  %v22313_v3 = vld [vmem:[#allocation8 + $0x1294] ss:$40 sps:$4 sm:$0xff]  }
 0x5ce   :  { %10838 = vmatpush1.bf16.msra.mxu1 %v22281_v1  ;;  %10788 = vmatprep.subr.bf16.mxu0 %v22286_v63  ;;  %v9875_v1 = vadd.f32 %v24259_v35, %v5791_v46  ;;  %v22308_v63 = vld [vmem:[#allocation8 + $0xed0] ss:$40 sps:$4 sm:$0xff]   ;;  %v22317_v35 = vld [vmem:[#allocation8 + $0x1240] ss:$40 sps:$4 sm:$0xff]  }
 0x5cf   :  { %10839 = vmatprep.subr.bf16.mxu1 %v22289_v29  ;;  %v9871_v29 = vadd.f32 %v24249_v23, %v5791_v46  ;;  %v22325_v23 = vld [vmem:[#allocation8 + $0x11f4] ss:$40 sps:$4 sm:$0xff]   ;;  %v22326_v46 = vld [vmem:[#allocation8 + $0xde0] ss:$40 sps:$4 sm:$0xff]  }
 0x5d1   :  { %10789 = vmatpush1.bf16.msra.mxu0 %v22284_v0  ;;  %v22311_v0 = vld [vmem:[#allocation8 + $0x1290] ss:$40 sps:$4 sm:$0xff]  }
 0x5d2   :  { %10840 = vmatpush2.bf16.msra.mxu1 %v22287_v50  ;;  %10790 = vmatprep.subr.bf16.mxu0 %v22292_v9  ;;  %v22316_v50 = vld [vmem:[#allocation8 + $0xe84] ss:$40 sps:$4 sm:$0xff]  }
 0x5d3   :  { %10841 = vmatprep.subr.bf16.mxu1 %v22295_v34  ;;  %v22319_v9 = vld [vmem:[#allocation8 + $0x1244] ss:$40 sps:$4 sm:$0xff]   ;;  %v9918_v34 = vadd.f32 %v24261_v47, %v9875_v1  ;;  %v22323_v47 = vld [vmem:[#allocation8 + $0x11f0] ss:$40 sps:$4 sm:$0xff]  }
 0x5d4   :  { %v22332_v1 = vld [vmem:[#allocation8 + $0xd90] ss:$40 sps:$4 sm:$0xff]  }
 0x5d5   :  { %10791 = vmatpush1.bf16.msra.mxu0 %v22290_v30  ;;  %v22314_v30 = vld [vmem:[#allocation8 + $0xe80] ss:$40 sps:$4 sm:$0xff]  }
 0x5d6   :  { %10842 = vmatpush2.bf16.msra.mxu1 %v22293_v55  ;;  %10792 = vmatprep.subr.bf16.mxu0 %v22298_v58  ;;  %v9914_v55 = vadd.f32 %v24253_v28, %v9871_v29  ;;  %v9961_v58 = vadd.f32 %v24279_v33, %v9918_v34  ;;  %v22331_v28 = vld [vmem:[#allocation8 + $0x11a4] ss:$40 sps:$4 sm:$0xff]   ;;  %v24388_v29 = vpop.f32.mrf.mxu1 }
 0x5d7   :  { %10843 = vmatprep.subr.bf16.mxu1 %v22301_v56  ;;  %v22322_v56 = vld [vmem:[#allocation8 + $0xe34] ss:$40 sps:$4 sm:$0xff]  }
 0x5d8   :  { %v22341_v34 = vld [vmem:[#allocation11 + $0x1e0] ss:$40 sps:$4 sm:$0xff]  }
 0x5d9   :  { %10793 = vmatpush1.bf16.msra.mxu0 %v22296_v40  ;;  %v9957_v40 = vadd.f32 %v24266_v10, %v9914_v55  ;;  %v22329_v10 = vld [vmem:[#allocation8 + $0x11a0] ss:$40 sps:$4 sm:$0xff]  }
 0x5da   :  { %10844 = vmatpush2.bf16.msra.mxu1 %v22299_v27  ;;  %10794 = vmatprep.subr.bf16.mxu0 %v22304_v53  ;;  %v22320_v27 = vld [vmem:[#allocation8 + $0xe30] ss:$40 sps:$4 sm:$0xff]   ;;  %v10004_v53 = vadd.f32 %v24289_v59, %v9961_v58  ;;  %v22337_v59 = vld [vmem:[#allocation11 + $0x234] ss:$40 sps:$4 sm:$0xff]  }
 0x5db   :  { %10845 = vmatprep.subr.bf16.mxu1 %v22307_v44  ;;  %v22328_v44 = vld [vmem:[#allocation8 + $0xde4] ss:$40 sps:$4 sm:$0xff]   ;;  %v10000_v33 = vadd.f32 %v24270_v18, %v9957_v40 }
 0x5dc   :  { %v22335_v18 = vld [vmem:[#allocation11 + $0x230] ss:$40 sps:$4 sm:$0xff]   ;;  %v22349_v55 = vld [vmem:[#allocation11 + $0x194] ss:$40 sps:$4 sm:$0xff]   ;;  %v22355_v40 = vld [vmem:[#allocation11 + $0x144] ss:$40 sps:$4 sm:$0xff]  }
 0x5dd   :  { %10795 = vmatpush1.bf16.msra.mxu0 %v22302_v20  ;;  %v10047_v20 = vadd.f32 %v24298_v36, %v10004_v53  ;;  %v22340_v36 = vld [vmem:[#allocation8 + $0xd44] ss:$40 sps:$4 sm:$0xff]  }
 0x5de   :  { %10846 = vmatpush2.bf16.msra.mxu1 %v22305_v49  ;;  %10796 = vmatprep.subr.bf16.mxu0 %v22310_v19  ;;  %v10043_v49 = vadd.f32 %v24284_v26, %v10000_v33  ;;  %v22334_v19 = vld [vmem:[#allocation8 + $0xd94] ss:$40 sps:$4 sm:$0xff]   ;;  %v10513_v26 = vpop.f32.mrf.mxu1 }
 0x5df   :  { %10847 = vmatprep.subr.bf16.mxu1 %v22313_v3  ;;  %v10920_v3 = vmax.f32 %v10047_v20, 0.0  ;;  %v22353_v53 = vld [vmem:[#allocation11 + $0x140] ss:$40 sps:$4 sm:$0xff]  }
 0x5e0   :  { %v24394_v58 = vpop.f32.mrf.mxu1  ;;  %v22356_v20 = vld [vmem:[#allocation8 + $0x1650] ss:$40 sps:$4 sm:$0xff]  }
 0x5e1   :  { %10797 = vmatpush2.bf16.msra.mxu0 %v22308_v63  ;;  %v10910_v63 = vmax.f32 %v10043_v49, 0.0 }
 0x5e2   :  { %10848 = vmatpush2.bf16.msra.mxu1 %v22311_v0  ;;  %10798 = vmatprep.subr.bf16.mxu0 %v22316_v50  ;;  %v22343_v0 = vld [vmem:[#allocation11 + $0x1e4] ss:$40 sps:$4 sm:$0xff]  }
 0x5e3   :  { %10849 = vmatprep.subr.bf16.mxu1 %v22319_v9  ;;  %v24390_v50 = vpack.c.bf16 %v10920_v3, %v10910_v63  ;;  %v22338_v9 = vld [vmem:[#allocation8 + $0xd40] ss:$40 sps:$4 sm:$0xff]   ;;  %v22367_v3 = vld [vmem:[#allocation11 + $0xa4] ss:$40 sps:$4 sm:$0xff]  }
 0x5e4   :  { %v22362_v63 = vld [vmem:[#allocation8 + $0x1600] ss:$40 sps:$4 sm:$0xff]  }
 0x5e5   :  { %10799 = vmatpush2.bf16.msra.mxu0 %v22314_v30  ;;  %v22346_v30 = vld [vmem:[#allocation8 + $0xcf4] ss:$40 sps:$4 sm:$0xff]  }
 0x5e6   :  { %10850 = vmatpush2.bf16.msra.mxu1 %v22317_v35  ;;  %10800 = vmatprep.subr.bf16.mxu0 %v22322_v56  ;;  %v22344_v35 = vld [vmem:[#allocation8 + $0xcf0] ss:$40 sps:$4 sm:$0xff]  }
 0x5e7   :  { %10851 = vmatprep.subr.bf16.mxu1 %v22325_v23  ;;  %v22347_v56 = vld [vmem:[#allocation11 + $0x190] ss:$40 sps:$4 sm:$0xff]  }
 0x5e8   :  { %v22352_v23 = vld [vmem:[#allocation8 + $0xca4] ss:$40 sps:$4 sm:$0xff]  }
 0x5e9   :  { %10801 = vmatpush2.bf16.msra.mxu0 %v22320_v27  ;;  %v22350_v27 = vld [vmem:[#allocation8 + $0xca0] ss:$40 sps:$4 sm:$0xff]  }
 0x5ea   :  { %10852 = vmatpush2.bf16.msra.mxu1 %v22323_v47  ;;  %10802 = vmatprep.subr.bf16.mxu0 %v22328_v44  ;;  %v22358_v47 = vld [vmem:[#allocation8 + $0x1654] ss:$40 sps:$4 sm:$0xff]   ;;  %v5811_v44 = vrot.slane %v24330_v4, %v24218_v62 }
 0x5eb   :  { %10853 = vmatprep.subr.bf16.mxu1 %v22331_v28  ;;  %v22361_v28 = vld [vmem:[#allocation11 + $0xf4] ss:$40 sps:$4 sm:$0xff]  }
 0x5ed   :  { %10803 = vmatpush2.bf16.msra.mxu0 %v22326_v46  ;;  %v24400_v46 = vpop.f32.mrf.mxu0 }
 0x5ee   :  { %10854 = vmatpush2.bf16.msra.mxu1 %v22329_v10  ;;  %10804 = vmatprep.subr.bf16.mxu0 %v22334_v19  ;;  %v22359_v10 = vld [vmem:[#allocation11 + $0xf0] ss:$40 sps:$4 sm:$0xff]  }
 0x5ef   :  { %15793 = vmatprep.subr.bf16.mxu1 %v22337_v59  ;;  %v22364_v19 = vld [vmem:[#allocation8 + $0x1604] ss:$40 sps:$4 sm:$0xff]   ;;  %v10514_v59 = vadd.f32 %v10513_v26, %v5811_v44 }
 0x5f0   :  { %v22373_v26 = vld [vmem:[#allocation11 + $0x54] ss:$40 sps:$4 sm:$0xff]  }
 0x5f1   :  { %10805 = vmatpush2.bf16.msra.mxu0 %v22332_v1  ;;  %10856 = vmatmul.mubr.bf16.vlgmr.msra.gmra.mxu1 %v24230_v61  ;;  %v10517_v61 = vpop.f32.mrf.mxu1 }
 0x5f2   :  { %15794 = vmatpush1.bf16.msra.mxu1 %v22335_v18  ;;  %15825 = vmatprep.mubr.bf16.mxu1 %v24390_v50 }
 0x5f3   :  { %10806 = vmatprep.subr.bf16.mxu0 %v22340_v36  ;;  %15795 = vmatprep.subr.bf16.mxu1 %v22343_v0  ;;  %v24398_v33 = vpop.f32.mrf.mxu1  ;;  %v22365_v0 = vld [vmem:[#allocation11 + $0xa0] ss:$40 sps:$4 sm:$0xff]  }
 0x5f5   :  { %10807 = vmatpush2.bf16.msra.mxu0 %v22338_v9  ;;  %v10599_v49 = vpop.f32.mrf.mxu1  ;;  %v22370_v9 = vld [vmem:[#allocation8 + $0x15b4] ss:$40 sps:$4 sm:$0xff]  }
 0x5f6   :  { %15796 = vmatpush1.bf16.msra.mxu1 %v22341_v34  ;;  %10808 = vmatprep.subr.bf16.mxu0 %v22346_v30  ;;  %v10518_v34 = vadd.f32 %v10517_v61, %v5811_v44  ;;  %v22377_v61 = vld [vmem:[#allocation11] ss:$40 sps:$4 sm:$0xff]   ;;  %v22385_v44 = vld [vmem:[#allocation11 + $0x4b4] ss:$40 sps:$4 sm:$0xff]  }
 0x5f7   :  { %15797 = vmatprep.subr.bf16.mxu1 %v22349_v55  ;;  %v24404_v18 = vpop.f32.mrf.mxu1 }
 0x5f9   :  { %10809 = vmatpush2.bf16.msra.mxu0 %v22344_v35  ;;  %v22368_v35 = vld [vmem:[#allocation8 + $0x15b0] ss:$40 sps:$4 sm:$0xff]  }
 0x5fa   :  { %15798 = vmatpush1.bf16.msra.mxu1 %v22347_v56  ;;  %10810 = vmatprep.subr.bf16.mxu0 %v22352_v23  ;;  %v10603_v56 = vpop.f32.mrf.mxu1  ;;  %v22376_v23 = vld [vmem:[#allocation8 + $0x1564] ss:$40 sps:$4 sm:$0xff]  }
 0x5fb   :  { %15799 = vmatprep.subr.bf16.mxu1 %v22355_v40  ;;  %v22379_v40 = vld [vmem:[#allocation11 + $0x4] ss:$40 sps:$4 sm:$0xff]  }
 0x5fd   :  { %10811 = vmatpush2.bf16.msra.mxu0 %v22350_v27 }
 0x5fe   :  { %15800 = vmatpush1.bf16.msra.mxu1 %v22353_v53  ;;  %10866 = vmatprep.subr.bf16.mxu0 %v22358_v47  ;;  %v22374_v53 = vld [vmem:[#allocation8 + $0x1560] ss:$40 sps:$4 sm:$0xff]   ;;  %v22382_v47 = vld [vmem:[#allocation8 + $0x1514] ss:$40 sps:$4 sm:$0xff]  }
 0x5ff   :  { %15801 = vmatprep.subr.bf16.mxu1 %v22361_v28  ;;  %v22380_v28 = vld [vmem:[#allocation8 + $0x1510] ss:$40 sps:$4 sm:$0xff]  }
 0x600   :  { %v10556_v1 = vpop.f32.mrf.mxu0  ;;  %10813 = vmatmul.mubr.bf16.vlgmr.msra.gmra.mxu0 %v24139_v41 }
 0x601   :  { %v10557_v4 = vadd.f32 %v10556_v1, %v10514_v59  ;;  %10867 = vmatpush1.bf16.msra.mxu0 %v22356_v20  ;;  %10898 = vmatprep.mubr.bf16.mxu0 %v24239_v7  ;;  %v22371_v7 = vld [vmem:[#allocation11 + $0x50] ss:$40 sps:$4 sm:$0xff]   ;;  %v22389_v59 = vld [vmem:[#allocation11 + $0x460] ss:$40 sps:$4 sm:$0xff]   ;;  %v22397_v1 = vld [vmem:[#allocation11 + $0x414] ss:$40 sps:$4 sm:$0xff]  }
 0x602   :  { %v24406_v36 = vpop.f32.mrf.mxu0  ;;  %15802 = vmatpush1.bf16.msra.mxu1 %v22359_v10  ;;  %10868 = vmatprep.subr.bf16.mxu0 %v22364_v19  ;;  %v22383_v20 = vld [vmem:[#allocation11 + $0x4b0] ss:$40 sps:$4 sm:$0xff]   ;;  %v22391_v10 = vld [vmem:[#allocation11 + $0x464] ss:$40 sps:$4 sm:$0xff]  }
 0x603   :  { %15803 = vmatprep.subr.bf16.mxu1 %v22367_v3  ;;  %v24408_v30 = vadd.f32 %v10599_v49, %v10557_v4  ;;  %v22388_v49 = vld [vmem:[#allocation8 + $0x14c4] ss:$40 sps:$4 sm:$0xff]   ;;  %v22386_v19 = vld [vmem:[#allocation8 + $0x14c0] ss:$40 sps:$4 sm:$0xff]   ;;  %v22394_v3 = vld [vmem:[#allocation8 + $0x1474] ss:$40 sps:$4 sm:$0xff]  }
 0x604   :  { %v10560_v55 = vpop.f32.mrf.mxu0  ;;  %v22392_v4 = vld [vmem:[#allocation8 + $0x1470] ss:$40 sps:$4 sm:$0xff]  }
 0x605   :  { %v10561_v41 = vadd.f32 %v10560_v55, %v10518_v34  ;;  %10869 = vmatpush1.bf16.msra.mxu0 %v22362_v63  ;;  %v22395_v63 = vld [vmem:[#allocation11 + $0x410] ss:$40 sps:$4 sm:$0xff]  }
 0x606   :  { %15804 = vmatpush1.bf16.msra.mxu1 %v22365_v0  ;;  %10870 = vmatprep.subr.bf16.mxu0 %v22370_v9  ;;  %v22400_v0 = vld [vmem:[#allocation8 + $0x1424] ss:$40 sps:$4 sm:$0xff]   ;;  %v22398_v34 = vld [vmem:[#allocation8 + $0x1420] ss:$40 sps:$4 sm:$0xff]  }
 0x607   :  { %15805 = vmatprep.subr.bf16.mxu1 %v22373_v26  ;;  %v24410_v27 = vadd.f32 %v10603_v56, %v10561_v41  ;;  %v22403_v9 = vld [vmem:[#allocation11 + $0x3c4] ss:$40 sps:$4 sm:$0xff]   ;;  %v24412_v26 = vld [vmem:[#allocation10] sm:$0xff]  ;;  %v22401_v41 = vld [vmem:[#allocation11 + $0x3c0] ss:$40 sps:$4 sm:$0xff]  }
 0x608   :  { %v5807_v55 = vrot.slane %v24412_v26, %v24176_v32  ;;  %v22409_v56 = vld [vmem:[#allocation11 + $0x374] ss:$40 sps:$4 sm:$0xff]  }
 0x609   :  { %10871 = vmatpush1.bf16.msra.mxu0 %v22368_v35  ;;  %v22406_v35 = vld [vmem:[#allocation8 + $0x18d4] ss:$40 sps:$4 sm:$0xff]  }
 0x60a   :  { %15806 = vmatpush1.bf16.msra.mxu1 %v22371_v7  ;;  %10872 = vmatprep.subr.bf16.mxu0 %v22376_v23  ;;  %v10305_v7 = vadd.f32 %v24350_v37, %v5807_v55  ;;  %v22404_v23 = vld [vmem:[#allocation8 + $0x18d0] ss:$40 sps:$4 sm:$0xff]  }
 0x60b   :  { %15807 = vmatprep.subr.bf16.mxu1 %v22379_v40  ;;  %v10301_v40 = vadd.f32 %v24340_v24, %v5807_v55  ;;  %v22413_v37 = vld [vmem:[#allocation11 + $0x320] ss:$40 sps:$4 sm:$0xff]   ;;  %v22421_v24 = vld [vmem:[#allocation11 + $0x2d4] ss:$40 sps:$4 sm:$0xff]  }
 0x60c   :  { %v22433_v55 = vld [vmem:[#allocation11 + $0xc34] ss:$40 sps:$4 sm:$0xff]  }
 0x60d   :  { %10873 = vmatpush1.bf16.msra.mxu0 %v22374_v53  ;;  %v22407_v53 = vld [vmem:[#allocation11 + $0x370] ss:$40 sps:$4 sm:$0xff]  }
 0x60e   :  { %15808 = vmatpush1.bf16.msra.mxu1 %v22377_v61  ;;  %10874 = vmatprep.subr.bf16.mxu0 %v22382_v47  ;;  %v22412_v61 = vld [vmem:[#allocation8 + $0x1884] ss:$40 sps:$4 sm:$0xff]  }
 0x60f   :  { %15809 = vmatprep.subr.bf16.mxu1 %v22385_v44  ;;  %v22415_v47 = vld [vmem:[#allocation11 + $0x324] ss:$40 sps:$4 sm:$0xff]   ;;  %v10348_v44 = vadd.f32 %v24348_v12, %v10305_v7  ;;  %v22419_v12 = vld [vmem:[#allocation11 + $0x2d0] ss:$40 sps:$4 sm:$0xff]  }
 0x610   :  { %v22431_v7 = vld [vmem:[#allocation11 + $0xc30] ss:$40 sps:$4 sm:$0xff]  }
 0x611   :  { %10875 = vmatpush1.bf16.msra.mxu0 %v22380_v28  ;;  %v22410_v28 = vld [vmem:[#allocation8 + $0x1880] ss:$40 sps:$4 sm:$0xff]  }
 0x612   :  { %15810 = vmatpush2.bf16.msra.mxu1 %v22383_v20  ;;  %10876 = vmatprep.subr.bf16.mxu0 %v22388_v49  ;;  %v10344_v20 = vadd.f32 %v24338_v13, %v10301_v40  ;;  %v10391_v49 = vadd.f32 %v24366_v57, %v10348_v44  ;;  %v22427_v13 = vld [vmem:[#allocation11 + $0x284] ss:$40 sps:$4 sm:$0xff]   ;;  %v22445_v44 = vld [vmem:[#allocation11 + $0xb94] ss:$40 sps:$4 sm:$0xff]  }
 0x613   :  { %15811 = vmatprep.subr.bf16.mxu1 %v22391_v10  ;;  %v22418_v10 = vld [vmem:[#allocation8 + $0x1834] ss:$40 sps:$4 sm:$0xff]  }
 0x614   :  { %v22439_v40 = vld [vmem:[#allocation11 + $0xbe4] ss:$40 sps:$4 sm:$0xff]  }
 0x615   :  { %10877 = vmatpush1.bf16.msra.mxu0 %v22386_v19  ;;  %v10387_v19 = vadd.f32 %v24357_v54, %v10344_v20  ;;  %v22443_v20 = vld [vmem:[#allocation11 + $0xb90] ss:$40 sps:$4 sm:$0xff]  }
 0x616   :  { %15812 = vmatpush2.bf16.msra.mxu1 %v22389_v59  ;;  %10878 = vmatprep.subr.bf16.mxu0 %v22394_v3  ;;  %v22416_v59 = vld [vmem:[#allocation8 + $0x1830] ss:$40 sps:$4 sm:$0xff]   ;;  %v10434_v3 = vadd.f32 %v24388_v29, %v10391_v49  ;;  %v22448_v49 = vld [vmem:[#allocation8 + $0x16a4] ss:$40 sps:$4 sm:$0xff]  }
 0x617   :  { %15813 = vmatprep.subr.bf16.mxu1 %v22397_v1  ;;  %v22424_v1 = vld [vmem:[#allocation8 + $0x17e4] ss:$40 sps:$4 sm:$0xff]   ;;  %v10430_v57 = vadd.f32 %v24355_v17, %v10387_v19 }
 0x618   :  { %v22425_v29 = vld [vmem:[#allocation11 + $0x280] ss:$40 sps:$4 sm:$0xff]   ;;  %v22454_v19 = vld [vmem:[#allocation11 + $0x734] ss:$40 sps:$4 sm:$0xff]  }
 0x619   :  { %10879 = vmatpush1.bf16.msra.mxu0 %v22392_v4  ;;  %v10477_v4 = vadd.f32 %v24400_v46, %v10434_v3  ;;  %v10473_v54 = vadd.f32 %v24371_v42, %v10430_v57  ;;  %v24442_v3 = vpop.f32.mrf.mxu1  ;;  %v22460_v57 = vld [vmem:[#allocation11 + $0x6e4] ss:$40 sps:$4 sm:$0xff]  }
 0x61a   :  { %15814 = vmatpush2.bf16.msra.mxu1 %v22395_v63  ;;  %10880 = vmatprep.subr.bf16.mxu0 %v22400_v0  ;;  %v5799_v63 = vrot.slane %v24412_v26, %v24145_v48  ;;  %v22422_v0 = vld [vmem:[#allocation8 + $0x17e0] ss:$40 sps:$4 sm:$0xff]  }
 0x61b   :  { %15815 = vmatprep.subr.bf16.mxu1 %v22403_v9  ;;  %v22430_v9 = vld [vmem:[#allocation8 + $0x1794] ss:$40 sps:$4 sm:$0xff]  }
 0x61c   :  { %v10086_v17 = vadd.f32 %v24293_v51, %v5799_v63  ;;  %v22434_v51 = vld [vmem:[#allocation8 + $0x1740] ss:$40 sps:$4 sm:$0xff]  }
 0x61d   :  { %10881 = vmatpush1.bf16.msra.mxu0 %v22398_v34  ;;  %v10090_v34 = vadd.f32 %v24296_v11, %v5799_v63  ;;  %v22463_v63 = vld [vmem:[#allocation11 + $0xaa4] ss:$40 sps:$4 sm:$0xff]  }
 0x61e   :  { %15816 = vmatpush2.bf16.msra.mxu1 %v22401_v41  ;;  %10882 = vmatprep.subr.bf16.mxu0 %v22406_v35  ;;  %v10924_v41 = vmax.f32 %v10477_v4, 0.0  ;;  %v22428_v35 = vld [vmem:[#allocation8 + $0x1790] ss:$40 sps:$4 sm:$0xff]   ;;  %v10129_v42 = vadd.f32 %v24304_v16, %v10086_v17 }
 0x61f   :  { %15817 = vmatprep.subr.bf16.mxu1 %v22409_v56  ;;  %v10133_v46 = vadd.f32 %v24314_v45, %v10090_v34  ;;  %v10914_v56 = vmax.f32 %v10473_v54, 0.0  ;;  %v22437_v45 = vld [vmem:[#allocation11 + $0xbe0] ss:$40 sps:$4 sm:$0xff]  }
 0x621   :  { %10883 = vmatpush2.bf16.msra.mxu0 %v22404_v23  ;;  %v22436_v23 = vld [vmem:[#allocation8 + $0x1744] ss:$40 sps:$4 sm:$0xff]   ;;  %v10176_v11 = vadd.f32 %v24312_v25, %v10133_v46  ;;  %v22440_v25 = vld [vmem:[#allocation8 + $0x16f0] ss:$40 sps:$4 sm:$0xff]  }
 0x622   :  { %15818 = vmatpush2.bf16.msra.mxu1 %v22407_v53  ;;  %10884 = vmatprep.subr.bf16.mxu0 %v22412_v61  ;;  %v24432_v53 = vpack.c.bf16 %v10924_v41, %v10914_v56  ;;  %v22442_v61 = vld [vmem:[#allocation8 + $0x16f4] ss:$40 sps:$4 sm:$0xff]  }
 0x623   :  { %15819 = vmatprep.subr.bf16.mxu1 %v22415_v47  ;;  %v10172_v47 = vadd.f32 %v24302_v8, %v10129_v42  ;;  %v10219_v16 = vadd.f32 %v24334_v22, %v10176_v11  ;;  %v22446_v8 = vld [vmem:[#allocation8 + $0x16a0] ss:$40 sps:$4 sm:$0xff]   ;;  %v22472_v42 = vld [vmem:[#allocation11 + $0x644] ss:$40 sps:$4 sm:$0xff]  }
 0x624   :  { %v22449_v22 = vld [vmem:[#allocation11 + $0xb40] ss:$40 sps:$4 sm:$0xff]   ;;  %v22466_v41 = vld [vmem:[#allocation11 + $0x694] ss:$40 sps:$4 sm:$0xff]  }
 0x625   :  { %10885 = vmatpush2.bf16.msra.mxu0 %v22410_v28  ;;  %v10215_v28 = vadd.f32 %v24321_v15, %v10172_v47  ;;  %v22457_v15 = vld [vmem:[#allocation11 + $0xaf4] ss:$40 sps:$4 sm:$0xff]  }
 0x626   :  { %15820 = vmatpush2.bf16.msra.mxu1 %v22413_v37  ;;  %10886 = vmatprep.subr.bf16.mxu0 %v22418_v10  ;;  %v10262_v37 = vadd.f32 %v24328_v5, %v10219_v16  ;;  %v22451_v10 = vld [vmem:[#allocation11 + $0xb44] ss:$40 sps:$4 sm:$0xff]   ;;  %v22469_v46 = vld [vmem:[#allocation11 + $0xa54] ss:$40 sps:$4 sm:$0xff]  }
 0x627   :  { %15821 = vmatprep.subr.bf16.mxu1 %v22421_v24  ;;  %v10258_v24 = vadd.f32 %v24319_v21, %v10215_v28  ;;  %v22455_v21 = vld [vmem:[#allocation11 + $0xaf0] ss:$40 sps:$4 sm:$0xff]   ;;  %v22478_v47 = vld [vmem:[#allocation11 + $0x5f4] ss:$40 sps:$4 sm:$0xff]  }
 0x628   :  { %v22479_v28 = vld [vmem:[#allocation11 + $0xeb0] ss:$40 sps:$4 sm:$0xff]  }
 0x629   :  { %10887 = vmatpush2.bf16.msra.mxu0 %v22416_v59  ;;  %v10922_v59 = vmax.f32 %v10262_v37, 0.0  ;;  %v22485_v37 = vld [vmem:[#allocation11 + $0xe60] ss:$40 sps:$4 sm:$0xff]  }
 0x62a   :  { %15822 = vmatpush2.bf16.msra.mxu1 %v22419_v12  ;;  %10888 = vmatprep.subr.bf16.mxu0 %v22424_v1  ;;  %v10912_v12 = vmax.f32 %v10258_v24, 0.0  ;;  %v22452_v1 = vld [vmem:[#allocation11 + $0x730] ss:$40 sps:$4 sm:$0xff]   ;;  %v22493_v24 = vld [vmem:[#allocation11 + $0xe14] ss:$40 sps:$4 sm:$0xff]  }
 0x62b   :  { %15823 = vmatprep.subr.bf16.mxu1 %v22427_v13  ;;  %v24444_v13 = vpop.f32.mrf.mxu0 }
 0x62c   :  { %v24446_v4 = vpack.c.bf16 %v10922_v59, %v10912_v12  ;;  %v22499_v59 = vld [vmem:[#allocation11 + $0xdc4] ss:$40 sps:$4 sm:$0xff]   ;;  %v22497_v12 = vld [vmem:[#allocation11 + $0xdc0] ss:$40 sps:$4 sm:$0xff]  }
 0x62d   :  { %10889 = vmatpush2.bf16.msra.mxu0 %v22422_v0 }
 0x62e   :  { %15824 = vmatpush2.bf16.msra.mxu1 %v22425_v29  ;;  %10890 = vmatprep.subr.bf16.mxu0 %v22430_v9  ;;  %v22458_v29 = vld [vmem:[#allocation11 + $0x6e0] ss:$40 sps:$4 sm:$0xff]  }
 0x62f   :  { %15879 = vmatprep.subr.bf16.mxu1 %v22433_v55  ;;  %v22461_v55 = vld [vmem:[#allocation11 + $0xaa0] ss:$40 sps:$4 sm:$0xff]  }
 0x631   :  { %10891 = vmatpush2.bf16.msra.mxu0 %v22428_v35  ;;  %15826 = vmatmul.mubr.bf16.vlgmr.msra.gmra.mxu1 %v24287_v6  ;;  %v10685_v5 = vpop.f32.mrf.mxu1 }
 0x632   :  { %15880 = vmatpush1.bf16.msra.mxu1 %v22431_v7  ;;  %15911 = vmatprep.mubr.bf16.mxu1 %v24432_v53  ;;  %v22467_v7 = vld [vmem:[#allocation11 + $0xa50] ss:$40 sps:$4 sm:$0xff]  }
 0x633   :  { %10892 = vmatprep.subr.bf16.mxu0 %v22436_v23  ;;  %15881 = vmatprep.subr.bf16.mxu1 %v22439_v40  ;;  %v24451_v9 = vpop.f32.mrf.mxu1  ;;  %v22475_v40 = vld [vmem:[#allocation11 + $0xa04] ss:$40 sps:$4 sm:$0xff]  }
 0x635   :  { %10893 = vmatpush2.bf16.msra.mxu0 %v22434_v51  ;;  %v10689_v56 = vpop.f32.mrf.mxu1 }
 0x636   :  { %15882 = vmatpush1.bf16.msra.mxu1 %v22437_v45  ;;  %10894 = vmatprep.subr.bf16.mxu0 %v22442_v61  ;;  %v22470_v45 = vld [vmem:[#allocation11 + $0x640] ss:$40 sps:$4 sm:$0xff]  }
 0x637   :  { %15883 = vmatprep.subr.bf16.mxu1 %v22445_v44  ;;  %v22473_v61 = vld [vmem:[#allocation11 + $0xa00] ss:$40 sps:$4 sm:$0xff]   ;;  %v22476_v44 = vld [vmem:[#allocation11 + $0x5f0] ss:$40 sps:$4 sm:$0xff]  }
 0x639   :  { %10895 = vmatpush2.bf16.msra.mxu0 %v22440_v25  ;;  %v22484_v25 = vld [vmem:[#allocation11 + $0x5a4] ss:$40 sps:$4 sm:$0xff]  }
 0x63a   :  { %15884 = vmatpush1.bf16.msra.mxu1 %v22443_v20  ;;  %10896 = vmatprep.subr.bf16.mxu0 %v22448_v49  ;;  %v22487_v20 = vld [vmem:[#allocation11 + $0xe64] ss:$40 sps:$4 sm:$0xff]   ;;  %v22482_v49 = vld [vmem:[#allocation11 + $0x5a0] ss:$40 sps:$4 sm:$0xff]  }
 0x63b   :  { %15885 = vmatprep.subr.bf16.mxu1 %v22451_v10  ;;  %v22490_v10 = vld [vmem:[#allocation11 + $0x554] ss:$40 sps:$4 sm:$0xff]  }
 0x63d   :  { %10897 = vmatpush2.bf16.msra.mxu0 %v22446_v8  ;;  %v22488_v8 = vld [vmem:[#allocation11 + $0x550] ss:$40 sps:$4 sm:$0xff]  }
 0x63e   :  { %15886 = vmatpush1.bf16.msra.mxu1 %v22449_v22  ;;  %15836 = vmatprep.subr.bf16.mxu0 %v22454_v19  ;;  %v22491_v22 = vld [vmem:[#allocation11 + $0xe10] ss:$40 sps:$4 sm:$0xff]   ;;  %v22496_v19 = vld [vmem:[#allocation11 + $0x504] ss:$40 sps:$4 sm:$0xff]  }
 0x63f   :  { %15887 = vmatprep.subr.bf16.mxu1 %v22457_v15  ;;  %v22494_v15 = vld [vmem:[#allocation11 + $0x500] ss:$40 sps:$4 sm:$0xff]  }
 0x640   :  { %v10642_v0 = vpop.f32.mrf.mxu0  ;;  %10899 = vmatmul.mubr.bf16.vlgmr.msra.gmra.mxu0 %v24241_v14 }
 0x641   :  { %v10643_v54 = vadd.f32 %v10642_v0, %v24408_v30  ;;  %15837 = vmatpush1.bf16.msra.mxu0 %v22452_v1  ;;  %15868 = vmatprep.mubr.bf16.mxu0 %v24446_v4  ;;  %v22464_v30 = vld [vmem:[#allocation11 + $0x690] ss:$40 sps:$4 sm:$0xff]   ;;  %v22502_v1 = vld [vmem:[#allocation11 + $0x9b4] ss:$40 sps:$4 sm:$0xff]   ;;  %v22511_v0 = vld [vmem:[#allocation11 + $0xd24] ss:$40 sps:$4 sm:$0xff]  }
 0x642   :  { %v24453_v34 = vpop.f32.mrf.mxu0  ;;  %15888 = vmatpush1.bf16.msra.mxu1 %v22455_v21  ;;  %15838 = vmatprep.subr.bf16.mxu0 %v22460_v57  ;;  %v22500_v21 = vld [vmem:[#allocation11 + $0x9b0] ss:$40 sps:$4 sm:$0xff]  }
 0x643   :  { %v10686_v17 = vadd.f32 %v10685_v5, %v10643_v54  ;;  %15889 = vmatprep.subr.bf16.mxu1 %v22463_v63  ;;  %v22505_v5 = vld [vmem:[#allocation11 + $0xd74] ss:$40 sps:$4 sm:$0xff]   ;;  %v22503_v57 = vld [vmem:[#allocation11 + $0xd70] ss:$40 sps:$4 sm:$0xff]   ;;  %v22508_v63 = vld [vmem:[#allocation11 + $0x964] ss:$40 sps:$4 sm:$0xff]  }
 0x644   :  { %v10646_v35 = vpop.f32.mrf.mxu0  ;;  %v22506_v54 = vld [vmem:[#allocation11 + $0x960] ss:$40 sps:$4 sm:$0xff]  }
 0x645   :  { %v10647_v14 = vadd.f32 %v10646_v35, %v24410_v27  ;;  %15839 = vmatpush1.bf16.msra.mxu0 %v22458_v29  ;;  %v10915_v11 = vmax.f32 %v10686_v17, 0.0  ;;  %v22481_v27 = vld [vmem:[#allocation11 + $0xeb4] ss:$40 sps:$4 sm:$0xff]   ;;  %v22509_v29 = vld [vmem:[#allocation11 + $0xd20] ss:$40 sps:$4 sm:$0xff]  }
 0x646   :  { %15890 = vmatpush1.bf16.msra.mxu1 %v22461_v55  ;;  %15840 = vmatprep.subr.bf16.mxu0 %v22466_v41  ;;  %v22514_v55 = vld [vmem:[#allocation11 + $0x914] ss:$40 sps:$4 sm:$0xff]   ;;  %v22512_v17 = vld [vmem:[#allocation11 + $0x910] ss:$40 sps:$4 sm:$0xff]   ;;  %v22520_v35 = vld [vmem:[#allocation11 + $0x8c4] ss:$40 sps:$4 sm:$0xff]  }
 0x647   :  { %v10690_v23 = vadd.f32 %v10689_v56, %v10647_v14  ;;  %15891 = vmatprep.subr.bf16.mxu1 %v22469_v46  ;;  %v22517_v41 = vld [vmem:[#allocation11 + $0xcd4] ss:$40 sps:$4 sm:$0xff]   ;;  %v22515_v46 = vld [vmem:[#allocation11 + $0xcd0] ss:$40 sps:$4 sm:$0xff]   ;;  %v22523_v14 = vld [vmem:[#allocation11 + $0xc84] ss:$40 sps:$4 sm:$0xff]  }
 0x648   :  { %v22518_v56 = vld [vmem:[#allocation11 + $0x8c0] ss:$40 sps:$4 sm:$0xff]  }
 0x649   :  { %v10925_v51 = vmax.f32 %v10690_v23, 0.0  ;;  %15841 = vmatpush1.bf16.msra.mxu0 %v22464_v30  ;;  %v5815_v30 = vrot.slane %v24412_v26, %v24191_v2  ;;  %v22596_v26 = vld [vmem:[#allocation11 + $0x1630] ss:$40 sps:$4 sm:$0xff]  }
 0x64a   :  { %15892 = vmatpush1.bf16.msra.mxu1 %v22467_v7  ;;  %15842 = vmatprep.subr.bf16.mxu0 %v22472_v42  ;;  %v22521_v7 = vld [vmem:[#allocation11 + $0xc80] ss:$40 sps:$4 sm:$0xff]   ;;  %v22526_v42 = vld [vmem:[#allocation11 + $0x874] ss:$40 sps:$4 sm:$0xff]  }
 0x64b   :  { %v24456_v16 = vpack.c.bf16 %v10925_v51, %v10915_v11  ;;  %15893 = vmatprep.subr.bf16.mxu1 %v22475_v40  ;;  %v10520_v23 = vadd.f32 %v24398_v33, %v5815_v30  ;;  %v22598_v40 = vld [vmem:[#allocation11 + $0x1634] ss:$40 sps:$4 sm:$0xff]   ;;  %v10516_v11 = vadd.f32 %v24394_v58, %v5815_v30  ;;  %v22527_v33 = vld [vmem:[#allocation11 + $0x820] ss:$40 sps:$4 sm:$0xff]  }
 0x64c   :  { %v22532_v58 = vld [vmem:[#allocation11 + $0x7d4] ss:$40 sps:$4 sm:$0xff]  }
 0x64d   :  { %15843 = vmatpush1.bf16.msra.mxu0 %v22470_v45  ;;  %v10563_v51 = vadd.f32 %v24444_v13, %v10520_v23  ;;  %v22524_v45 = vld [vmem:[#allocation11 + $0x870] ss:$40 sps:$4 sm:$0xff]   ;;  %v22602_v13 = vld [vmem:[#allocation11 + $0x15e0] ss:$40 sps:$4 sm:$0xff]   ;;  %v22550_v30 = vld [vmem:[#allocation11 + $0xff4] ss:$40 sps:$4 sm:$0xff]  }
 0x64e   :  { %15894 = vmatpush1.bf16.msra.mxu1 %v22473_v61  ;;  %15844 = vmatprep.subr.bf16.mxu0 %v22478_v47  ;;  %v22529_v61 = vld [vmem:[#allocation11 + $0x824] ss:$40 sps:$4 sm:$0xff]   ;;  %v10559_v47 = vadd.f32 %v24406_v36, %v10516_v11 }
 0x64f   :  { %15895 = vmatprep.subr.bf16.mxu1 %v22481_v27  ;;  %v22604_v27 = vld [vmem:[#allocation11 + $0x15e4] ss:$40 sps:$4 sm:$0xff]  }
 0x650   :  { %v22553_v23 = vld [vmem:[#allocation11 + $0xfa4] ss:$40 sps:$4 sm:$0xff]  }
 0x651   :  { %15845 = vmatpush1.bf16.msra.mxu0 %v22476_v44  ;;  %v10648_v44 = vpop.f32.mrf.mxu0  ;;  %v22652_v11 = vld [vmem:[#allocation11 + $0x1864] ss:$40 sps:$4 sm:$0xff]  }
 0x652   :  { %15896 = vmatpush2.bf16.msra.mxu1 %v22479_v28  ;;  %15846 = vmatprep.subr.bf16.mxu0 %v22484_v25  ;;  %v10606_v28 = vadd.f32 %v24442_v3, %v10563_v51  ;;  %v10602_v25 = vadd.f32 %v24404_v18, %v10559_v47  ;;  %v22535_v3 = vld [vmem:[#allocation11 + $0x784] ss:$40 sps:$4 sm:$0xff]   ;;  %v22538_v18 = vld [vmem:[#allocation11 + $0x1134] ss:$40 sps:$4 sm:$0xff]   ;;  %v22551_v51 = vld [vmem:[#allocation11 + $0xfa0] ss:$40 sps:$4 sm:$0xff]  }
 0x653   :  { %15897 = vmatprep.subr.bf16.mxu1 %v22487_v20  ;;  %v22554_v47 = vld [vmem:[#allocation11 + $0xf50] ss:$40 sps:$4 sm:$0xff]  }
 0x654   :  { %v10649_v20 = vadd.f32 %v10648_v44, %v10606_v28  ;;  %v10645_v36 = vadd.f32 %v24453_v34, %v10602_v25  ;;  %v22622_v34 = vld [vmem:[#allocation11 + $0x14f4] ss:$40 sps:$4 sm:$0xff]   ;;  %v22656_v44 = vld [vmem:[#allocation11 + $0x1810] ss:$40 sps:$4 sm:$0xff]   ;;  %v22664_v28 = vld [vmem:[#allocation11 + $0x17c4] ss:$40 sps:$4 sm:$0xff]  }
 0x655   :  { %15847 = vmatpush1.bf16.msra.mxu0 %v22482_v49  ;;  %v22610_v49 = vld [vmem:[#allocation11 + $0x1594] ss:$40 sps:$4 sm:$0xff]  }
 0x656   :  { %15898 = vmatpush2.bf16.msra.mxu1 %v22485_v37  ;;  %15848 = vmatprep.subr.bf16.mxu0 %v22490_v10  ;;  %v22530_v37 = vld [vmem:[#allocation11 + $0x7d0] ss:$40 sps:$4 sm:$0xff]   ;;  %v10691_v10 = vpop.f32.mrf.mxu1  ;;  %v22670_v25 = vld [vmem:[#allocation11 + $0x1774] ss:$40 sps:$4 sm:$0xff]  }
 0x657   :  { %15899 = vmatprep.subr.bf16.mxu1 %v22493_v24  ;;  %v22608_v24 = vld [vmem:[#allocation11 + $0x1590] ss:$40 sps:$4 sm:$0xff]  }
 0x659   :  { %15849 = vmatpush1.bf16.msra.mxu0 %v22488_v8  ;;  %v10692_v8 = vadd.f32 %v10691_v10, %v10649_v20  ;;  %v22560_v20 = vld [vmem:[#allocation11 + $0x13b0] ss:$40 sps:$4 sm:$0xff]   ;;  %v22563_v10 = vld [vmem:[#allocation11 + $0x1360] ss:$40 sps:$4 sm:$0xff]  }
 0x65a   :  { %15900 = vmatpush2.bf16.msra.mxu1 %v22491_v22  ;;  %15850 = vmatprep.subr.bf16.mxu0 %v22496_v19  ;;  %v22616_v22 = vld [vmem:[#allocation11 + $0x1544] ss:$40 sps:$4 sm:$0xff]   ;;  %v10688_v19 = vadd.f32 %v24451_v9, %v10645_v36  ;;  %v22668_v36 = vld [vmem:[#allocation11 + $0x1770] ss:$40 sps:$4 sm:$0xff]  }
 0x65b   :  { %15901 = vmatprep.subr.bf16.mxu1 %v22499_v59  ;;  %v22533_v59 = vld [vmem:[#allocation11 + $0x780] ss:$40 sps:$4 sm:$0xff]   ;;  %v22628_v9 = vld [vmem:[#allocation11 + $0x14a4] ss:$40 sps:$4 sm:$0xff]  }
 0x65d   :  { %15851 = vmatpush1.bf16.msra.mxu0 %v22494_v15  ;;  %v22614_v15 = vld [vmem:[#allocation11 + $0x1540] ss:$40 sps:$4 sm:$0xff]  }
 0x65e   :  { %15902 = vmatpush2.bf16.msra.mxu1 %v22497_v12  ;;  %15852 = vmatprep.subr.bf16.mxu0 %v22502_v1  ;;  %v10926_v12 = vmax.f32 %v10692_v8, 0.0  ;;  %v10916_v1 = vmax.f32 %v10688_v19, 0.0  ;;  %v22682_v8 = vld [vmem:[#allocation11 + $0x16d4] ss:$40 sps:$4 sm:$0xff]   ;;  %v22571_v19 = vld [vmem:[#allocation11 + $0x12c4] ss:$40 sps:$4 sm:$0xff]  }
 0x65f   :  { %15903 = vmatprep.subr.bf16.mxu1 %v22505_v5  ;;  %v22536_v5 = vld [vmem:[#allocation11 + $0x1130] ss:$40 sps:$4 sm:$0xff]  }
 0x661   :  { %15853 = vmatpush2.bf16.msra.mxu0 %v22500_v21  ;;  %v22541_v21 = vld [vmem:[#allocation11 + $0x10e4] ss:$40 sps:$4 sm:$0xff]  }
 0x662   :  { %15904 = vmatpush2.bf16.msra.mxu1 %v22503_v57  ;;  %15854 = vmatprep.subr.bf16.mxu0 %v22508_v63  ;;  %v22620_v57 = vld [vmem:[#allocation11 + $0x14f0] ss:$40 sps:$4 sm:$0xff]   ;;  %v24469_v63 = vpack.c.bf16 %v10926_v12, %v10916_v1  ;;  %v22574_v12 = vld [vmem:[#allocation11 + $0x1274] ss:$40 sps:$4 sm:$0xff]  }
 0x663   :  { %15905 = vmatprep.subr.bf16.mxu1 %v22511_v0  ;;  %v22539_v0 = vld [vmem:[#allocation11 + $0x10e0] ss:$40 sps:$4 sm:$0xff]   ;;  %v22694_v1 = vld [vmem:[#allocation11 + $0x73c] ss:$40 sps:$4 sm:$0xff]  }
 0x665   :  { %15855 = vmatpush2.bf16.msra.mxu0 %v22506_v54  ;;  %v22544_v54 = vld [vmem:[#allocation11 + $0x1094] ss:$40 sps:$4 sm:$0xff]  }
 0x666   :  { %15906 = vmatpush2.bf16.msra.mxu1 %v22509_v29  ;;  %15856 = vmatprep.subr.bf16.mxu0 %v22514_v55  ;;  %v22626_v29 = vld [vmem:[#allocation11 + $0x14a0] ss:$40 sps:$4 sm:$0xff]   ;;  %v22634_v55 = vld [vmem:[#allocation11 + $0x1454] ss:$40 sps:$4 sm:$0xff]  }
 0x667   :  { %15907 = vmatprep.subr.bf16.mxu1 %v22517_v41  ;;  %v22542_v41 = vld [vmem:[#allocation11 + $0x1090] ss:$40 sps:$4 sm:$0xff]  }
 0x669   :  { %15857 = vmatpush2.bf16.msra.mxu0 %v22512_v17  ;;  %v22547_v17 = vld [vmem:[#allocation11 + $0x1044] ss:$40 sps:$4 sm:$0xff]  }
 0x66a   :  { %15908 = vmatpush2.bf16.msra.mxu1 %v22515_v46  ;;  %15858 = vmatprep.subr.bf16.mxu0 %v22520_v35  ;;  %v22632_v46 = vld [vmem:[#allocation11 + $0x1450] ss:$40 sps:$4 sm:$0xff]   ;;  %v22640_v35 = vld [vmem:[#allocation11 + $0x1404] ss:$40 sps:$4 sm:$0xff]  }
 0x66b   :  { %15909 = vmatprep.subr.bf16.mxu1 %v22523_v14  ;;  %v22545_v14 = vld [vmem:[#allocation11 + $0x1040] ss:$40 sps:$4 sm:$0xff]  }
 0x66d   :  { %15859 = vmatpush2.bf16.msra.mxu0 %v22518_v56  ;;  %v22638_v56 = vld [vmem:[#allocation11 + $0x1400] ss:$40 sps:$4 sm:$0xff]  }
 0x66e   :  { %15910 = vmatpush2.bf16.msra.mxu1 %v22521_v7  ;;  %15860 = vmatprep.subr.bf16.mxu0 %v22526_v42  ;;  %v22646_v7 = vld [vmem:[#allocation11 + $0x18b4] ss:$40 sps:$4 sm:$0xff]   ;;  %v22548_v42 = vld [vmem:[#allocation11 + $0xff0] ss:$40 sps:$4 sm:$0xff]  }
 0x66f   :  { %15965 = vmatprep.subr.bf16.mxu1 %v22598_v40  ;;  %v22644_v40 = vld [vmem:[#allocation11 + $0x18b0] ss:$40 sps:$4 sm:$0xff]  }
 0x671   :  { %15861 = vmatpush2.bf16.msra.mxu0 %v22524_v45  ;;  %15912 = vmatmul.mubr.bf16.vlgmr.msra.gmra.mxu1 %v24374_v52  ;;  %v22556_v45 = vld [vmem:[#allocation11 + $0xf54] ss:$40 sps:$4 sm:$0xff]  }
 0x672   :  { %15862 = vmatprep.subr.bf16.mxu0 %v22529_v61  ;;  %15966 = vmatpush1.bf16.msra.mxu1 %v22596_v26  ;;  %v22650_v61 = vld [vmem:[#allocation11 + $0x1860] ss:$40 sps:$4 sm:$0xff]   ;;  %v22658_v26 = vld [vmem:[#allocation11 + $0x1814] ss:$40 sps:$4 sm:$0xff]  }
 0x673   :  { %15967 = vmatprep.subr.bf16.mxu1 %v22604_v27  ;;  %v22559_v27 = vld [vmem:[#allocation11 + $0xf04] ss:$40 sps:$4 sm:$0xff]  }
 0x675   :  { %15863 = vmatpush2.bf16.msra.mxu0 %v22527_v33  ;;  %v22557_v33 = vld [vmem:[#allocation11 + $0xf00] ss:$40 sps:$4 sm:$0xff]  }
 0x676   :  { %15864 = vmatprep.subr.bf16.mxu0 %v22532_v58  ;;  %15968 = vmatpush1.bf16.msra.mxu1 %v22602_v13  ;;  %v22562_v58 = vld [vmem:[#allocation11 + $0x13b4] ss:$40 sps:$4 sm:$0xff]   ;;  %v22662_v13 = vld [vmem:[#allocation11 + $0x17c0] ss:$40 sps:$4 sm:$0xff]  }
 0x677   :  { %15969 = vmatprep.subr.bf16.mxu1 %v22610_v49  ;;  %v22565_v49 = vld [vmem:[#allocation11 + $0x1364] ss:$40 sps:$4 sm:$0xff]  }
 0x679   :  { %15865 = vmatpush2.bf16.msra.mxu0 %v22530_v37  ;;  %v22676_v37 = vld [vmem:[#allocation11 + $0x1724] ss:$40 sps:$4 sm:$0xff]  }
 0x67a   :  { %15866 = vmatprep.subr.bf16.mxu0 %v22535_v3  ;;  %15970 = vmatpush1.bf16.msra.mxu1 %v22608_v24  ;;  %v22568_v3 = vld [vmem:[#allocation11 + $0x1314] ss:$40 sps:$4 sm:$0xff]   ;;  %v22674_v24 = vld [vmem:[#allocation11 + $0x1720] ss:$40 sps:$4 sm:$0xff]  }
 0x67b   :  { %15971 = vmatprep.subr.bf16.mxu1 %v22616_v22  ;;  %v22566_v22 = vld [vmem:[#allocation11 + $0x1310] ss:$40 sps:$4 sm:$0xff]  }
 0x67d   :  { %15867 = vmatpush2.bf16.msra.mxu0 %v22533_v59  ;;  %v22680_v59 = vld [vmem:[#allocation11 + $0x16d0] ss:$40 sps:$4 sm:$0xff]  }
 0x67e   :  { %15922 = vmatprep.subr.bf16.mxu0 %v22538_v18  ;;  %15972 = vmatpush1.bf16.msra.mxu1 %v22614_v15  ;;  %v22688_v18 = vld [vmem:[#allocation11 + $0x1684] ss:$40 sps:$4 sm:$0xff]   ;;  %v22569_v15 = vld [vmem:[#allocation11 + $0x12c0] ss:$40 sps:$4 sm:$0xff]  }
 0x67f   :  { %15973 = vmatprep.subr.bf16.mxu1 %v22622_v34  ;;  %v22686_v34 = vld [vmem:[#allocation11 + $0x1680] ss:$40 sps:$4 sm:$0xff]  }
 0x680   :  { %15869 = vmatmul.mubr.bf16.vlgmr.msra.gmra.mxu0 %v24324_v60 }
 0x681   :  { %15923 = vmatpush1.bf16.msra.mxu0 %v22536_v5  ;;  %15954 = vmatprep.mubr.bf16.mxu0 %v24469_v63  ;;  %v22572_v5 = vld [vmem:[#allocation11 + $0x1270] ss:$40 sps:$4 sm:$0xff]  }
 0x682   :  { %15924 = vmatprep.subr.bf16.mxu0 %v22541_v21  ;;  %15974 = vmatpush1.bf16.msra.mxu1 %v22620_v57  ;;  %v22577_v21 = vld [vmem:[#allocation11 + $0x1224] ss:$40 sps:$4 sm:$0xff]   ;;  %v22575_v57 = vld [vmem:[#allocation11 + $0x1220] ss:$40 sps:$4 sm:$0xff]  }
 0x683   :  { %15975 = vmatprep.subr.bf16.mxu1 %v22628_v9  ;;  %v22580_v9 = vld [vmem:[#allocation11 + $0x11d4] ss:$40 sps:$4 sm:$0xff]  }
 0x685   :  { %15925 = vmatpush1.bf16.msra.mxu0 %v22539_v0  ;;  %v22578_v0 = vld [vmem:[#allocation11 + $0x11d0] ss:$40 sps:$4 sm:$0xff]  }
 0x686   :  { %15926 = vmatprep.subr.bf16.mxu0 %v22544_v54  ;;  %15976 = vmatpush1.bf16.msra.mxu1 %v22626_v29  ;;  %v22583_v54 = vld [vmem:[#allocation11 + $0x1184] ss:$40 sps:$4 sm:$0xff]   ;;  %v22581_v29 = vld [vmem:[#allocation11 + $0x1180] ss:$40 sps:$4 sm:$0xff]  }
 0x687   :  { %15977 = vmatprep.subr.bf16.mxu1 %v22634_v55  ;;  %v22586_v55 = vld [vmem:[#allocation11 + $0x23c] ss:$40 sps:$4 sm:$0xff]  }
 0x689   :  { %15927 = vmatpush1.bf16.msra.mxu0 %v22542_v41  ;;  %v22584_v41 = vld [vmem:[#allocation11 + $0x238] ss:$40 sps:$4 sm:$0xff]  }
 0x68a   :  { %15928 = vmatprep.subr.bf16.mxu0 %v22547_v17  ;;  %15978 = vmatpush1.bf16.msra.mxu1 %v22632_v46  ;;  %v22589_v17 = vld [vmem:[#allocation11 + $0x1ec] ss:$40 sps:$4 sm:$0xff]   ;;  %v22587_v46 = vld [vmem:[#allocation11 + $0x1e8] ss:$40 sps:$4 sm:$0xff]  }
 0x68b   :  { %15979 = vmatprep.subr.bf16.mxu1 %v22640_v35  ;;  %v22592_v35 = vld [vmem:[#allocation11 + $0x19c] ss:$40 sps:$4 sm:$0xff]  }
 0x68d   :  { %15929 = vmatpush1.bf16.msra.mxu0 %v22545_v14  ;;  %v22590_v14 = vld [vmem:[#allocation11 + $0x198] ss:$40 sps:$4 sm:$0xff]  }
 0x68e   :  { %15930 = vmatprep.subr.bf16.mxu0 %v22550_v30  ;;  %15980 = vmatpush1.bf16.msra.mxu1 %v22638_v56  ;;  %v22595_v30 = vld [vmem:[#allocation11 + $0x14c] ss:$40 sps:$4 sm:$0xff]   ;;  %v22593_v56 = vld [vmem:[#allocation11 + $0x148] ss:$40 sps:$4 sm:$0xff]  }
 0x68f   :  { %15981 = vmatprep.subr.bf16.mxu1 %v22646_v7  ;;  %v22601_v7 = vld [vmem:[#allocation11 + $0xfc] ss:$40 sps:$4 sm:$0xff]  }
 0x691   :  { %15931 = vmatpush1.bf16.msra.mxu0 %v22548_v42  ;;  %v22599_v42 = vld [vmem:[#allocation11 + $0xf8] ss:$40 sps:$4 sm:$0xff]  }
 0x692   :  { %15932 = vmatprep.subr.bf16.mxu0 %v22553_v23  ;;  %15982 = vmatpush2.bf16.msra.mxu1 %v22644_v40  ;;  %v22607_v23 = vld [vmem:[#allocation11 + $0xac] ss:$40 sps:$4 sm:$0xff]   ;;  %v22605_v40 = vld [vmem:[#allocation11 + $0xa8] ss:$40 sps:$4 sm:$0xff]  }
 0x693   :  { %15983 = vmatprep.subr.bf16.mxu1 %v22652_v11  ;;  %v22613_v11 = vld [vmem:[#allocation11 + $0x5c] ss:$40 sps:$4 sm:$0xff]  }
 0x695   :  { %15933 = vmatpush1.bf16.msra.mxu0 %v22551_v51  ;;  %v22611_v51 = vld [vmem:[#allocation11 + $0x58] ss:$40 sps:$4 sm:$0xff]  }
 0x696   :  { %15934 = vmatprep.subr.bf16.mxu0 %v22556_v45  ;;  %15984 = vmatpush2.bf16.msra.mxu1 %v22650_v61  ;;  %v22619_v45 = vld [vmem:[#allocation11 + $0xc] ss:$40 sps:$4 sm:$0xff]   ;;  %v22617_v61 = vld [vmem:[#allocation11 + $0x8] ss:$40 sps:$4 sm:$0xff]  }
 0x697   :  { %15985 = vmatprep.subr.bf16.mxu1 %v22658_v26  ;;  %v22625_v26 = vld [vmem:[#allocation11 + $0x4bc] ss:$40 sps:$4 sm:$0xff]  }
 0x699   :  { %15935 = vmatpush1.bf16.msra.mxu0 %v22554_v47  ;;  %v22623_v47 = vld [vmem:[#allocation11 + $0x4b8] ss:$40 sps:$4 sm:$0xff]  }
 0x69a   :  { %15936 = vmatprep.subr.bf16.mxu0 %v22559_v27  ;;  %15986 = vmatpush2.bf16.msra.mxu1 %v22656_v44  ;;  %v22631_v27 = vld [vmem:[#allocation11 + $0x46c] ss:$40 sps:$4 sm:$0xff]   ;;  %v22629_v44 = vld [vmem:[#allocation11 + $0x468] ss:$40 sps:$4 sm:$0xff]  }
 0x69b   :  { %15987 = vmatprep.subr.bf16.mxu1 %v22664_v28  ;;  %v22637_v28 = vld [vmem:[#allocation11 + $0x41c] ss:$40 sps:$4 sm:$0xff]  }
 0x69d   :  { %15937 = vmatpush1.bf16.msra.mxu0 %v22557_v33  ;;  %v10728_v33 = vpop.f32.mrf.mxu0 }
 0x69e   :  { %15938 = vmatprep.subr.bf16.mxu0 %v22562_v58  ;;  %15988 = vmatpush2.bf16.msra.mxu1 %v22662_v13  ;;  %v22635_v58 = vld [vmem:[#allocation11 + $0x418] ss:$40 sps:$4 sm:$0xff]   ;;  %v22643_v13 = vld [vmem:[#allocation11 + $0x3cc] ss:$40 sps:$4 sm:$0xff]  }
 0x69f   :  { %15989 = vmatprep.subr.bf16.mxu1 %v22670_v25  ;;  %v10730_v25 = vpop.f32.mrf.mxu0 }
 0x6a1   :  { %15939 = vmatpush2.bf16.msra.mxu0 %v22560_v20  ;;  %v22641_v20 = vld [vmem:[#allocation11 + $0x3c8] ss:$40 sps:$4 sm:$0xff]  }
 0x6a2   :  { %15940 = vmatprep.subr.bf16.mxu0 %v22565_v49  ;;  %15990 = vmatpush2.bf16.msra.mxu1 %v22668_v36  ;;  %v10771_v49 = vpop.f32.mrf.mxu1  ;;  %v22649_v36 = vld [vmem:[#allocation11 + $0x37c] ss:$40 sps:$4 sm:$0xff]  }
 0x6a3   :  { %15991 = vmatprep.subr.bf16.mxu1 %v22676_v37  ;;  %v10732_v37 = vpop.f32.mrf.mxu0 }
 0x6a5   :  { %15941 = vmatpush2.bf16.msra.mxu0 %v22563_v10  ;;  %v22647_v10 = vld [vmem:[#allocation11 + $0x378] ss:$40 sps:$4 sm:$0xff]  }
 0x6a6   :  { %15942 = vmatprep.subr.bf16.mxu0 %v22568_v3  ;;  %15992 = vmatpush2.bf16.msra.mxu1 %v22674_v24  ;;  %v10773_v3 = vpop.f32.mrf.mxu1  ;;  %v22655_v24 = vld [vmem:[#allocation11 + $0x32c] ss:$40 sps:$4 sm:$0xff]  }
 0x6a7   :  { %15993 = vmatprep.subr.bf16.mxu1 %v22682_v8  ;;  %v10734_v8 = vpop.f32.mrf.mxu0 }
 0x6a9   :  { %15943 = vmatpush2.bf16.msra.mxu0 %v22566_v22  ;;  %v22653_v22 = vld [vmem:[#allocation11 + $0x328] ss:$40 sps:$4 sm:$0xff]  }
 0x6aa   :  { %15944 = vmatprep.subr.bf16.mxu0 %v22571_v19  ;;  %15994 = vmatpush2.bf16.msra.mxu1 %v22680_v59  ;;  %v10775_v19 = vpop.f32.mrf.mxu1 }
 0x6ab   :  { %15995 = vmatprep.subr.bf16.mxu1 %v22688_v18  ;;  %v22661_v18 = vld [vmem:[#allocation11 + $0x2dc] ss:$40 sps:$4 sm:$0xff]  }
 0x6ad   :  { %15945 = vmatpush2.bf16.msra.mxu0 %v22569_v15  ;;  %v5781_v15 = vld [vmem:[#allocation10 + $0x8] sm:$0x3] }
 0x6ae   :  { %15946 = vmatprep.subr.bf16.mxu0 %v22574_v12  ;;  %15996 = vmatpush2.bf16.msra.mxu1 %v22686_v34  ;;  %v5823_v12 = vrot.slane %v5781_v15, %v24142_v38  ;;  %v22659_v34 = vld [vmem:[#allocation11 + $0x2d8] ss:$40 sps:$4 sm:$0xff]  }
 0x6af   :  { %16051 = vmatprep.subr.bf16.mxu1 %v22694_v1  ;;  %v10777_v1 = vpop.f32.mrf.mxu1 }
 0x6b1   :  { %15947 = vmatpush2.bf16.msra.mxu0 %v22572_v5  ;;  %v5819_v5 = vrot.slane %v5781_v15, %v24035_v39  ;;  %v22689_v15 = vld [vmem:[#allocation11 + $0xb48] ss:$40 sps:$4 sm:$0xff]  }
 0x6b2   :  { %15948 = vmatprep.subr.bf16.mxu0 %v22577_v21 }
 0x6b5   :  { %15949 = vmatpush2.bf16.msra.mxu0 %v22575_v57  ;;  %v22667_v57 = vld [vmem:[#allocation11 + $0x28c] ss:$40 sps:$4 sm:$0xff]  }
 0x6b6   :  { %15950 = vmatprep.subr.bf16.mxu0 %v22580_v9  ;;  %v10857_v9 = vpop.f32.mrf.mxu1 }
 0x6b9   :  { %15951 = vmatpush2.bf16.msra.mxu0 %v22578_v0  ;;  %v10731_v0 = vadd.f32 %v10730_v25, %v5823_v12 }
 0x6ba   :  { %15952 = vmatprep.subr.bf16.mxu0 %v22583_v54  ;;  %v10733_v54 = vadd.f32 %v10732_v37, %v5819_v5 }
 0x6bd   :  { %15953 = vmatpush2.bf16.msra.mxu0 %v22581_v29  ;;  %v22665_v29 = vld [vmem:[#allocation11 + $0x288] ss:$40 sps:$4 sm:$0xff]  }
 0x6be   :  { %16008 = vmatprep.subr.bf16.mxu0 %v22586_v55  ;;  %v10729_v55 = vadd.f32 %v10728_v33, %v5819_v5  ;;  %v22692_v5 = vld [vmem:[#allocation11 + $0x738] ss:$40 sps:$4 sm:$0xff]  }
 0x6c0   :  { %15955 = vmatmul.mubr.bf16.vlgmr.msra.gmra.mxu0 %v24456_v16  ;;  %v10814_v59 = vpop.f32.mrf.mxu0 }
 0x6c1   :  { %16009 = vmatpush1.bf16.msra.mxu0 %v22584_v41  ;;  %16040 = vmatprep.mubr.bf16.mxu0 %v24390_v50 }
 0x6c2   :  { %16010 = vmatprep.subr.bf16.mxu0 %v22589_v17  ;;  %v10816_v21 = vpop.f32.mrf.mxu0  ;;  %v22673_v17 = vld [vmem:[#allocation11 + $0xc3c] ss:$40 sps:$4 sm:$0xff]  }
 0x6c4   :  { %v10818_v41 = vpop.f32.mrf.mxu0 }
 0x6c5   :  { %16011 = vmatpush1.bf16.msra.mxu0 %v22587_v46  ;;  %v10735_v46 = vadd.f32 %v10734_v8, %v5823_v12  ;;  %v22691_v8 = vld [vmem:[#allocation11 + $0xb4c] ss:$40 sps:$4 sm:$0xff]  }
 0x6c6   :  { %16012 = vmatprep.subr.bf16.mxu0 %v22592_v35  ;;  %v10859_v35 = vpop.f32.mrf.mxu1 }
 0x6c9   :  { %16013 = vmatpush1.bf16.msra.mxu0 %v22590_v14  ;;  %v10774_v14 = vadd.f32 %v10773_v3, %v10731_v0  ;;  %v22703_v0 = vld [vmem:[#allocation11 + $0xaac] ss:$40 sps:$4 sm:$0xff]  }
 0x6ca   :  { %16014 = vmatprep.subr.bf16.mxu0 %v22595_v30  ;;  %v10776_v30 = vadd.f32 %v10775_v19, %v10733_v54  ;;  %v22698_v54 = vld [vmem:[#allocation11 + $0x6e8] ss:$40 sps:$4 sm:$0xff]  }
 0x6cd   :  { %16015 = vmatpush1.bf16.msra.mxu0 %v22593_v56  ;;  %v22671_v56 = vld [vmem:[#allocation11 + $0xc38] ss:$40 sps:$4 sm:$0xff]  }
 0x6ce   :  { %16016 = vmatprep.subr.bf16.mxu0 %v22601_v7  ;;  %v10772_v7 = vadd.f32 %v10771_v49, %v10729_v55  ;;  %v22701_v55 = vld [vmem:[#allocation11 + $0xaa8] ss:$40 sps:$4 sm:$0xff]  }
 0x6d1   :  { %16017 = vmatpush1.bf16.msra.mxu0 %v22599_v42  ;;  %v10820_v42 = vpop.f32.mrf.mxu0 }
 0x6d2   :  { %16018 = vmatprep.subr.bf16.mxu0 %v22607_v23  ;;  %v22679_v23 = vld [vmem:[#allocation11 + $0xbec] ss:$40 sps:$4 sm:$0xff]  }
 0x6d5   :  { %16019 = vmatpush1.bf16.msra.mxu0 %v22605_v40  ;;  %v10817_v40 = vadd.f32 %v10816_v21, %v10774_v14  ;;  %v22715_v14 = vld [vmem:[#allocation11 + $0xa0c] ss:$40 sps:$4 sm:$0xff]  }
 0x6d6   :  { %16020 = vmatprep.subr.bf16.mxu0 %v22613_v11  ;;  %v10819_v11 = vadd.f32 %v10818_v41, %v10776_v30  ;;  %v22709_v41 = vld [vmem:[#allocation11 + $0xa5c] ss:$40 sps:$4 sm:$0xff]   ;;  %v22710_v30 = vld [vmem:[#allocation11 + $0x648] ss:$40 sps:$4 sm:$0xff]  }
 0x6d7   :  { %v10860_v33 = vadd.f32 %v10859_v35, %v10817_v40  ;;  %v22707_v35 = vld [vmem:[#allocation11 + $0xa58] ss:$40 sps:$4 sm:$0xff]   ;;  %v22724_v40 = vld [vmem:[#allocation11 + $0x5ac] ss:$40 sps:$4 sm:$0xff]  }
 0x6d9   :  { %16021 = vmatpush1.bf16.msra.mxu0 %v22611_v51  ;;  %v10778_v51 = vadd.f32 %v10777_v1, %v10735_v46  ;;  %v22712_v46 = vld [vmem:[#allocation11 + $0x64c] ss:$40 sps:$4 sm:$0xff]  }
 0x6da   :  { %16022 = vmatprep.subr.bf16.mxu0 %v22619_v45  ;;  %v10861_v45 = vpop.f32.mrf.mxu1 }
 0x6dd   :  { %16023 = vmatpush1.bf16.msra.mxu0 %v22617_v61  ;;  %v10815_v61 = vadd.f32 %v10814_v59, %v10772_v7  ;;  %v22713_v7 = vld [vmem:[#allocation11 + $0xa08] ss:$40 sps:$4 sm:$0xff]  }
 0x6de   :  { %16024 = vmatprep.subr.bf16.mxu0 %v22625_v26 }
 0x6df   :  { %v10858_v25 = vadd.f32 %v10857_v9, %v10815_v61  ;;  %v22695_v9 = vld [vmem:[#allocation11 + $0xaf8] ss:$40 sps:$4 sm:$0xff]   ;;  %v22730_v61 = vld [vmem:[#allocation11 + $0x55c] ss:$40 sps:$4 sm:$0xff]  }
 0x6e1   :  { %16025 = vmatpush2.bf16.msra.mxu0 %v22623_v47  ;;  %v10821_v47 = vadd.f32 %v10820_v42, %v10778_v51  ;;  %v22721_v42 = vld [vmem:[#allocation11 + $0xebc] ss:$40 sps:$4 sm:$0xff]   ;;  %v22727_v51 = vld [vmem:[#allocation11 + $0xe6c] ss:$40 sps:$4 sm:$0xff]  }
 0x6e2   :  { %16026 = vmatprep.subr.bf16.mxu0 %v22631_v27  ;;  %v22677_v27 = vld [vmem:[#allocation11 + $0xbe8] ss:$40 sps:$4 sm:$0xff]  }
 0x6e5   :  { %16027 = vmatpush2.bf16.msra.mxu0 %v22629_v44 }
 0x6e6   :  { %16028 = vmatprep.subr.bf16.mxu0 %v22637_v28  ;;  %v22685_v28 = vld [vmem:[#allocation11 + $0xb9c] ss:$40 sps:$4 sm:$0xff]  }
 0x6e9   :  { %16029 = vmatpush2.bf16.msra.mxu0 %v22635_v58  ;;  %v10862_v58 = vadd.f32 %v10861_v45, %v10819_v11  ;;  %v22719_v11 = vld [vmem:[#allocation11 + $0xeb8] ss:$40 sps:$4 sm:$0xff]   ;;  %v22722_v45 = vld [vmem:[#allocation11 + $0x5a8] ss:$40 sps:$4 sm:$0xff]  }
 0x6ea   :  { %16030 = vmatprep.subr.bf16.mxu0 %v22643_v13  ;;  %v10863_v13 = vpop.f32.mrf.mxu1 }
 0x6eb   :  { %v10864_v37 = vadd.f32 %v10863_v13, %v10821_v47  ;;  %v22733_v47 = vld [vmem:[#allocation11 + $0xe1c] ss:$40 sps:$4 sm:$0xff]  }
 0x6ec   :  { %v22742_v13 = vld [vmem:[#allocation11 + $0x9bc] ss:$40 sps:$4 sm:$0xff]  }
 0x6ed   :  { %16031 = vmatpush2.bf16.msra.mxu0 %v22641_v20 }
 0x6ee   :  { %16032 = vmatprep.subr.bf16.mxu0 %v22649_v36 }
 0x6f1   :  { %16033 = vmatpush2.bf16.msra.mxu0 %v22647_v10  ;;  %v22683_v10 = vld [vmem:[#allocation11 + $0xb98] ss:$40 sps:$4 sm:$0xff]  }
 0x6f2   :  { %16034 = vmatprep.subr.bf16.mxu0 %v22655_v24 }
 0x6f5   :  { %16035 = vmatpush2.bf16.msra.mxu0 %v22653_v22 }
 0x6f6   :  { %16036 = vmatprep.subr.bf16.mxu0 %v22661_v18 }
 0x6f9   :  { %16037 = vmatpush2.bf16.msra.mxu0 %v22659_v34  ;;  %v22697_v34 = vld [vmem:[#allocation11 + $0xafc] ss:$40 sps:$4 sm:$0xff]  }
 0x6fa   :  { %16038 = vmatprep.subr.bf16.mxu0 %v22667_v57  ;;  %v22700_v57 = vld [vmem:[#allocation11 + $0x6ec] ss:$40 sps:$4 sm:$0xff]  }
 0x6fd   :  { %16039 = vmatpush2.bf16.msra.mxu0 %v22665_v29  ;;  %v22706_v29 = vld [vmem:[#allocation11 + $0x69c] ss:$40 sps:$4 sm:$0xff]  }
 0x6fe   :  { %16094 = vmatprep.subr.bf16.mxu0 %v22673_v17  ;;  %v22704_v17 = vld [vmem:[#allocation11 + $0x698] ss:$40 sps:$4 sm:$0xff]  }
 0x700   :  { %v10900_v26 = vpop.f32.mrf.mxu0  ;;  %16041 = vmatmul.mubr.bf16.vlgmr.msra.gmra.mxu0 %v24287_v6 }
 0x701   :  { %16095 = vmatpush1.bf16.msra.mxu0 %v22671_v56  ;;  %16126 = vmatprep.mubr.bf16.mxu0 %v24432_v53  ;;  %v10901_v3 = vadd.f32 %v10900_v26, %v10858_v25  ;;  %v22718_v56 = vld [vmem:[#allocation11 + $0x5fc] ss:$40 sps:$4 sm:$0xff]   ;;  %v22725_v26 = vld [vmem:[#allocation11 + $0xe68] ss:$40 sps:$4 sm:$0xff]  }
 0x702   :  { %v10902_v44 = vpop.f32.mrf.mxu0  ;;  %16096 = vmatprep.subr.bf16.mxu0 %v22679_v23  ;;  %v22716_v23 = vld [vmem:[#allocation11 + $0x5f8] ss:$40 sps:$4 sm:$0xff]   ;;  %v22737_v25 = vld [vmem:[#allocation11 + $0xdc8] ss:$40 sps:$4 sm:$0xff]  }
 0x703   :  { %v10903_v49 = vadd.f32 %v10902_v44, %v10860_v33  ;;  %v10917_v12 = vmax.f32 %v10901_v3, 0.0  ;;  %v22736_v44 = vld [vmem:[#allocation11 + $0x50c] ss:$40 sps:$4 sm:$0xff]   ;;  %v22746_v3 = vld [vmem:[#allocation11 + $0x968] ss:$40 sps:$4 sm:$0xff]  }
 0x704   :  { %v10904_v20 = vpop.f32.mrf.mxu0  ;;  %v22739_v33 = vld [vmem:[#allocation11 + $0xdcc] ss:$40 sps:$4 sm:$0xff]  }
 0x705   :  { %v10905_v36 = vadd.f32 %v10904_v20, %v10862_v58  ;;  %16097 = vmatpush1.bf16.msra.mxu0 %v22677_v27  ;;  %v10918_v59 = vmax.f32 %v10903_v49, 0.0  ;;  %v22728_v27 = vld [vmem:[#allocation11 + $0x558] ss:$40 sps:$4 sm:$0xff]   ;;  %v22734_v58 = vld [vmem:[#allocation11 + $0x508] ss:$40 sps:$4 sm:$0xff]  }
 0x706   :  { %v10906_v24 = vpop.f32.mrf.mxu0  ;;  %16098 = vmatprep.subr.bf16.mxu0 %v22685_v28  ;;  %v22731_v28 = vld [vmem:[#allocation11 + $0xe18] ss:$40 sps:$4 sm:$0xff]   ;;  %v22745_v20 = vld [vmem:[#allocation11 + $0xd7c] ss:$40 sps:$4 sm:$0xff]  }
 0x707   :  { %v10907_v22 = vadd.f32 %v10906_v24, %v10864_v37  ;;  %v10927_v19 = vmax.f32 %v10905_v36, 0.0  ;;  %v22740_v49 = vld [vmem:[#allocation11 + $0x9b8] ss:$40 sps:$4 sm:$0xff]   ;;  %v22748_v36 = vld [vmem:[#allocation11 + $0x96c] ss:$40 sps:$4 sm:$0xff]  }
 0x708   :  { %v22743_v37 = vld [vmem:[#allocation11 + $0xd78] ss:$40 sps:$4 sm:$0xff]   ;;  %v22754_v24 = vld [vmem:[#allocation11 + $0x91c] ss:$40 sps:$4 sm:$0xff]  }
 0x709   :  { %v10928_v18 = vmax.f32 %v10907_v22, 0.0  ;;  %16099 = vmatpush1.bf16.msra.mxu0 %v22683_v10  ;;  %v24481_v21 = vpack.c.bf16 %v10927_v19, %v10917_v12  ;;  %v22751_v10 = vld [vmem:[#allocation11 + $0xd2c] ss:$40 sps:$4 sm:$0xff]   ;;  %v22757_v22 = vld [vmem:[#allocation11 + $0xcdc] ss:$40 sps:$4 sm:$0xff]  }
 0x70a   :  { %16100 = vmatprep.subr.bf16.mxu0 %v22691_v8  ;;  %v22749_v8 = vld [vmem:[#allocation11 + $0xd28] ss:$40 sps:$4 sm:$0xff]   ;;  %v22752_v19 = vld [vmem:[#allocation11 + $0x918] ss:$40 sps:$4 sm:$0xff]  }
 0x70b   :  { %v24479_v1 = vpack.c.bf16 %v10928_v18, %v10918_v59  ;;  %v22760_v59 = vld [vmem:[#allocation11 + $0x8cc] ss:$40 sps:$4 sm:$0xff]   ;;  %v22755_v18 = vld [vmem:[#allocation11 + $0xcd8] ss:$40 sps:$4 sm:$0xff]   ;;  %v22758_v12 = vld [vmem:[#allocation11 + $0x8c8] ss:$40 sps:$4 sm:$0xff]  }
 0x70d   :  { %15997 = vmatprep.mubr.bf16.mxu1 %v24479_v1  ;;  %16101 = vmatpush1.bf16.msra.mxu0 %v22689_v15  ;;  %v22763_v15 = vld [vmem:[#allocation11 + $0xc8c] ss:$40 sps:$4 sm:$0xff]  }
 0x70e   :  { %15998 = vmatmul.mubr.bf16.vlgmr.msra.gmra.mxu1 %v24481_v21  ;;  %16102 = vmatprep.subr.bf16.mxu0 %v22697_v34  ;;  %v22766_v34 = vld [vmem:[#allocation11 + $0x87c] ss:$40 sps:$4 sm:$0xff]  }
 0x70f   :  { %16052 = vmatpush1.bf16.msra.mxu1 %v22692_v5  ;;  %16083 = vmatprep.mubr.bf16.mxu1 %v24446_v4  ;;  %v22761_v5 = vld [vmem:[#allocation11 + $0xc88] ss:$40 sps:$4 sm:$0xff]  }
 0x710   :  { %16053 = vmatprep.subr.bf16.mxu1 %v22700_v57  ;;  %v22769_v57 = vld [vmem:[#allocation11 + $0x163c] ss:$40 sps:$4 sm:$0xff]  }
 0x711   :  { %16103 = vmatpush1.bf16.msra.mxu0 %v22695_v9  ;;  %v22764_v9 = vld [vmem:[#allocation11 + $0x878] ss:$40 sps:$4 sm:$0xff]  }
 0x712   :  { %16104 = vmatprep.subr.bf16.mxu0 %v22703_v0  ;;  %v22772_v0 = vld [vmem:[#allocation11 + $0x82c] ss:$40 sps:$4 sm:$0xff]  }
 0x713   :  { %16054 = vmatpush1.bf16.msra.mxu1 %v22698_v54  ;;  %v22767_v54 = vld [vmem:[#allocation11 + $0x1638] ss:$40 sps:$4 sm:$0xff]  }
 0x714   :  { %16055 = vmatprep.subr.bf16.mxu1 %v22706_v29  ;;  %v22775_v29 = vld [vmem:[#allocation11 + $0x15ec] ss:$40 sps:$4 sm:$0xff]  }
 0x715   :  { %16105 = vmatpush1.bf16.msra.mxu0 %v22701_v55  ;;  %v22770_v55 = vld [vmem:[#allocation11 + $0x828] ss:$40 sps:$4 sm:$0xff]  }
 0x716   :  { %16106 = vmatprep.subr.bf16.mxu0 %v22709_v41  ;;  %v22778_v41 = vld [vmem:[#allocation11 + $0x7dc] ss:$40 sps:$4 sm:$0xff]  }
 0x717   :  { %16056 = vmatpush1.bf16.msra.mxu1 %v22704_v17  ;;  %v22773_v17 = vld [vmem:[#allocation11 + $0x15e8] ss:$40 sps:$4 sm:$0xff]  }
 0x718   :  { %16057 = vmatprep.subr.bf16.mxu1 %v22712_v46  ;;  %v22781_v46 = vld [vmem:[#allocation11 + $0x159c] ss:$40 sps:$4 sm:$0xff]  }
 0x719   :  { %16107 = vmatpush1.bf16.msra.mxu0 %v22707_v35  ;;  %v22776_v35 = vld [vmem:[#allocation11 + $0x7d8] ss:$40 sps:$4 sm:$0xff]  }
 0x71a   :  { %16108 = vmatprep.subr.bf16.mxu0 %v22715_v14  ;;  %v22784_v14 = vld [vmem:[#allocation11 + $0x78c] ss:$40 sps:$4 sm:$0xff]  }
 0x71b   :  { %16058 = vmatpush1.bf16.msra.mxu1 %v22710_v30  ;;  %v22779_v30 = vld [vmem:[#allocation11 + $0x1598] ss:$40 sps:$4 sm:$0xff]  }
 0x71c   :  { %16059 = vmatprep.subr.bf16.mxu1 %v22718_v56  ;;  %v22787_v56 = vld [vmem:[#allocation11 + $0x154c] ss:$40 sps:$4 sm:$0xff]  }
 0x71d   :  { %16109 = vmatpush1.bf16.msra.mxu0 %v22713_v7  ;;  %v22782_v7 = vld [vmem:[#allocation11 + $0x788] ss:$40 sps:$4 sm:$0xff]  }
 0x71e   :  { %16110 = vmatprep.subr.bf16.mxu0 %v22721_v42  ;;  %v22790_v42 = vld [vmem:[#allocation11 + $0x113c] ss:$40 sps:$4 sm:$0xff]  }
 0x71f   :  { %16060 = vmatpush1.bf16.msra.mxu1 %v22716_v23  ;;  %v22785_v23 = vld [vmem:[#allocation11 + $0x1548] ss:$40 sps:$4 sm:$0xff]  }
 0x720   :  { %16061 = vmatprep.subr.bf16.mxu1 %v22724_v40  ;;  %v22793_v40 = vld [vmem:[#allocation11 + $0x14fc] ss:$40 sps:$4 sm:$0xff]  }
 0x721   :  { %16111 = vmatpush2.bf16.msra.mxu0 %v22719_v11  ;;  %v22788_v11 = vld [vmem:[#allocation11 + $0x1138] ss:$40 sps:$4 sm:$0xff]  }
 0x722   :  { %16112 = vmatprep.subr.bf16.mxu0 %v22727_v51  ;;  %v22796_v51 = vld [vmem:[#allocation11 + $0x10ec] ss:$40 sps:$4 sm:$0xff]  }
 0x723   :  { %16062 = vmatpush1.bf16.msra.mxu1 %v22722_v45  ;;  %v22791_v45 = vld [vmem:[#allocation11 + $0x14f8] ss:$40 sps:$4 sm:$0xff]  }
 0x724   :  { %16063 = vmatprep.subr.bf16.mxu1 %v22730_v61  ;;  %v22799_v61 = vld [vmem:[#allocation11 + $0x14ac] ss:$40 sps:$4 sm:$0xff]  }
 0x725   :  { %16113 = vmatpush2.bf16.msra.mxu0 %v22725_v26  ;;  %v22794_v26 = vld [vmem:[#allocation11 + $0x10e8] ss:$40 sps:$4 sm:$0xff]  }
 0x726   :  { %16114 = vmatprep.subr.bf16.mxu0 %v22733_v47  ;;  %v22802_v47 = vld [vmem:[#allocation11 + $0x109c] ss:$40 sps:$4 sm:$0xff]  }
 0x727   :  { %16064 = vmatpush1.bf16.msra.mxu1 %v22728_v27  ;;  %v22797_v27 = vld [vmem:[#allocation11 + $0x14a8] ss:$40 sps:$4 sm:$0xff]  }
 0x728   :  { %16065 = vmatprep.subr.bf16.mxu1 %v22736_v44  ;;  %v22805_v44 = vld [vmem:[#allocation11 + $0x145c] ss:$40 sps:$4 sm:$0xff]  }
 0x729   :  { %16115 = vmatpush2.bf16.msra.mxu0 %v22731_v28  ;;  %v22800_v28 = vld [vmem:[#allocation11 + $0x1098] ss:$40 sps:$4 sm:$0xff]  }
 0x72a   :  { %16116 = vmatprep.subr.bf16.mxu0 %v22739_v33  ;;  %v22808_v33 = vld [vmem:[#allocation11 + $0x104c] ss:$40 sps:$4 sm:$0xff]  }
 0x72b   :  { %16066 = vmatpush1.bf16.msra.mxu1 %v22734_v58  ;;  %v22803_v58 = vld [vmem:[#allocation11 + $0x1458] ss:$40 sps:$4 sm:$0xff]  }
 0x72c   :  { %16067 = vmatprep.subr.bf16.mxu1 %v22742_v13  ;;  %v22811_v13 = vld [vmem:[#allocation11 + $0x140c] ss:$40 sps:$4 sm:$0xff]  }
 0x72d   :  { %16117 = vmatpush2.bf16.msra.mxu0 %v22737_v25  ;;  %v22806_v25 = vld [vmem:[#allocation11 + $0x1048] ss:$40 sps:$4 sm:$0xff]  }
 0x72e   :  { %16118 = vmatprep.subr.bf16.mxu0 %v22745_v20  ;;  %v22814_v20 = vld [vmem:[#allocation11 + $0xffc] ss:$40 sps:$4 sm:$0xff]  }
 0x72f   :  { %16068 = vmatpush2.bf16.msra.mxu1 %v22740_v49  ;;  %v22809_v49 = vld [vmem:[#allocation11 + $0x1408] ss:$40 sps:$4 sm:$0xff]  }
 0x730   :  { %16069 = vmatprep.subr.bf16.mxu1 %v22748_v36  ;;  %v22817_v36 = vld [vmem:[#allocation11 + $0x18bc] ss:$40 sps:$4 sm:$0xff]  }
 0x731   :  { %16119 = vmatpush2.bf16.msra.mxu0 %v22743_v37  ;;  %v22812_v37 = vld [vmem:[#allocation11 + $0xff8] ss:$40 sps:$4 sm:$0xff]  }
 0x732   :  { %16120 = vmatprep.subr.bf16.mxu0 %v22751_v10  ;;  %v22820_v10 = vld [vmem:[#allocation11 + $0xfac] ss:$40 sps:$4 sm:$0xff]  }
 0x733   :  { %16070 = vmatpush2.bf16.msra.mxu1 %v22746_v3  ;;  %v22815_v3 = vld [vmem:[#allocation11 + $0x18b8] ss:$40 sps:$4 sm:$0xff]  }
 0x734   :  { %16071 = vmatprep.subr.bf16.mxu1 %v22754_v24  ;;  %v22823_v24 = vld [vmem:[#allocation11 + $0x186c] ss:$40 sps:$4 sm:$0xff]  }
 0x735   :  { %16121 = vmatpush2.bf16.msra.mxu0 %v22749_v8  ;;  %v22818_v8 = vld [vmem:[#allocation11 + $0xfa8] ss:$40 sps:$4 sm:$0xff]  }
 0x736   :  { %16122 = vmatprep.subr.bf16.mxu0 %v22757_v22  ;;  %v22826_v22 = vld [vmem:[#allocation11 + $0xf5c] ss:$40 sps:$4 sm:$0xff]  }
 0x737   :  { %16072 = vmatpush2.bf16.msra.mxu1 %v22752_v19  ;;  %v22821_v19 = vld [vmem:[#allocation11 + $0x1868] ss:$40 sps:$4 sm:$0xff]  }
 0x738   :  { %16073 = vmatprep.subr.bf16.mxu1 %v22760_v59  ;;  %v22829_v59 = vld [vmem:[#allocation11 + $0x181c] ss:$40 sps:$4 sm:$0xff]  }
 0x739   :  { %16123 = vmatpush2.bf16.msra.mxu0 %v22755_v18  ;;  %v22824_v18 = vld [vmem:[#allocation11 + $0xf58] ss:$40 sps:$4 sm:$0xff]  }
 0x73a   :  { %16124 = vmatprep.subr.bf16.mxu0 %v22763_v15  ;;  %v22832_v15 = vld [vmem:[#allocation11 + $0xf0c] ss:$40 sps:$4 sm:$0xff]  }
 0x73b   :  { %16074 = vmatpush2.bf16.msra.mxu1 %v22758_v12  ;;  %v22827_v12 = vld [vmem:[#allocation11 + $0x1818] ss:$40 sps:$4 sm:$0xff]  }
 0x73c   :  { %16075 = vmatprep.subr.bf16.mxu1 %v22766_v34  ;;  %v22835_v34 = vld [vmem:[#allocation11 + $0x17cc] ss:$40 sps:$4 sm:$0xff]  }
 0x73d   :  { %16125 = vmatpush2.bf16.msra.mxu0 %v22761_v5  ;;  %v22830_v5 = vld [vmem:[#allocation11 + $0xf08] ss:$40 sps:$4 sm:$0xff]  }
 0x73e   :  { %16180 = vmatprep.subr.bf16.mxu0 %v22769_v57  ;;  %v22838_v57 = vld [vmem:[#allocation11 + $0x13bc] ss:$40 sps:$4 sm:$0xff]  }
 0x73f   :  { %16076 = vmatpush2.bf16.msra.mxu1 %v22764_v9  ;;  %v22833_v9 = vld [vmem:[#allocation11 + $0x17c8] ss:$40 sps:$4 sm:$0xff]  }
 0x740   :  { %16127 = vmatmul.mubr.bf16.vlgmr.msra.gmra.mxu0 %v24374_v52  ;;  %16077 = vmatprep.subr.bf16.mxu1 %v22772_v0  ;;  %v22841_v0 = vld [vmem:[#allocation11 + $0x177c] ss:$40 sps:$4 sm:$0xff]  }
 0x741   :  { %16181 = vmatpush1.bf16.msra.mxu0 %v22767_v54  ;;  %16212 = vmatprep.mubr.bf16.mxu0 %v24479_v1  ;;  %v22836_v54 = vld [vmem:[#allocation11 + $0x13b8] ss:$40 sps:$4 sm:$0xff]  }
 0x742   :  { %16182 = vmatprep.subr.bf16.mxu0 %v22775_v29  ;;  %v22844_v29 = vld [vmem:[#allocation11 + $0x136c] ss:$40 sps:$4 sm:$0xff]  }
 0x743   :  { %16078 = vmatpush2.bf16.msra.mxu1 %v22770_v55  ;;  %v22839_v55 = vld [vmem:[#allocation11 + $0x1778] ss:$40 sps:$4 sm:$0xff]  }
 0x744   :  { %16079 = vmatprep.subr.bf16.mxu1 %v22778_v41  ;;  %v22847_v41 = vld [vmem:[#allocation11 + $0x172c] ss:$40 sps:$4 sm:$0xff]  }
 0x745   :  { %16183 = vmatpush1.bf16.msra.mxu0 %v22773_v17  ;;  %v22842_v17 = vld [vmem:[#allocation11 + $0x1368] ss:$40 sps:$4 sm:$0xff]  }
 0x746   :  { %16184 = vmatprep.subr.bf16.mxu0 %v22781_v46  ;;  %v22850_v46 = vld [vmem:[#allocation11 + $0x131c] ss:$40 sps:$4 sm:$0xff]  }
 0x747   :  { %16080 = vmatpush2.bf16.msra.mxu1 %v22776_v35  ;;  %v22845_v35 = vld [vmem:[#allocation11 + $0x1728] ss:$40 sps:$4 sm:$0xff]  }
 0x748   :  { %16081 = vmatprep.subr.bf16.mxu1 %v22784_v14  ;;  %v22853_v14 = vld [vmem:[#allocation11 + $0x16dc] ss:$40 sps:$4 sm:$0xff]  }
 0x749   :  { %16185 = vmatpush1.bf16.msra.mxu0 %v22779_v30  ;;  %v22848_v30 = vld [vmem:[#allocation11 + $0x1318] ss:$40 sps:$4 sm:$0xff]  }
 0x74a   :  { %16186 = vmatprep.subr.bf16.mxu0 %v22787_v56  ;;  %v22856_v56 = vld [vmem:[#allocation11 + $0x12cc] ss:$40 sps:$4 sm:$0xff]  }
 0x74b   :  { %16082 = vmatpush2.bf16.msra.mxu1 %v22782_v7  ;;  %v22851_v7 = vld [vmem:[#allocation11 + $0x16d8] ss:$40 sps:$4 sm:$0xff]  }
 0x74c   :  { %16137 = vmatprep.subr.bf16.mxu1 %v22790_v42  ;;  %v22859_v42 = vld [vmem:[#allocation11 + $0x168c] ss:$40 sps:$4 sm:$0xff]  }
 0x74d   :  { %16187 = vmatpush1.bf16.msra.mxu0 %v22785_v23  ;;  %v22854_v23 = vld [vmem:[#allocation11 + $0x12c8] ss:$40 sps:$4 sm:$0xff]  }
 0x74e   :  { %16084 = vmatmul.mubr.bf16.vlgmr.msra.gmra.mxu1 %v24324_v60  ;;  %16188 = vmatprep.subr.bf16.mxu0 %v22793_v40  ;;  %v22862_v40 = vld [vmem:[#allocation11 + $0x127c] ss:$40 sps:$4 sm:$0xff]  }
 0x74f   :  { %16138 = vmatpush1.bf16.msra.mxu1 %v22788_v11  ;;  %16169 = vmatprep.mubr.bf16.mxu1 %v24469_v63  ;;  %v22857_v11 = vld [vmem:[#allocation11 + $0x1688] ss:$40 sps:$4 sm:$0xff]  }
 0x750   :  { %16139 = vmatprep.subr.bf16.mxu1 %v22796_v51  ;;  %v22865_v51 = vld [vmem:[#allocation11 + $0x744] ss:$40 sps:$4 sm:$0xff]  }
 0x751   :  { %16189 = vmatpush1.bf16.msra.mxu0 %v22791_v45  ;;  %v22860_v45 = vld [vmem:[#allocation11 + $0x1278] ss:$40 sps:$4 sm:$0xff]  }
 0x752   :  { %16190 = vmatprep.subr.bf16.mxu0 %v22799_v61  ;;  %v22868_v61 = vld [vmem:[#allocation11 + $0x122c] ss:$40 sps:$4 sm:$0xff]  }
 0x753   :  { %16140 = vmatpush1.bf16.msra.mxu1 %v22794_v26  ;;  %v22863_v26 = vld [vmem:[#allocation11 + $0x740] ss:$40 sps:$4 sm:$0xff]  }
 0x754   :  { %16141 = vmatprep.subr.bf16.mxu1 %v22802_v47  ;;  %v22871_v47 = vld [vmem:[#allocation11 + $0x6f4] ss:$40 sps:$4 sm:$0xff]  }
 0x755   :  { %16191 = vmatpush1.bf16.msra.mxu0 %v22797_v27  ;;  %v22866_v27 = vld [vmem:[#allocation11 + $0x1228] ss:$40 sps:$4 sm:$0xff]  }
 0x756   :  { %16192 = vmatprep.subr.bf16.mxu0 %v22805_v44  ;;  %v22874_v44 = vld [vmem:[#allocation11 + $0x11dc] ss:$40 sps:$4 sm:$0xff]  }
 0x757   :  { %16142 = vmatpush1.bf16.msra.mxu1 %v22800_v28  ;;  %v22869_v28 = vld [vmem:[#allocation11 + $0x6f0] ss:$40 sps:$4 sm:$0xff]  }
 0x758   :  { %16143 = vmatprep.subr.bf16.mxu1 %v22808_v33  ;;  %v22877_v33 = vld [vmem:[#allocation11 + $0x6a4] ss:$40 sps:$4 sm:$0xff]  }
 0x759   :  { %16193 = vmatpush1.bf16.msra.mxu0 %v22803_v58  ;;  %v22872_v58 = vld [vmem:[#allocation11 + $0x11d8] ss:$40 sps:$4 sm:$0xff]  }
 0x75a   :  { %16194 = vmatprep.subr.bf16.mxu0 %v22811_v13  ;;  %v22880_v13 = vld [vmem:[#allocation11 + $0x118c] ss:$40 sps:$4 sm:$0xff]  }
 0x75b   :  { %16144 = vmatpush1.bf16.msra.mxu1 %v22806_v25  ;;  %v22875_v25 = vld [vmem:[#allocation11 + $0x6a0] ss:$40 sps:$4 sm:$0xff]  }
 0x75c   :  { %16145 = vmatprep.subr.bf16.mxu1 %v22814_v20  ;;  %v22883_v20 = vld [vmem:[#allocation11 + $0x654] ss:$40 sps:$4 sm:$0xff]  }
 0x75d   :  { %16195 = vmatpush1.bf16.msra.mxu0 %v22809_v49  ;;  %v22878_v49 = vld [vmem:[#allocation11 + $0x1188] ss:$40 sps:$4 sm:$0xff]  }
 0x75e   :  { %16196 = vmatprep.subr.bf16.mxu0 %v22817_v36  ;;  %v22886_v36 = vld [vmem:[#allocation11 + $0x244] ss:$40 sps:$4 sm:$0xff]  }
 0x75f   :  { %16146 = vmatpush1.bf16.msra.mxu1 %v22812_v37  ;;  %v22881_v37 = vld [vmem:[#allocation11 + $0x650] ss:$40 sps:$4 sm:$0xff]  }
 0x760   :  { %16147 = vmatprep.subr.bf16.mxu1 %v22820_v10  ;;  %v22889_v10 = vld [vmem:[#allocation11 + $0x604] ss:$40 sps:$4 sm:$0xff]  }
 0x761   :  { %16197 = vmatpush2.bf16.msra.mxu0 %v22815_v3  ;;  %v22884_v3 = vld [vmem:[#allocation11 + $0x240] ss:$40 sps:$4 sm:$0xff]  }
 0x762   :  { %16198 = vmatprep.subr.bf16.mxu0 %v22823_v24  ;;  %v22892_v24 = vld [vmem:[#allocation11 + $0x1f4] ss:$40 sps:$4 sm:$0xff]  }
 0x763   :  { %16148 = vmatpush1.bf16.msra.mxu1 %v22818_v8  ;;  %v22887_v8 = vld [vmem:[#allocation11 + $0x600] ss:$40 sps:$4 sm:$0xff]  }
 0x764   :  { %16149 = vmatprep.subr.bf16.mxu1 %v22826_v22  ;;  %v22895_v22 = vld [vmem:[#allocation11 + $0x5b4] ss:$40 sps:$4 sm:$0xff]  }
 0x765   :  { %16199 = vmatpush2.bf16.msra.mxu0 %v22821_v19  ;;  %v22890_v19 = vld [vmem:[#allocation11 + $0x1f0] ss:$40 sps:$4 sm:$0xff]  }
 0x766   :  { %16200 = vmatprep.subr.bf16.mxu0 %v22829_v59  ;;  %v22898_v59 = vld [vmem:[#allocation11 + $0x1a4] ss:$40 sps:$4 sm:$0xff]  }
 0x767   :  { %16150 = vmatpush1.bf16.msra.mxu1 %v22824_v18  ;;  %v22893_v18 = vld [vmem:[#allocation11 + $0x5b0] ss:$40 sps:$4 sm:$0xff]  }
 0x768   :  { %16151 = vmatprep.subr.bf16.mxu1 %v22832_v15  ;;  %v22901_v15 = vld [vmem:[#allocation11 + $0x564] ss:$40 sps:$4 sm:$0xff]  }
 0x769   :  { %16201 = vmatpush2.bf16.msra.mxu0 %v22827_v12  ;;  %v22896_v12 = vld [vmem:[#allocation11 + $0x1a0] ss:$40 sps:$4 sm:$0xff]  }
 0x76a   :  { %16202 = vmatprep.subr.bf16.mxu0 %v22835_v34  ;;  %v22904_v34 = vld [vmem:[#allocation11 + $0x154] ss:$40 sps:$4 sm:$0xff]  }
 0x76b   :  { %16152 = vmatpush1.bf16.msra.mxu1 %v22830_v5  ;;  %v22899_v5 = vld [vmem:[#allocation11 + $0x560] ss:$40 sps:$4 sm:$0xff]  }
 0x76c   :  { %16153 = vmatprep.subr.bf16.mxu1 %v22838_v57  ;;  %v22907_v57 = vld [vmem:[#allocation11 + $0x514] ss:$40 sps:$4 sm:$0xff]  }
 0x76d   :  { %16203 = vmatpush2.bf16.msra.mxu0 %v22833_v9  ;;  %v22902_v9 = vld [vmem:[#allocation11 + $0x150] ss:$40 sps:$4 sm:$0xff]  }
 0x76e   :  { %16204 = vmatprep.subr.bf16.mxu0 %v22841_v0  ;;  %v22910_v0 = vld [vmem:[#allocation11 + $0x104] ss:$40 sps:$4 sm:$0xff]  }
 0x76f   :  { %16154 = vmatpush2.bf16.msra.mxu1 %v22836_v54  ;;  %v22905_v54 = vld [vmem:[#allocation11 + $0x510] ss:$40 sps:$4 sm:$0xff]  }
 0x770   :  { %16155 = vmatprep.subr.bf16.mxu1 %v22844_v29  ;;  %v22913_v29 = vld [vmem:[#allocation11 + $0x9c4] ss:$40 sps:$4 sm:$0xff]  }
 0x771   :  { %16205 = vmatpush2.bf16.msra.mxu0 %v22839_v55  ;;  %v22908_v55 = vld [vmem:[#allocation11 + $0x100] ss:$40 sps:$4 sm:$0xff]  }
 0x772   :  { %16206 = vmatprep.subr.bf16.mxu0 %v22847_v41  ;;  %v22916_v41 = vld [vmem:[#allocation11 + $0xb4] ss:$40 sps:$4 sm:$0xff]  }
 0x773   :  { %16156 = vmatpush2.bf16.msra.mxu1 %v22842_v17  ;;  %v22911_v17 = vld [vmem:[#allocation11 + $0x9c0] ss:$40 sps:$4 sm:$0xff]  }
 0x774   :  { %16157 = vmatprep.subr.bf16.mxu1 %v22850_v46  ;;  %v22919_v46 = vld [vmem:[#allocation11 + $0x974] ss:$40 sps:$4 sm:$0xff]  }
 0x775   :  { %16207 = vmatpush2.bf16.msra.mxu0 %v22845_v35  ;;  %v22914_v35 = vld [vmem:[#allocation11 + $0xb0] ss:$40 sps:$4 sm:$0xff]  }
 0x776   :  { %16208 = vmatprep.subr.bf16.mxu0 %v22853_v14  ;;  %v22922_v14 = vld [vmem:[#allocation11 + $0x64] ss:$40 sps:$4 sm:$0xff]  }
 0x777   :  { %16158 = vmatpush2.bf16.msra.mxu1 %v22848_v30  ;;  %v22917_v30 = vld [vmem:[#allocation11 + $0x970] ss:$40 sps:$4 sm:$0xff]  }
 0x778   :  { %16159 = vmatprep.subr.bf16.mxu1 %v22856_v56  ;;  %v22925_v56 = vld [vmem:[#allocation11 + $0x924] ss:$40 sps:$4 sm:$0xff]  }
 0x779   :  { %16209 = vmatpush2.bf16.msra.mxu0 %v22851_v7  ;;  %v22920_v7 = vld [vmem:[#allocation11 + $0x60] ss:$40 sps:$4 sm:$0xff]  }
 0x77a   :  { %16210 = vmatprep.subr.bf16.mxu0 %v22859_v42  ;;  %v22928_v42 = vld [vmem:[#allocation11 + $0x14] ss:$40 sps:$4 sm:$0xff]  }
 0x77b   :  { %16160 = vmatpush2.bf16.msra.mxu1 %v22854_v23  ;;  %v22923_v23 = vld [vmem:[#allocation11 + $0x920] ss:$40 sps:$4 sm:$0xff]  }
 0x77c   :  { %16161 = vmatprep.subr.bf16.mxu1 %v22862_v40  ;;  %v22931_v40 = vld [vmem:[#allocation11 + $0x8d4] ss:$40 sps:$4 sm:$0xff]  }
 0x77d   :  { %16211 = vmatpush2.bf16.msra.mxu0 %v22857_v11  ;;  %v22926_v11 = vld [vmem:[#allocation11 + $0x10] ss:$40 sps:$4 sm:$0xff]  }
 0x77e   :  { %16266 = vmatprep.subr.bf16.mxu0 %v22865_v51  ;;  %v22934_v51 = vld [vmem:[#allocation11 + $0x4c4] ss:$40 sps:$4 sm:$0xff]  }
 0x77f   :  { %16162 = vmatpush2.bf16.msra.mxu1 %v22860_v45  ;;  %v22929_v45 = vld [vmem:[#allocation11 + $0x8d0] ss:$40 sps:$4 sm:$0xff]  }
 0x780   :  { %16213 = vmatmul.mubr.bf16.vlgmr.msra.gmra.mxu0 %v24481_v21  ;;  %16163 = vmatprep.subr.bf16.mxu1 %v22868_v61  ;;  %v22937_v61 = vld [vmem:[#allocation11 + $0x884] ss:$40 sps:$4 sm:$0xff]  }
 0x781   :  { %16267 = vmatpush1.bf16.msra.mxu0 %v22863_v26  ;;  %16298 = vmatprep.mubr.bf16.mxu0 %v24446_v4  ;;  %v22932_v26 = vld [vmem:[#allocation11 + $0x4c0] ss:$40 sps:$4 sm:$0xff]  }
 0x782   :  { %16268 = vmatprep.subr.bf16.mxu0 %v22871_v47  ;;  %v22940_v47 = vld [vmem:[#allocation11 + $0x474] ss:$40 sps:$4 sm:$0xff]  }
 0x783   :  { %16164 = vmatpush2.bf16.msra.mxu1 %v22866_v27  ;;  %v22935_v27 = vld [vmem:[#allocation11 + $0x880] ss:$40 sps:$4 sm:$0xff]  }
 0x784   :  { %16165 = vmatprep.subr.bf16.mxu1 %v22874_v44  ;;  %v22943_v44 = vld [vmem:[#allocation11 + $0x834] ss:$40 sps:$4 sm:$0xff]  }
 0x785   :  { %16269 = vmatpush1.bf16.msra.mxu0 %v22869_v28  ;;  %v22938_v28 = vld [vmem:[#allocation11 + $0x470] ss:$40 sps:$4 sm:$0xff]  }
 0x786   :  { %16270 = vmatprep.subr.bf16.mxu0 %v22877_v33  ;;  %v22946_v33 = vld [vmem:[#allocation11 + $0x424] ss:$40 sps:$4 sm:$0xff]  }
 0x787   :  { %16166 = vmatpush2.bf16.msra.mxu1 %v22872_v58  ;;  %v22941_v58 = vld [vmem:[#allocation11 + $0x830] ss:$40 sps:$4 sm:$0xff]  }
 0x788   :  { %16167 = vmatprep.subr.bf16.mxu1 %v22880_v13  ;;  %v22949_v13 = vld [vmem:[#allocation11 + $0x7e4] ss:$40 sps:$4 sm:$0xff]  }
 0x789   :  { %16271 = vmatpush1.bf16.msra.mxu0 %v22875_v25  ;;  %v22944_v25 = vld [vmem:[#allocation11 + $0x420] ss:$40 sps:$4 sm:$0xff]  }
 0x78a   :  { %16272 = vmatprep.subr.bf16.mxu0 %v22883_v20  ;;  %v22952_v20 = vld [vmem:[#allocation11 + $0x3d4] ss:$40 sps:$4 sm:$0xff]  }
 0x78b   :  { %16168 = vmatpush2.bf16.msra.mxu1 %v22878_v49  ;;  %v22947_v49 = vld [vmem:[#allocation11 + $0x7e0] ss:$40 sps:$4 sm:$0xff]  }
 0x78c   :  { %16223 = vmatprep.subr.bf16.mxu1 %v22886_v36  ;;  %v22955_v36 = vld [vmem:[#allocation11 + $0x794] ss:$40 sps:$4 sm:$0xff]  }
 0x78d   :  { %16273 = vmatpush1.bf16.msra.mxu0 %v22881_v37  ;;  %v22950_v37 = vld [vmem:[#allocation11 + $0x3d0] ss:$40 sps:$4 sm:$0xff]  }
 0x78e   :  { %16170 = vmatmul.mubr.bf16.vlgmr.msra.gmra.mxu1 %v24456_v16  ;;  %16274 = vmatprep.subr.bf16.mxu0 %v22889_v10  ;;  %v22958_v10 = vld [vmem:[#allocation11 + $0x384] ss:$40 sps:$4 sm:$0xff]  }
 0x78f   :  { %16224 = vmatpush1.bf16.msra.mxu1 %v22884_v3  ;;  %16255 = vmatprep.mubr.bf16.mxu1 %v24390_v50  ;;  %v22953_v3 = vld [vmem:[#allocation11 + $0x790] ss:$40 sps:$4 sm:$0xff]  }
 0x790   :  { %16225 = vmatprep.subr.bf16.mxu1 %v22892_v24  ;;  %v22961_v24 = vld [vmem:[#allocation11 + $0x1144] ss:$40 sps:$4 sm:$0xff]  }
 0x791   :  { %16275 = vmatpush1.bf16.msra.mxu0 %v22887_v8  ;;  %v22956_v8 = vld [vmem:[#allocation11 + $0x380] ss:$40 sps:$4 sm:$0xff]  }
 0x792   :  { %16276 = vmatprep.subr.bf16.mxu0 %v22895_v22  ;;  %v22964_v22 = vld [vmem:[#allocation11 + $0x334] ss:$40 sps:$4 sm:$0xff]  }
 0x793   :  { %16226 = vmatpush1.bf16.msra.mxu1 %v22890_v19  ;;  %v22959_v19 = vld [vmem:[#allocation11 + $0x1140] ss:$40 sps:$4 sm:$0xff]  }
 0x794   :  { %16227 = vmatprep.subr.bf16.mxu1 %v22898_v59  ;;  %v22967_v59 = vld [vmem:[#allocation11 + $0x10f4] ss:$40 sps:$4 sm:$0xff]  }
 0x795   :  { %16277 = vmatpush1.bf16.msra.mxu0 %v22893_v18  ;;  %v22962_v18 = vld [vmem:[#allocation11 + $0x330] ss:$40 sps:$4 sm:$0xff]  }
 0x796   :  { %16278 = vmatprep.subr.bf16.mxu0 %v22901_v15  ;;  %v22970_v15 = vld [vmem:[#allocation11 + $0x2e4] ss:$40 sps:$4 sm:$0xff]  }
 0x797   :  { %16228 = vmatpush1.bf16.msra.mxu1 %v22896_v12  ;;  %v22965_v12 = vld [vmem:[#allocation11 + $0x10f0] ss:$40 sps:$4 sm:$0xff]  }
 0x798   :  { %16229 = vmatprep.subr.bf16.mxu1 %v22904_v34  ;;  %v22973_v34 = vld [vmem:[#allocation11 + $0x10a4] ss:$40 sps:$4 sm:$0xff]  }
 0x799   :  { %16279 = vmatpush1.bf16.msra.mxu0 %v22899_v5  ;;  %v22968_v5 = vld [vmem:[#allocation11 + $0x2e0] ss:$40 sps:$4 sm:$0xff]  }
 0x79a   :  { %16280 = vmatprep.subr.bf16.mxu0 %v22907_v57  ;;  %v22976_v57 = vld [vmem:[#allocation11 + $0x294] ss:$40 sps:$4 sm:$0xff]  }
 0x79b   :  { %16230 = vmatpush1.bf16.msra.mxu1 %v22902_v9  ;;  %v22971_v9 = vld [vmem:[#allocation11 + $0x10a0] ss:$40 sps:$4 sm:$0xff]  }
 0x79c   :  { %16231 = vmatprep.subr.bf16.mxu1 %v22910_v0  ;;  %v22979_v0 = vld [vmem:[#allocation11 + $0x1054] ss:$40 sps:$4 sm:$0xff]  }
 0x79d   :  { %16281 = vmatpush1.bf16.msra.mxu0 %v22905_v54  ;;  %v22974_v54 = vld [vmem:[#allocation11 + $0x290] ss:$40 sps:$4 sm:$0xff]  }
 0x79e   :  { %16282 = vmatprep.subr.bf16.mxu0 %v22913_v29  ;;  %v22982_v29 = vld [vmem:[#allocation11 + $0xc44] ss:$40 sps:$4 sm:$0xff]  }
 0x79f   :  { %16232 = vmatpush1.bf16.msra.mxu1 %v22908_v55  ;;  %v22977_v55 = vld [vmem:[#allocation11 + $0x1050] ss:$40 sps:$4 sm:$0xff]  }
 0x7a0   :  { %16233 = vmatprep.subr.bf16.mxu1 %v22916_v41  ;;  %v22985_v41 = vld [vmem:[#allocation11 + $0x1004] ss:$40 sps:$4 sm:$0xff]  }
 0x7a1   :  { %16283 = vmatpush2.bf16.msra.mxu0 %v22911_v17  ;;  %v22980_v17 = vld [vmem:[#allocation11 + $0xc40] ss:$40 sps:$4 sm:$0xff]  }
 0x7a2   :  { %16284 = vmatprep.subr.bf16.mxu0 %v22919_v46  ;;  %v22988_v46 = vld [vmem:[#allocation11 + $0xbf4] ss:$40 sps:$4 sm:$0xff]  }
 0x7a3   :  { %16234 = vmatpush1.bf16.msra.mxu1 %v22914_v35  ;;  %v22983_v35 = vld [vmem:[#allocation11 + $0x1000] ss:$40 sps:$4 sm:$0xff]  }
 0x7a4   :  { %16235 = vmatprep.subr.bf16.mxu1 %v22922_v14  ;;  %v22991_v14 = vld [vmem:[#allocation11 + $0xfb4] ss:$40 sps:$4 sm:$0xff]  }
 0x7a5   :  { %16285 = vmatpush2.bf16.msra.mxu0 %v22917_v30  ;;  %v22986_v30 = vld [vmem:[#allocation11 + $0xbf0] ss:$40 sps:$4 sm:$0xff]  }
 0x7a6   :  { %16286 = vmatprep.subr.bf16.mxu0 %v22925_v56  ;;  %v22994_v56 = vld [vmem:[#allocation11 + $0xba4] ss:$40 sps:$4 sm:$0xff]  }
 0x7a7   :  { %16236 = vmatpush1.bf16.msra.mxu1 %v22920_v7  ;;  %v22989_v7 = vld [vmem:[#allocation11 + $0xfb0] ss:$40 sps:$4 sm:$0xff]  }
 0x7a8   :  { %16237 = vmatprep.subr.bf16.mxu1 %v22928_v42  ;;  %v22997_v42 = vld [vmem:[#allocation11 + $0xf64] ss:$40 sps:$4 sm:$0xff]  }
 0x7a9   :  { %16287 = vmatpush2.bf16.msra.mxu0 %v22923_v23  ;;  %v22992_v23 = vld [vmem:[#allocation11 + $0xba0] ss:$40 sps:$4 sm:$0xff]  }
 0x7aa   :  { %16288 = vmatprep.subr.bf16.mxu0 %v22931_v40  ;;  %v23000_v40 = vld [vmem:[#allocation11 + $0xb54] ss:$40 sps:$4 sm:$0xff]  }
 0x7ab   :  { %16238 = vmatpush1.bf16.msra.mxu1 %v22926_v11  ;;  %v22995_v11 = vld [vmem:[#allocation11 + $0xf60] ss:$40 sps:$4 sm:$0xff]  }
 0x7ac   :  { %16239 = vmatprep.subr.bf16.mxu1 %v22934_v51  ;;  %v23003_v51 = vld [vmem:[#allocation11 + $0xf14] ss:$40 sps:$4 sm:$0xff]  }
 0x7ad   :  { %16289 = vmatpush2.bf16.msra.mxu0 %v22929_v45  ;;  %v22998_v45 = vld [vmem:[#allocation11 + $0xb50] ss:$40 sps:$4 sm:$0xff]  }
 0x7ae   :  { %16290 = vmatprep.subr.bf16.mxu0 %v22937_v61  ;;  %v23006_v61 = vld [vmem:[#allocation11 + $0xb04] ss:$40 sps:$4 sm:$0xff]  }
 0x7af   :  { %16240 = vmatpush2.bf16.msra.mxu1 %v22932_v26  ;;  %v23001_v26 = vld [vmem:[#allocation11 + $0xf10] ss:$40 sps:$4 sm:$0xff]  }
 0x7b0   :  { %16241 = vmatprep.subr.bf16.mxu1 %v22940_v47  ;;  %v23009_v47 = vld [vmem:[#allocation11 + $0x13c4] ss:$40 sps:$4 sm:$0xff]  }
 0x7b1   :  { %16291 = vmatpush2.bf16.msra.mxu0 %v22935_v27  ;;  %v23004_v27 = vld [vmem:[#allocation11 + $0xb00] ss:$40 sps:$4 sm:$0xff]  }
 0x7b2   :  { %16292 = vmatprep.subr.bf16.mxu0 %v22943_v44  ;;  %v23012_v44 = vld [vmem:[#allocation11 + $0xab4] ss:$40 sps:$4 sm:$0xff]  }
 0x7b3   :  { %16242 = vmatpush2.bf16.msra.mxu1 %v22938_v28  ;;  %v23007_v28 = vld [vmem:[#allocation11 + $0x13c0] ss:$40 sps:$4 sm:$0xff]  }
 0x7b4   :  { %16243 = vmatprep.subr.bf16.mxu1 %v22946_v33  ;;  %v23015_v33 = vld [vmem:[#allocation11 + $0x1374] ss:$40 sps:$4 sm:$0xff]  }
 0x7b5   :  { %16293 = vmatpush2.bf16.msra.mxu0 %v22941_v58  ;;  %v23010_v58 = vld [vmem:[#allocation11 + $0xab0] ss:$40 sps:$4 sm:$0xff]  }
 0x7b6   :  { %16294 = vmatprep.subr.bf16.mxu0 %v22949_v13  ;;  %v24498_v13 = vpop.f32.mrf.mxu0 }
 0x7b7   :  { %16244 = vmatpush2.bf16.msra.mxu1 %v22944_v25  ;;  %v23018_v25 = vld [vmem:[#allocation11 + $0xa64] ss:$40 sps:$4 sm:$0xff]  }
 0x7b8   :  { %16245 = vmatprep.subr.bf16.mxu1 %v22952_v20  ;;  %v23013_v20 = vld [vmem:[#allocation11 + $0x1370] ss:$40 sps:$4 sm:$0xff]  }
 0x7b9   :  { %16295 = vmatpush2.bf16.msra.mxu0 %v22947_v49  ;;  %v23021_v49 = vld [vmem:[#allocation11 + $0x1324] ss:$40 sps:$4 sm:$0xff]  }
 0x7ba   :  { %16296 = vmatprep.subr.bf16.mxu0 %v22955_v36  ;;  %v23016_v36 = vld [vmem:[#allocation11 + $0xa60] ss:$40 sps:$4 sm:$0xff]  }
 0x7bb   :  { %16246 = vmatpush2.bf16.msra.mxu1 %v22950_v37  ;;  %v24500_v37 = vpop.f32.mrf.mxu1 }
 0x7bc   :  { %16247 = vmatprep.subr.bf16.mxu1 %v22958_v10  ;;  %v24502_v10 = vpop.f32.mrf.mxu0 }
 0x7bd   :  { %16297 = vmatpush2.bf16.msra.mxu0 %v22953_v3  ;;  %v23024_v3 = vld [vmem:[#allocation11 + $0xa14] ss:$40 sps:$4 sm:$0xff]  }
 0x7be   :  { %16352 = vmatprep.subr.bf16.mxu0 %v22961_v24  ;;  %v23019_v24 = vld [vmem:[#allocation11 + $0x1320] ss:$40 sps:$4 sm:$0xff]  }
 0x7bf   :  { %16248 = vmatpush2.bf16.msra.mxu1 %v22956_v8  ;;  %v23027_v8 = vld [vmem:[#allocation11 + $0x12d4] ss:$40 sps:$4 sm:$0xff]  }
 0x7c0   :  { %16299 = vmatmul.mubr.bf16.vlgmr.msra.gmra.mxu0 %v24324_v60  ;;  %16249 = vmatprep.subr.bf16.mxu1 %v22964_v22  ;;  %v23022_v22 = vld [vmem:[#allocation11 + $0xa10] ss:$40 sps:$4 sm:$0xff]  }
 0x7c1   :  { %16353 = vmatpush1.bf16.msra.mxu0 %v22959_v19  ;;  %16384 = vmatprep.mubr.bf16.mxu0 %v24469_v63  ;;  %v24504_v19 = vpop.f32.mrf.mxu1 }
 0x7c2   :  { %16354 = vmatprep.subr.bf16.mxu0 %v22967_v59  ;;  %v24506_v59 = vpop.f32.mrf.mxu0 }
 0x7c3   :  { %16250 = vmatpush2.bf16.msra.mxu1 %v22962_v18  ;;  %v23030_v18 = vld [vmem:[#allocation11 + $0xec4] ss:$40 sps:$4 sm:$0xff]  }
 0x7c4   :  { %16251 = vmatprep.subr.bf16.mxu1 %v22970_v15  ;;  %v23025_v15 = vld [vmem:[#allocation11 + $0x12d0] ss:$40 sps:$4 sm:$0xff]  }
 0x7c5   :  { %16355 = vmatpush1.bf16.msra.mxu0 %v22965_v12  ;;  %v23033_v12 = vld [vmem:[#allocation11 + $0x1284] ss:$40 sps:$4 sm:$0xff]  }
 0x7c6   :  { %16356 = vmatprep.subr.bf16.mxu0 %v22973_v34  ;;  %v23028_v34 = vld [vmem:[#allocation11 + $0xec0] ss:$40 sps:$4 sm:$0xff]  }
 0x7c7   :  { %16252 = vmatpush2.bf16.msra.mxu1 %v22968_v5  ;;  %v24508_v5 = vpop.f32.mrf.mxu1 }
 0x7c8   :  { %16253 = vmatprep.subr.bf16.mxu1 %v22976_v57  ;;  %v24510_v57 = vpop.f32.mrf.mxu0 }
 0x7c9   :  { %16357 = vmatpush1.bf16.msra.mxu0 %v22971_v9  ;;  %v23036_v9 = vld [vmem:[#allocation11 + $0xe74] ss:$40 sps:$4 sm:$0xff]  }
 0x7ca   :  { %16358 = vmatprep.subr.bf16.mxu0 %v22979_v0  ;;  %v23031_v0 = vld [vmem:[#allocation11 + $0x1280] ss:$40 sps:$4 sm:$0xff]  }
 0x7cb   :  { %16254 = vmatpush2.bf16.msra.mxu1 %v22974_v54  ;;  %v24512_v54 = vpop.f32.mrf.mxu0 }
 0x7cc   :  { %16309 = vmatprep.subr.bf16.mxu1 %v22982_v29  ;;  %v23039_v29 = vld [vmem:[#allocation11 + $0x1234] ss:$40 sps:$4 sm:$0xff]  }
 0x7cd   :  { %16359 = vmatpush1.bf16.msra.mxu0 %v22977_v55  ;;  %v23034_v55 = vld [vmem:[#allocation11 + $0xe70] ss:$40 sps:$4 sm:$0xff]  }
 0x7ce   :  { %16256 = vmatmul.mubr.bf16.vlgmr.msra.gmra.mxu1 %v24287_v6  ;;  %16360 = vmatprep.subr.bf16.mxu0 %v22985_v41  ;;  %v24514_v41 = vpop.f32.mrf.mxu1 }
 0x7cf   :  { %16310 = vmatpush1.bf16.msra.mxu1 %v22980_v17  ;;  %16341 = vmatprep.mubr.bf16.mxu1 %v24432_v53  ;;  %v23042_v17 = vld [vmem:[#allocation11 + $0xe24] ss:$40 sps:$4 sm:$0xff]  }
 0x7d0   :  { %16311 = vmatprep.subr.bf16.mxu1 %v22988_v46  ;;  %v23037_v46 = vld [vmem:[#allocation11 + $0x1230] ss:$40 sps:$4 sm:$0xff]  }
 0x7d1   :  { %16361 = vmatpush1.bf16.msra.mxu0 %v22983_v35  ;;  %v24516_v35 = vpop.f32.mrf.mxu1 }
 0x7d2   :  { %16362 = vmatprep.subr.bf16.mxu0 %v22991_v14  ;;  %v24518_v14 = vpop.f32.mrf.mxu0 }
 0x7d3   :  { %16312 = vmatpush1.bf16.msra.mxu1 %v22986_v30  ;;  %v23045_v30 = vld [vmem:[#allocation11 + $0x11e4] ss:$40 sps:$4 sm:$0xff]  }
 0x7d4   :  { %16313 = vmatprep.subr.bf16.mxu1 %v22994_v56  ;;  %v23040_v56 = vld [vmem:[#allocation11 + $0xe20] ss:$40 sps:$4 sm:$0xff]  }
 0x7d5   :  { %16363 = vmatpush1.bf16.msra.mxu0 %v22989_v7  ;;  %v23048_v7 = vld [vmem:[#allocation11 + $0xdd4] ss:$40 sps:$4 sm:$0xff]  }
 0x7d6   :  { %16364 = vmatprep.subr.bf16.mxu0 %v22997_v42  ;;  %v23043_v42 = vld [vmem:[#allocation11 + $0x11e0] ss:$40 sps:$4 sm:$0xff]  }
 0x7d7   :  { %16314 = vmatpush1.bf16.msra.mxu1 %v22992_v23  ;;  %v24520_v23 = vpop.f32.mrf.mxu1 }
 0x7d8   :  { %16315 = vmatprep.subr.bf16.mxu1 %v23000_v40  ;;  %v24522_v40 = vpop.f32.mrf.mxu0 }
 0x7d9   :  { %16365 = vmatpush1.bf16.msra.mxu0 %v22995_v11  ;;  %v23051_v11 = vld [vmem:[#allocation11 + $0x1194] ss:$40 sps:$4 sm:$0xff]  }
 0x7da   :  { %16366 = vmatprep.subr.bf16.mxu0 %v23003_v51  ;;  %v23046_v51 = vld [vmem:[#allocation11 + $0xdd0] ss:$40 sps:$4 sm:$0xff]  }
 0x7db   :  { %16316 = vmatpush1.bf16.msra.mxu1 %v22998_v45  ;;  %v23054_v45 = vld [vmem:[#allocation11 + $0xd84] ss:$40 sps:$4 sm:$0xff]  }
 0x7dc   :  { %16317 = vmatprep.subr.bf16.mxu1 %v23006_v61  ;;  %v23049_v61 = vld [vmem:[#allocation11 + $0x1190] ss:$40 sps:$4 sm:$0xff]  }
 0x7dd   :  { %16367 = vmatpush1.bf16.msra.mxu0 %v23001_v26  ;;  %v24524_v26 = vpop.f32.mrf.mxu1 }
 0x7de   :  { %16368 = vmatprep.subr.bf16.mxu0 %v23009_v47  ;;  %v24526_v47 = vpop.f32.mrf.mxu0 }
 0x7df   :  { %16318 = vmatpush1.bf16.msra.mxu1 %v23004_v27  ;;  %v23057_v27 = vld [vmem:[#allocation11 + $0x24c] ss:$40 sps:$4 sm:$0xff]  }
 0x7e0   :  { %16319 = vmatprep.subr.bf16.mxu1 %v23012_v44  ;;  %v23052_v44 = vld [vmem:[#allocation11 + $0xd80] ss:$40 sps:$4 sm:$0xff]  }
 0x7e1   :  { %16369 = vmatpush2.bf16.msra.mxu0 %v23007_v28  ;;  %v16042_v28 = vpop.f32.mrf.mxu0 }
 0x7e2   :  { %16370 = vmatprep.subr.bf16.mxu0 %v23015_v33  ;;  %v23060_v33 = vld [vmem:[#allocation11 + $0xd34] ss:$40 sps:$4 sm:$0xff]  }
 0x7e3   :  { %16320 = vmatpush1.bf16.msra.mxu1 %v23010_v58  ;;  %v23055_v58 = vld [vmem:[#allocation11 + $0x248] ss:$40 sps:$4 sm:$0xff]  }
 0x7e4   :  { %16321 = vmatprep.subr.bf16.mxu1 %v23018_v25  ;;  %v24528_v25 = vpop.f32.mrf.mxu1 }
 0x7e5   :  { %16371 = vmatpush2.bf16.msra.mxu0 %v23013_v20  ;;  %v23063_v20 = vld [vmem:[#allocation11 + $0x1fc] ss:$40 sps:$4 sm:$0xff]  }
 0x7e6   :  { %16372 = vmatprep.subr.bf16.mxu0 %v23021_v49  ;;  %v23058_v49 = vld [vmem:[#allocation11 + $0xd30] ss:$40 sps:$4 sm:$0xff]  }
 0x7e7   :  { %16322 = vmatpush1.bf16.msra.mxu1 %v23016_v36  ;;  %v16044_v36 = vpop.f32.mrf.mxu0 }
 0x7e8   :  { %16323 = vmatprep.subr.bf16.mxu1 %v23024_v3  ;;  %v24530_v3 = vpop.f32.mrf.mxu1 }
 0x7e9   :  { %16373 = vmatpush2.bf16.msra.mxu0 %v23019_v24  ;;  %v23066_v24 = vld [vmem:[#allocation11 + $0xce4] ss:$40 sps:$4 sm:$0xff]  }
 0x7ea   :  { %16374 = vmatprep.subr.bf16.mxu0 %v23027_v8  ;;  %v23061_v8 = vld [vmem:[#allocation11 + $0x1f8] ss:$40 sps:$4 sm:$0xff]  }
 0x7eb   :  { %16324 = vmatpush1.bf16.msra.mxu1 %v23022_v22  ;;  %v23069_v22 = vld [vmem:[#allocation11 + $0x1ac] ss:$40 sps:$4 sm:$0xff]  }
 0x7ec   :  { %16325 = vmatprep.subr.bf16.mxu1 %v23030_v18  ;;  %v23064_v18 = vld [vmem:[#allocation11 + $0xce0] ss:$40 sps:$4 sm:$0xff]  }
 0x7ed   :  { %16375 = vmatpush2.bf16.msra.mxu0 %v23025_v15  ;;  %v16046_v15 = vpop.f32.mrf.mxu0 }
 0x7ee   :  { %16376 = vmatprep.subr.bf16.mxu0 %v23033_v12  ;;  %v24534_v12 = vpop.f32.mrf.mxu1 }
 0x7ef   :  { %16326 = vmatpush2.bf16.msra.mxu1 %v23028_v34  ;;  %v23072_v34 = vld [vmem:[#allocation11 + $0xc94] ss:$40 sps:$4 sm:$0xff]  }
 0x7f0   :  { %16327 = vmatprep.subr.bf16.mxu1 %v23036_v9  ;;  %v23067_v9 = vld [vmem:[#allocation11 + $0x1a8] ss:$40 sps:$4 sm:$0xff]  }
 0x7f1   :  { %16377 = vmatpush2.bf16.msra.mxu0 %v23031_v0  ;;  %v23075_v0 = vld [vmem:[#allocation11 + $0x15c] ss:$40 sps:$4 sm:$0xff]  }
 0x7f2   :  { %16378 = vmatprep.subr.bf16.mxu0 %v23039_v29  ;;  %v23070_v29 = vld [vmem:[#allocation11 + $0xc90] ss:$40 sps:$4 sm:$0xff]  }
 0x7f3   :  { %16328 = vmatpush2.bf16.msra.mxu1 %v23034_v55  ;;  %v11739_v55 = vld [vmem:[#allocation13] sm:$0xff] }
 0x7f4   :  { %16329 = vmatprep.subr.bf16.mxu1 %v23042_v17  ;;  %v16048_v17 = vpop.f32.mrf.mxu0 }
 0x7f5   :  { %16379 = vmatpush2.bf16.msra.mxu0 %v23037_v46  ;;  %v24536_v46 = vpop.f32.mrf.mxu1 }
 0x7f6   :  { %16380 = vmatprep.subr.bf16.mxu0 %v23045_v30  ;;  %v23078_v30 = vld [vmem:[#allocation11 + $0x1644] ss:$40 sps:$4 sm:$0xff]  }
 0x7f7   :  { %16330 = vmatpush2.bf16.msra.mxu1 %v23040_v56  ;;  %v11754_v56 = vrot.slane %v11739_v55, %v24067_v43  ;;  %v23087_v43 = vld [vmem:[#allocation11 + $0xbc] ss:$40 sps:$4 sm:$0xff]  }
 0x7f8   :  { %16331 = vmatprep.subr.bf16.mxu1 %v23048_v7  ;;  %v23073_v7 = vld [vmem:[#allocation11 + $0x158] ss:$40 sps:$4 sm:$0xff]  }
 0x7f9   :  { %16381 = vmatpush2.bf16.msra.mxu0 %v23043_v42 }
 0x7fa   :  { %16382 = vmatprep.subr.bf16.mxu0 %v23051_v11  ;;  %v23081_v11 = vld [vmem:[#allocation11 + $0x10c] ss:$40 sps:$4 sm:$0xff]  }
 0x7fb   :  { %16332 = vmatpush2.bf16.msra.mxu1 %v23046_v51  ;;  %v11758_v51 = vrot.slane %v11739_v55, %v24145_v48  ;;  %v23082_v48 = vld [vmem:[#allocation11 + $0x15f0] ss:$40 sps:$4 sm:$0xff]   ;;  %v23093_v55 = vld [vmem:[#allocation11 + $0x6c] ss:$40 sps:$4 sm:$0xff]  }
 0x7fc   :  { %16333 = vmatprep.subr.bf16.mxu1 %v23054_v45  ;;  %v23076_v45 = vld [vmem:[#allocation11 + $0x1640] ss:$40 sps:$4 sm:$0xff]  }
 0x7fd   :  { %16383 = vmatpush2.bf16.msra.mxu0 %v23049_v61  ;;  %v24540_v61 = vpop.f32.mrf.mxu1 }
 0x7fe   :  { %16438 = vmatprep.subr.bf16.mxu0 %v23057_v27  ;;  %v23084_v27 = vld [vmem:[#allocation11 + $0x15f4] ss:$40 sps:$4 sm:$0xff]  }
 0x7ff   :  { %16334 = vmatpush2.bf16.msra.mxu1 %v23052_v44  ;;  %v16043_v44 = vadd.f32 %v16042_v28, %v11754_v56  ;;  %v23085_v28 = vld [vmem:[#allocation11 + $0xb8] ss:$40 sps:$4 sm:$0xff]  }
 0x800   :  { %16385 = vmatmul.mubr.bf16.vlgmr.msra.gmra.mxu0 %v24456_v16  ;;  %16335 = vmatprep.subr.bf16.mxu1 %v23060_v33  ;;  %v16128_v42 = vpop.f32.mrf.mxu0  ;;  %v23079_v33 = vld [vmem:[#allocation11 + $0x108] ss:$40 sps:$4 sm:$0xff]  }
 0x801   :  { %16439 = vmatpush1.bf16.msra.mxu0 %v23055_v58  ;;  %16470 = vmatprep.mubr.bf16.mxu0 %v24390_v50 }
 0x802   :  { %16440 = vmatprep.subr.bf16.mxu0 %v23063_v20  ;;  %v16130_v58 = vpop.f32.mrf.mxu0 }
 0x803   :  { %16336 = vmatpush2.bf16.msra.mxu1 %v23058_v49  ;;  %v16045_v49 = vadd.f32 %v16044_v36, %v11758_v51 }
 0x804   :  { %16337 = vmatprep.subr.bf16.mxu1 %v23066_v24 }
 0x805   :  { %16441 = vmatpush1.bf16.msra.mxu0 %v23061_v8 }
 0x806   :  { %16442 = vmatprep.subr.bf16.mxu0 %v23069_v22  ;;  %v23090_v22 = vld [vmem:[#allocation11 + $0x15a4] ss:$40 sps:$4 sm:$0xff]  }
 0x807   :  { %16338 = vmatpush2.bf16.msra.mxu1 %v23064_v18  ;;  %v16047_v18 = vadd.f32 %v16046_v15, %v11754_v56  ;;  %v23091_v15 = vld [vmem:[#allocation11 + $0x68] ss:$40 sps:$4 sm:$0xff]  }
 0x808   :  { %16339 = vmatprep.subr.bf16.mxu1 %v23072_v34 }
 0x809   :  { %16443 = vmatpush1.bf16.msra.mxu0 %v23067_v9 }
 0x80a   :  { %16444 = vmatprep.subr.bf16.mxu0 %v23075_v0  ;;  %v16132_v0 = vpop.f32.mrf.mxu0 }
 0x80b   :  { %16340 = vmatpush2.bf16.msra.mxu1 %v23070_v29 }
 0x80c   :  { %16395 = vmatprep.subr.bf16.mxu1 %v23078_v30  ;;  %v16049_v30 = vadd.f32 %v16048_v17, %v11758_v51  ;;  %v23102_v17 = vld [vmem:[#allocation11 + $0x1504] ss:$40 sps:$4 sm:$0xff]   ;;  %v23097_v51 = vld [vmem:[#allocation11 + $0x18] ss:$40 sps:$4 sm:$0xff]  }
 0x80d   :  { %16445 = vmatpush1.bf16.msra.mxu0 %v23073_v7  ;;  %v23088_v7 = vld [vmem:[#allocation11 + $0x15a0] ss:$40 sps:$4 sm:$0xff]  }
 0x80e   :  { %v16085_v20 = vpop.f32.mrf.mxu1  ;;  %16342 = vmatmul.mubr.bf16.vlgmr.msra.gmra.mxu1 %v24374_v52  ;;  %16446 = vmatprep.subr.bf16.mxu0 %v23081_v11 }
 0x80f   :  { %v16086_v24 = vadd.f32 %v16085_v20, %v16043_v44  ;;  %16396 = vmatpush1.bf16.msra.mxu1 %v23076_v45  ;;  %16427 = vmatprep.mubr.bf16.mxu1 %v24479_v1  ;;  %v23094_v20 = vld [vmem:[#allocation11 + $0x1550] ss:$40 sps:$4 sm:$0xff]  }
 0x810   :  { %v16087_v8 = vpop.f32.mrf.mxu1  ;;  %16397 = vmatprep.subr.bf16.mxu1 %v23084_v27  ;;  %v23096_v27 = vld [vmem:[#allocation11 + $0x1554] ss:$40 sps:$4 sm:$0xff]  }
 0x811   :  { %v16088_v34 = vadd.f32 %v16087_v8, %v16045_v49  ;;  %16447 = vmatpush1.bf16.msra.mxu0 %v23079_v33  ;;  %v24544_v9 = vadd.f32 %v16128_v42, %v16086_v24  ;;  %v16134_v42 = vpop.f32.mrf.mxu0  ;;  %v23099_v33 = vld [vmem:[#allocation11 + $0x1c] ss:$40 sps:$4 sm:$0xff]   ;;  %v23100_v49 = vld [vmem:[#allocation11 + $0x1500] ss:$40 sps:$4 sm:$0xff]  }
 0x812   :  { %v16089_v29 = vpop.f32.mrf.mxu1  ;;  %16448 = vmatprep.subr.bf16.mxu0 %v23087_v43  ;;  %v23108_v24 = vld [vmem:[#allocation11 + $0x14b4] ss:$40 sps:$4 sm:$0xff]  }
 0x813   :  { %v16090_v36 = vadd.f32 %v16089_v29, %v16047_v18  ;;  %16398 = vmatpush1.bf16.msra.mxu1 %v23082_v48  ;;  %v24546_v11 = vadd.f32 %v16130_v58, %v16088_v34  ;;  %v23105_v58 = vld [vmem:[#allocation11 + $0x4cc] ss:$40 sps:$4 sm:$0xff]   ;;  %v23103_v48 = vld [vmem:[#allocation11 + $0x4c8] ss:$40 sps:$4 sm:$0xff]   ;;  %v23111_v8 = vld [vmem:[#allocation11 + $0x47c] ss:$40 sps:$4 sm:$0xff]  }
 0x814   :  { %v16091_v45 = vpop.f32.mrf.mxu1  ;;  %16399 = vmatprep.subr.bf16.mxu1 %v23090_v22  ;;  %v23106_v22 = vld [vmem:[#allocation11 + $0x14b0] ss:$40 sps:$4 sm:$0xff]   ;;  %v23114_v18 = vld [vmem:[#allocation11 + $0x1464] ss:$40 sps:$4 sm:$0xff]   ;;  %v23120_v29 = vld [vmem:[#allocation11 + $0x1414] ss:$40 sps:$4 sm:$0xff]  }
 0x815   :  { %v16092_v44 = vadd.f32 %v16091_v45, %v16049_v30  ;;  %16449 = vmatpush1.bf16.msra.mxu0 %v23085_v28  ;;  %v24548_v56 = vadd.f32 %v16132_v0, %v16090_v36  ;;  %v23109_v34 = vld [vmem:[#allocation11 + $0x478] ss:$40 sps:$4 sm:$0xff]   ;;  %v23117_v28 = vld [vmem:[#allocation11 + $0x42c] ss:$40 sps:$4 sm:$0xff]   ;;  %v23123_v30 = vld [vmem:[#allocation11 + $0x3dc] ss:$40 sps:$4 sm:$0xff]  }
 0x816   :  { %16450 = vmatprep.subr.bf16.mxu0 %v23093_v55  ;;  %v23112_v0 = vld [vmem:[#allocation11 + $0x1460] ss:$40 sps:$4 sm:$0xff]   ;;  %v23118_v36 = vld [vmem:[#allocation11 + $0x1410] ss:$40 sps:$4 sm:$0xff]  }
 0x817   :  { %16400 = vmatpush1.bf16.msra.mxu1 %v23088_v7  ;;  %v24550_v43 = vadd.f32 %v16134_v42, %v16092_v44  ;;  %v23115_v55 = vld [vmem:[#allocation11 + $0x428] ss:$40 sps:$4 sm:$0xff]   ;;  %v23126_v7 = vld [vmem:[#allocation11 + $0x18c4] ss:$40 sps:$4 sm:$0xff]   ;;  %v23121_v45 = vld [vmem:[#allocation11 + $0x3d8] ss:$40 sps:$4 sm:$0xff]  }
 0x818   :  { %16401 = vmatprep.subr.bf16.mxu1 %v23096_v27  ;;  %v23129_v27 = vld [vmem:[#allocation11 + $0x38c] ss:$40 sps:$4 sm:$0xff]   ;;  %v23124_v44 = vld [vmem:[#allocation11 + $0x18c0] ss:$40 sps:$4 sm:$0xff]  }
 0x819   :  { %16451 = vmatpush1.bf16.msra.mxu0 %v23091_v15  ;;  %v23132_v15 = vld [vmem:[#allocation11 + $0x1874] ss:$40 sps:$4 sm:$0xff]   ;;  %v23127_v42 = vld [vmem:[#allocation11 + $0x388] ss:$40 sps:$4 sm:$0xff]  }
 0x81a   :  { %16452 = vmatprep.subr.bf16.mxu0 %v23099_v33  ;;  %v23135_v33 = vld [vmem:[#allocation11 + $0x33c] ss:$40 sps:$4 sm:$0xff]  }
 0x81b   :  { %16402 = vmatpush1.bf16.msra.mxu1 %v23094_v20  ;;  %v23130_v20 = vld [vmem:[#allocation11 + $0x1870] ss:$40 sps:$4 sm:$0xff]  }
 0x81c   :  { %16403 = vmatprep.subr.bf16.mxu1 %v23102_v17  ;;  %v23138_v17 = vld [vmem:[#allocation11 + $0x1824] ss:$40 sps:$4 sm:$0xff]  }
 0x81d   :  { %16453 = vmatpush1.bf16.msra.mxu0 %v23097_v51  ;;  %v23133_v51 = vld [vmem:[#allocation11 + $0x338] ss:$40 sps:$4 sm:$0xff]  }
 0x81e   :  { %16454 = vmatprep.subr.bf16.mxu0 %v23105_v58  ;;  %v23141_v58 = vld [vmem:[#allocation11 + $0x2ec] ss:$40 sps:$4 sm:$0xff]  }
 0x81f   :  { %16404 = vmatpush1.bf16.msra.mxu1 %v23100_v49  ;;  %v23136_v49 = vld [vmem:[#allocation11 + $0x1820] ss:$40 sps:$4 sm:$0xff]  }
 0x820   :  { %16405 = vmatprep.subr.bf16.mxu1 %v23108_v24  ;;  %v23144_v24 = vld [vmem:[#allocation11 + $0x17d4] ss:$40 sps:$4 sm:$0xff]  }
 0x821   :  { %16455 = vmatpush2.bf16.msra.mxu0 %v23103_v48  ;;  %v23139_v48 = vld [vmem:[#allocation11 + $0x2e8] ss:$40 sps:$4 sm:$0xff]  }
 0x822   :  { %16456 = vmatprep.subr.bf16.mxu0 %v23111_v8  ;;  %v23147_v8 = vld [vmem:[#allocation11 + $0x29c] ss:$40 sps:$4 sm:$0xff]  }
 0x823   :  { %16406 = vmatpush1.bf16.msra.mxu1 %v23106_v22  ;;  %v23142_v22 = vld [vmem:[#allocation11 + $0x17d0] ss:$40 sps:$4 sm:$0xff]  }
 0x824   :  { %16407 = vmatprep.subr.bf16.mxu1 %v23114_v18  ;;  %v23150_v18 = vld [vmem:[#allocation11 + $0x1784] ss:$40 sps:$4 sm:$0xff]  }
 0x825   :  { %16457 = vmatpush2.bf16.msra.mxu0 %v23109_v34  ;;  %v23145_v34 = vld [vmem:[#allocation11 + $0x298] ss:$40 sps:$4 sm:$0xff]  }
 0x826   :  { %16458 = vmatprep.subr.bf16.mxu0 %v23117_v28  ;;  %v23153_v28 = vld [vmem:[#allocation11 + $0xc4c] ss:$40 sps:$4 sm:$0xff]  }
 0x827   :  { %16408 = vmatpush1.bf16.msra.mxu1 %v23112_v0  ;;  %v23148_v0 = vld [vmem:[#allocation11 + $0x1780] ss:$40 sps:$4 sm:$0xff]  }
 0x828   :  { %16409 = vmatprep.subr.bf16.mxu1 %v23120_v29  ;;  %v23156_v29 = vld [vmem:[#allocation11 + $0x1734] ss:$40 sps:$4 sm:$0xff]  }
 0x829   :  { %16459 = vmatpush2.bf16.msra.mxu0 %v23115_v55  ;;  %v23151_v55 = vld [vmem:[#allocation11 + $0xc48] ss:$40 sps:$4 sm:$0xff]  }
 0x82a   :  { %16460 = vmatprep.subr.bf16.mxu0 %v23123_v30  ;;  %v23159_v30 = vld [vmem:[#allocation11 + $0xbfc] ss:$40 sps:$4 sm:$0xff]  }
 0x82b   :  { %16410 = vmatpush1.bf16.msra.mxu1 %v23118_v36  ;;  %v23154_v36 = vld [vmem:[#allocation11 + $0x1730] ss:$40 sps:$4 sm:$0xff]  }
 0x82c   :  { %16411 = vmatprep.subr.bf16.mxu1 %v23126_v7  ;;  %v23162_v7 = vld [vmem:[#allocation11 + $0x16e4] ss:$40 sps:$4 sm:$0xff]  }
 0x82d   :  { %16461 = vmatpush2.bf16.msra.mxu0 %v23121_v45  ;;  %v23157_v45 = vld [vmem:[#allocation11 + $0xbf8] ss:$40 sps:$4 sm:$0xff]  }
 0x82e   :  { %16462 = vmatprep.subr.bf16.mxu0 %v23129_v27  ;;  %v23165_v27 = vld [vmem:[#allocation11 + $0xbac] ss:$40 sps:$4 sm:$0xff]  }
 0x82f   :  { %16412 = vmatpush2.bf16.msra.mxu1 %v23124_v44  ;;  %v23160_v44 = vld [vmem:[#allocation11 + $0x16e0] ss:$40 sps:$4 sm:$0xff]  }
 0x830   :  { %16413 = vmatprep.subr.bf16.mxu1 %v23132_v15  ;;  %v23168_v15 = vld [vmem:[#allocation11 + $0x1694] ss:$40 sps:$4 sm:$0xff]  }
 0x831   :  { %16463 = vmatpush2.bf16.msra.mxu0 %v23127_v42  ;;  %v23163_v42 = vld [vmem:[#allocation11 + $0xba8] ss:$40 sps:$4 sm:$0xff]  }
 0x832   :  { %16464 = vmatprep.subr.bf16.mxu0 %v23135_v33  ;;  %v23171_v33 = vld [vmem:[#allocation11 + $0xb5c] ss:$40 sps:$4 sm:$0xff]  }
 0x833   :  { %16414 = vmatpush2.bf16.msra.mxu1 %v23130_v20  ;;  %v23166_v20 = vld [vmem:[#allocation11 + $0x1690] ss:$40 sps:$4 sm:$0xff]  }
 0x834   :  { %16415 = vmatprep.subr.bf16.mxu1 %v23138_v17  ;;  %v23174_v17 = vld [vmem:[#allocation11 + $0x74c] ss:$40 sps:$4 sm:$0xff]  }
 0x835   :  { %16465 = vmatpush2.bf16.msra.mxu0 %v23133_v51  ;;  %v23169_v51 = vld [vmem:[#allocation11 + $0xb58] ss:$40 sps:$4 sm:$0xff]  }
 0x836   :  { %16466 = vmatprep.subr.bf16.mxu0 %v23141_v58 }
 0x837   :  { %16416 = vmatpush2.bf16.msra.mxu1 %v23136_v49  ;;  %v23177_v49 = vld [vmem:[#allocation11 + $0xb0c] ss:$40 sps:$4 sm:$0xff]  }
 0x838   :  { %16417 = vmatprep.subr.bf16.mxu1 %v23144_v24  ;;  %v23172_v24 = vld [vmem:[#allocation11 + $0x748] ss:$40 sps:$4 sm:$0xff]  }
 0x839   :  { %16467 = vmatpush2.bf16.msra.mxu0 %v23139_v48  ;;  %v23180_v48 = vld [vmem:[#allocation11 + $0x6fc] ss:$40 sps:$4 sm:$0xff]  }
 0x83a   :  { %16468 = vmatprep.subr.bf16.mxu0 %v23147_v8  ;;  %v23175_v8 = vld [vmem:[#allocation11 + $0xb08] ss:$40 sps:$4 sm:$0xff]  }
 0x83b   :  { %16418 = vmatpush2.bf16.msra.mxu1 %v23142_v22 }
 0x83c   :  { %16419 = vmatprep.subr.bf16.mxu1 %v23150_v18 }
 0x83d   :  { %16469 = vmatpush2.bf16.msra.mxu0 %v23145_v34  ;;  %v23183_v34 = vld [vmem:[#allocation11 + $0xabc] ss:$40 sps:$4 sm:$0xff]  }
 0x83e   :  { %16524 = vmatprep.subr.bf16.mxu0 %v23153_v28 }
 0x83f   :  { %16420 = vmatpush2.bf16.msra.mxu1 %v23148_v0  ;;  %v23178_v0 = vld [vmem:[#allocation11 + $0x6f8] ss:$40 sps:$4 sm:$0xff]  }
 0x840   :  { %16471 = vmatmul.mubr.bf16.vlgmr.msra.gmra.mxu0 %v24287_v6  ;;  %16421 = vmatprep.subr.bf16.mxu1 %v23156_v29  ;;  %v16214_v58 = vpop.f32.mrf.mxu0 }
 0x841   :  { %16525 = vmatpush1.bf16.msra.mxu0 %v23151_v55  ;;  %16556 = vmatprep.mubr.bf16.mxu0 %v24432_v53  ;;  %v23186_v55 = vld [vmem:[#allocation11 + $0x6ac] ss:$40 sps:$4 sm:$0xff]  }
 0x842   :  { %16526 = vmatprep.subr.bf16.mxu0 %v23159_v30  ;;  %v16216_v22 = vpop.f32.mrf.mxu0 }
 0x843   :  { %16422 = vmatpush2.bf16.msra.mxu1 %v23154_v36 }
 0x844   :  { %16423 = vmatprep.subr.bf16.mxu1 %v23162_v7  ;;  %v23181_v7 = vld [vmem:[#allocation11 + $0xab8] ss:$40 sps:$4 sm:$0xff]  }
 0x845   :  { %16527 = vmatpush1.bf16.msra.mxu0 %v23157_v45  ;;  %v16218_v45 = vpop.f32.mrf.mxu0 }
 0x846   :  { %16528 = vmatprep.subr.bf16.mxu0 %v23165_v27 }
 0x847   :  { %16424 = vmatpush2.bf16.msra.mxu1 %v23160_v44  ;;  %v23189_v44 = vld [vmem:[#allocation11 + $0xa6c] ss:$40 sps:$4 sm:$0xff]  }
 0x848   :  { %16425 = vmatprep.subr.bf16.mxu1 %v23168_v15 }
 0x849   :  { %16529 = vmatpush1.bf16.msra.mxu0 %v23163_v42 }
 0x84a   :  { %16530 = vmatprep.subr.bf16.mxu0 %v23171_v33 }
 0x84b   :  { %16426 = vmatpush2.bf16.msra.mxu1 %v23166_v20  ;;  %v23192_v20 = vld [vmem:[#allocation11 + $0x65c] ss:$40 sps:$4 sm:$0xff]  }
 0x84c   :  { %16481 = vmatprep.subr.bf16.mxu1 %v23174_v17 }
 0x84d   :  { %16531 = vmatpush1.bf16.msra.mxu0 %v23169_v51 }
 0x84e   :  { %v16171_v18 = vpop.f32.mrf.mxu1  ;;  %16428 = vmatmul.mubr.bf16.vlgmr.msra.gmra.mxu1 %v24481_v21  ;;  %16532 = vmatprep.subr.bf16.mxu0 %v23177_v49  ;;  %v23195_v49 = vld [vmem:[#allocation11 + $0xa1c] ss:$40 sps:$4 sm:$0xff]  }
 0x84f   :  { %v16172_v28 = vadd.f32 %v16171_v18, %v24544_v9  ;;  %16482 = vmatpush1.bf16.msra.mxu1 %v23172_v24  ;;  %16513 = vmatprep.mubr.bf16.mxu1 %v24446_v4  ;;  %v23184_v9 = vld [vmem:[#allocation11 + $0x6a8] ss:$40 sps:$4 sm:$0xff]  }
 0x850   :  { %v16173_v29 = vpop.f32.mrf.mxu1  ;;  %16483 = vmatprep.subr.bf16.mxu1 %v23180_v48 }
 0x851   :  { %v16215_v30 = vadd.f32 %v16214_v58, %v16172_v28  ;;  %v16174_v36 = vadd.f32 %v16173_v29, %v24546_v11  ;;  %16533 = vmatpush1.bf16.msra.mxu0 %v23175_v8  ;;  %v23187_v58 = vld [vmem:[#allocation11 + $0xa68] ss:$40 sps:$4 sm:$0xff]   ;;  %v16220_v11 = vpop.f32.mrf.mxu0 }
 0x852   :  { %v16175_v27 = vpop.f32.mrf.mxu1  ;;  %16534 = vmatprep.subr.bf16.mxu0 %v23183_v34  ;;  %v23196_v29 = vld [vmem:[#allocation11 + $0x608] ss:$40 sps:$4 sm:$0xff]  }
 0x853   :  { %v16217_v15 = vadd.f32 %v16216_v22, %v16174_v36  ;;  %v16176_v42 = vadd.f32 %v16175_v27, %v24548_v56  ;;  %16484 = vmatpush1.bf16.msra.mxu1 %v23178_v0  ;;  %v16870_v24 = vmax.f32 %v16215_v30, 0.0  ;;  %v23190_v22 = vld [vmem:[#allocation11 + $0x658] ss:$40 sps:$4 sm:$0xff]   ;;  %v23198_v56 = vld [vmem:[#allocation11 + $0x60c] ss:$40 sps:$4 sm:$0xff]  }
 0x854   :  { %v16177_v33 = vpop.f32.mrf.mxu1  ;;  %16485 = vmatprep.subr.bf16.mxu1 %v23186_v55  ;;  %v23193_v0 = vld [vmem:[#allocation11 + $0xa18] ss:$40 sps:$4 sm:$0xff]   ;;  %v23204_v30 = vld [vmem:[#allocation11 + $0x5bc] ss:$40 sps:$4 sm:$0xff]   ;;  %v23199_v36 = vld [vmem:[#allocation11 + $0xec8] ss:$40 sps:$4 sm:$0xff]  }
 0x855   :  { %v16219_v17 = vadd.f32 %v16218_v45, %v16176_v42  ;;  %v16178_v51 = vadd.f32 %v16177_v33, %v24550_v43  ;;  %16535 = vmatpush1.bf16.msra.mxu0 %v23181_v7  ;;  %v16871_v18 = vmax.f32 %v16217_v15, 0.0  ;;  %v23201_v43 = vld [vmem:[#allocation11 + $0xecc] ss:$40 sps:$4 sm:$0xff]   ;;  %v23207_v7 = vld [vmem:[#allocation11 + $0xe7c] ss:$40 sps:$4 sm:$0xff]  }
 0x856   :  { %16536 = vmatprep.subr.bf16.mxu0 %v23189_v44  ;;  %v23202_v45 = vld [vmem:[#allocation11 + $0x5b8] ss:$40 sps:$4 sm:$0xff]   ;;  %v23210_v27 = vld [vmem:[#allocation11 + $0x56c] ss:$40 sps:$4 sm:$0xff]   ;;  %v23208_v42 = vld [vmem:[#allocation11 + $0x568] ss:$40 sps:$4 sm:$0xff]  }
 0x857   :  { %v16880_v48 = vmax.f32 %v16219_v17, 0.0  ;;  %v16221_v8 = vadd.f32 %v16220_v11, %v16178_v51  ;;  %16486 = vmatpush1.bf16.msra.mxu1 %v23184_v9  ;;  %v23205_v44 = vld [vmem:[#allocation11 + $0xe78] ss:$40 sps:$4 sm:$0xff]   ;;  %v23213_v15 = vld [vmem:[#allocation11 + $0xe2c] ss:$40 sps:$4 sm:$0xff]  }
 0x858   :  { %16487 = vmatprep.subr.bf16.mxu1 %v23192_v20  ;;  %v23216_v9 = vld [vmem:[#allocation11 + $0x51c] ss:$40 sps:$4 sm:$0xff]   ;;  %v23211_v33 = vld [vmem:[#allocation11 + $0xe28] ss:$40 sps:$4 sm:$0xff]   ;;  %v23214_v17 = vld [vmem:[#allocation11 + $0x518] ss:$40 sps:$4 sm:$0xff]  }
 0x859   :  { %v24560_v34 = vpack.c.bf16 %v16880_v48, %v16870_v24  ;;  %v16881_v28 = vmax.f32 %v16221_v8, 0.0  ;;  %16537 = vmatpush1.bf16.msra.mxu0 %v23187_v58  ;;  %v23219_v20 = vld [vmem:[#allocation11 + $0xddc] ss:$40 sps:$4 sm:$0xff]   ;;  %v23222_v51 = vld [vmem:[#allocation11 + $0x9cc] ss:$40 sps:$4 sm:$0xff]  }
 0x85a   :  { %16538 = vmatprep.subr.bf16.mxu0 %v23195_v49  ;;  %v23217_v58 = vld [vmem:[#allocation11 + $0xdd8] ss:$40 sps:$4 sm:$0xff]   ;;  %v23225_v11 = vld [vmem:[#allocation11 + $0xd8c] ss:$40 sps:$4 sm:$0xff]   ;;  %v23220_v49 = vld [vmem:[#allocation11 + $0x9c8] ss:$40 sps:$4 sm:$0xff]  }
 0x85b   :  { %16488 = vmatpush1.bf16.msra.mxu1 %v23190_v22  ;;  %v24562_v55 = vpack.c.bf16 %v16881_v28, %v16871_v18  ;;  %v23228_v24 = vld [vmem:[#allocation11 + $0x97c] ss:$40 sps:$4 sm:$0xff]   ;;  %v23223_v48 = vld [vmem:[#allocation11 + $0xd88] ss:$40 sps:$4 sm:$0xff]   ;;  %v23226_v22 = vld [vmem:[#allocation11 + $0x978] ss:$40 sps:$4 sm:$0xff]  }
 0x85c   :  { %16489 = vmatprep.subr.bf16.mxu1 %v23198_v56  ;;  %v23231_v8 = vld [vmem:[#allocation11 + $0xd3c] ss:$40 sps:$4 sm:$0xff]   ;;  %v23234_v56 = vld [vmem:[#allocation11 + $0x92c] ss:$40 sps:$4 sm:$0xff]   ;;  %v23229_v18 = vld [vmem:[#allocation11 + $0xd38] ss:$40 sps:$4 sm:$0xff]  }
 0x85d   :  { %16539 = vmatpush1.bf16.msra.mxu0 %v23193_v0  ;;  %v23237_v28 = vld [vmem:[#allocation11 + $0xcec] ss:$40 sps:$4 sm:$0xff]   ;;  %v23232_v0 = vld [vmem:[#allocation11 + $0x928] ss:$40 sps:$4 sm:$0xff]  }
 0x85e   :  { %16540 = vmatprep.subr.bf16.mxu0 %v23201_v43  ;;  %v23240_v43 = vld [vmem:[#allocation11 + $0x8dc] ss:$40 sps:$4 sm:$0xff]  }
 0x85f   :  { %16490 = vmatpush1.bf16.msra.mxu1 %v23196_v29  ;;  %v23235_v29 = vld [vmem:[#allocation11 + $0xce8] ss:$40 sps:$4 sm:$0xff]  }
 0x860   :  { %16491 = vmatprep.subr.bf16.mxu1 %v23204_v30  ;;  %v23243_v30 = vld [vmem:[#allocation11 + $0xc9c] ss:$40 sps:$4 sm:$0xff]  }
 0x861   :  { %16541 = vmatpush2.bf16.msra.mxu0 %v23199_v36  ;;  %v23238_v36 = vld [vmem:[#allocation11 + $0x8d8] ss:$40 sps:$4 sm:$0xff]  }
 0x862   :  { %16542 = vmatprep.subr.bf16.mxu0 %v23207_v7  ;;  %v23246_v7 = vld [vmem:[#allocation11 + $0x88c] ss:$40 sps:$4 sm:$0xff]  }
 0x863   :  { %16492 = vmatpush1.bf16.msra.mxu1 %v23202_v45  ;;  %v23241_v45 = vld [vmem:[#allocation11 + $0xc98] ss:$40 sps:$4 sm:$0xff]  }
 0x864   :  { %16493 = vmatprep.subr.bf16.mxu1 %v23210_v27  ;;  %v23249_v27 = vld [vmem:[#allocation11 + $0x164c] ss:$40 sps:$4 sm:$0xff]  }
 0x865   :  { %16543 = vmatpush2.bf16.msra.mxu0 %v23205_v44  ;;  %v23244_v44 = vld [vmem:[#allocation11 + $0x888] ss:$40 sps:$4 sm:$0xff]  }
 0x866   :  { %16544 = vmatprep.subr.bf16.mxu0 %v23213_v15  ;;  %v23252_v15 = vld [vmem:[#allocation11 + $0x83c] ss:$40 sps:$4 sm:$0xff]  }
 0x867   :  { %16494 = vmatpush1.bf16.msra.mxu1 %v23208_v42  ;;  %v23247_v42 = vld [vmem:[#allocation11 + $0x1648] ss:$40 sps:$4 sm:$0xff]  }
 0x868   :  { %16495 = vmatprep.subr.bf16.mxu1 %v23216_v9  ;;  %v23255_v9 = vld [vmem:[#allocation11 + $0x15fc] ss:$40 sps:$4 sm:$0xff]  }
 0x869   :  { %16545 = vmatpush2.bf16.msra.mxu0 %v23211_v33  ;;  %v23250_v33 = vld [vmem:[#allocation11 + $0x838] ss:$40 sps:$4 sm:$0xff]  }
 0x86a   :  { %16546 = vmatprep.subr.bf16.mxu0 %v23219_v20  ;;  %v23258_v20 = vld [vmem:[#allocation11 + $0x7ec] ss:$40 sps:$4 sm:$0xff]  }
 0x86b   :  { %16496 = vmatpush1.bf16.msra.mxu1 %v23214_v17  ;;  %v23253_v17 = vld [vmem:[#allocation11 + $0x15f8] ss:$40 sps:$4 sm:$0xff]  }
 0x86c   :  { %16497 = vmatprep.subr.bf16.mxu1 %v23222_v51  ;;  %v23261_v51 = vld [vmem:[#allocation11 + $0x15ac] ss:$40 sps:$4 sm:$0xff]  }
 0x86d   :  { %16547 = vmatpush2.bf16.msra.mxu0 %v23217_v58  ;;  %v23256_v58 = vld [vmem:[#allocation11 + $0x7e8] ss:$40 sps:$4 sm:$0xff]  }
 0x86e   :  { %16548 = vmatprep.subr.bf16.mxu0 %v23225_v11  ;;  %v23264_v11 = vld [vmem:[#allocation11 + $0x79c] ss:$40 sps:$4 sm:$0xff]  }
 0x86f   :  { %16498 = vmatpush2.bf16.msra.mxu1 %v23220_v49  ;;  %v23259_v49 = vld [vmem:[#allocation11 + $0x15a8] ss:$40 sps:$4 sm:$0xff]  }
 0x870   :  { %16499 = vmatprep.subr.bf16.mxu1 %v23228_v24  ;;  %v23267_v24 = vld [vmem:[#allocation11 + $0x155c] ss:$40 sps:$4 sm:$0xff]  }
 0x871   :  { %16549 = vmatpush2.bf16.msra.mxu0 %v23223_v48  ;;  %v23262_v48 = vld [vmem:[#allocation11 + $0x798] ss:$40 sps:$4 sm:$0xff]  }
 0x872   :  { %16550 = vmatprep.subr.bf16.mxu0 %v23231_v8  ;;  %v23270_v8 = vld [vmem:[#allocation11 + $0x114c] ss:$40 sps:$4 sm:$0xff]  }
 0x873   :  { %16500 = vmatpush2.bf16.msra.mxu1 %v23226_v22  ;;  %v23265_v22 = vld [vmem:[#allocation11 + $0x1558] ss:$40 sps:$4 sm:$0xff]  }
 0x874   :  { %16501 = vmatprep.subr.bf16.mxu1 %v23234_v56  ;;  %v23273_v56 = vld [vmem:[#allocation11 + $0x150c] ss:$40 sps:$4 sm:$0xff]  }
 0x875   :  { %16551 = vmatpush2.bf16.msra.mxu0 %v23229_v18  ;;  %v23268_v18 = vld [vmem:[#allocation11 + $0x1148] ss:$40 sps:$4 sm:$0xff]  }
 0x876   :  { %16552 = vmatprep.subr.bf16.mxu0 %v23237_v28  ;;  %v23276_v28 = vld [vmem:[#allocation11 + $0x10fc] ss:$40 sps:$4 sm:$0xff]  }
 0x877   :  { %16502 = vmatpush2.bf16.msra.mxu1 %v23232_v0  ;;  %v23271_v0 = vld [vmem:[#allocation11 + $0x1508] ss:$40 sps:$4 sm:$0xff]  }
 0x878   :  { %16503 = vmatprep.subr.bf16.mxu1 %v23240_v43  ;;  %v23279_v43 = vld [vmem:[#allocation11 + $0x14bc] ss:$40 sps:$4 sm:$0xff]  }
 0x879   :  { %16553 = vmatpush2.bf16.msra.mxu0 %v23235_v29  ;;  %v23274_v29 = vld [vmem:[#allocation11 + $0x10f8] ss:$40 sps:$4 sm:$0xff]  }
 0x87a   :  { %16554 = vmatprep.subr.bf16.mxu0 %v23243_v30  ;;  %v23282_v30 = vld [vmem:[#allocation11 + $0x10ac] ss:$40 sps:$4 sm:$0xff]  }
 0x87b   :  { %16504 = vmatpush2.bf16.msra.mxu1 %v23238_v36  ;;  %v23277_v36 = vld [vmem:[#allocation11 + $0x14b8] ss:$40 sps:$4 sm:$0xff]  }
 0x87c   :  { %16505 = vmatprep.subr.bf16.mxu1 %v23246_v7  ;;  %v23285_v7 = vld [vmem:[#allocation11 + $0x146c] ss:$40 sps:$4 sm:$0xff]  }
 0x87d   :  { %16555 = vmatpush2.bf16.msra.mxu0 %v23241_v45  ;;  %v23280_v45 = vld [vmem:[#allocation11 + $0x10a8] ss:$40 sps:$4 sm:$0xff]  }
 0x87e   :  { %16610 = vmatprep.subr.bf16.mxu0 %v23249_v27  ;;  %v23288_v27 = vld [vmem:[#allocation11 + $0x105c] ss:$40 sps:$4 sm:$0xff]  }
 0x87f   :  { %16506 = vmatpush2.bf16.msra.mxu1 %v23244_v44  ;;  %v23283_v44 = vld [vmem:[#allocation11 + $0x1468] ss:$40 sps:$4 sm:$0xff]  }
 0x880   :  { %16557 = vmatmul.mubr.bf16.vlgmr.msra.gmra.mxu0 %v24374_v52  ;;  %16507 = vmatprep.subr.bf16.mxu1 %v23252_v15  ;;  %v23291_v15 = vld [vmem:[#allocation11 + $0x141c] ss:$40 sps:$4 sm:$0xff]  }
 0x881   :  { %16611 = vmatpush1.bf16.msra.mxu0 %v23247_v42  ;;  %16642 = vmatprep.mubr.bf16.mxu0 %v24479_v1  ;;  %v23286_v42 = vld [vmem:[#allocation11 + $0x1058] ss:$40 sps:$4 sm:$0xff]  }
 0x882   :  { %16612 = vmatprep.subr.bf16.mxu0 %v23255_v9  ;;  %v23294_v9 = vld [vmem:[#allocation11 + $0x100c] ss:$40 sps:$4 sm:$0xff]  }
 0x883   :  { %16508 = vmatpush2.bf16.msra.mxu1 %v23250_v33  ;;  %v23289_v33 = vld [vmem:[#allocation11 + $0x1418] ss:$40 sps:$4 sm:$0xff]  }
 0x884   :  { %16509 = vmatprep.subr.bf16.mxu1 %v23258_v20  ;;  %v23297_v20 = vld [vmem:[#allocation11 + $0x18cc] ss:$40 sps:$4 sm:$0xff]  }
 0x885   :  { %16613 = vmatpush1.bf16.msra.mxu0 %v23253_v17  ;;  %v23292_v17 = vld [vmem:[#allocation11 + $0x1008] ss:$40 sps:$4 sm:$0xff]  }
 0x886   :  { %16614 = vmatprep.subr.bf16.mxu0 %v23261_v51  ;;  %v23300_v51 = vld [vmem:[#allocation11 + $0xfbc] ss:$40 sps:$4 sm:$0xff]  }
 0x887   :  { %16510 = vmatpush2.bf16.msra.mxu1 %v23256_v58  ;;  %v23295_v58 = vld [vmem:[#allocation11 + $0x18c8] ss:$40 sps:$4 sm:$0xff]  }
 0x888   :  { %16511 = vmatprep.subr.bf16.mxu1 %v23264_v11  ;;  %v23303_v11 = vld [vmem:[#allocation11 + $0x187c] ss:$40 sps:$4 sm:$0xff]  }
 0x889   :  { %16615 = vmatpush1.bf16.msra.mxu0 %v23259_v49  ;;  %v23298_v49 = vld [vmem:[#allocation11 + $0xfb8] ss:$40 sps:$4 sm:$0xff]  }
 0x88a   :  { %16616 = vmatprep.subr.bf16.mxu0 %v23267_v24  ;;  %v23306_v24 = vld [vmem:[#allocation11 + $0xf6c] ss:$40 sps:$4 sm:$0xff]  }
 0x88b   :  { %16512 = vmatpush2.bf16.msra.mxu1 %v23262_v48  ;;  %v23301_v48 = vld [vmem:[#allocation11 + $0x1878] ss:$40 sps:$4 sm:$0xff]  }
 0x88c   :  { %16567 = vmatprep.subr.bf16.mxu1 %v23270_v8  ;;  %v23309_v8 = vld [vmem:[#allocation11 + $0x182c] ss:$40 sps:$4 sm:$0xff]  }
 0x88d   :  { %16617 = vmatpush1.bf16.msra.mxu0 %v23265_v22  ;;  %v23304_v22 = vld [vmem:[#allocation11 + $0xf68] ss:$40 sps:$4 sm:$0xff]  }
 0x88e   :  { %16514 = vmatmul.mubr.bf16.vlgmr.msra.gmra.mxu1 %v24324_v60  ;;  %16618 = vmatprep.subr.bf16.mxu0 %v23273_v56  ;;  %v23312_v56 = vld [vmem:[#allocation11 + $0xf1c] ss:$40 sps:$4 sm:$0xff]  }
 0x88f   :  { %16568 = vmatpush1.bf16.msra.mxu1 %v23268_v18  ;;  %16599 = vmatprep.mubr.bf16.mxu1 %v24469_v63  ;;  %v23307_v18 = vld [vmem:[#allocation11 + $0x1828] ss:$40 sps:$4 sm:$0xff]  }
 0x890   :  { %16569 = vmatprep.subr.bf16.mxu1 %v23276_v28  ;;  %v23315_v28 = vld [vmem:[#allocation11 + $0x17dc] ss:$40 sps:$4 sm:$0xff]  }
 0x891   :  { %16619 = vmatpush1.bf16.msra.mxu0 %v23271_v0  ;;  %v23310_v0 = vld [vmem:[#allocation11 + $0xf18] ss:$40 sps:$4 sm:$0xff]  }
 0x892   :  { %16620 = vmatprep.subr.bf16.mxu0 %v23279_v43  ;;  %v23318_v43 = vld [vmem:[#allocation11 + $0x13cc] ss:$40 sps:$4 sm:$0xff]  }
 0x893   :  { %16570 = vmatpush1.bf16.msra.mxu1 %v23274_v29  ;;  %v23313_v29 = vld [vmem:[#allocation11 + $0x17d8] ss:$40 sps:$4 sm:$0xff]  }
 0x894   :  { %16571 = vmatprep.subr.bf16.mxu1 %v23282_v30  ;;  %v23321_v30 = vld [vmem:[#allocation11 + $0x178c] ss:$40 sps:$4 sm:$0xff]  }
 0x895   :  { %16621 = vmatpush1.bf16.msra.mxu0 %v23277_v36  ;;  %v23316_v36 = vld [vmem:[#allocation11 + $0x13c8] ss:$40 sps:$4 sm:$0xff]  }
 0x896   :  { %16622 = vmatprep.subr.bf16.mxu0 %v23285_v7  ;;  %v23324_v7 = vld [vmem:[#allocation11 + $0x137c] ss:$40 sps:$4 sm:$0xff]  }
 0x897   :  { %16572 = vmatpush1.bf16.msra.mxu1 %v23280_v45  ;;  %v23319_v45 = vld [vmem:[#allocation11 + $0x1788] ss:$40 sps:$4 sm:$0xff]  }
 0x898   :  { %16573 = vmatprep.subr.bf16.mxu1 %v23288_v27  ;;  %v23327_v27 = vld [vmem:[#allocation11 + $0x173c] ss:$40 sps:$4 sm:$0xff]  }
 0x899   :  { %16623 = vmatpush1.bf16.msra.mxu0 %v23283_v44  ;;  %v23322_v44 = vld [vmem:[#allocation11 + $0x1378] ss:$40 sps:$4 sm:$0xff]  }
 0x89a   :  { %16624 = vmatprep.subr.bf16.mxu0 %v23291_v15  ;;  %v23330_v15 = vld [vmem:[#allocation11 + $0x132c] ss:$40 sps:$4 sm:$0xff]  }
 0x89b   :  { %16574 = vmatpush1.bf16.msra.mxu1 %v23286_v42  ;;  %v23325_v42 = vld [vmem:[#allocation11 + $0x1738] ss:$40 sps:$4 sm:$0xff]  }
 0x89c   :  { %16575 = vmatprep.subr.bf16.mxu1 %v23294_v9  ;;  %v23333_v9 = vld [vmem:[#allocation11 + $0x16ec] ss:$40 sps:$4 sm:$0xff]  }
 0x89d   :  { %16625 = vmatpush1.bf16.msra.mxu0 %v23289_v33  ;;  %v23328_v33 = vld [vmem:[#allocation11 + $0x1328] ss:$40 sps:$4 sm:$0xff]  }
 0x89e   :  { %16626 = vmatprep.subr.bf16.mxu0 %v23297_v20  ;;  %v23336_v20 = vld [vmem:[#allocation11 + $0x12dc] ss:$40 sps:$4 sm:$0xff]  }
 0x89f   :  { %16576 = vmatpush1.bf16.msra.mxu1 %v23292_v17  ;;  %v23331_v17 = vld [vmem:[#allocation11 + $0x16e8] ss:$40 sps:$4 sm:$0xff]  }
 0x8a0   :  { %16577 = vmatprep.subr.bf16.mxu1 %v23300_v51  ;;  %v23339_v51 = vld [vmem:[#allocation11 + $0x169c] ss:$40 sps:$4 sm:$0xff]  }
 0x8a1   :  { %16627 = vmatpush2.bf16.msra.mxu0 %v23295_v58  ;;  %v23334_v58 = vld [vmem:[#allocation11 + $0x12d8] ss:$40 sps:$4 sm:$0xff]  }
 0x8a2   :  { %16628 = vmatprep.subr.bf16.mxu0 %v23303_v11  ;;  %v23342_v11 = vld [vmem:[#allocation11 + $0x128c] ss:$40 sps:$4 sm:$0xff]  }
 0x8a3   :  { %16578 = vmatpush1.bf16.msra.mxu1 %v23298_v49  ;;  %v23337_v49 = vld [vmem:[#allocation11 + $0x1698] ss:$40 sps:$4 sm:$0xff]  }
 0x8a4   :  { %16579 = vmatprep.subr.bf16.mxu1 %v23306_v24  ;;  %v23345_v24 = vld [vmem:[#allocation11 + $0x754] ss:$40 sps:$4 sm:$0xff]  }
 0x8a5   :  { %16629 = vmatpush2.bf16.msra.mxu0 %v23301_v48  ;;  %v23340_v48 = vld [vmem:[#allocation11 + $0x1288] ss:$40 sps:$4 sm:$0xff]  }
 0x8a6   :  { %16630 = vmatprep.subr.bf16.mxu0 %v23309_v8  ;;  %v23348_v8 = vld [vmem:[#allocation11 + $0x123c] ss:$40 sps:$4 sm:$0xff]  }
 0x8a7   :  { %16580 = vmatpush1.bf16.msra.mxu1 %v23304_v22  ;;  %v23343_v22 = vld [vmem:[#allocation11 + $0x750] ss:$40 sps:$4 sm:$0xff]  }
 0x8a8   :  { %16581 = vmatprep.subr.bf16.mxu1 %v23312_v56  ;;  %v23351_v56 = vld [vmem:[#allocation11 + $0x704] ss:$40 sps:$4 sm:$0xff]  }
 0x8a9   :  { %16631 = vmatpush2.bf16.msra.mxu0 %v23307_v18  ;;  %v23346_v18 = vld [vmem:[#allocation11 + $0x1238] ss:$40 sps:$4 sm:$0xff]  }
 0x8aa   :  { %16632 = vmatprep.subr.bf16.mxu0 %v23315_v28  ;;  %v23354_v28 = vld [vmem:[#allocation11 + $0x11ec] ss:$40 sps:$4 sm:$0xff]  }
 0x8ab   :  { %16582 = vmatpush1.bf16.msra.mxu1 %v23310_v0  ;;  %v23349_v0 = vld [vmem:[#allocation11 + $0x700] ss:$40 sps:$4 sm:$0xff]  }
 0x8ac   :  { %16583 = vmatprep.subr.bf16.mxu1 %v23318_v43  ;;  %v23357_v43 = vld [vmem:[#allocation11 + $0x6b4] ss:$40 sps:$4 sm:$0xff]  }
 0x8ad   :  { %16633 = vmatpush2.bf16.msra.mxu0 %v23313_v29  ;;  %v23352_v29 = vld [vmem:[#allocation11 + $0x11e8] ss:$40 sps:$4 sm:$0xff]  }
 0x8ae   :  { %16634 = vmatprep.subr.bf16.mxu0 %v23321_v30  ;;  %v23360_v30 = vld [vmem:[#allocation11 + $0x119c] ss:$40 sps:$4 sm:$0xff]  }
 0x8af   :  { %16584 = vmatpush2.bf16.msra.mxu1 %v23316_v36  ;;  %v23355_v36 = vld [vmem:[#allocation11 + $0x6b0] ss:$40 sps:$4 sm:$0xff]  }
 0x8b0   :  { %16585 = vmatprep.subr.bf16.mxu1 %v23324_v7  ;;  %v23363_v7 = vld [vmem:[#allocation11 + $0x664] ss:$40 sps:$4 sm:$0xff]  }
 0x8b1   :  { %16635 = vmatpush2.bf16.msra.mxu0 %v23319_v45  ;;  %v23358_v45 = vld [vmem:[#allocation11 + $0x1198] ss:$40 sps:$4 sm:$0xff]  }
 0x8b2   :  { %16636 = vmatprep.subr.bf16.mxu0 %v23327_v27  ;;  %v23366_v27 = vld [vmem:[#allocation11 + $0x254] ss:$40 sps:$4 sm:$0xff]  }
 0x8b3   :  { %16586 = vmatpush2.bf16.msra.mxu1 %v23322_v44  ;;  %v23361_v44 = vld [vmem:[#allocation11 + $0x660] ss:$40 sps:$4 sm:$0xff]  }
 0x8b4   :  { %16587 = vmatprep.subr.bf16.mxu1 %v23330_v15  ;;  %v23369_v15 = vld [vmem:[#allocation11 + $0x614] ss:$40 sps:$4 sm:$0xff]  }
 0x8b5   :  { %16637 = vmatpush2.bf16.msra.mxu0 %v23325_v42  ;;  %v23372_v42 = vld [vmem:[#allocation11 + $0x204] ss:$40 sps:$4 sm:$0xff]  }
 0x8b6   :  { %16638 = vmatprep.subr.bf16.mxu0 %v23333_v9  ;;  %v23367_v9 = vld [vmem:[#allocation11 + $0x610] ss:$40 sps:$4 sm:$0xff]  }
 0x8b7   :  { %16588 = vmatpush2.bf16.msra.mxu1 %v23328_v33  ;;  %v23375_v33 = vld [vmem:[#allocation11 + $0x5c4] ss:$40 sps:$4 sm:$0xff]  }
 0x8b8   :  { %16589 = vmatprep.subr.bf16.mxu1 %v23336_v20  ;;  %v23370_v20 = vld [vmem:[#allocation11 + $0x200] ss:$40 sps:$4 sm:$0xff]  }
 0x8b9   :  { %16639 = vmatpush2.bf16.msra.mxu0 %v23331_v17  ;;  %v23378_v17 = vld [vmem:[#allocation11 + $0x1b4] ss:$40 sps:$4 sm:$0xff]  }
 0x8ba   :  { %16640 = vmatprep.subr.bf16.mxu0 %v23339_v51  ;;  %v23373_v51 = vld [vmem:[#allocation11 + $0x5c0] ss:$40 sps:$4 sm:$0xff]  }
 0x8bb   :  { %16590 = vmatpush2.bf16.msra.mxu1 %v23334_v58  ;;  %v23381_v58 = vld [vmem:[#allocation11 + $0x574] ss:$40 sps:$4 sm:$0xff]  }
 0x8bc   :  { %16591 = vmatprep.subr.bf16.mxu1 %v23342_v11  ;;  %v23376_v11 = vld [vmem:[#allocation11 + $0x1b0] ss:$40 sps:$4 sm:$0xff]  }
 0x8bd   :  { %16641 = vmatpush2.bf16.msra.mxu0 %v23337_v49  ;;  %v23384_v49 = vld [vmem:[#allocation11 + $0x164] ss:$40 sps:$4 sm:$0xff]  }
 0x8be   :  { %16696 = vmatprep.subr.bf16.mxu0 %v23345_v24  ;;  %v23379_v24 = vld [vmem:[#allocation11 + $0x570] ss:$40 sps:$4 sm:$0xff]  }
 0x8bf   :  { %16592 = vmatpush2.bf16.msra.mxu1 %v23340_v48  ;;  %v23387_v48 = vld [vmem:[#allocation11 + $0x524] ss:$40 sps:$4 sm:$0xff]  }
 0x8c0   :  { %16643 = vmatmul.mubr.bf16.vlgmr.msra.gmra.mxu0 %v24481_v21  ;;  %16593 = vmatprep.subr.bf16.mxu1 %v23348_v8  ;;  %v23382_v8 = vld [vmem:[#allocation11 + $0x160] ss:$40 sps:$4 sm:$0xff]  }
 0x8c1   :  { %16697 = vmatpush1.bf16.msra.mxu0 %v23343_v22  ;;  %16728 = vmatprep.mubr.bf16.mxu0 %v24446_v4  ;;  %v23364_v4 = vld [vmem:[#allocation11 + $0x250] ss:$40 sps:$4 sm:$0xff]   ;;  %v23390_v22 = vld [vmem:[#allocation11 + $0x114] ss:$40 sps:$4 sm:$0xff]  }
 0x8c2   :  { %16698 = vmatprep.subr.bf16.mxu0 %v23351_v56  ;;  %v23393_v56 = vld [vmem:[#allocation11 + $0x9d4] ss:$40 sps:$4 sm:$0xff]  }
 0x8c3   :  { %16594 = vmatpush2.bf16.msra.mxu1 %v23346_v18  ;;  %v23388_v18 = vld [vmem:[#allocation11 + $0x110] ss:$40 sps:$4 sm:$0xff]  }
 0x8c4   :  { %16595 = vmatprep.subr.bf16.mxu1 %v23354_v28  ;;  %v23396_v28 = vld [vmem:[#allocation11 + $0xc4] ss:$40 sps:$4 sm:$0xff]  }
 0x8c5   :  { %16699 = vmatpush1.bf16.msra.mxu0 %v23349_v0  ;;  %v23391_v0 = vld [vmem:[#allocation11 + $0x9d0] ss:$40 sps:$4 sm:$0xff]  }
 0x8c6   :  { %16700 = vmatprep.subr.bf16.mxu0 %v23357_v43  ;;  %v23399_v43 = vld [vmem:[#allocation11 + $0x984] ss:$40 sps:$4 sm:$0xff]  }
 0x8c7   :  { %16596 = vmatpush2.bf16.msra.mxu1 %v23352_v29  ;;  %v23394_v29 = vld [vmem:[#allocation11 + $0xc0] ss:$40 sps:$4 sm:$0xff]  }
 0x8c8   :  { %16597 = vmatprep.subr.bf16.mxu1 %v23360_v30  ;;  %v23402_v30 = vld [vmem:[#allocation11 + $0x74] ss:$40 sps:$4 sm:$0xff]  }
 0x8c9   :  { %16701 = vmatpush1.bf16.msra.mxu0 %v23355_v36  ;;  %v23397_v36 = vld [vmem:[#allocation11 + $0x980] ss:$40 sps:$4 sm:$0xff]  }
 0x8ca   :  { %16702 = vmatprep.subr.bf16.mxu0 %v23363_v7  ;;  %v23405_v7 = vld [vmem:[#allocation11 + $0x934] ss:$40 sps:$4 sm:$0xff]  }
 0x8cb   :  { %16598 = vmatpush2.bf16.msra.mxu1 %v23358_v45  ;;  %v23400_v45 = vld [vmem:[#allocation11 + $0x70] ss:$40 sps:$4 sm:$0xff]  }
 0x8cc   :  { %16653 = vmatprep.subr.bf16.mxu1 %v23366_v27  ;;  %v23408_v27 = vld [vmem:[#allocation11 + $0x24] ss:$40 sps:$4 sm:$0xff]  }
 0x8cd   :  { %16703 = vmatpush1.bf16.msra.mxu0 %v23361_v44  ;;  %v23403_v44 = vld [vmem:[#allocation11 + $0x930] ss:$40 sps:$4 sm:$0xff]  }
 0x8ce   :  { %16600 = vmatmul.mubr.bf16.vlgmr.msra.gmra.mxu1 %v24456_v16  ;;  %16704 = vmatprep.subr.bf16.mxu0 %v23369_v15  ;;  %v23411_v15 = vld [vmem:[#allocation11 + $0x8e4] ss:$40 sps:$4 sm:$0xff]  }
 0x8cf   :  { %16654 = vmatpush1.bf16.msra.mxu1 %v23364_v4  ;;  %16685 = vmatprep.mubr.bf16.mxu1 %v24390_v50  ;;  %v23385_v50 = vld [vmem:[#allocation11 + $0x520] ss:$40 sps:$4 sm:$0xff]  }
 0x8d0   :  { %16655 = vmatprep.subr.bf16.mxu1 %v23372_v42  ;;  %v23406_v4 = vld [vmem:[#allocation11 + $0x20] ss:$40 sps:$4 sm:$0xff]   ;;  %v23414_v42 = vld [vmem:[#allocation11 + $0x4d4] ss:$40 sps:$4 sm:$0xff]  }
 0x8d1   :  { %16705 = vmatpush1.bf16.msra.mxu0 %v23367_v9  ;;  %v23409_v9 = vld [vmem:[#allocation11 + $0x8e0] ss:$40 sps:$4 sm:$0xff]  }
 0x8d2   :  { %16706 = vmatprep.subr.bf16.mxu0 %v23375_v33  ;;  %v23417_v33 = vld [vmem:[#allocation11 + $0x894] ss:$40 sps:$4 sm:$0xff]  }
 0x8d3   :  { %16656 = vmatpush1.bf16.msra.mxu1 %v23370_v20  ;;  %v23412_v20 = vld [vmem:[#allocation11 + $0x4d0] ss:$40 sps:$4 sm:$0xff]  }
 0x8d4   :  { %16657 = vmatprep.subr.bf16.mxu1 %v23378_v17  ;;  %v23420_v17 = vld [vmem:[#allocation11 + $0x484] ss:$40 sps:$4 sm:$0xff]  }
 0x8d5   :  { %16707 = vmatpush1.bf16.msra.mxu0 %v23373_v51  ;;  %v23415_v51 = vld [vmem:[#allocation11 + $0x890] ss:$40 sps:$4 sm:$0xff]  }
 0x8d6   :  { %16708 = vmatprep.subr.bf16.mxu0 %v23381_v58  ;;  %v23423_v58 = vld [vmem:[#allocation11 + $0x844] ss:$40 sps:$4 sm:$0xff]  }
 0x8d7   :  { %16658 = vmatpush1.bf16.msra.mxu1 %v23376_v11  ;;  %v23418_v11 = vld [vmem:[#allocation11 + $0x480] ss:$40 sps:$4 sm:$0xff]  }
 0x8d8   :  { %16659 = vmatprep.subr.bf16.mxu1 %v23384_v49  ;;  %v23426_v49 = vld [vmem:[#allocation11 + $0x434] ss:$40 sps:$4 sm:$0xff]  }
 0x8d9   :  { %16709 = vmatpush1.bf16.msra.mxu0 %v23379_v24  ;;  %v23421_v24 = vld [vmem:[#allocation11 + $0x840] ss:$40 sps:$4 sm:$0xff]  }
 0x8da   :  { %16710 = vmatprep.subr.bf16.mxu0 %v23387_v48  ;;  %v23429_v48 = vld [vmem:[#allocation11 + $0x7f4] ss:$40 sps:$4 sm:$0xff]  }
 0x8db   :  { %16660 = vmatpush1.bf16.msra.mxu1 %v23382_v8  ;;  %v23424_v8 = vld [vmem:[#allocation11 + $0x430] ss:$40 sps:$4 sm:$0xff]  }
 0x8dc   :  { %16661 = vmatprep.subr.bf16.mxu1 %v23390_v22  ;;  %v23432_v22 = vld [vmem:[#allocation11 + $0x3e4] ss:$40 sps:$4 sm:$0xff]  }
 0x8dd   :  { %16711 = vmatpush1.bf16.msra.mxu0 %v23385_v50  ;;  %v23427_v50 = vld [vmem:[#allocation11 + $0x7f0] ss:$40 sps:$4 sm:$0xff]  }
 0x8de   :  { %16712 = vmatprep.subr.bf16.mxu0 %v23393_v56  ;;  %v23435_v56 = vld [vmem:[#allocation11 + $0x7a4] ss:$40 sps:$4 sm:$0xff]  }
 0x8df   :  { %16662 = vmatpush1.bf16.msra.mxu1 %v23388_v18  ;;  %v23430_v18 = vld [vmem:[#allocation11 + $0x3e0] ss:$40 sps:$4 sm:$0xff]  }
 0x8e0   :  { %16663 = vmatprep.subr.bf16.mxu1 %v23396_v28  ;;  %v23438_v28 = vld [vmem:[#allocation11 + $0x394] ss:$40 sps:$4 sm:$0xff]  }
 0x8e1   :  { %16713 = vmatpush2.bf16.msra.mxu0 %v23391_v0  ;;  %v23433_v0 = vld [vmem:[#allocation11 + $0x7a0] ss:$40 sps:$4 sm:$0xff]  }
 0x8e2   :  { %16714 = vmatprep.subr.bf16.mxu0 %v23399_v43  ;;  %v23441_v43 = vld [vmem:[#allocation11 + $0x1154] ss:$40 sps:$4 sm:$0xff]  }
 0x8e3   :  { %16664 = vmatpush1.bf16.msra.mxu1 %v23394_v29  ;;  %v23436_v29 = vld [vmem:[#allocation11 + $0x390] ss:$40 sps:$4 sm:$0xff]  }
 0x8e4   :  { %16665 = vmatprep.subr.bf16.mxu1 %v23402_v30  ;;  %v23444_v30 = vld [vmem:[#allocation11 + $0x344] ss:$40 sps:$4 sm:$0xff]  }
 0x8e5   :  { %16715 = vmatpush2.bf16.msra.mxu0 %v23397_v36  ;;  %v23439_v36 = vld [vmem:[#allocation11 + $0x1150] ss:$40 sps:$4 sm:$0xff]  }
 0x8e6   :  { %16716 = vmatprep.subr.bf16.mxu0 %v23405_v7  ;;  %v23447_v7 = vld [vmem:[#allocation11 + $0x1104] ss:$40 sps:$4 sm:$0xff]  }
 0x8e7   :  { %16666 = vmatpush1.bf16.msra.mxu1 %v23400_v45  ;;  %v23442_v45 = vld [vmem:[#allocation11 + $0x340] ss:$40 sps:$4 sm:$0xff]  }
 0x8e8   :  { %16667 = vmatprep.subr.bf16.mxu1 %v23408_v27  ;;  %v23450_v27 = vld [vmem:[#allocation11 + $0x2f4] ss:$40 sps:$4 sm:$0xff]  }
 0x8e9   :  { %16717 = vmatpush2.bf16.msra.mxu0 %v23403_v44  ;;  %v23445_v44 = vld [vmem:[#allocation11 + $0x1100] ss:$40 sps:$4 sm:$0xff]  }
 0x8ea   :  { %16718 = vmatprep.subr.bf16.mxu0 %v23411_v15  ;;  %v23453_v15 = vld [vmem:[#allocation11 + $0x10b4] ss:$40 sps:$4 sm:$0xff]  }
 0x8eb   :  { %16668 = vmatpush1.bf16.msra.mxu1 %v23406_v4  ;;  %v23448_v4 = vld [vmem:[#allocation11 + $0x2f0] ss:$40 sps:$4 sm:$0xff]  }
 0x8ec   :  { %16669 = vmatprep.subr.bf16.mxu1 %v23414_v42  ;;  %v23456_v42 = vld [vmem:[#allocation11 + $0x2a4] ss:$40 sps:$4 sm:$0xff]  }
 0x8ed   :  { %16719 = vmatpush2.bf16.msra.mxu0 %v23409_v9  ;;  %v23451_v9 = vld [vmem:[#allocation11 + $0x10b0] ss:$40 sps:$4 sm:$0xff]  }
 0x8ee   :  { %16720 = vmatprep.subr.bf16.mxu0 %v23417_v33  ;;  %v23459_v33 = vld [vmem:[#allocation11 + $0x1064] ss:$40 sps:$4 sm:$0xff]  }
 0x8ef   :  { %16670 = vmatpush2.bf16.msra.mxu1 %v23412_v20  ;;  %v23454_v20 = vld [vmem:[#allocation11 + $0x2a0] ss:$40 sps:$4 sm:$0xff]  }
 0x8f0   :  { %16671 = vmatprep.subr.bf16.mxu1 %v23420_v17  ;;  %v23457_v17 = vld [vmem:[#allocation11 + $0x1060] ss:$40 sps:$4 sm:$0xff]  }
 0x8f1   :  { %16721 = vmatpush2.bf16.msra.mxu0 %v23415_v51  ;;  %v23465_v51 = vld [vmem:[#allocation11 + $0x1014] ss:$40 sps:$4 sm:$0xff]  }
 0x8f2   :  { %16722 = vmatprep.subr.bf16.mxu0 %v23423_v58  ;;  %v23468_v58 = vld [vmem:[#allocation11 + $0xc04] ss:$40 sps:$4 sm:$0xff]  }
 0x8f3   :  { %16672 = vmatpush2.bf16.msra.mxu1 %v23418_v11  ;;  %v23463_v11 = vld [vmem:[#allocation11 + $0x1010] ss:$40 sps:$4 sm:$0xff]  }
 0x8f4   :  { %16673 = vmatprep.subr.bf16.mxu1 %v23426_v49  ;;  %v23471_v49 = vld [vmem:[#allocation11 + $0xfc4] ss:$40 sps:$4 sm:$0xff]  }
 0x8f5   :  { %16723 = vmatpush2.bf16.msra.mxu0 %v23421_v24  ;;  %v23466_v24 = vld [vmem:[#allocation11 + $0xc00] ss:$40 sps:$4 sm:$0xff]  }
 0x8f6   :  { %16724 = vmatprep.subr.bf16.mxu0 %v23429_v48  ;;  %v23474_v48 = vld [vmem:[#allocation11 + $0xbb4] ss:$40 sps:$4 sm:$0xff]  }
 0x8f7   :  { %16674 = vmatpush2.bf16.msra.mxu1 %v23424_v8  ;;  %v23469_v8 = vld [vmem:[#allocation11 + $0xfc0] ss:$40 sps:$4 sm:$0xff]  }
 0x8f8   :  { %16675 = vmatprep.subr.bf16.mxu1 %v23432_v22  ;;  %v23477_v22 = vld [vmem:[#allocation11 + $0xf74] ss:$40 sps:$4 sm:$0xff]  }
 0x8f9   :  { %16725 = vmatpush2.bf16.msra.mxu0 %v23427_v50  ;;  %v23472_v50 = vld [vmem:[#allocation11 + $0xbb0] ss:$40 sps:$4 sm:$0xff]  }
 0x8fa   :  { %16726 = vmatprep.subr.bf16.mxu0 %v23435_v56  ;;  %v23480_v56 = vld [vmem:[#allocation11 + $0xb64] ss:$40 sps:$4 sm:$0xff]  }
 0x8fb   :  { %16676 = vmatpush2.bf16.msra.mxu1 %v23430_v18  ;;  %v23475_v18 = vld [vmem:[#allocation11 + $0xf70] ss:$40 sps:$4 sm:$0xff]  }
 0x8fc   :  { %16677 = vmatprep.subr.bf16.mxu1 %v23438_v28  ;;  %v23478_v28 = vld [vmem:[#allocation11 + $0xb60] ss:$40 sps:$4 sm:$0xff]  }
 0x8fd   :  { %16727 = vmatpush2.bf16.msra.mxu0 %v23433_v0  ;;  %v23486_v0 = vld [vmem:[#allocation11 + $0xb14] ss:$40 sps:$4 sm:$0xff]  }
 0x8fe   :  { %16782 = vmatprep.subr.bf16.mxu0 %v23441_v43  ;;  %v23489_v43 = vld [vmem:[#allocation11 + $0x13d4] ss:$40 sps:$4 sm:$0xff]  }
 0x8ff   :  { %16678 = vmatpush2.bf16.msra.mxu1 %v23436_v29  ;;  %v23484_v29 = vld [vmem:[#allocation11 + $0xb10] ss:$40 sps:$4 sm:$0xff]  }
 0x900   :  { %16729 = vmatmul.mubr.bf16.vlgmr.msra.gmra.mxu0 %v24324_v60  ;;  %16679 = vmatprep.subr.bf16.mxu1 %v23444_v30  ;;  %v23462_v60 = vld [vmem:[#allocation11 + $0xc54] ss:$40 sps:$4 sm:$0xff]   ;;  %v23492_v30 = vld [vmem:[#allocation11 + $0xac4] ss:$40 sps:$4 sm:$0xff]  }
 0x901   :  { %16783 = vmatpush1.bf16.msra.mxu0 %v23439_v36  ;;  %16814 = vmatprep.mubr.bf16.mxu0 %v24469_v63  ;;  %v23460_v63 = vld [vmem:[#allocation11 + $0xc50] ss:$40 sps:$4 sm:$0xff]  }
 0x902   :  { %16784 = vmatprep.subr.bf16.mxu0 %v23447_v7  ;;  %v23487_v36 = vld [vmem:[#allocation11 + $0x13d0] ss:$40 sps:$4 sm:$0xff]   ;;  %v23495_v7 = vld [vmem:[#allocation11 + $0x1384] ss:$40 sps:$4 sm:$0xff]  }
 0x903   :  { %16680 = vmatpush2.bf16.msra.mxu1 %v23442_v45  ;;  %v23490_v45 = vld [vmem:[#allocation11 + $0xac0] ss:$40 sps:$4 sm:$0xff]  }
 0x904   :  { %16681 = vmatprep.subr.bf16.mxu1 %v23450_v27  ;;  %v23498_v27 = vld [vmem:[#allocation11 + $0xa74] ss:$40 sps:$4 sm:$0xff]  }
 0x905   :  { %16785 = vmatpush1.bf16.msra.mxu0 %v23445_v44  ;;  %v23493_v44 = vld [vmem:[#allocation11 + $0x1380] ss:$40 sps:$4 sm:$0xff]  }
 0x906   :  { %16786 = vmatprep.subr.bf16.mxu0 %v23453_v15  ;;  %v23501_v15 = vld [vmem:[#allocation11 + $0x1334] ss:$40 sps:$4 sm:$0xff]  }
 0x907   :  { %16682 = vmatpush2.bf16.msra.mxu1 %v23448_v4  ;;  %v23496_v4 = vld [vmem:[#allocation11 + $0xa70] ss:$40 sps:$4 sm:$0xff]  }
 0x908   :  { %16683 = vmatprep.subr.bf16.mxu1 %v23456_v42  ;;  %v23504_v42 = vld [vmem:[#allocation11 + $0xa24] ss:$40 sps:$4 sm:$0xff]  }
 0x909   :  { %16787 = vmatpush1.bf16.msra.mxu0 %v23451_v9  ;;  %v23499_v9 = vld [vmem:[#allocation11 + $0x1330] ss:$40 sps:$4 sm:$0xff]  }
 0x90a   :  { %16788 = vmatprep.subr.bf16.mxu0 %v23459_v33  ;;  %v23507_v33 = vld [vmem:[#allocation11 + $0x12e4] ss:$40 sps:$4 sm:$0xff]  }
 0x90b   :  { %16684 = vmatpush2.bf16.msra.mxu1 %v23454_v20  ;;  %v23502_v20 = vld [vmem:[#allocation11 + $0xa20] ss:$40 sps:$4 sm:$0xff]  }
 0x90c   :  { %16739 = vmatprep.subr.bf16.mxu1 %v23462_v60  ;;  %v23510_v60 = vld [vmem:[#allocation11 + $0xed4] ss:$40 sps:$4 sm:$0xff]  }
 0x90d   :  { %16789 = vmatpush1.bf16.msra.mxu0 %v23457_v17  ;;  %v23505_v17 = vld [vmem:[#allocation11 + $0x12e0] ss:$40 sps:$4 sm:$0xff]  }
 0x90e   :  { %16686 = vmatmul.mubr.bf16.vlgmr.msra.gmra.mxu1 %v24287_v6  ;;  %16790 = vmatprep.subr.bf16.mxu0 %v23465_v51  ;;  %v23483_v6 = vld [vmem:[#allocation11 + $0xf24] ss:$40 sps:$4 sm:$0xff]   ;;  %v23513_v51 = vld [vmem:[#allocation11 + $0x1294] ss:$40 sps:$4 sm:$0xff]  }
 0x90f   :  { %16740 = vmatpush1.bf16.msra.mxu1 %v23460_v63  ;;  %16771 = vmatprep.mubr.bf16.mxu1 %v24432_v53  ;;  %v23481_v53 = vld [vmem:[#allocation11 + $0xf20] ss:$40 sps:$4 sm:$0xff]  }
 0x910   :  { %16741 = vmatprep.subr.bf16.mxu1 %v23468_v58  ;;  %v24576_v63 = vld [vmem:[#allocation13] sm:$0xff] }
 0x911   :  { %16791 = vmatpush1.bf16.msra.mxu0 %v23463_v11  ;;  %v11750_v58 = vrot.slane %v24576_v63, %v24142_v38  ;;  %v23508_v11 = vld [vmem:[#allocation11 + $0xed0] ss:$40 sps:$4 sm:$0xff]  }
 0x912   :  { %16792 = vmatprep.subr.bf16.mxu0 %v23471_v49  ;;  %v24580_v49 = vpop.f32.mrf.mxu1 }
 0x913   :  { %16742 = vmatpush1.bf16.msra.mxu1 %v23466_v24  ;;  %v23516_v24 = vld [vmem:[#allocation11 + $0xe84] ss:$40 sps:$4 sm:$0xff]  }
 0x914   :  { %16743 = vmatprep.subr.bf16.mxu1 %v23474_v48  ;;  %v15834_v48 = vadd.f32 %v24514_v41, %v11750_v58  ;;  %v23525_v41 = vld [vmem:[#allocation11 + $0x11f4] ss:$40 sps:$4 sm:$0xff]  }
 0x915   :  { %16793 = vmatpush1.bf16.msra.mxu0 %v23469_v8  ;;  %v23511_v8 = vld [vmem:[#allocation11 + $0x1290] ss:$40 sps:$4 sm:$0xff]  }
 0x916   :  { %16794 = vmatprep.subr.bf16.mxu0 %v23477_v22  ;;  %v23519_v22 = vld [vmem:[#allocation11 + $0x1244] ss:$40 sps:$4 sm:$0xff]  }
 0x917   :  { %16744 = vmatpush1.bf16.msra.mxu1 %v23472_v50  ;;  %v15830_v50 = vadd.f32 %v24504_v19, %v11750_v58  ;;  %v23528_v19 = vld [vmem:[#allocation11 + $0xde4] ss:$40 sps:$4 sm:$0xff]  }
 0x918   :  { %16745 = vmatprep.subr.bf16.mxu1 %v23480_v56  ;;  %v15877_v56 = vadd.f32 %v24510_v57, %v15834_v48  ;;  %v23544_v48 = vld [vmem:[#allocation14 + $0x30] sm:$0xff]  }
 0x919   :  { %16795 = vmatpush1.bf16.msra.mxu0 %v23475_v18  ;;  %v23514_v18 = vld [vmem:[#allocation11 + $0xe80] ss:$40 sps:$4 sm:$0xff]  }
 0x91a   :  { %16796 = vmatprep.subr.bf16.mxu0 %v23483_v6  ;;  %v24585_v6 = vpop.f32.mrf.mxu1 }
 0x91b   :  { %16746 = vmatpush1.bf16.msra.mxu1 %v23478_v28  ;;  %v23522_v28 = vld [vmem:[#allocation11 + $0xe34] ss:$40 sps:$4 sm:$0xff]  }
 0x91c   :  { %16747 = vmatprep.subr.bf16.mxu1 %v23486_v0  ;;  %v15873_v0 = vadd.f32 %v24502_v10, %v15830_v50  ;;  %v23531_v10 = vld [vmem:[#allocation11 + $0x11a4] ss:$40 sps:$4 sm:$0xff]   ;;  %v23545_v50 = vld [vmem:[#allocation14 + $0x68] sm:$0xff]  }
 0x91d   :  { %16797 = vmatpush1.bf16.msra.mxu0 %v23481_v53  ;;  %v23517_v53 = vld [vmem:[#allocation11 + $0x1240] ss:$40 sps:$4 sm:$0xff]  }
 0x91e   :  { %16798 = vmatprep.subr.bf16.mxu0 %v23489_v43  ;;  %v15920_v43 = vadd.f32 %v24528_v25, %v15877_v56  ;;  %v15916_v57 = vadd.f32 %v24520_v23, %v15873_v0  ;;  %v23526_v25 = vld [vmem:[#allocation11 + $0xde0] ss:$40 sps:$4 sm:$0xff]   ;;  %v24596_v23 = vpop.f32.mrf.mxu0  ;;  %v23541_v56 = vld [vmem:[#allocation11 + $0xcf0] ss:$40 sps:$4 sm:$0xff]  }
 0x91f   :  { %16748 = vmatpush1.bf16.msra.mxu1 %v23484_v29  ;;  %v23520_v29 = vld [vmem:[#allocation11 + $0xe30] ss:$40 sps:$4 sm:$0xff]  }
 0x920   :  { %16749 = vmatprep.subr.bf16.mxu1 %v23492_v30  ;;  %v24589_v30 = vpop.f32.mrf.mxu1 }
 0x921   :  { %16799 = vmatpush2.bf16.msra.mxu0 %v23487_v36  ;;  %v15963_v36 = vadd.f32 %v24526_v47, %v15920_v43 }
 0x922   :  { %16800 = vmatprep.subr.bf16.mxu0 %v23495_v7  ;;  %v23523_v7 = vld [vmem:[#allocation11 + $0x11f0] ss:$40 sps:$4 sm:$0xff]  }
 0x923   :  { %16750 = vmatpush1.bf16.msra.mxu1 %v23490_v45  ;;  %v15959_v45 = vadd.f32 %v24518_v14, %v15916_v57  ;;  %v23532_v14 = vld [vmem:[#allocation11 + $0xd90] ss:$40 sps:$4 sm:$0xff]   ;;  %v11766_v57 = vrot.slane %v24576_v63, %v24176_v32  ;;  %v23559_v32 = vld [vmem:[#allocation14 + $0x18] sm:$0xff]  }
 0x924   :  { %16751 = vmatprep.subr.bf16.mxu1 %v23498_v27  ;;  %v16006_v27 = vadd.f32 %v24540_v61, %v15963_v36  ;;  %v23538_v61 = vld [vmem:[#allocation11 + $0xd44] ss:$40 sps:$4 sm:$0xff]  }
 0x925   :  { %16801 = vmatpush2.bf16.msra.mxu0 %v23493_v44  ;;  %v16263_v44 = vpop.f32.mrf.mxu1  ;;  %v23554_v36 = vld [vmem:[#allocation14 + $0x20] sm:$0xff]  }
 0x926   :  { %16802 = vmatprep.subr.bf16.mxu0 %v23501_v15  ;;  %v23534_v15 = vld [vmem:[#allocation11 + $0xd94] ss:$40 sps:$4 sm:$0xff]  }
 0x927   :  { %16752 = vmatpush1.bf16.msra.mxu1 %v23496_v4  ;;  %v16002_v4 = vadd.f32 %v24534_v12, %v15959_v45  ;;  %v24598_v47 = vpop.f32.mrf.mxu1  ;;  %v23540_v12 = vld [vmem:[#allocation14 + $0x70] sm:$0xff]   ;;  %v16264_v45 = vadd.f32 %v16263_v44, %v11766_v57 }
 0x928   :  { %16753 = vmatprep.subr.bf16.mxu1 %v23504_v42  ;;  %v23529_v42 = vld [vmem:[#allocation11 + $0x11a0] ss:$40 sps:$4 sm:$0xff]  }
 0x929   :  { %16803 = vmatpush2.bf16.msra.mxu0 %v23499_v9  ;;  %v23535_v9 = vld [vmem:[#allocation14 + $0x78] sm:$0xff]   ;;  %v23560_v44 = vld [vmem:[#allocation14 + $0x50] sm:$0xff]  }
 0x92a   :  { %16804 = vmatprep.subr.bf16.mxu0 %v23507_v33  ;;  %v16879_v33 = vmax.f32 %v16006_v27, 0.0  ;;  %v23551_v27 = vld [vmem:[#allocation11 + $0x1650] ss:$40 sps:$4 sm:$0xff]  }
 0x92b   :  { %16754 = vmatpush1.bf16.msra.mxu1 %v23502_v20  ;;  %v16869_v20 = vmax.f32 %v16002_v4, 0.0 }
 0x92c   :  { %16755 = vmatprep.subr.bf16.mxu1 %v23510_v60  ;;  %v23539_v60 = vld [vmem:[#allocation14 + $0x38] sm:$0xff]  }
 0x92d   :  { %16805 = vmatpush2.bf16.msra.mxu0 %v23505_v17  ;;  %v24600_v17 = vpop.f32.mrf.mxu0  ;;  %v16889_v58 = vpack.c.bf16 %v16879_v33, %v16869_v20 }
 0x92e   :  { %16806 = vmatprep.subr.bf16.mxu0 %v23513_v51  ;;  %v24602_v51 = vpop.f32.mrf.mxu1 }
 0x92f   :  { %16756 = vmatpush2.bf16.msra.mxu1 %v23508_v11  ;;  %v23536_v11 = vld [vmem:[#allocation11 + $0xd40] ss:$40 sps:$4 sm:$0xff]  }
 0x930   :  { %16757 = vmatprep.subr.bf16.mxu1 %v23516_v24  ;;  %v23543_v24 = vld [vmem:[#allocation11 + $0xcf4] ss:$40 sps:$4 sm:$0xff]  }
 0x931   :  { %16807 = vmatpush2.bf16.msra.mxu0 %v23511_v8  ;;  %v24605_v8 = vpop.f32.mrf.mxu0 }
 0x932   :  { %16808 = vmatprep.subr.bf16.mxu0 %v23519_v22  ;;  %v24607_v22 = vpop.f32.mrf.mxu1 }
 0x933   :  { %16758 = vmatpush2.bf16.msra.mxu1 %v23514_v18  ;;  %v23548_v18 = vld [vmem:[#allocation11 + $0xca4] ss:$40 sps:$4 sm:$0xff]   ;;  %v16306_v0 = vpop.f32.mrf.mxu0 }
 0x934   :  { %16759 = vmatprep.subr.bf16.mxu1 %v23522_v28  ;;  %v23549_v28 = vld [vmem:[#allocation14 + $0x28] sm:$0xff]  }
 0x935   :  { %16809 = vmatpush2.bf16.msra.mxu0 %v23517_v53  ;;  %v16349_v53 = vpop.f32.mrf.mxu1  ;;  %v24609_v43 = vpop.f32.mrf.mxu0 }
 0x936   :  { %16810 = vmatprep.subr.bf16.mxu0 %v23525_v41  ;;  %v23546_v41 = vld [vmem:[#allocation11 + $0xca0] ss:$40 sps:$4 sm:$0xff]  }
 0x937   :  { %16760 = vmatpush2.bf16.msra.mxu1 %v23520_v29  ;;  %v24611_v29 = vpop.f32.mrf.mxu1 }
 0x938   :  { %16761 = vmatprep.subr.bf16.mxu1 %v23528_v19  ;;  %v23553_v19 = vld [vmem:[#allocation11 + $0x1654] ss:$40 sps:$4 sm:$0xff]  }
 0x939   :  { %16811 = vmatpush2.bf16.msra.mxu0 %v23523_v7  ;;  %v11746_v7 = vrot.slane %v24576_v63, %v24035_v39  ;;  %v16431_v4 = vpop.f32.mrf.mxu1 }
 0x93a   :  { %16812 = vmatprep.subr.bf16.mxu0 %v23531_v10  ;;  %v23555_v10 = vld [vmem:[#allocation14 + $0x58] sm:$0xff]  }
 0x93b   :  { %16762 = vmatpush2.bf16.msra.mxu1 %v23526_v25  ;;  %v15832_v25 = vadd.f32 %v24508_v5, %v11746_v7  ;;  %v15828_v33 = vadd.f32 %v24500_v37, %v11746_v7  ;;  %v23556_v5 = vld [vmem:[#allocation11 + $0x1600] ss:$40 sps:$4 sm:$0xff]  }
 0x93c   :  { %16763 = vmatprep.subr.bf16.mxu1 %v23534_v15  ;;  %v16388_v15 = vpop.f32.mrf.mxu0  ;;  %v23575_v7 = vld [vmem:[#allocation14 + $0x178] sm:$0xff]  }
 0x93d   :  { %16813 = vmatpush2.bf16.msra.mxu0 %v23529_v42  ;;  %v23558_v42 = vld [vmem:[#allocation11 + $0x1604] ss:$40 sps:$4 sm:$0xff]   ;;  %v15871_v20 = vadd.f32 %v24498_v13, %v15828_v33  ;;  %v23585_v33 = vld [vmem:[#allocation14 + $0x168] sm:$0xff]  }
 0x93e   :  { %20104 = vmatprep.subr.bf16.mxu0 %v23535_v9  ;;  %v16260_v9 = vadd.f32 %v24585_v6, %v11766_v57  ;;  %v24626_v6 = vpop.f32.mrf.mxu1  ;;  %v23574_v57 = vld [vmem:[#allocation14] sm:$0xff]  }
 0x93f   :  { %16764 = vmatpush2.bf16.msra.mxu1 %v23532_v14  ;;  %v15875_v14 = vadd.f32 %v24506_v59, %v15832_v25  ;;  %v15914_v13 = vadd.f32 %v24516_v35, %v15871_v20  ;;  %v23579_v25 = vld [vmem:[#allocation14 + $0x138] sm:$0xff]  }
 0x940   :  { %16815 = vmatmul.mubr.bf16.vlgmr.msra.gmra.mxu0 %v24456_v16  ;;  %16765 = vmatprep.subr.bf16.mxu1 %v23538_v61  ;;  %v23550_v16 = vld [vmem:[#allocation14 + $0x60] sm:$0xff]   ;;  %v16307_v61 = vadd.f32 %v16306_v0, %v16264_v45  ;;  %v16303_v37 = vadd.f32 %v24600_v17, %v16260_v9  ;;  %v23583_v9 = vld [vmem:[#allocation11 + $0x1474] ss:$40 sps:$4 sm:$0xff]  }
 0x941   :  { %20105 = vmatpush3.bf16.msra.mxu0 %v23539_v60  ;;  %17577 = vmatprep.mubr.bf16.mxu0 %v16889_v58  ;;  %v24624_v60 = vpop.f32.mrf.mxu0  ;;  %v15918_v58 = vadd.f32 %v24524_v26, %v15875_v14  ;;  %v15957_v0 = vadd.f32 %v24512_v54, %v15914_v13  ;;  %v23571_v54 = vld [vmem:[#allocation11 + $0x1510] ss:$40 sps:$4 sm:$0xff]   ;;  %v23578_v45 = vld [vmem:[#allocation11 + $0x14c4] ss:$40 sps:$4 sm:$0xff]   ;;  %v23586_v20 = vld [vmem:[#allocation11 + $0x1420] ss:$40 sps:$4 sm:$0xff]  }
 0x942   :  { %20106 = vmatprep.subr.bf16.mxu0 %v23540_v12  ;;  %v23563_v12 = vld [vmem:[#allocation11 + $0x15b4] ss:$40 sps:$4 sm:$0xff]   ;;  %v16350_v59 = vadd.f32 %v16349_v53, %v16307_v61  ;;  %v23570_v53 = vld [vmem:[#allocation14 + $0x40] sm:$0xff]   ;;  %v23599_v13 = vld [vmem:[#allocation14 + $0x118] sm:$0xff]  }
 0x943   :  { %16766 = vmatpush2.bf16.msra.mxu1 %v23536_v11  ;;  %v23565_v11 = vld [vmem:[#allocation14 + $0x48] sm:$0xff]   ;;  %v16000_v35 = vadd.f32 %v24530_v3, %v15957_v0  ;;  %v23580_v3 = vld [vmem:[#allocation14 + $0x170] sm:$0xff]  }
 0x944   :  { %16767 = vmatprep.subr.bf16.mxu1 %v23543_v24  ;;  %v23561_v24 = vld [vmem:[#allocation11 + $0x15b0] ss:$40 sps:$4 sm:$0xff]  }
 0x945   :  { %20107 = vmatpush3.bf16.msra.mxu0 %v23544_v48  ;;  %v15961_v48 = vadd.f32 %v24522_v40, %v15918_v58  ;;  %v23573_v40 = vld [vmem:[#allocation11 + $0x1514] ss:$40 sps:$4 sm:$0xff]   ;;  %v23581_v14 = vld [vmem:[#allocation11 + $0x1470] ss:$40 sps:$4 sm:$0xff]   ;;  %v23595_v58 = vld [vmem:[#allocation14 + $0x158] sm:$0xff]  }
 0x946   :  { %20108 = vmatprep.subr.bf16.mxu0 %v23545_v50  ;;  %v16392_v50 = vpop.f32.mrf.mxu0  ;;  %v23589_v61 = vld [vmem:[#allocation14 + $0x128] sm:$0xff]  }
 0x947   :  { %16768 = vmatpush2.bf16.msra.mxu1 %v23541_v56  ;;  %v16435_v56 = vpop.f32.mrf.mxu1  ;;  %v16393_v17 = vadd.f32 %v16392_v50, %v16350_v59  ;;  %v16004_v26 = vadd.f32 %v24536_v46, %v15961_v48  ;;  %v16868_v46 = vmax.f32 %v16000_v35, 0.0  ;;  %v23594_v59 = vld [vmem:[#allocation14 + $0x120] sm:$0xff]  }
 0x948   :  { %16769 = vmatprep.subr.bf16.mxu1 %v23548_v18  ;;  %v23568_v18 = vld [vmem:[#allocation11 + $0x1564] ss:$40 sps:$4 sm:$0xff]   ;;  %v23596_v50 = vld [vmem:[#allocation11 + $0x1880] ss:$40 sps:$4 sm:$0xff]   ;;  %v23601_v0 = vld [vmem:[#allocation11 + $0x1830] ss:$40 sps:$4 sm:$0xff]  }
 0x949   :  { %20109 = vmatpush3.bf16.msra.mxu0 %v23549_v28  ;;  %v23569_v28 = vld [vmem:[#allocation14 + $0x8] sm:$0xff]   ;;  %v23614_v35 = vld [vmem:[#allocation14 + $0x100] sm:$0xff]  }
 0x94a   :  { %20110 = vmatprep.subr.bf16.mxu0 %v23550_v16  ;;  %v16436_v16 = vadd.f32 %v16435_v56, %v16393_v17  ;;  %v23604_v17 = vld [vmem:[#allocation14 + $0x110] sm:$0xff]  }
 0x94b   :  { %16770 = vmatpush2.bf16.msra.mxu1 %v23546_v41  ;;  %v23566_v41 = vld [vmem:[#allocation11 + $0x1560] ss:$40 sps:$4 sm:$0xff]  }
 0x94c   :  { %16825 = vmatprep.subr.bf16.mxu1 %v23553_v19 }
 0x94d   :  { %20111 = vmatpush3.bf16.msra.mxu0 %v23554_v36  ;;  %v16878_v36 = vmax.f32 %v16004_v26, 0.0  ;;  %v23608_v26 = vld [vmem:[#allocation11 + $0x17e4] ss:$40 sps:$4 sm:$0xff]  }
 0x94e   :  { %16772 = vmatmul.mubr.bf16.vlgmr.msra.gmra.mxu1 %v24374_v52  ;;  %20112 = vmatprep.subr.bf16.mxu0 %v23555_v10  ;;  %v23564_v52 = vld [vmem:[#allocation14 + $0x10] sm:$0xff]   ;;  %v16883_v10 = vmax.f32 %v16436_v16, 0.0 }
 0x94f   :  { %16826 = vmatpush1.bf16.msra.mxu1 %v23551_v27  ;;  %16857 = vmatprep.mubr.bf16.mxu1 %v24479_v1  ;;  %v16346_v1 = vadd.f32 %v24602_v51, %v16303_v37  ;;  %v23593_v37 = vld [vmem:[#allocation11 + $0x18d4] ss:$40 sps:$4 sm:$0xff]   ;;  %v23606_v16 = vld [vmem:[#allocation11 + $0x17e0] ss:$40 sps:$4 sm:$0xff]  }
 0x950   :  { %16827 = vmatprep.subr.bf16.mxu1 %v23558_v42 }
 0x951   :  { %20113 = vmatpush3.bf16.msra.mxu0 %v23559_v32  ;;  %v16389_v51 = vadd.f32 %v16388_v15, %v16346_v1  ;;  %v16888_v15 = vpack.c.bf16 %v16878_v36, %v16868_v46  ;;  %v23584_v32 = vld [vmem:[#allocation14 + $0x130] sm:$0xff]   ;;  %v24652_v46 = vpop.f32.mrf.mxu1 }
 0x952   :  { %20114 = vmatprep.subr.bf16.mxu0 %v23560_v44  ;;  %v23588_v44 = vld [vmem:[#allocation11 + $0x1424] ss:$40 sps:$4 sm:$0xff]   ;;  %v23615_v36 = vld [vmem:[#allocation11 + $0x1740] ss:$40 sps:$4 sm:$0xff]  }
 0x953   :  { %16828 = vmatpush1.bf16.msra.mxu1 %v23556_v5  ;;  %v16432_v19 = vadd.f32 %v16431_v4, %v16389_v51  ;;  %v23576_v4 = vld [vmem:[#allocation11 + $0x14c0] ss:$40 sps:$4 sm:$0xff]  }
 0x954   :  { %16829 = vmatprep.subr.bf16.mxu1 %v23563_v12  ;;  %v23590_v5 = vld [vmem:[#allocation14 + $0x160] sm:$0xff]   ;;  %v11762_v12 = vrot.slane %v24576_v63, %v24103_v31  ;;  %v23600_v31 = vld [vmem:[#allocation14 + $0x150] sm:$0xff]  }
 0x955   :  { %20115 = vmatpush3.bf16.msra.mxu0 %v23564_v52  ;;  %v16873_v27 = vmax.f32 %v16432_v19, 0.0  ;;  %v23610_v51 = vld [vmem:[#allocation14 + $0x140] sm:$0xff]   ;;  %v24648_v19 = vpop.f32.mrf.mxu0 }
 0x956   :  { %20116 = vmatprep.subr.bf16.mxu0 %v23565_v11  ;;  %v16262_v52 = vadd.f32 %v24589_v30, %v11762_v12  ;;  %v23591_v11 = vld [vmem:[#allocation11 + $0x18d0] ss:$40 sps:$4 sm:$0xff]   ;;  %v16258_v1 = vadd.f32 %v24580_v49, %v11762_v12 }
 0x957   :  { %16830 = vmatpush1.bf16.msra.mxu1 %v23561_v24  ;;  %v16893_v42 = vpack.c.bf16 %v16883_v10, %v16873_v27  ;;  %v23598_v24 = vld [vmem:[#allocation11 + $0x1884] ss:$40 sps:$4 sm:$0xff]   ;;  %v23618_v10 = vld [vmem:[#allocation11 + $0x16f0] ss:$40 sps:$4 sm:$0xff]   ;;  %v23621_v27 = vld [vmem:[#allocation11 + $0x16a0] ss:$40 sps:$4 sm:$0xff]  }
 0x958   :  { %16831 = vmatprep.subr.bf16.mxu1 %v23568_v18  ;;  %v16305_v48 = vadd.f32 %v24605_v8, %v16262_v52  ;;  %v16301_v56 = vadd.f32 %v24596_v23, %v16258_v1  ;;  %v23603_v18 = vld [vmem:[#allocation11 + $0x1834] ss:$40 sps:$4 sm:$0xff]  }
 0x959   :  { %20117 = vmatpush3.bf16.msra.mxu0 %v23569_v28  ;;  %v23605_v28 = vld [vmem:[#allocation14 + $0x148] sm:$0xff]  }
 0x95a   :  { %20118 = vmatprep.subr.bf16.mxu0 %v23570_v53  ;;  %v16348_v30 = vadd.f32 %v24607_v22, %v16305_v48  ;;  %v16344_v49 = vadd.f32 %v24598_v47, %v16301_v56  ;;  %v23609_v53 = vld [vmem:[#allocation14 + $0x108] sm:$0xff]   ;;  %v23634_v56 = vld [vmem:[#allocation14 + $0xd0] sm:$0xff]  }
 0x95b   :  { %16832 = vmatpush1.bf16.msra.mxu1 %v23566_v41  ;;  %v23613_v41 = vld [vmem:[#allocation11 + $0x1794] ss:$40 sps:$4 sm:$0xff]  }
 0x95c   :  { %16833 = vmatprep.subr.bf16.mxu1 %v23573_v40  ;;  %v16391_v8 = vadd.f32 %v24624_v60, %v16348_v30  ;;  %v16387_v23 = vadd.f32 %v24609_v43, %v16344_v49  ;;  %v23611_v60 = vld [vmem:[#allocation11 + $0x1790] ss:$40 sps:$4 sm:$0xff]   ;;  %v23617_v43 = vld [vmem:[#allocation11 + $0x1744] ss:$40 sps:$4 sm:$0xff]  }
 0x95d   :  { %20119 = vmatpush3.bf16.msra.mxu0 %v23574_v57  ;;  %v23629_v12 = vld [vmem:[#allocation14 + $0xa8] sm:$0xff]  }
 0x95e   :  { %20148 = vmatprep.subr.bf16.mxu0 %v23575_v7  ;;  %v16434_v22 = vadd.f32 %v24626_v6, %v16391_v8  ;;  %v16430_v47 = vadd.f32 %v24611_v29, %v16387_v23  ;;  %v16474_v7 = vpop.f32.mrf.mxu0  ;;  %v23620_v29 = vld [vmem:[#allocation11 + $0x16f4] ss:$40 sps:$4 sm:$0xff]  }
 0x95f   :  { %16834 = vmatpush1.bf16.msra.mxu1 %v23571_v54 }
 0x960   :  { %17578 = vmatmul.mubr.bf16.vlgmr.msra.gmra.mxu0 %v16888_v15  ;;  %16835 = vmatprep.subr.bf16.mxu1 %v23578_v45  ;;  %v16882_v40 = vmax.f32 %v16434_v22, 0.0  ;;  %v16872_v57 = vmax.f32 %v16430_v47, 0.0  ;;  %v24650_v54 = vpop.f32.mrf.mxu0  ;;  %v23623_v45 = vld [vmem:[#allocation11 + $0x16a4] ss:$40 sps:$4 sm:$0xff]   ;;  %v16517_v15 = vpop.f32.mrf.mxu1 }
 0x961   :  { %20149 = vmatpush3.bf16.msra.mxu0 %v23579_v25  ;;  %17659 = vmatprep.mubr.bf16.mxu0 %v16893_v42  ;;  %v23638_v22 = vld [vmem:[#allocation14 + $0xc0] sm:$0xff]  }
 0x962   :  { %20150 = vmatprep.subr.bf16.mxu0 %v23580_v3  ;;  %v16892_v6 = vpack.c.bf16 %v16882_v40, %v16872_v57  ;;  %v16478_v25 = vpop.f32.mrf.mxu0  ;;  %v23624_v3 = vld [vmem:[#allocation14 + $0xf8] sm:$0xff]   ;;  %v23639_v47 = vld [vmem:[#allocation14 + $0x80] sm:$0xff]   ;;  %v23658_v57 = vld [vmem:[#allocation14 + $0x270] sm:$0xff]  }
 0x963   :  { %16836 = vmatpush1.bf16.msra.mxu1 %v23576_v4  ;;  %v23625_v4 = vld [vmem:[#allocation14 + $0xb8] sm:$0xff]  }
 0x964   :  { %16837 = vmatprep.subr.bf16.mxu1 %v23583_v9  ;;  %v24654_v42 = vpop.f32.mrf.mxu0  ;;  %v24656_v9 = vpop.f32.mrf.mxu1  ;;  %v23656_v40 = vld [vmem:[#allocation14 + $0x278] sm:$0xff]  }
 0x965   :  { %20151 = vmatpush3.bf16.msra.mxu0 %v23584_v32  ;;  %v23626_v32 = vld [vmem:[#allocation14 + $0xf0] sm:$0xff]  }
 0x966   :  { %20152 = vmatprep.subr.bf16.mxu0 %v23585_v33  ;;  %v16560_v33 = vpop.f32.mrf.mxu0 }
 0x967   :  { %16838 = vmatpush1.bf16.msra.mxu1 %v23581_v14  ;;  %v23627_v14 = vld [vmem:[#allocation14 + $0xb0] sm:$0xff]  }
 0x968   :  { %16839 = vmatprep.subr.bf16.mxu1 %v23588_v44  ;;  %v16521_v44 = vpop.f32.mrf.mxu1 }
 0x969   :  { %20153 = vmatpush3.bf16.msra.mxu0 %v23589_v61  ;;  %v23628_v61 = vld [vmem:[#allocation14 + $0xe8] sm:$0xff]  }
 0x96a   :  { %20154 = vmatprep.subr.bf16.mxu0 %v23590_v5  ;;  %v24660_v5 = vpop.f32.mrf.mxu0 }
 0x96b   :  { %16840 = vmatpush1.bf16.msra.mxu1 %v23586_v20 }
 0x96c   :  { %16841 = vmatprep.subr.bf16.mxu1 %v23593_v37  ;;  %v23630_v37 = vld [vmem:[#allocation14 + $0xe0] sm:$0xff]  }
 0x96d   :  { %20155 = vmatpush3.bf16.msra.mxu0 %v23594_v59  ;;  %v16564_v59 = vpop.f32.mrf.mxu0 }
 0x96e   :  { %20156 = vmatprep.subr.bf16.mxu0 %v23595_v58  ;;  %v23631_v58 = vld [vmem:[#allocation14 + $0xa0] sm:$0xff]  }
 0x96f   :  { %16842 = vmatpush2.bf16.msra.mxu1 %v23591_v11  ;;  %v23632_v11 = vld [vmem:[#allocation14 + $0xd8] sm:$0xff]  }
 0x970   :  { %16843 = vmatprep.subr.bf16.mxu1 %v23598_v24 }
 0x971   :  { %20157 = vmatpush3.bf16.msra.mxu0 %v23599_v13 }
 0x972   :  { %20158 = vmatprep.subr.bf16.mxu0 %v23600_v31  ;;  %v23633_v31 = vld [vmem:[#allocation14 + $0x98] sm:$0xff]  }
 0x973   :  { %16844 = vmatpush2.bf16.msra.mxu1 %v23596_v50 }
 0x974   :  { %16845 = vmatprep.subr.bf16.mxu1 %v23603_v18 }
 0x975   :  { %20159 = vmatpush3.bf16.msra.mxu0 %v23604_v17 }
 0x976   :  { %20160 = vmatprep.subr.bf16.mxu0 %v23605_v28  ;;  %v23636_v28 = vld [vmem:[#allocation14 + $0xc8] sm:$0xff]  }
 0x977   :  { %16846 = vmatpush2.bf16.msra.mxu1 %v23601_v0 }
 0x978   :  { %16847 = vmatprep.subr.bf16.mxu1 %v23608_v26 }
 0x979   :  { %20161 = vmatpush3.bf16.msra.mxu0 %v23609_v53  ;;  %v23637_v53 = vld [vmem:[#allocation14 + $0x88] sm:$0xff]  }
 0x97a   :  { %20162 = vmatprep.subr.bf16.mxu0 %v23610_v51 }
 0x97b   :  { %16848 = vmatpush2.bf16.msra.mxu1 %v23606_v16 }
 0x97c   :  { %16849 = vmatprep.subr.bf16.mxu1 %v23613_v41  ;;  %v23640_v41 = vld [vmem:[#allocation14 + $0x1f8] sm:$0xff]  }
 0x97d   :  { %20163 = vmatpush3.bf16.msra.mxu0 %v23614_v35 }
 0x97e   :  { %20192 = vmatprep.subr.bf16.mxu0 %v23656_v40 }
 0x97f   :  { %16850 = vmatpush2.bf16.msra.mxu1 %v23611_v60  ;;  %v23657_v60 = vld [vmem:[#allocation14 + $0x238] sm:$0xff]  }
 0x980   :  { %17660 = vmatmul.mubr.bf16.vlgmr.msra.gmra.mxu0 %v16892_v6  ;;  %16851 = vmatprep.subr.bf16.mxu1 %v23617_v43  ;;  %v23641_v6 = vld [vmem:[#allocation14 + $0x1b8] sm:$0xff]  }
 0x981   :  { %20193 = vmatpush3.bf16.msra.mxu0 %v23657_v60 }
 0x982   :  { %20194 = vmatprep.subr.bf16.mxu0 %v23658_v57 }
 0x983   :  { %16852 = vmatpush2.bf16.msra.mxu1 %v23615_v36  ;;  %v23642_v36 = vld [vmem:[#allocation14 + $0x1f0] sm:$0xff]  }
 0x984   :  { %16853 = vmatprep.subr.bf16.mxu1 %v23620_v29  ;;  %v23643_v29 = vld [vmem:[#allocation14 + $0x1b0] sm:$0xff]  }
 0x987   :  { %16854 = vmatpush2.bf16.msra.mxu1 %v23618_v10  ;;  %v23644_v10 = vld [vmem:[#allocation14 + $0x1e8] sm:$0xff]  }
 0x988   :  { %16855 = vmatprep.subr.bf16.mxu1 %v23623_v45  ;;  %v23645_v45 = vld [vmem:[#allocation14 + $0x1a8] sm:$0xff]  }
 0x98b   :  { %16856 = vmatpush2.bf16.msra.mxu1 %v23621_v27  ;;  %v23646_v27 = vld [vmem:[#allocation14 + $0x1e0] sm:$0xff]  }
 0x98c   :  { %20126 = vmatprep.subr.bf16.mxu1 %v23624_v3 }
 0x98e   :  { %16858 = vmatmul.mubr.bf16.vlgmr.msra.gmra.mxu1 %v24481_v21  ;;  %v24662_v20 = vpop.f32.mrf.mxu1  ;;  %v11774_v21 = vrot.slane %v24576_v63, %v24191_v2  ;;  %v23635_v2 = vld [vmem:[#allocation14 + $0x90] sm:$0xff]  }
 0x98f   :  { %20127 = vmatpush3.bf16.msra.mxu1 %v23625_v4  ;;  %17618 = vmatprep.mubr.bf16.mxu1 %v24562_v55  ;;  %v24666_v55 = vpop.f32.mrf.mxu0  ;;  %v23648_v4 = vld [vmem:[#allocation14 + $0x1d8] sm:$0xff]  }
 0x990   :  { %20128 = vmatprep.subr.bf16.mxu1 %v23626_v32  ;;  %v16603_v52 = vpop.f32.mrf.mxu1  ;;  %v16479_v1 = vadd.f32 %v16478_v25, %v11774_v21  ;;  %v16475_v13 = vadd.f32 %v16474_v7, %v11774_v21  ;;  %v11770_v25 = vrot.slane %v24576_v63, %v24218_v62  ;;  %v23651_v62 = vld [vmem:[#allocation14 + $0x190] sm:$0xff]  }
 0x991   :  { %v16646_v50 = vpop.f32.mrf.mxu0  ;;  %v23659_v63 = vld [vmem:[#allocation14 + $0x230] sm:$0xff]  }
 0x992   :  { %v24668_v24 = vpop.f32.mrf.mxu1  ;;  %v16522_v48 = vadd.f32 %v16521_v44, %v16479_v1  ;;  %v16518_v30 = vadd.f32 %v16517_v15, %v16475_v13  ;;  %v23647_v15 = vld [vmem:[#allocation14 + $0x1a0] sm:$0xff]   ;;  %v16477_v3 = vadd.f32 %v24650_v54, %v11770_v25  ;;  %v23650_v44 = vld [vmem:[#allocation14 + $0x1d0] sm:$0xff]   ;;  %20195 = vmatpush3.bf16.msra.mxu0 %v23659_v63  ;;  %v23664_v1 = vld [vmem:[#allocation14 + $0x258] sm:$0xff]  }
 0x993   :  { %20129 = vmatpush3.bf16.msra.mxu1 %v23627_v14  ;;  %v24670_v49 = vpop.f32.mrf.mxu0 }
 0x994   :  { %20130 = vmatprep.subr.bf16.mxu1 %v23628_v61  ;;  %v16607_v18 = vpop.f32.mrf.mxu1  ;;  %v16565_v17 = vadd.f32 %v16564_v59, %v16522_v48  ;;  %v16561_v0 = vadd.f32 %v16560_v33, %v16518_v30  ;;  %v16520_v32 = vadd.f32 %v24656_v9, %v16477_v3  ;;  %v23649_v33 = vld [vmem:[#allocation14 + $0x198] sm:$0xff]   ;;  %v23660_v9 = vld [vmem:[#allocation14 + $0x268] sm:$0xff]   ;;  %v23670_v30 = vld [vmem:[#allocation14 + $0x240] sm:$0xff]  }
 0x995   :  { %v16650_v23 = vpop.f32.mrf.mxu0  ;;  %v23653_v59 = vld [vmem:[#allocation14 + $0x188] sm:$0xff]   ;;  %20196 = vmatprep.subr.bf16.mxu0 %v23660_v9 }
 0x996   :  { %v16608_v8 = vadd.f32 %v16607_v18, %v16565_v17  ;;  %v16604_v26 = vadd.f32 %v16603_v52, %v16561_v0  ;;  %v16563_v61 = vadd.f32 %v24660_v5, %v16520_v32  ;;  %v23654_v5 = vld [vmem:[#allocation14 + $0x1c0] sm:$0xff]  }
 0x997   :  { %20131 = vmatpush3.bf16.msra.mxu1 %v23629_v12  ;;  %v23671_v18 = vld [vmem:[#allocation14 + $0x200] sm:$0xff]  }
 0x998   :  { %20132 = vmatprep.subr.bf16.mxu1 %v23630_v37  ;;  %v16651_v51 = vadd.f32 %v16650_v23, %v16608_v8  ;;  %v16647_v16 = vadd.f32 %v16646_v50, %v16604_v26  ;;  %v16606_v54 = vadd.f32 %v24668_v24, %v16563_v61  ;;  %v23652_v37 = vld [vmem:[#allocation14 + $0x1c8] sm:$0xff]   ;;  %v23667_v50 = vld [vmem:[#allocation14 + $0x210] sm:$0xff]   ;;  %v11740_v23 = vld [vmem:[#allocation13 + $0x8] sm:$0x3] }
 0x99a   :  { %v16885_v35 = vmax.f32 %v16651_v51, 0.0  ;;  %v16875_v43 = vmax.f32 %v16647_v16, 0.0  ;;  %v16649_v52 = vadd.f32 %v24670_v49, %v16606_v54  ;;  %v11778_v16 = vrot.slane %v11740_v23, %v24035_v39 }
 0x99b   :  { %20133 = vmatpush3.bf16.msra.mxu1 %v23631_v58  ;;  %v23655_v58 = vld [vmem:[#allocation14 + $0x180] sm:$0xff]  }
 0x99c   :  { %20134 = vmatprep.subr.bf16.mxu1 %v23632_v11  ;;  %v16895_v7 = vpack.c.bf16 %v16885_v35, %v16875_v43  ;;  %v23663_v11 = vld [vmem:[#allocation14 + $0x220] sm:$0xff]   ;;  %v16884_v24 = vmax.f32 %v16649_v52, 0.0 }
 0x99f   :  { %20135 = vmatpush3.bf16.msra.mxu1 %v23633_v31  ;;  %v23666_v31 = vld [vmem:[#allocation14 + $0x250] sm:$0xff]  }
 0x9a0   :  { %20136 = vmatprep.subr.bf16.mxu1 %v23634_v56  ;;  %v23669_v56 = vld [vmem:[#allocation14 + $0x208] sm:$0xff]  }
 0x9a3   :  { %20137 = vmatpush3.bf16.msra.mxu1 %v23635_v2 }
 0x9a4   :  { %20138 = vmatprep.subr.bf16.mxu1 %v23636_v28 }
 0x9a7   :  { %20139 = vmatpush3.bf16.msra.mxu1 %v23637_v53 }
 0x9a8   :  { %20140 = vmatprep.subr.bf16.mxu1 %v23638_v22  ;;  %v11782_v22 = vrot.slane %v11740_v23, %v24142_v38 }
 0x9ab   :  { %20141 = vmatpush3.bf16.msra.mxu1 %v23639_v47 }
 0x9ac   :  { %20170 = vmatprep.subr.bf16.mxu1 %v23640_v41 }
 0x9ae   :  { %17619 = vmatmul.mubr.bf16.vlgmr.msra.gmra.mxu1 %v24560_v34  ;;  %v16473_v34 = vadd.f32 %v24648_v19, %v11770_v25 }
 0x9af   :  { %20171 = vmatpush3.bf16.msra.mxu1 %v23641_v6  ;;  %17700 = vmatprep.mubr.bf16.mxu1 %v16895_v7 }
 0x9b0   :  { %20172 = vmatprep.subr.bf16.mxu1 %v23642_v36  ;;  %v16516_v14 = vadd.f32 %v24652_v46, %v16473_v34  ;;  %v23661_v46 = vld [vmem:[#allocation14 + $0x228] sm:$0xff]  }
 0x9b1   :  { %20197 = vmatpush3.bf16.msra.mxu0 %v23661_v46 }
 0x9b2   :  { %v16559_v12 = vadd.f32 %v24654_v42, %v16516_v14  ;;  %v23662_v42 = vld [vmem:[#allocation14 + $0x260] sm:$0xff]  }
 0x9b3   :  { %20173 = vmatpush3.bf16.msra.mxu1 %v23643_v29  ;;  %20198 = vmatprep.subr.bf16.mxu0 %v23662_v42 }
 0x9b4   :  { %20174 = vmatprep.subr.bf16.mxu1 %v23644_v10  ;;  %v16602_v19 = vadd.f32 %v24662_v20, %v16559_v12  ;;  %v23665_v20 = vld [vmem:[#allocation14 + $0x218] sm:$0xff]  }
 0x9b5   :  { %20199 = vmatpush3.bf16.msra.mxu0 %v23663_v11 }
 0x9b6   :  { %v16645_v21 = vadd.f32 %v24666_v55, %v16602_v19  ;;  %20200 = vmatprep.subr.bf16.mxu0 %v23664_v1  ;;  %v23668_v55 = vld [vmem:[#allocation14 + $0x248] sm:$0xff]  }
 0x9b7   :  { %20175 = vmatpush3.bf16.msra.mxu1 %v23645_v45 }
 0x9b8   :  { %20176 = vmatprep.subr.bf16.mxu1 %v23646_v27  ;;  %v16874_v13 = vmax.f32 %v16645_v21, 0.0 }
 0x9b9   :  { %20201 = vmatpush3.bf16.msra.mxu0 %v23665_v20 }
 0x9ba   :  { %v16894_v48 = vpack.c.bf16 %v16884_v24, %v16874_v13  ;;  %20202 = vmatprep.subr.bf16.mxu0 %v23666_v31 }
 0x9bb   :  { %20177 = vmatpush3.bf16.msra.mxu1 %v23647_v15 }
 0x9bc   :  { %20178 = vmatprep.subr.bf16.mxu1 %v23648_v4 }
 0x9bd   :  { %20203 = vmatpush3.bf16.msra.mxu0 %v23667_v50 }
 0x9be   :  { %20204 = vmatprep.subr.bf16.mxu0 %v23668_v55 }
 0x9bf   :  { %20179 = vmatpush3.bf16.msra.mxu1 %v23649_v33 }
 0x9c0   :  { %20180 = vmatprep.subr.bf16.mxu1 %v23650_v44  ;;  %v16730_v49 = vpop.f32.mrf.mxu0 }
 0x9c1   :  { %20205 = vmatpush3.bf16.msra.mxu0 %v23669_v56  ;;  %v20023_v56 = vld [vmem:[#allocation16] ss:$0 sm:$0xff] }
 0x9c2   :  { %20206 = vmatprep.subr.bf16.mxu0 %v23670_v30  ;;  %v16732_v0 = vpop.f32.mrf.mxu0 }
 0x9c3   :  { %20181 = vmatpush3.bf16.msra.mxu1 %v23651_v62 }
 0x9c4   :  { %20182 = vmatprep.subr.bf16.mxu1 %v23652_v37  ;;  %v16734_v26 = vpop.f32.mrf.mxu0 }
 0x9c5   :  { %20207 = vmatpush3.bf16.msra.mxu0 %v23671_v18 }
 0x9c6   :  { %v16736_v51 = vpop.f32.mrf.mxu0 }
 0x9c7   :  { %20183 = vmatpush3.bf16.msra.mxu1 %v23653_v59 }
 0x9c8   :  { %20184 = vmatprep.subr.bf16.mxu1 %v23654_v5 }
 0x9cb   :  { %20185 = vmatpush3.bf16.msra.mxu1 %v23655_v58 }
 0x9ce   :  { %17701 = vmatmul.mubr.bf16.vlgmr.msra.gmra.mxu1 %v16894_v48  ;;  %v16687_v17 = vpop.f32.mrf.mxu1 }
 0x9cf   :  { %v16688_v60 = vadd.f32 %v16687_v17, %v11778_v16 }
 0x9d0   :  { %v16689_v2 = vpop.f32.mrf.mxu1 }
 0x9d1   :  { %v16690_v35 = vadd.f32 %v16689_v2, %v11782_v22  ;;  %v16731_v29 = vadd.f32 %v16730_v49, %v16688_v60 }
 0x9d2   :  { %v16691_v28 = vpop.f32.mrf.mxu1 }
 0x9d3   :  { %v16692_v40 = vadd.f32 %v16691_v28, %v11778_v16  ;;  %v16733_v36 = vadd.f32 %v16732_v0, %v16690_v35 }
 0x9d4   :  { %v16693_v8 = vpop.f32.mrf.mxu1 }
 0x9d5   :  { %v16694_v43 = vadd.f32 %v16693_v8, %v11782_v22  ;;  %v16735_v7 = vadd.f32 %v16734_v26, %v16692_v40 }
 0x9d7   :  { %v16737_v25 = vadd.f32 %v16736_v51, %v16694_v43 }
 0xa00   :  { %v16816_v41 = vpop.f32.mrf.mxu0 }
 0xa02   :  { %v16818_v6 = vpop.f32.mrf.mxu0 }
 0xa04   :  { %v16820_v15 = vpop.f32.mrf.mxu0 }
 0xa06   :  { %v16822_v33 = vpop.f32.mrf.mxu0 }
 0xa0e   :  { %v16773_v53 = vpop.f32.mrf.mxu1 }
 0xa0f   :  { %v16774_v38 = vadd.f32 %v16773_v53, %v16731_v29 }
 0xa10   :  { %v16775_v47 = vpop.f32.mrf.mxu1 }
 0xa11   :  { %v16776_v45 = vadd.f32 %v16775_v47, %v16733_v36  ;;  %v16817_v14 = vadd.f32 %v16816_v41, %v16774_v38 }
 0xa12   :  { %v16777_v57 = vpop.f32.mrf.mxu1 }
 0xa13   :  { %v16778_v27 = vadd.f32 %v16777_v57, %v16735_v7  ;;  %v16819_v34 = vadd.f32 %v16818_v6, %v16776_v45 }
 0xa14   :  { %v16779_v10 = vpop.f32.mrf.mxu1 }
 0xa15   :  { %v16780_v4 = vadd.f32 %v16779_v10, %v16737_v25  ;;  %v16821_v32 = vadd.f32 %v16820_v15, %v16778_v27 }
 0xa17   :  { %v16823_v63 = vadd.f32 %v16822_v33, %v16780_v4 }
 0xa20   :  { %v20120_v21 = vpop.f32.mrf.mxu0 }
 0xa22   :  { %v20121_v58 = vpop.f32.mrf.mxu0 }
 0xa23   :  { %v20122_v55 = vadd.f32 %v20121_v58, %v20120_v21 }
 0xa24   :  { %v20123_v1 = vpop.f32.mrf.mxu0 }
 0xa25   :  { %v17580_v2 = vadd.f32 %v20122_v55, %v20023_v56 }
 0xa26   :  { %v20124_v20 = vpop.f32.mrf.mxu0 }
 0xa27   :  { %v20125_v49 = vadd.f32 %v20124_v20, %v20123_v1 }
 0xa29   :  { %v17583_v53 = vadd.f32 %v20125_v49, %v20023_v56 }
 0xa40   :  { %v20164_v13 = vpop.f32.mrf.mxu0 }
 0xa42   :  { %v20165_v50 = vpop.f32.mrf.mxu0 }
 0xa43   :  { %v20166_v23 = vadd.f32 %v20165_v50, %v20164_v13 }
 0xa44   :  { %v20167_v17 = vpop.f32.mrf.mxu0 }
 0xa46   :  { %v20168_v26 = vpop.f32.mrf.mxu0 }
 0xa47   :  { %v20169_v40 = vadd.f32 %v20168_v26, %v20167_v17 }
 0xa4e   :  { %v16859_v3 = vpop.f32.mrf.mxu1 }
 0xa4f   :  { %v16860_v12 = vadd.f32 %v16859_v3, %v16817_v14 }
 0xa50   :  { %v16861_v39 = vpop.f32.mrf.mxu1 }
 0xa51   :  { %v16862_v61 = vadd.f32 %v16861_v39, %v16819_v34  ;;  %v16876_v46 = vmax.f32 %v16860_v12, 0.0 }
 0xa52   :  { %v16863_v44 = vpop.f32.mrf.mxu1 }
 0xa53   :  { %v16864_v62 = vadd.f32 %v16863_v44, %v16821_v32  ;;  %v16877_v9 = vmax.f32 %v16862_v61, 0.0 }
 0xa54   :  { %v16865_v54 = vpop.f32.mrf.mxu1 }
 0xa55   :  { %v16866_v37 = vadd.f32 %v16865_v54, %v16823_v63  ;;  %v16886_v19 = vmax.f32 %v16864_v62, 0.0 }
 0xa57   :  { %v16887_v59 = vmax.f32 %v16866_v37, 0.0  ;;  %v16896_v5 = vpack.c.bf16 %v16886_v19, %v16876_v46 }
 0xa59   :  { %v16897_v52 = vpack.c.bf16 %v16887_v59, %v16877_v9 }
 0xa5b   :  { %17741 = vmatprep.mubr.bf16.mxu0 %v16897_v52 }
 0xa5c   :  { %17742 = vmatmul.mubr.bf16.vlgmr.msra.gmra.mxu0 %v16896_v5 }
 0xa6e   :  { %v20142_v42 = vpop.f32.mrf.mxu1 }
 0xa70   :  { %v20143_v11 = vpop.f32.mrf.mxu1 }
 0xa71   :  { %v20144_v18 = vadd.f32 %v20143_v11, %v20142_v42 }
 0xa72   :  { %v20145_v24 = vpop.f32.mrf.mxu1 }
 0xa73   :  { %v17621_v0 = vadd.f32 %v20144_v18, %v17580_v2 }
 0xa74   :  { %v20146_v48 = vpop.f32.mrf.mxu1 }
 0xa75   :  { %v20147_v8 = vadd.f32 %v20146_v48, %v20145_v24  ;;  %v17662_v41 = vadd.f32 %v20166_v23, %v17621_v0 }
 0xa77   :  { %v17624_v47 = vadd.f32 %v20147_v8, %v17583_v53 }
 0xa79   :  { %v17665_v36 = vadd.f32 %v20169_v40, %v17624_v47 }
 0xa8e   :  { %v20186_v31 = vpop.f32.mrf.mxu1 }
 0xa90   :  { %v20187_v30 = vpop.f32.mrf.mxu1 }
 0xa91   :  { %v20188_v22 = vadd.f32 %v20187_v30, %v20186_v31 }
 0xa92   :  { %v20189_v28 = vpop.f32.mrf.mxu1 }
 0xa93   :  { %v17703_v60 = vadd.f32 %v20188_v22, %v17662_v41 }
 0xa94   :  { %v20190_v51 = vpop.f32.mrf.mxu1 }
 0xa95   :  { %v20191_v57 = vadd.f32 %v20190_v51, %v20189_v28 }
 0xa97   :  { %v17706_v10 = vadd.f32 %v20191_v57, %v17665_v36 }
 0xb1c   :  { %v20208_v16 = vpop.f32.mrf.mxu0 }
 0xb1e   :  { %v20209_v35 = vpop.f32.mrf.mxu0 }
 0xb1f   :  { %v20210_v43 = vadd.f32 %v20209_v35, %v20208_v16 }
 0xb20   :  { %v20211_v6 = vpop.f32.mrf.mxu0 }
 0xb21   :  { %v17744_v7 = vadd.f32 %v20210_v43, %v17703_v60 }
 0xb22   :  { %v20212_v29 = vpop.f32.mrf.mxu0 }
 0xb23   :  { %v17750_v45 = vmax.f32 %v17744_v7, 0.0  ;;  %v20213_v27 = vadd.f32 %v20212_v29, %v20211_v6 }
 0xb25   :  { %17752 = vst [vmem:[#allocation17] sm:$0xff] %v17750_v45  ;;  %v17747_v25 = vadd.f32 %v20213_v27, %v17706_v10 }
 0xb27   :  { %v17751_v15 = vmax.f32 %v17747_v25, 0.0 }
 0xb29   :  { %17753 = vst [vmem:[#allocation17 + $0x8] sm:$0xff] %v17751_v15 }
 0xb2a   :  { %23870 = shalt.err (!%p23867_p7)
}
 0xb2b   :  { %s23907_s11 = smov 128   ;;  %s23908_s5 = smov 8  }
 0xb2c   :  { %17765 = dma.vmem_to_hbm [thread:$0]  %s17760_s8, 256, %s24699_s9, [#allocation4], %s23907_s11, %s23907_s11, %s23908_s5  }
 0xb2d   :  { %23889 = dma.done.wait [#allocation4], 256  }
 0xb2e   :  { %23890 = vsyncadd [#allocation4], 4294967040 }
 0xb2f   :  { %17769 = vsyncpa [#allocation3], 1 }
 0xb30   :  { %17770 = vsyncpa [#allocation6], 1 }
 0xb31   :  { %17771 = vsyncpa [#allocation9], 1 }
 0xb32   :  { %17772 = vsyncpa [#allocation12], 1 }
 0xb33   :  { %17773 = vsyncpa [#allocation15], 1 }
 0xb34   :  { %17774 = vsyncpa [#allocation4], 1 }

</bundles_post_ra>
